<compile_context>
chip_gen: v7x
topology: tpu7x:2x2x1
jax: 0.10.0
libtpu: 0.0.40
codegen_flags: <defaults>
</compile_context>

<pallas_src>
import jax
import jax.numpy as jnp
from jax.experimental import pallas as pl
from jax.experimental.pallas import tpu as pltpu


# --------------------------------------------------------------------------
# Fused per-layer kernel builder
# --------------------------------------------------------------------------
def _make_layer_kernel(H, W, Cin, Cmid, Cout, pool, compute_dtype):
    Wp = W + 2                       # padded width
    P = (H + 2) * Wp                 # padded-flat spatial size
    lo = Wp + 1                      # flat index of interior pixel (1, 1)
    L = (H - 1) * Wp + W             # window covering first..last interior pixel
    Ho, Wo = H // 2, W // 2
    Wpo = Wo + 2
    P_out = (Ho + 2) * Wpo if pool else P

    def _two_convs(x_ref, w1_ref, b1_ref, w2_ref, b2_ref, mask_ref, buf1):
        # ---- conv1 (9 shift-accumulate MXU matmuls) + bias + ReLU ----
        acc1 = jnp.zeros((L, Cmid), jnp.float32)
        for dy in range(3):
            for dx in range(3):
                s = (dy - 1) * Wp + (dx - 1)
                tap = x_ref[pl.ds(lo + s, L), :]                  # (L, Cin)
                acc1 = acc1 + jnp.dot(tap, w1_ref[dy * 3 + dx],
                                      preferred_element_type=jnp.float32)
        y1 = jnp.maximum(acc1 + b1_ref[...], 0.0) * mask_ref[...]  # mask kills pad cols
        # padded VMEM buffer for conv2: border strips must be zero (conv2's padding)
        buf1[pl.ds(0, lo), :] = jnp.zeros((lo, Cmid), compute_dtype)
        buf1[pl.ds(lo + L, Wp + 1), :] = jnp.zeros((Wp + 1, Cmid), compute_dtype)
        buf1[pl.ds(lo, L), :] = y1.astype(compute_dtype)

        # ---- conv2 + bias + ReLU ----
        acc2 = jnp.zeros((L, Cout), jnp.float32)
        for dy in range(3):
            for dx in range(3):
                s = (dy - 1) * Wp + (dx - 1)
                tap = buf1[pl.ds(lo + s, L), :]                   # (L, Cmid)
                acc2 = acc2 + jnp.dot(tap, w2_ref[dy * 3 + dx],
                                      preferred_element_type=jnp.float32)
        return jnp.maximum(acc2 + b2_ref[...], 0.0)               # (L, Cout) f32

    if pool:
        def kernel(x_ref, w1_ref, b1_ref, w2_ref, b2_ref, mask_ref,
                   sel_e_ref, sel_o_ref, o_ref, buf1, buf2):
            y2 = _two_convs(x_ref, w1_ref, b1_ref, w2_ref, b2_ref, mask_ref, buf1)
            buf2[...] = y2
            sel_e = sel_e_ref[...]
            sel_o = sel_o_ref[...]
            # output is the next layer's padded-flat input: zero ring + pooled interior
            o_ref[...] = jnp.zeros((P_out, Cout), compute_dtype)
            for ho in range(Ho):
                base = 2 * ho * Wp
                row_a = buf2[pl.ds(base, W), :]                   # conv2 row 2*ho
                row_b = buf2[pl.ds(base + Wp, W), :]              # conv2 row 2*ho + 1
                vmax = jnp.maximum(row_a, row_b)                  # (W, Cout)
                even = jnp.dot(sel_e, vmax, preferred_element_type=jnp.float32)
                odd = jnp.dot(sel_o, vmax, preferred_element_type=jnp.float32)
                pooled = jnp.maximum(even, odd)                   # (Wo, Cout)
                o_ref[pl.ds((ho + 1) * Wpo + 1, Wo), :] = pooled.astype(compute_dtype)
    else:
        def kernel(x_ref, w1_ref, b1_ref, w2_ref, b2_ref, mask_ref, o_ref, buf1):
            y2 = _two_convs(x_ref, w1_ref, b1_ref, w2_ref, b2_ref, mask_ref, buf1)
            # keep the padded-flat contract (zero ring, masked interior)
            o_ref[pl.ds(0, lo), :] = jnp.zeros((lo, Cout), compute_dtype)
            o_ref[pl.ds(lo + L, Wp + 1), :] = jnp.zeros((Wp + 1, Cout), compute_dtype)
            o_ref[pl.ds(lo, L), :] = (y2 * mask_ref[...]).astype(compute_dtype)

    return kernel, P, P_out, L


# --------------------------------------------------------------------------
# Per-layer wrapper (one pallas_call per VGG layer)
# --------------------------------------------------------------------------
def fused_vgg_layer(x_flat, H, W, layer_params, pool, compute_dtype):
    """One VGG layer (conv+ReLU, conv+ReLU, optional 2x2 maxpool) as one pallas_call.

    x_flat: (N, (H+2)*(W+2), Cin) padded-flat NHWC activation with zero borders.
    Returns (y_flat, H_out, W_out) in the same padded-flat format.
    """
    (w1, b1), (w2, b2) = layer_params
    N = x_flat.shape[0]
    Cmid, Cin = w1.shape[0], w1.shape[1]
    Cout = w2.shape[0]
    Wp = W + 2
    Ho, Wo = H // 2, W // 2

    kernel, P, P_out, L = _make_layer_kernel(H, W, Cin, Cmid, Cout, pool, compute_dtype)
    assert x_flat.shape == (N, P, Cin)

    # PyTorch weight (Cout, Cin, 3, 3) -> (dy, dx, Cin, Cout) -> (9, Cin, Cout); tap k = dy*3+dx
    w1_m = jnp.transpose(w1, (2, 3, 1, 0)).reshape(9, Cin, Cmid).astype(compute_dtype)
    w2_m = jnp.transpose(w2, (2, 3, 1, 0)).reshape(9, Cmid, Cout).astype(compute_dtype)
    b1_m = b1.reshape(1, Cmid).astype(jnp.float32)
    b2_m = b2.reshape(1, Cout).astype(jnp.float32)

    # interior mask over the accumulation window [lo, lo+L): zero at padded columns
    lo = Wp + 1
    col = (lo + jnp.arange(L)) % Wp
    mask = ((col >= 1) & (col <= W)).astype(jnp.float32)[:, None]          # (L, 1)

    inputs = [x_flat, w1_m, b1_m, w2_m, b2_m, mask]
    in_specs = [
        pl.BlockSpec((None, P, Cin), lambda n: (n, 0, 0)),
        pl.BlockSpec((9, Cin, Cmid), lambda n: (0, 0, 0)),
        pl.BlockSpec((1, Cmid), lambda n: (0, 0)),
        pl.BlockSpec((9, Cmid, Cout), lambda n: (0, 0, 0)),
        pl.BlockSpec((1, Cout), lambda n: (0, 0)),
        pl.BlockSpec((L, 1), lambda n: (0, 0)),
    ]
    scratch = [pltpu.VMEM((P, Cmid), compute_dtype)]
    if pool:
        wo_idx = 2 * jnp.arange(Wo)[:, None]
        w_idx = jnp.arange(W)[None, :]
        sel_e = (w_idx == wo_idx).astype(jnp.float32)                      # (Wo, W)
        sel_o = (w_idx == wo_idx + 1).astype(jnp.float32)
        inputs += [sel_e, sel_o]
        in_specs += [pl.BlockSpec((Wo, W), lambda n: (0, 0)),
                     pl.BlockSpec((Wo, W), lambda n: (0, 0))]
        scratch.append(pltpu.VMEM((L, Cout), jnp.float32))

    itemsize = jnp.dtype(compute_dtype).itemsize
    flops = 18 * N * L * (Cin * Cmid + Cmid * Cout)
    if pool:
        flops += 4 * N * Ho * W * Wo * Cout
    bytes_accessed = itemsize * (N * P * Cin + N * P_out * Cout
                                 + 9 * (Cin * Cmid + Cmid * Cout)) + 4 * (Cmid + Cout + L)

    out = pl.pallas_call(
        kernel,
        out_shape=jax.ShapeDtypeStruct((N, P_out, Cout), compute_dtype),
        grid=(N,),
        in_specs=in_specs,
        out_specs=pl.BlockSpec((None, P_out, Cout), lambda n: (n, 0, 0)),
        scratch_shapes=scratch,
        compiler_params=pltpu.CompilerParams(
            dimension_semantics=("parallel",),
            vmem_limit_bytes=64 * 1024 * 1024),
        cost_estimate=pl.CostEstimate(flops=flops, transcendentals=0,
                                      bytes_accessed=bytes_accessed),
    )(*inputs)

    if pool:
        return out, Ho, Wo
    return out, H, W


# --------------------------------------------------------------------------
# ParametricVGG forward (normalization_fn = Identity, non_linearity = ReLU, padding=1)
# --------------------------------------------------------------------------
def parametric_vgg_forward(x_nchw, params, use_max_pooling=True,
                           compute_dtype=jnp.float32):
    """Matches ParametricVGG.forward (padding=1, Identity norm, ReLU, maxpool between layers)."""
    x = jnp.transpose(x_nchw, (0, 2, 3, 1))                   # NCHW -> NHWC
    N, H, W, C = x.shape
    xp = jnp.pad(x, ((0, 0), (1, 1), (1, 1), (0, 0)))
    x_flat = xp.reshape(N, (H + 2) * (W + 2), C).astype(compute_dtype)

    n_layers = len(params)
    for li, layer in enumerate(params):
        pool = use_max_pooling and li < n_layers - 1          # no pool after last layer
        x_flat, H, W = fused_vgg_layer(x_flat, H, W, layer, pool, compute_dtype)

    C = x_flat.shape[-1]
    out = x_flat.reshape(N, H + 2, W + 2, C)[:, 1:H + 1, 1:W + 1, :]
    return jnp.transpose(out, (0, 3, 1, 2)).astype(x_nchw.dtype)   # NHWC -> NCHW


def make_vgg_params(key, input_num_channels, channels):
    """Deterministic parameter init.  Returns [layer][block] -> (w_oihw, b)."""
    chans = (input_num_channels,) + tuple(channels)
    params = []
    for i in range(1, len(chans)):
        layer = []
        for (ci, co) in ((chans[i - 1], chans[i]), (chans[i], chans[i])):
            key, kw, kb = jax.random.split(key, 3)
            w = jax.random.normal(kw, (co, ci, 3, 3), jnp.float32) * (1.0 / jnp.sqrt(9.0 * ci))
            b = jax.random.normal(kb, (co,), jnp.float32) * 0.01
            layer.append((w, b))
        params.append(layer)
    return params


# --------------------------------------------------------------------------
# Pure-JAX reference (sanity check only)
# --------------------------------------------------------------------------
def reference_forward(x_nchw, params, use_max_pooling=True, compute_dtype=jnp.float32):
    x = jnp.transpose(x_nchw, (0, 2, 3, 1)).astype(jnp.float32)
    n_layers = len(params)
    for li, layer in enumerate(params):
        for (w, b) in layer:
            w_hwio = jnp.transpose(w, (2, 3, 1, 0)).astype(compute_dtype)
            y = jax.lax.conv_general_dilated(
                x.astype(compute_dtype), w_hwio,
                window_strides=(1, 1), padding=((1, 1), (1, 1)),
                dimension_numbers=("NHWC", "HWIO", "NHWC"),
                preferred_element_type=jnp.float32,
                precision=jax.lax.Precision.HIGHEST)
            x = jnp.maximum(y + b.astype(jnp.float32), 0.0)
        if use_max_pooling and li < n_layers - 1:
            x = jax.lax.reduce_window(x, -jnp.inf, jax.lax.max,
                                      (1, 2, 2, 1), (1, 2, 2, 1), "VALID")
    return jnp.transpose(x, (0, 3, 1, 2))


# --------------------------------------------------------------------------
if __name__ == "__main__":
    key = jax.random.PRNGKey(0)
    k_x, k_p = jax.random.split(key)

    # small config consistent with the module: input_num_channels=4, channels=(8,8,16,16)
    input_num_channels = 4
    channels = (8, 8, 16, 16)
    x = jax.random.normal(k_x, (2, input_num_channels, 16, 16), jnp.float32)  # NCHW
    params = make_vgg_params(k_p, input_num_channels, channels)

    fwd = jax.jit(parametric_vgg_forward,
                  static_argnames=("use_max_pooling", "compute_dtype"))

    # float32 path: strict check against the f32 reference
    out = jax.block_until_ready(fwd(x, params, use_max_pooling=True,
                                    compute_dtype=jnp.float32))
    ref = jax.block_until_ready(reference_forward(x, params, True, jnp.float32))
    assert out.shape == (2, channels[-1], 2, 2), out.shape
    assert jnp.allclose(out, ref, atol=1e-3, rtol=1e-3), float(jnp.max(jnp.abs(out - ref)))

    # bf16 MXU path (halves HBM traffic): check against a bf16-operand reference
    out_bf = jax.block_until_ready(fwd(x, params, use_max_pooling=True,
                                       compute_dtype=jnp.bfloat16))
    ref_bf = jax.block_until_ready(reference_forward(x, params, True, jnp.bfloat16))
    assert jnp.allclose(out_bf.astype(jnp.float32), ref_bf, atol=5e-2, rtol=5e-2), \
        float(jnp.max(jnp.abs(out_bf.astype(jnp.float32) - ref_bf)))

    print("KERNEL_OK")
</pallas_src>

<mosaic_0001>
module attributes {stable_mosaic.version = 11 : i64} {
  func.func @kernel(%arg0: i32, %arg1: memref<1x324x4xf32, #tpu.memory_space<vmem>>, %arg2: memref<9x4x8xf32, #tpu.memory_space<vmem>>, %arg3: memref<1x8xf32, #tpu.memory_space<vmem>>, %arg4: memref<9x8x8xf32, #tpu.memory_space<vmem>>, %arg5: memref<1x8xf32, #tpu.memory_space<vmem>>, %arg6: memref<286x1xf32, #tpu.memory_space<vmem>>, %arg7: memref<8x16xf32, #tpu.memory_space<vmem>>, %arg8: memref<8x16xf32, #tpu.memory_space<vmem>>, %arg9: memref<1x100x8xf32, #tpu.memory_space<vmem>>, %arg10: memref<324x8xf32, #tpu.memory_space<vmem>>, %arg11: memref<286x8xf32, #tpu.memory_space<vmem>>) attributes {dimension_semantics = [#tpu.dimension_semantics<parallel>], iteration_bounds = array<i64: 2>, scalar_prefetch = 0 : i64, scratch_operands = 2 : i64, tpu.core_type = #tpu.core_type<tc>, window_params = [{transform_indices = @transform_0, window_bounds = array<i64: 1, 324, 4>}, {pipeline_mode = #tpu.pipeline_mode<synchronous>, transform_indices = @transform_1, window_bounds = array<i64: 9, 4, 8>}, {pipeline_mode = #tpu.pipeline_mode<synchronous>, transform_indices = @transform_2, window_bounds = array<i64: 1, 8>}, {pipeline_mode = #tpu.pipeline_mode<synchronous>, transform_indices = @transform_3, window_bounds = array<i64: 9, 8, 8>}, {pipeline_mode = #tpu.pipeline_mode<synchronous>, transform_indices = @transform_4, window_bounds = array<i64: 1, 8>}, {pipeline_mode = #tpu.pipeline_mode<synchronous>, transform_indices = @transform_5, window_bounds = array<i64: 286, 1>}, {pipeline_mode = #tpu.pipeline_mode<synchronous>, transform_indices = @transform_6, window_bounds = array<i64: 8, 16>}, {pipeline_mode = #tpu.pipeline_mode<synchronous>, transform_indices = @transform_7, window_bounds = array<i64: 8, 16>}, {transform_indices = @transform_8, window_bounds = array<i64: 1, 100, 8>}]} {
    %cst = arith.constant 0.000000e+00 : f32
    %0 = vector.broadcast %cst : f32 to vector<286x8xf32>
    %c0 = arith.constant 0 : index
    %c0_0 = arith.constant 0 : index
    %c0_1 = arith.constant 0 : index
    %1 = vector.load %arg1[%c0, %c0_0, %c0_1] : memref<1x324x4xf32, #tpu.memory_space<vmem>>, vector<1x286x4xf32>
    %2 = vector.shape_cast %1 : vector<1x286x4xf32> to vector<286x4xf32>
    %c0_2 = arith.constant 0 : index
    %c0_3 = arith.constant 0 : index
    %c0_4 = arith.constant 0 : index
    %3 = vector.load %arg2[%c0_2, %c0_3, %c0_4] : memref<9x4x8xf32, #tpu.memory_space<vmem>>, vector<1x4x8xf32>
    %4 = vector.shape_cast %3 : vector<1x4x8xf32> to vector<4x8xf32>
    %cst_5 = arith.constant dense<0.000000e+00> : vector<286x8xf32>
    %5 = tpu.matmul %2, %4, %cst_5 {dimension_numbers = #tpu.dot_dimension_numbers<[1], [0], [0], [1], [0, 0, 1, 1], [], []>} : vector<286x4xf32>, vector<4x8xf32>, vector<286x8xf32> -> vector<286x8xf32>
    %6 = arith.addf %0, %5 : vector<286x8xf32>
    %c0_6 = arith.constant 0 : index
    %c1 = arith.constant 1 : index
    %c0_7 = arith.constant 0 : index
    %7 = vector.load %arg1[%c0_6, %c1, %c0_7] : memref<1x324x4xf32, #tpu.memory_space<vmem>>, vector<1x286x4xf32>
    %8 = vector.shape_cast %7 : vector<1x286x4xf32> to vector<286x4xf32>
    %c1_8 = arith.constant 1 : index
    %c0_9 = arith.constant 0 : index
    %c0_10 = arith.constant 0 : index
    %9 = vector.load %arg2[%c1_8, %c0_9, %c0_10] : memref<9x4x8xf32, #tpu.memory_space<vmem>>, vector<1x4x8xf32>
    %10 = vector.shape_cast %9 : vector<1x4x8xf32> to vector<4x8xf32>
    %cst_11 = arith.constant dense<0.000000e+00> : vector<286x8xf32>
    %11 = tpu.matmul %8, %10, %cst_11 {dimension_numbers = #tpu.dot_dimension_numbers<[1], [0], [0], [1], [0, 0, 1, 1], [], []>} : vector<286x4xf32>, vector<4x8xf32>, vector<286x8xf32> -> vector<286x8xf32>
    %12 = arith.addf %6, %11 : vector<286x8xf32>
    %c0_12 = arith.constant 0 : index
    %c2 = arith.constant 2 : index
    %c0_13 = arith.constant 0 : index
    %13 = vector.load %arg1[%c0_12, %c2, %c0_13] : memref<1x324x4xf32, #tpu.memory_space<vmem>>, vector<1x286x4xf32>
    %14 = vector.shape_cast %13 : vector<1x286x4xf32> to vector<286x4xf32>
    %c2_14 = arith.constant 2 : index
    %c0_15 = arith.constant 0 : index
    %c0_16 = arith.constant 0 : index
    %15 = vector.load %arg2[%c2_14, %c0_15, %c0_16] : memref<9x4x8xf32, #tpu.memory_space<vmem>>, vector<1x4x8xf32>
    %16 = vector.shape_cast %15 : vector<1x4x8xf32> to vector<4x8xf32>
    %cst_17 = arith.constant dense<0.000000e+00> : vector<286x8xf32>
    %17 = tpu.matmul %14, %16, %cst_17 {dimension_numbers = #tpu.dot_dimension_numbers<[1], [0], [0], [1], [0, 0, 1, 1], [], []>} : vector<286x4xf32>, vector<4x8xf32>, vector<286x8xf32> -> vector<286x8xf32>
    %18 = arith.addf %12, %17 : vector<286x8xf32>
    %c0_18 = arith.constant 0 : index
    %c18 = arith.constant 18 : index
    %c0_19 = arith.constant 0 : index
    %19 = vector.load %arg1[%c0_18, %c18, %c0_19] : memref<1x324x4xf32, #tpu.memory_space<vmem>>, vector<1x286x4xf32>
    %20 = vector.shape_cast %19 : vector<1x286x4xf32> to vector<286x4xf32>
    %c3 = arith.constant 3 : index
    %c0_20 = arith.constant 0 : index
    %c0_21 = arith.constant 0 : index
    %21 = vector.load %arg2[%c3, %c0_20, %c0_21] : memref<9x4x8xf32, #tpu.memory_space<vmem>>, vector<1x4x8xf32>
    %22 = vector.shape_cast %21 : vector<1x4x8xf32> to vector<4x8xf32>
    %cst_22 = arith.constant dense<0.000000e+00> : vector<286x8xf32>
    %23 = tpu.matmul %20, %22, %cst_22 {dimension_numbers = #tpu.dot_dimension_numbers<[1], [0], [0], [1], [0, 0, 1, 1], [], []>} : vector<286x4xf32>, vector<4x8xf32>, vector<286x8xf32> -> vector<286x8xf32>
    %24 = arith.addf %18, %23 : vector<286x8xf32>
    %c0_23 = arith.constant 0 : index
    %c19 = arith.constant 19 : index
    %c0_24 = arith.constant 0 : index
    %25 = vector.load %arg1[%c0_23, %c19, %c0_24] : memref<1x324x4xf32, #tpu.memory_space<vmem>>, vector<1x286x4xf32>
    %26 = vector.shape_cast %25 : vector<1x286x4xf32> to vector<286x4xf32>
    %c4 = arith.constant 4 : index
    %c0_25 = arith.constant 0 : index
    %c0_26 = arith.constant 0 : index
    %27 = vector.load %arg2[%c4, %c0_25, %c0_26] : memref<9x4x8xf32, #tpu.memory_space<vmem>>, vector<1x4x8xf32>
    %28 = vector.shape_cast %27 : vector<1x4x8xf32> to vector<4x8xf32>
    %cst_27 = arith.constant dense<0.000000e+00> : vector<286x8xf32>
    %29 = tpu.matmul %26, %28, %cst_27 {dimension_numbers = #tpu.dot_dimension_numbers<[1], [0], [0], [1], [0, 0, 1, 1], [], []>} : vector<286x4xf32>, vector<4x8xf32>, vector<286x8xf32> -> vector<286x8xf32>
    %30 = arith.addf %24, %29 : vector<286x8xf32>
    %c0_28 = arith.constant 0 : index
    %c20 = arith.constant 20 : index
    %c0_29 = arith.constant 0 : index
    %31 = vector.load %arg1[%c0_28, %c20, %c0_29] : memref<1x324x4xf32, #tpu.memory_space<vmem>>, vector<1x286x4xf32>
    %32 = vector.shape_cast %31 : vector<1x286x4xf32> to vector<286x4xf32>
    %c5 = arith.constant 5 : index
    %c0_30 = arith.constant 0 : index
    %c0_31 = arith.constant 0 : index
    %33 = vector.load %arg2[%c5, %c0_30, %c0_31] : memref<9x4x8xf32, #tpu.memory_space<vmem>>, vector<1x4x8xf32>
    %34 = vector.shape_cast %33 : vector<1x4x8xf32> to vector<4x8xf32>
    %cst_32 = arith.constant dense<0.000000e+00> : vector<286x8xf32>
    %35 = tpu.matmul %32, %34, %cst_32 {dimension_numbers = #tpu.dot_dimension_numbers<[1], [0], [0], [1], [0, 0, 1, 1], [], []>} : vector<286x4xf32>, vector<4x8xf32>, vector<286x8xf32> -> vector<286x8xf32>
    %36 = arith.addf %30, %35 : vector<286x8xf32>
    %c0_33 = arith.constant 0 : index
    %c36 = arith.constant 36 : index
    %c0_34 = arith.constant 0 : index
    %37 = vector.load %arg1[%c0_33, %c36, %c0_34] : memref<1x324x4xf32, #tpu.memory_space<vmem>>, vector<1x286x4xf32>
    %38 = vector.shape_cast %37 : vector<1x286x4xf32> to vector<286x4xf32>
    %c6 = arith.constant 6 : index
    %c0_35 = arith.constant 0 : index
    %c0_36 = arith.constant 0 : index
    %39 = vector.load %arg2[%c6, %c0_35, %c0_36] : memref<9x4x8xf32, #tpu.memory_space<vmem>>, vector<1x4x8xf32>
    %40 = vector.shape_cast %39 : vector<1x4x8xf32> to vector<4x8xf32>
    %cst_37 = arith.constant dense<0.000000e+00> : vector<286x8xf32>
    %41 = tpu.matmul %38, %40, %cst_37 {dimension_numbers = #tpu.dot_dimension_numbers<[1], [0], [0], [1], [0, 0, 1, 1], [], []>} : vector<286x4xf32>, vector<4x8xf32>, vector<286x8xf32> -> vector<286x8xf32>
    %42 = arith.addf %36, %41 : vector<286x8xf32>
    %c0_38 = arith.constant 0 : index
    %c37 = arith.constant 37 : index
    %c0_39 = arith.constant 0 : index
    %43 = vector.load %arg1[%c0_38, %c37, %c0_39] : memref<1x324x4xf32, #tpu.memory_space<vmem>>, vector<1x286x4xf32>
    %44 = vector.shape_cast %43 : vector<1x286x4xf32> to vector<286x4xf32>
    %c7 = arith.constant 7 : index
    %c0_40 = arith.constant 0 : index
    %c0_41 = arith.constant 0 : index
    %45 = vector.load %arg2[%c7, %c0_40, %c0_41] : memref<9x4x8xf32, #tpu.memory_space<vmem>>, vector<1x4x8xf32>
    %46 = vector.shape_cast %45 : vector<1x4x8xf32> to vector<4x8xf32>
    %cst_42 = arith.constant dense<0.000000e+00> : vector<286x8xf32>
    %47 = tpu.matmul %44, %46, %cst_42 {dimension_numbers = #tpu.dot_dimension_numbers<[1], [0], [0], [1], [0, 0, 1, 1], [], []>} : vector<286x4xf32>, vector<4x8xf32>, vector<286x8xf32> -> vector<286x8xf32>
    %48 = arith.addf %42, %47 : vector<286x8xf32>
    %c0_43 = arith.constant 0 : index
    %c38 = arith.constant 38 : index
    %c0_44 = arith.constant 0 : index
    %49 = vector.load %arg1[%c0_43, %c38, %c0_44] : memref<1x324x4xf32, #tpu.memory_space<vmem>>, vector<1x286x4xf32>
    %50 = vector.shape_cast %49 : vector<1x286x4xf32> to vector<286x4xf32>
    %c8 = arith.constant 8 : index
    %c0_45 = arith.constant 0 : index
    %c0_46 = arith.constant 0 : index
    %51 = vector.load %arg2[%c8, %c0_45, %c0_46] : memref<9x4x8xf32, #tpu.memory_space<vmem>>, vector<1x4x8xf32>
    %52 = vector.shape_cast %51 : vector<1x4x8xf32> to vector<4x8xf32>
    %cst_47 = arith.constant dense<0.000000e+00> : vector<286x8xf32>
    %53 = tpu.matmul %50, %52, %cst_47 {dimension_numbers = #tpu.dot_dimension_numbers<[1], [0], [0], [1], [0, 0, 1, 1], [], []>} : vector<286x4xf32>, vector<4x8xf32>, vector<286x8xf32> -> vector<286x8xf32>
    %54 = arith.addf %48, %53 : vector<286x8xf32>
    %c0_48 = arith.constant 0 : index
    %c0_49 = arith.constant 0 : index
    %55 = vector.load %arg3[%c0_48, %c0_49] : memref<1x8xf32, #tpu.memory_space<vmem>>, vector<1x8xf32>
    %56 = vector.broadcast %55 : vector<1x8xf32> to vector<286x8xf32>
    %57 = arith.addf %54, %56 : vector<286x8xf32>
    %cst_50 = arith.constant 0.000000e+00 : f32
    %58 = vector.broadcast %cst_50 : f32 to vector<286x8xf32>
    %59 = arith.maximumf %57, %58 : vector<286x8xf32>
    %c0_51 = arith.constant 0 : index
    %c0_52 = arith.constant 0 : index
    %60 = vector.load %arg6[%c0_51, %c0_52] : memref<286x1xf32, #tpu.memory_space<vmem>>, vector<286x1xf32>
    %61 = vector.broadcast %60 : vector<286x1xf32> to vector<286x8xf32>
    %62 = arith.mulf %59, %61 : vector<286x8xf32>
    %cst_53 = arith.constant 0.000000e+00 : f32
    %63 = vector.broadcast %cst_53 : f32 to vector<19x8xf32>
    %c0_54 = arith.constant 0 : index
    %c0_55 = arith.constant 0 : index
    %64 = vector.load %arg10[%c0_54, %c0_55] : memref<324x8xf32, #tpu.memory_space<vmem>>, vector<19x8xf32>
    tpu.vector_store %arg10[%c0_54, %c0_55], %63 {strides = array<i32>} : memref<324x8xf32, #tpu.memory_space<vmem>>, vector<19x8xf32>,
    %cst_56 = arith.constant 0.000000e+00 : f32
    %65 = vector.broadcast %cst_56 : f32 to vector<19x8xf32>
    %c305 = arith.constant 305 : index
    %c0_57 = arith.constant 0 : index
    %66 = vector.load %arg10[%c305, %c0_57] : memref<324x8xf32, #tpu.memory_space<vmem>>, vector<19x8xf32>
    tpu.vector_store %arg10[%c305, %c0_57], %65 {strides = array<i32>} : memref<324x8xf32, #tpu.memory_space<vmem>>, vector<19x8xf32>,
    %c19_58 = arith.constant 19 : index
    %c0_59 = arith.constant 0 : index
    %67 = vector.load %arg10[%c19_58, %c0_59] : memref<324x8xf32, #tpu.memory_space<vmem>>, vector<286x8xf32>
    tpu.vector_store %arg10[%c19_58, %c0_59], %62 {strides = array<i32>} : memref<324x8xf32, #tpu.memory_space<vmem>>, vector<286x8xf32>,
    %cst_60 = arith.constant 0.000000e+00 : f32
    %68 = vector.broadcast %cst_60 : f32 to vector<286x8xf32>
    %c0_61 = arith.constant 0 : index
    %c0_62 = arith.constant 0 : index
    %69 = vector.load %arg10[%c0_61, %c0_62] : memref<324x8xf32, #tpu.memory_space<vmem>>, vector<286x8xf32>
    %c0_63 = arith.constant 0 : index
    %c0_64 = arith.constant 0 : index
    %c0_65 = arith.constant 0 : index
    %70 = vector.load %arg4[%c0_63, %c0_64, %c0_65] : memref<9x8x8xf32, #tpu.memory_space<vmem>>, vector<1x8x8xf32>
    %71 = vector.shape_cast %70 : vector<1x8x8xf32> to vector<8x8xf32>
    %cst_66 = arith.constant dense<0.000000e+00> : vector<286x8xf32>
    %72 = tpu.matmul %69, %71, %cst_66 {dimension_numbers = #tpu.dot_dimension_numbers<[1], [0], [0], [1], [0, 0, 1, 1], [], []>} : vector<286x8xf32>, vector<8x8xf32>, vector<286x8xf32> -> vector<286x8xf32>
    %73 = arith.addf %68, %72 : vector<286x8xf32>
    %c1_67 = arith.constant 1 : index
    %c0_68 = arith.constant 0 : index
    %74 = vector.load %arg10[%c1_67, %c0_68] : memref<324x8xf32, #tpu.memory_space<vmem>>, vector<286x8xf32>
    %c1_69 = arith.constant 1 : index
    %c0_70 = arith.constant 0 : index
    %c0_71 = arith.constant 0 : index
    %75 = vector.load %arg4[%c1_69, %c0_70, %c0_71] : memref<9x8x8xf32, #tpu.memory_space<vmem>>, vector<1x8x8xf32>
    %76 = vector.shape_cast %75 : vector<1x8x8xf32> to vector<8x8xf32>
    %cst_72 = arith.constant dense<0.000000e+00> : vector<286x8xf32>
    %77 = tpu.matmul %74, %76, %cst_72 {dimension_numbers = #tpu.dot_dimension_numbers<[1], [0], [0], [1], [0, 0, 1, 1], [], []>} : vector<286x8xf32>, vector<8x8xf32>, vector<286x8xf32> -> vector<286x8xf32>
    %78 = arith.addf %73, %77 : vector<286x8xf32>
    %c2_73 = arith.constant 2 : index
    %c0_74 = arith.constant 0 : index
    %79 = vector.load %arg10[%c2_73, %c0_74] : memref<324x8xf32, #tpu.memory_space<vmem>>, vector<286x8xf32>
    %c2_75 = arith.constant 2 : index
    %c0_76 = arith.constant 0 : index
    %c0_77 = arith.constant 0 : index
    %80 = vector.load %arg4[%c2_75, %c0_76, %c0_77] : memref<9x8x8xf32, #tpu.memory_space<vmem>>, vector<1x8x8xf32>
    %81 = vector.shape_cast %80 : vector<1x8x8xf32> to vector<8x8xf32>
    %cst_78 = arith.constant dense<0.000000e+00> : vector<286x8xf32>
    %82 = tpu.matmul %79, %81, %cst_78 {dimension_numbers = #tpu.dot_dimension_numbers<[1], [0], [0], [1], [0, 0, 1, 1], [], []>} : vector<286x8xf32>, vector<8x8xf32>, vector<286x8xf32> -> vector<286x8xf32>
    %83 = arith.addf %78, %82 : vector<286x8xf32>
    %c18_79 = arith.constant 18 : index
    %c0_80 = arith.constant 0 : index
    %84 = vector.load %arg10[%c18_79, %c0_80] : memref<324x8xf32, #tpu.memory_space<vmem>>, vector<286x8xf32>
    %c3_81 = arith.constant 3 : index
    %c0_82 = arith.constant 0 : index
    %c0_83 = arith.constant 0 : index
    %85 = vector.load %arg4[%c3_81, %c0_82, %c0_83] : memref<9x8x8xf32, #tpu.memory_space<vmem>>, vector<1x8x8xf32>
    %86 = vector.shape_cast %85 : vector<1x8x8xf32> to vector<8x8xf32>
    %cst_84 = arith.constant dense<0.000000e+00> : vector<286x8xf32>
    %87 = tpu.matmul %84, %86, %cst_84 {dimension_numbers = #tpu.dot_dimension_numbers<[1], [0], [0], [1], [0, 0, 1, 1], [], []>} : vector<286x8xf32>, vector<8x8xf32>, vector<286x8xf32> -> vector<286x8xf32>
    %88 = arith.addf %83, %87 : vector<286x8xf32>
    %c19_85 = arith.constant 19 : index
    %c0_86 = arith.constant 0 : index
    %89 = vector.load %arg10[%c19_85, %c0_86] : memref<324x8xf32, #tpu.memory_space<vmem>>, vector<286x8xf32>
    %c4_87 = arith.constant 4 : index
    %c0_88 = arith.constant 0 : index
    %c0_89 = arith.constant 0 : index
    %90 = vector.load %arg4[%c4_87, %c0_88, %c0_89] : memref<9x8x8xf32, #tpu.memory_space<vmem>>, vector<1x8x8xf32>
    %91 = vector.shape_cast %90 : vector<1x8x8xf32> to vector<8x8xf32>
    %cst_90 = arith.constant dense<0.000000e+00> : vector<286x8xf32>
    %92 = tpu.matmul %89, %91, %cst_90 {dimension_numbers = #tpu.dot_dimension_numbers<[1], [0], [0], [1], [0, 0, 1, 1], [], []>} : vector<286x8xf32>, vector<8x8xf32>, vector<286x8xf32> -> vector<286x8xf32>
    %93 = arith.addf %88, %92 : vector<286x8xf32>
    %c20_91 = arith.constant 20 : index
    %c0_92 = arith.constant 0 : index
    %94 = vector.load %arg10[%c20_91, %c0_92] : memref<324x8xf32, #tpu.memory_space<vmem>>, vector<286x8xf32>
    %c5_93 = arith.constant 5 : index
    %c0_94 = arith.constant 0 : index
    %c0_95 = arith.constant 0 : index
    %95 = vector.load %arg4[%c5_93, %c0_94, %c0_95] : memref<9x8x8xf32, #tpu.memory_space<vmem>>, vector<1x8x8xf32>
    %96 = vector.shape_cast %95 : vector<1x8x8xf32> to vector<8x8xf32>
    %cst_96 = arith.constant dense<0.000000e+00> : vector<286x8xf32>
    %97 = tpu.matmul %94, %96, %cst_96 {dimension_numbers = #tpu.dot_dimension_numbers<[1], [0], [0], [1], [0, 0, 1, 1], [], []>} : vector<286x8xf32>, vector<8x8xf32>, vector<286x8xf32> -> vector<286x8xf32>
    %98 = arith.addf %93, %97 : vector<286x8xf32>
    %c36_97 = arith.constant 36 : index
    %c0_98 = arith.constant 0 : index
    %99 = vector.load %arg10[%c36_97, %c0_98] : memref<324x8xf32, #tpu.memory_space<vmem>>, vector<286x8xf32>
    %c6_99 = arith.constant 6 : index
    %c0_100 = arith.constant 0 : index
    %c0_101 = arith.constant 0 : index
    %100 = vector.load %arg4[%c6_99, %c0_100, %c0_101] : memref<9x8x8xf32, #tpu.memory_space<vmem>>, vector<1x8x8xf32>
    %101 = vector.shape_cast %100 : vector<1x8x8xf32> to vector<8x8xf32>
    %cst_102 = arith.constant dense<0.000000e+00> : vector<286x8xf32>
    %102 = tpu.matmul %99, %101, %cst_102 {dimension_numbers = #tpu.dot_dimension_numbers<[1], [0], [0], [1], [0, 0, 1, 1], [], []>} : vector<286x8xf32>, vector<8x8xf32>, vector<286x8xf32> -> vector<286x8xf32>
    %103 = arith.addf %98, %102 : vector<286x8xf32>
    %c37_103 = arith.constant 37 : index
    %c0_104 = arith.constant 0 : index
    %104 = vector.load %arg10[%c37_103, %c0_104] : memref<324x8xf32, #tpu.memory_space<vmem>>, vector<286x8xf32>
    %c7_105 = arith.constant 7 : index
    %c0_106 = arith.constant 0 : index
    %c0_107 = arith.constant 0 : index
    %105 = vector.load %arg4[%c7_105, %c0_106, %c0_107] : memref<9x8x8xf32, #tpu.memory_space<vmem>>, vector<1x8x8xf32>
    %106 = vector.shape_cast %105 : vector<1x8x8xf32> to vector<8x8xf32>
    %cst_108 = arith.constant dense<0.000000e+00> : vector<286x8xf32>
    %107 = tpu.matmul %104, %106, %cst_108 {dimension_numbers = #tpu.dot_dimension_numbers<[1], [0], [0], [1], [0, 0, 1, 1], [], []>} : vector<286x8xf32>, vector<8x8xf32>, vector<286x8xf32> -> vector<286x8xf32>
    %108 = arith.addf %103, %107 : vector<286x8xf32>
    %c38_109 = arith.constant 38 : index
    %c0_110 = arith.constant 0 : index
    %109 = vector.load %arg10[%c38_109, %c0_110] : memref<324x8xf32, #tpu.memory_space<vmem>>, vector<286x8xf32>
    %c8_111 = arith.constant 8 : index
    %c0_112 = arith.constant 0 : index
    %c0_113 = arith.constant 0 : index
    %110 = vector.load %arg4[%c8_111, %c0_112, %c0_113] : memref<9x8x8xf32, #tpu.memory_space<vmem>>, vector<1x8x8xf32>
    %111 = vector.shape_cast %110 : vector<1x8x8xf32> to vector<8x8xf32>
    %cst_114 = arith.constant dense<0.000000e+00> : vector<286x8xf32>
    %112 = tpu.matmul %109, %111, %cst_114 {dimension_numbers = #tpu.dot_dimension_numbers<[1], [0], [0], [1], [0, 0, 1, 1], [], []>} : vector<286x8xf32>, vector<8x8xf32>, vector<286x8xf32> -> vector<286x8xf32>
    %113 = arith.addf %108, %112 : vector<286x8xf32>
    %c0_115 = arith.constant 0 : index
    %c0_116 = arith.constant 0 : index
    %114 = vector.load %arg5[%c0_115, %c0_116] : memref<1x8xf32, #tpu.memory_space<vmem>>, vector<1x8xf32>
    %115 = vector.broadcast %114 : vector<1x8xf32> to vector<286x8xf32>
    %116 = arith.addf %113, %115 : vector<286x8xf32>
    %cst_117 = arith.constant 0.000000e+00 : f32
    %117 = vector.broadcast %cst_117 : f32 to vector<286x8xf32>
    %118 = arith.maximumf %116, %117 : vector<286x8xf32>
    %c0_118 = arith.constant 0 : index
    %c0_119 = arith.constant 0 : index
    %119 = vector.load %arg11[%c0_118, %c0_119] : memref<286x8xf32, #tpu.memory_space<vmem>>, vector<286x8xf32>
    tpu.vector_store %arg11[%c0_118, %c0_119], %118 {strides = array<i32>} : memref<286x8xf32, #tpu.memory_space<vmem>>, vector<286x8xf32>,
    %c0_120 = arith.constant 0 : index
    %c0_121 = arith.constant 0 : index
    %120 = vector.load %arg7[%c0_120, %c0_121] : memref<8x16xf32, #tpu.memory_space<vmem>>, vector<8x16xf32>
    %c0_122 = arith.constant 0 : index
    %c0_123 = arith.constant 0 : index
    %121 = vector.load %arg8[%c0_122, %c0_123] : memref<8x16xf32, #tpu.memory_space<vmem>>, vector<8x16xf32>
    %cst_124 = arith.constant 0.000000e+00 : f32
    %122 = vector.broadcast %cst_124 : f32 to vector<100x8xf32>
    %c0_125 = arith.constant 0 : index
    %c0_126 = arith.constant 0 : index
    %c0_127 = arith.constant 0 : index
    %123 = vector.load %arg9[%c0_125, %c0_126, %c0_127] : memref<1x100x8xf32, #tpu.memory_space<vmem>>, vector<1x100x8xf32>
    %124 = vector.shape_cast %123 : vector<1x100x8xf32> to vector<100x8xf32>
    %125 = vector.shape_cast %122 : vector<100x8xf32> to vector<1x100x8xf32>
    tpu.vector_store %arg9[%c0_125, %c0_126, %c0_127], %125 {strides = array<i32>} : memref<1x100x8xf32, #tpu.memory_space<vmem>>, vector<1x100x8xf32>,
    %c0_128 = arith.constant 0 : index
    %c0_129 = arith.constant 0 : index
    %126 = vector.load %arg11[%c0_128, %c0_129] : memref<286x8xf32, #tpu.memory_space<vmem>>, vector<16x8xf32>
    %c18_130 = arith.constant 18 : index
    %c0_131 = arith.constant 0 : index
    %127 = vector.load %arg11[%c18_130, %c0_131] : memref<286x8xf32, #tpu.memory_space<vmem>>, vector<16x8xf32>
    %128 = arith.maximumf %126, %127 : vector<16x8xf32>
    %cst_132 = arith.constant dense<0.000000e+00> : vector<8x8xf32>
    %129 = tpu.matmul %120, %128, %cst_132 {dimension_numbers = #tpu.dot_dimension_numbers<[1], [0], [0], [1], [0, 0, 1, 1], [], []>} : vector<8x16xf32>, vector<16x8xf32>, vector<8x8xf32> -> vector<8x8xf32>
    %cst_133 = arith.constant dense<0.000000e+00> : vector<8x8xf32>
    %130 = tpu.matmul %121, %128, %cst_133 {dimension_numbers = #tpu.dot_dimension_numbers<[1], [0], [0], [1], [0, 0, 1, 1], [], []>} : vector<8x16xf32>, vector<16x8xf32>, vector<8x8xf32> -> vector<8x8xf32>
    %131 = arith.maximumf %129, %130 : vector<8x8xf32>
    %c0_134 = arith.constant 0 : index
    %c11 = arith.constant 11 : index
    %c0_135 = arith.constant 0 : index
    %132 = vector.load %arg9[%c0_134, %c11, %c0_135] : memref<1x100x8xf32, #tpu.memory_space<vmem>>, vector<1x8x8xf32>
    %133 = vector.shape_cast %132 : vector<1x8x8xf32> to vector<8x8xf32>
    %134 = vector.shape_cast %131 : vector<8x8xf32> to vector<1x8x8xf32>
    tpu.vector_store %arg9[%c0_134, %c11, %c0_135], %134 {strides = array<i32>} : memref<1x100x8xf32, #tpu.memory_space<vmem>>, vector<1x8x8xf32>,
    %c36_136 = arith.constant 36 : index
    %c0_137 = arith.constant 0 : index
    %135 = vector.load %arg11[%c36_136, %c0_137] : memref<286x8xf32, #tpu.memory_space<vmem>>, vector<16x8xf32>
    %c54 = arith.constant 54 : index
    %c0_138 = arith.constant 0 : index
    %136 = vector.load %arg11[%c54, %c0_138] : memref<286x8xf32, #tpu.memory_space<vmem>>, vector<16x8xf32>
    %137 = arith.maximumf %135, %136 : vector<16x8xf32>
    %cst_139 = arith.constant dense<0.000000e+00> : vector<8x8xf32>
    %138 = tpu.matmul %120, %137, %cst_139 {dimension_numbers = #tpu.dot_dimension_numbers<[1], [0], [0], [1], [0, 0, 1, 1], [], []>} : vector<8x16xf32>, vector<16x8xf32>, vector<8x8xf32> -> vector<8x8xf32>
    %cst_140 = arith.constant dense<0.000000e+00> : vector<8x8xf32>
    %139 = tpu.matmul %121, %137, %cst_140 {dimension_numbers = #tpu.dot_dimension_numbers<[1], [0], [0], [1], [0, 0, 1, 1], [], []>} : vector<8x16xf32>, vector<16x8xf32>, vector<8x8xf32> -> vector<8x8xf32>
    %140 = arith.maximumf %138, %139 : vector<8x8xf32>
    %c0_141 = arith.constant 0 : index
    %c21 = arith.constant 21 : index
    %c0_142 = arith.constant 0 : index
    %141 = vector.load %arg9[%c0_141, %c21, %c0_142] : memref<1x100x8xf32, #tpu.memory_space<vmem>>, vector<1x8x8xf32>
    %142 = vector.shape_cast %141 : vector<1x8x8xf32> to vector<8x8xf32>
    %143 = vector.shape_cast %140 : vector<8x8xf32> to vector<1x8x8xf32>
    tpu.vector_store %arg9[%c0_141, %c21, %c0_142], %143 {strides = array<i32>} : memref<1x100x8xf32, #tpu.memory_space<vmem>>, vector<1x8x8xf32>,
    %c72 = arith.constant 72 : index
    %c0_143 = arith.constant 0 : index
    %144 = vector.load %arg11[%c72, %c0_143] : memref<286x8xf32, #tpu.memory_space<vmem>>, vector<16x8xf32>
    %c90 = arith.constant 90 : index
    %c0_144 = arith.constant 0 : index
    %145 = vector.load %arg11[%c90, %c0_144] : memref<286x8xf32, #tpu.memory_space<vmem>>, vector<16x8xf32>
    %146 = arith.maximumf %144, %145 : vector<16x8xf32>
    %cst_145 = arith.constant dense<0.000000e+00> : vector<8x8xf32>
    %147 = tpu.matmul %120, %146, %cst_145 {dimension_numbers = #tpu.dot_dimension_numbers<[1], [0], [0], [1], [0, 0, 1, 1], [], []>} : vector<8x16xf32>, vector<16x8xf32>, vector<8x8xf32> -> vector<8x8xf32>
    %cst_146 = arith.constant dense<0.000000e+00> : vector<8x8xf32>
    %148 = tpu.matmul %121, %146, %cst_146 {dimension_numbers = #tpu.dot_dimension_numbers<[1], [0], [0], [1], [0, 0, 1, 1], [], []>} : vector<8x16xf32>, vector<16x8xf32>, vector<8x8xf32> -> vector<8x8xf32>
    %149 = arith.maximumf %147, %148 : vector<8x8xf32>
    %c0_147 = arith.constant 0 : index
    %c31 = arith.constant 31 : index
    %c0_148 = arith.constant 0 : index
    %150 = vector.load %arg9[%c0_147, %c31, %c0_148] : memref<1x100x8xf32, #tpu.memory_space<vmem>>, vector<1x8x8xf32>
    %151 = vector.shape_cast %150 : vector<1x8x8xf32> to vector<8x8xf32>
    %152 = vector.shape_cast %149 : vector<8x8xf32> to vector<1x8x8xf32>
    tpu.vector_store %arg9[%c0_147, %c31, %c0_148], %152 {strides = array<i32>} : memref<1x100x8xf32, #tpu.memory_space<vmem>>, vector<1x8x8xf32>,
    %c108 = arith.constant 108 : index
    %c0_149 = arith.constant 0 : index
    %153 = vector.load %arg11[%c108, %c0_149] : memref<286x8xf32, #tpu.memory_space<vmem>>, vector<16x8xf32>
    %c126 = arith.constant 126 : index
    %c0_150 = arith.constant 0 : index
    %154 = vector.load %arg11[%c126, %c0_150] : memref<286x8xf32, #tpu.memory_space<vmem>>, vector<16x8xf32>
    %155 = arith.maximumf %153, %154 : vector<16x8xf32>
    %cst_151 = arith.constant dense<0.000000e+00> : vector<8x8xf32>
    %156 = tpu.matmul %120, %155, %cst_151 {dimension_numbers = #tpu.dot_dimension_numbers<[1], [0], [0], [1], [0, 0, 1, 1], [], []>} : vector<8x16xf32>, vector<16x8xf32>, vector<8x8xf32> -> vector<8x8xf32>
    %cst_152 = arith.constant dense<0.000000e+00> : vector<8x8xf32>
    %157 = tpu.matmul %121, %155, %cst_152 {dimension_numbers = #tpu.dot_dimension_numbers<[1], [0], [0], [1], [0, 0, 1, 1], [], []>} : vector<8x16xf32>, vector<16x8xf32>, vector<8x8xf32> -> vector<8x8xf32>
    %158 = arith.maximumf %156, %157 : vector<8x8xf32>
    %c0_153 = arith.constant 0 : index
    %c41 = arith.constant 41 : index
    %c0_154 = arith.constant 0 : index
    %159 = vector.load %arg9[%c0_153, %c41, %c0_154] : memref<1x100x8xf32, #tpu.memory_space<vmem>>, vector<1x8x8xf32>
    %160 = vector.shape_cast %159 : vector<1x8x8xf32> to vector<8x8xf32>
    %161 = vector.shape_cast %158 : vector<8x8xf32> to vector<1x8x8xf32>
    tpu.vector_store %arg9[%c0_153, %c41, %c0_154], %161 {strides = array<i32>} : memref<1x100x8xf32, #tpu.memory_space<vmem>>, vector<1x8x8xf32>,
    %c144 = arith.constant 144 : index
    %c0_155 = arith.constant 0 : index
    %162 = vector.load %arg11[%c144, %c0_155] : memref<286x8xf32, #tpu.memory_space<vmem>>, vector<16x8xf32>
    %c162 = arith.constant 162 : index
    %c0_156 = arith.constant 0 : index
    %163 = vector.load %arg11[%c162, %c0_156] : memref<286x8xf32, #tpu.memory_space<vmem>>, vector<16x8xf32>
    %164 = arith.maximumf %162, %163 : vector<16x8xf32>
    %cst_157 = arith.constant dense<0.000000e+00> : vector<8x8xf32>
    %165 = tpu.matmul %120, %164, %cst_157 {dimension_numbers = #tpu.dot_dimension_numbers<[1], [0], [0], [1], [0, 0, 1, 1], [], []>} : vector<8x16xf32>, vector<16x8xf32>, vector<8x8xf32> -> vector<8x8xf32>
    %cst_158 = arith.constant dense<0.000000e+00> : vector<8x8xf32>
    %166 = tpu.matmul %121, %164, %cst_158 {dimension_numbers = #tpu.dot_dimension_numbers<[1], [0], [0], [1], [0, 0, 1, 1], [], []>} : vector<8x16xf32>, vector<16x8xf32>, vector<8x8xf32> -> vector<8x8xf32>
    %167 = arith.maximumf %165, %166 : vector<8x8xf32>
    %c0_159 = arith.constant 0 : index
    %c51 = arith.constant 51 : index
    %c0_160 = arith.constant 0 : index
    %168 = vector.load %arg9[%c0_159, %c51, %c0_160] : memref<1x100x8xf32, #tpu.memory_space<vmem>>, vector<1x8x8xf32>
    %169 = vector.shape_cast %168 : vector<1x8x8xf32> to vector<8x8xf32>
    %170 = vector.shape_cast %167 : vector<8x8xf32> to vector<1x8x8xf32>
    tpu.vector_store %arg9[%c0_159, %c51, %c0_160], %170 {strides = array<i32>} : memref<1x100x8xf32, #tpu.memory_space<vmem>>, vector<1x8x8xf32>,
    %c180 = arith.constant 180 : index
    %c0_161 = arith.constant 0 : index
    %171 = vector.load %arg11[%c180, %c0_161] : memref<286x8xf32, #tpu.memory_space<vmem>>, vector<16x8xf32>
    %c198 = arith.constant 198 : index
    %c0_162 = arith.constant 0 : index
    %172 = vector.load %arg11[%c198, %c0_162] : memref<286x8xf32, #tpu.memory_space<vmem>>, vector<16x8xf32>
    %173 = arith.maximumf %171, %172 : vector<16x8xf32>
    %cst_163 = arith.constant dense<0.000000e+00> : vector<8x8xf32>
    %174 = tpu.matmul %120, %173, %cst_163 {dimension_numbers = #tpu.dot_dimension_numbers<[1], [0], [0], [1], [0, 0, 1, 1], [], []>} : vector<8x16xf32>, vector<16x8xf32>, vector<8x8xf32> -> vector<8x8xf32>
    %cst_164 = arith.constant dense<0.000000e+00> : vector<8x8xf32>
    %175 = tpu.matmul %121, %173, %cst_164 {dimension_numbers = #tpu.dot_dimension_numbers<[1], [0], [0], [1], [0, 0, 1, 1], [], []>} : vector<8x16xf32>, vector<16x8xf32>, vector<8x8xf32> -> vector<8x8xf32>
    %176 = arith.maximumf %174, %175 : vector<8x8xf32>
    %c0_165 = arith.constant 0 : index
    %c61 = arith.constant 61 : index
    %c0_166 = arith.constant 0 : index
    %177 = vector.load %arg9[%c0_165, %c61, %c0_166] : memref<1x100x8xf32, #tpu.memory_space<vmem>>, vector<1x8x8xf32>
    %178 = vector.shape_cast %177 : vector<1x8x8xf32> to vector<8x8xf32>
    %179 = vector.shape_cast %176 : vector<8x8xf32> to vector<1x8x8xf32>
    tpu.vector_store %arg9[%c0_165, %c61, %c0_166], %179 {strides = array<i32>} : memref<1x100x8xf32, #tpu.memory_space<vmem>>, vector<1x8x8xf32>,
    %c216 = arith.constant 216 : index
    %c0_167 = arith.constant 0 : index
    %180 = vector.load %arg11[%c216, %c0_167] : memref<286x8xf32, #tpu.memory_space<vmem>>, vector<16x8xf32>
    %c234 = arith.constant 234 : index
    %c0_168 = arith.constant 0 : index
    %181 = vector.load %arg11[%c234, %c0_168] : memref<286x8xf32, #tpu.memory_space<vmem>>, vector<16x8xf32>
    %182 = arith.maximumf %180, %181 : vector<16x8xf32>
    %cst_169 = arith.constant dense<0.000000e+00> : vector<8x8xf32>
    %183 = tpu.matmul %120, %182, %cst_169 {dimension_numbers = #tpu.dot_dimension_numbers<[1], [0], [0], [1], [0, 0, 1, 1], [], []>} : vector<8x16xf32>, vector<16x8xf32>, vector<8x8xf32> -> vector<8x8xf32>
    %cst_170 = arith.constant dense<0.000000e+00> : vector<8x8xf32>
    %184 = tpu.matmul %121, %182, %cst_170 {dimension_numbers = #tpu.dot_dimension_numbers<[1], [0], [0], [1], [0, 0, 1, 1], [], []>} : vector<8x16xf32>, vector<16x8xf32>, vector<8x8xf32> -> vector<8x8xf32>
    %185 = arith.maximumf %183, %184 : vector<8x8xf32>
    %c0_171 = arith.constant 0 : index
    %c71 = arith.constant 71 : index
    %c0_172 = arith.constant 0 : index
    %186 = vector.load %arg9[%c0_171, %c71, %c0_172] : memref<1x100x8xf32, #tpu.memory_space<vmem>>, vector<1x8x8xf32>
    %187 = vector.shape_cast %186 : vector<1x8x8xf32> to vector<8x8xf32>
    %188 = vector.shape_cast %185 : vector<8x8xf32> to vector<1x8x8xf32>
    tpu.vector_store %arg9[%c0_171, %c71, %c0_172], %188 {strides = array<i32>} : memref<1x100x8xf32, #tpu.memory_space<vmem>>, vector<1x8x8xf32>,
    %c252 = arith.constant 252 : index
    %c0_173 = arith.constant 0 : index
    %189 = vector.load %arg11[%c252, %c0_173] : memref<286x8xf32, #tpu.memory_space<vmem>>, vector<16x8xf32>
    %c270 = arith.constant 270 : index
    %c0_174 = arith.constant 0 : index
    %190 = vector.load %arg11[%c270, %c0_174] : memref<286x8xf32, #tpu.memory_space<vmem>>, vector<16x8xf32>
    %191 = arith.maximumf %189, %190 : vector<16x8xf32>
    %cst_175 = arith.constant dense<0.000000e+00> : vector<8x8xf32>
    %192 = tpu.matmul %120, %191, %cst_175 {dimension_numbers = #tpu.dot_dimension_numbers<[1], [0], [0], [1], [0, 0, 1, 1], [], []>} : vector<8x16xf32>, vector<16x8xf32>, vector<8x8xf32> -> vector<8x8xf32>
    %cst_176 = arith.constant dense<0.000000e+00> : vector<8x8xf32>
    %193 = tpu.matmul %121, %191, %cst_176 {dimension_numbers = #tpu.dot_dimension_numbers<[1], [0], [0], [1], [0, 0, 1, 1], [], []>} : vector<8x16xf32>, vector<16x8xf32>, vector<8x8xf32> -> vector<8x8xf32>
    %194 = arith.maximumf %192, %193 : vector<8x8xf32>
    %c0_177 = arith.constant 0 : index
    %c81 = arith.constant 81 : index
    %c0_178 = arith.constant 0 : index
    %195 = vector.load %arg9[%c0_177, %c81, %c0_178] : memref<1x100x8xf32, #tpu.memory_space<vmem>>, vector<1x8x8xf32>
    %196 = vector.shape_cast %195 : vector<1x8x8xf32> to vector<8x8xf32>
    %197 = vector.shape_cast %194 : vector<8x8xf32> to vector<1x8x8xf32>
    tpu.vector_store %arg9[%c0_177, %c81, %c0_178], %197 {strides = array<i32>} : memref<1x100x8xf32, #tpu.memory_space<vmem>>, vector<1x8x8xf32>,
    return
  }
  func.func @transform_0(%arg0: i32) -> (i32, i32, i32) {
    %c0_i32 = arith.constant 0 : i32
    %c0_i32_0 = arith.constant 0 : i32
    %c0_i32_1 = arith.constant 0 : i32
    return %arg0, %c0_i32, %c0_i32_0 : i32, i32, i32
  }
  func.func @transform_1(%arg0: i32) -> (i32, i32, i32) {
    %c0_i32 = arith.constant 0 : i32
    %c0_i32_0 = arith.constant 0 : i32
    %c0_i32_1 = arith.constant 0 : i32
    %c0_i32_2 = arith.constant 0 : i32
    return %c0_i32, %c0_i32_0, %c0_i32_1 : i32, i32, i32
  }
  func.func @transform_2(%arg0: i32) -> (i32, i32) {
    %c0_i32 = arith.constant 0 : i32
    %c0_i32_0 = arith.constant 0 : i32
    %c0_i32_1 = arith.constant 0 : i32
    return %c0_i32, %c0_i32_0 : i32, i32
  }
  func.func @transform_3(%arg0: i32) -> (i32, i32, i32) {
    %c0_i32 = arith.constant 0 : i32
    %c0_i32_0 = arith.constant 0 : i32
    %c0_i32_1 = arith.constant 0 : i32
    %c0_i32_2 = arith.constant 0 : i32
    return %c0_i32, %c0_i32_0, %c0_i32_1 : i32, i32, i32
  }
  func.func @transform_4(%arg0: i32) -> (i32, i32) {
    %c0_i32 = arith.constant 0 : i32
    %c0_i32_0 = arith.constant 0 : i32
    %c0_i32_1 = arith.constant 0 : i32
    return %c0_i32, %c0_i32_0 : i32, i32
  }
  func.func @transform_5(%arg0: i32) -> (i32, i32) {
    %c0_i32 = arith.constant 0 : i32
    %c0_i32_0 = arith.constant 0 : i32
    %c0_i32_1 = arith.constant 0 : i32
    return %c0_i32, %c0_i32_0 : i32, i32
  }
  func.func @transform_6(%arg0: i32) -> (i32, i32) {
    %c0_i32 = arith.constant 0 : i32
    %c0_i32_0 = arith.constant 0 : i32
    %c0_i32_1 = arith.constant 0 : i32
    return %c0_i32, %c0_i32_0 : i32, i32
  }
  func.func @transform_7(%arg0: i32) -> (i32, i32) {
    %c0_i32 = arith.constant 0 : i32
    %c0_i32_0 = arith.constant 0 : i32
    %c0_i32_1 = arith.constant 0 : i32
    return %c0_i32, %c0_i32_0 : i32, i32
  }
  func.func @transform_8(%arg0: i32) -> (i32, i32, i32) {
    %c0_i32 = arith.constant 0 : i32
    %c0_i32_0 = arith.constant 0 : i32
    %c0_i32_1 = arith.constant 0 : i32
    return %arg0, %c0_i32, %c0_i32_0 : i32, i32, i32
  }
}

module attributes {stable_mosaic.version = 11 : i64} {
  func.func @kernel(%arg0: i32, %arg1: memref<1x100x8xf32, #tpu.memory_space<vmem>>, %arg2: memref<9x8x8xf32, #tpu.memory_space<vmem>>, %arg3: memref<1x8xf32, #tpu.memory_space<vmem>>, %arg4: memref<9x8x8xf32, #tpu.memory_space<vmem>>, %arg5: memref<1x8xf32, #tpu.memory_space<vmem>>, %arg6: memref<78x1xf32, #tpu.memory_space<vmem>>, %arg7: memref<4x8xf32, #tpu.memory_space<vmem>>, %arg8: memref<4x8xf32, #tpu.memory_space<vmem>>, %arg9: memref<1x36x8xf32, #tpu.memory_space<vmem>>, %arg10: memref<100x8xf32, #tpu.memory_space<vmem>>, %arg11: memref<78x8xf32, #tpu.memory_space<vmem>>) attributes {dimension_semantics = [#tpu.dimension_semantics<parallel>], iteration_bounds = array<i64: 2>, scalar_prefetch = 0 : i64, scratch_operands = 2 : i64, tpu.core_type = #tpu.core_type<tc>, window_params = [{transform_indices = @transform_0, window_bounds = array<i64: 1, 100, 8>}, {pipeline_mode = #tpu.pipeline_mode<synchronous>, transform_indices = @transform_1, window_bounds = array<i64: 9, 8, 8>}, {pipeline_mode = #tpu.pipeline_mode<synchronous>, transform_indices = @transform_2, window_bounds = array<i64: 1, 8>}, {pipeline_mode = #tpu.pipeline_mode<synchronous>, transform_indices = @transform_3, window_bounds = array<i64: 9, 8, 8>}, {pipeline_mode = #tpu.pipeline_mode<synchronous>, transform_indices = @transform_4, window_bounds = array<i64: 1, 8>}, {pipeline_mode = #tpu.pipeline_mode<synchronous>, transform_indices = @transform_5, window_bounds = array<i64: 78, 1>}, {pipeline_mode = #tpu.pipeline_mode<synchronous>, transform_indices = @transform_6, window_bounds = array<i64: 4, 8>}, {pipeline_mode = #tpu.pipeline_mode<synchronous>, transform_indices = @transform_7, window_bounds = array<i64: 4, 8>}, {transform_indices = @transform_8, window_bounds = array<i64: 1, 36, 8>}]} {
    %cst = arith.constant 0.000000e+00 : f32
    %0 = vector.broadcast %cst : f32 to vector<78x8xf32>
    %c0 = arith.constant 0 : index
    %c0_0 = arith.constant 0 : index
    %c0_1 = arith.constant 0 : index
    %1 = vector.load %arg1[%c0, %c0_0, %c0_1] : memref<1x100x8xf32, #tpu.memory_space<vmem>>, vector<1x78x8xf32>
    %2 = vector.shape_cast %1 : vector<1x78x8xf32> to vector<78x8xf32>
    %c0_2 = arith.constant 0 : index
    %c0_3 = arith.constant 0 : index
    %c0_4 = arith.constant 0 : index
    %3 = vector.load %arg2[%c0_2, %c0_3, %c0_4] : memref<9x8x8xf32, #tpu.memory_space<vmem>>, vector<1x8x8xf32>
    %4 = vector.shape_cast %3 : vector<1x8x8xf32> to vector<8x8xf32>
    %cst_5 = arith.constant dense<0.000000e+00> : vector<78x8xf32>
    %5 = tpu.matmul %2, %4, %cst_5 {dimension_numbers = #tpu.dot_dimension_numbers<[1], [0], [0], [1], [0, 0, 1, 1], [], []>} : vector<78x8xf32>, vector<8x8xf32>, vector<78x8xf32> -> vector<78x8xf32>
    %6 = arith.addf %0, %5 : vector<78x8xf32>
    %c0_6 = arith.constant 0 : index
    %c1 = arith.constant 1 : index
    %c0_7 = arith.constant 0 : index
    %7 = vector.load %arg1[%c0_6, %c1, %c0_7] : memref<1x100x8xf32, #tpu.memory_space<vmem>>, vector<1x78x8xf32>
    %8 = vector.shape_cast %7 : vector<1x78x8xf32> to vector<78x8xf32>
    %c1_8 = arith.constant 1 : index
    %c0_9 = arith.constant 0 : index
    %c0_10 = arith.constant 0 : index
    %9 = vector.load %arg2[%c1_8, %c0_9, %c0_10] : memref<9x8x8xf32, #tpu.memory_space<vmem>>, vector<1x8x8xf32>
    %10 = vector.shape_cast %9 : vector<1x8x8xf32> to vector<8x8xf32>
    %cst_11 = arith.constant dense<0.000000e+00> : vector<78x8xf32>
    %11 = tpu.matmul %8, %10, %cst_11 {dimension_numbers = #tpu.dot_dimension_numbers<[1], [0], [0], [1], [0, 0, 1, 1], [], []>} : vector<78x8xf32>, vector<8x8xf32>, vector<78x8xf32> -> vector<78x8xf32>
    %12 = arith.addf %6, %11 : vector<78x8xf32>
    %c0_12 = arith.constant 0 : index
    %c2 = arith.constant 2 : index
    %c0_13 = arith.constant 0 : index
    %13 = vector.load %arg1[%c0_12, %c2, %c0_13] : memref<1x100x8xf32, #tpu.memory_space<vmem>>, vector<1x78x8xf32>
    %14 = vector.shape_cast %13 : vector<1x78x8xf32> to vector<78x8xf32>
    %c2_14 = arith.constant 2 : index
    %c0_15 = arith.constant 0 : index
    %c0_16 = arith.constant 0 : index
    %15 = vector.load %arg2[%c2_14, %c0_15, %c0_16] : memref<9x8x8xf32, #tpu.memory_space<vmem>>, vector<1x8x8xf32>
    %16 = vector.shape_cast %15 : vector<1x8x8xf32> to vector<8x8xf32>
    %cst_17 = arith.constant dense<0.000000e+00> : vector<78x8xf32>
    %17 = tpu.matmul %14, %16, %cst_17 {dimension_numbers = #tpu.dot_dimension_numbers<[1], [0], [0], [1], [0, 0, 1, 1], [], []>} : vector<78x8xf32>, vector<8x8xf32>, vector<78x8xf32> -> vector<78x8xf32>
    %18 = arith.addf %12, %17 : vector<78x8xf32>
    %c0_18 = arith.constant 0 : index
    %c10 = arith.constant 10 : index
    %c0_19 = arith.constant 0 : index
    %19 = vector.load %arg1[%c0_18, %c10, %c0_19] : memref<1x100x8xf32, #tpu.memory_space<vmem>>, vector<1x78x8xf32>
    %20 = vector.shape_cast %19 : vector<1x78x8xf32> to vector<78x8xf32>
    %c3 = arith.constant 3 : index
    %c0_20 = arith.constant 0 : index
    %c0_21 = arith.constant 0 : index
    %21 = vector.load %arg2[%c3, %c0_20, %c0_21] : memref<9x8x8xf32, #tpu.memory_space<vmem>>, vector<1x8x8xf32>
    %22 = vector.shape_cast %21 : vector<1x8x8xf32> to vector<8x8xf32>
    %cst_22 = arith.constant dense<0.000000e+00> : vector<78x8xf32>
    %23 = tpu.matmul %20, %22, %cst_22 {dimension_numbers = #tpu.dot_dimension_numbers<[1], [0], [0], [1], [0, 0, 1, 1], [], []>} : vector<78x8xf32>, vector<8x8xf32>, vector<78x8xf32> -> vector<78x8xf32>
    %24 = arith.addf %18, %23 : vector<78x8xf32>
    %c0_23 = arith.constant 0 : index
    %c11 = arith.constant 11 : index
    %c0_24 = arith.constant 0 : index
    %25 = vector.load %arg1[%c0_23, %c11, %c0_24] : memref<1x100x8xf32, #tpu.memory_space<vmem>>, vector<1x78x8xf32>
    %26 = vector.shape_cast %25 : vector<1x78x8xf32> to vector<78x8xf32>
    %c4 = arith.constant 4 : index
    %c0_25 = arith.constant 0 : index
    %c0_26 = arith.constant 0 : index
    %27 = vector.load %arg2[%c4, %c0_25, %c0_26] : memref<9x8x8xf32, #tpu.memory_space<vmem>>, vector<1x8x8xf32>
    %28 = vector.shape_cast %27 : vector<1x8x8xf32> to vector<8x8xf32>
    %cst_27 = arith.constant dense<0.000000e+00> : vector<78x8xf32>
    %29 = tpu.matmul %26, %28, %cst_27 {dimension_numbers = #tpu.dot_dimension_numbers<[1], [0], [0], [1], [0, 0, 1, 1], [], []>} : vector<78x8xf32>, vector<8x8xf32>, vector<78x8xf32> -> vector<78x8xf32>
    %30 = arith.addf %24, %29 : vector<78x8xf32>
    %c0_28 = arith.constant 0 : index
    %c12 = arith.constant 12 : index
    %c0_29 = arith.constant 0 : index
    %31 = vector.load %arg1[%c0_28, %c12, %c0_29] : memref<1x100x8xf32, #tpu.memory_space<vmem>>, vector<1x78x8xf32>
    %32 = vector.shape_cast %31 : vector<1x78x8xf32> to vector<78x8xf32>
    %c5 = arith.constant 5 : index
    %c0_30 = arith.constant 0 : index
    %c0_31 = arith.constant 0 : index
    %33 = vector.load %arg2[%c5, %c0_30, %c0_31] : memref<9x8x8xf32, #tpu.memory_space<vmem>>, vector<1x8x8xf32>
    %34 = vector.shape_cast %33 : vector<1x8x8xf32> to vector<8x8xf32>
    %cst_32 = arith.constant dense<0.000000e+00> : vector<78x8xf32>
    %35 = tpu.matmul %32, %34, %cst_32 {dimension_numbers = #tpu.dot_dimension_numbers<[1], [0], [0], [1], [0, 0, 1, 1], [], []>} : vector<78x8xf32>, vector<8x8xf32>, vector<78x8xf32> -> vector<78x8xf32>
    %36 = arith.addf %30, %35 : vector<78x8xf32>
    %c0_33 = arith.constant 0 : index
    %c20 = arith.constant 20 : index
    %c0_34 = arith.constant 0 : index
    %37 = vector.load %arg1[%c0_33, %c20, %c0_34] : memref<1x100x8xf32, #tpu.memory_space<vmem>>, vector<1x78x8xf32>
    %38 = vector.shape_cast %37 : vector<1x78x8xf32> to vector<78x8xf32>
    %c6 = arith.constant 6 : index
    %c0_35 = arith.constant 0 : index
    %c0_36 = arith.constant 0 : index
    %39 = vector.load %arg2[%c6, %c0_35, %c0_36] : memref<9x8x8xf32, #tpu.memory_space<vmem>>, vector<1x8x8xf32>
    %40 = vector.shape_cast %39 : vector<1x8x8xf32> to vector<8x8xf32>
    %cst_37 = arith.constant dense<0.000000e+00> : vector<78x8xf32>
    %41 = tpu.matmul %38, %40, %cst_37 {dimension_numbers = #tpu.dot_dimension_numbers<[1], [0], [0], [1], [0, 0, 1, 1], [], []>} : vector<78x8xf32>, vector<8x8xf32>, vector<78x8xf32> -> vector<78x8xf32>
    %42 = arith.addf %36, %41 : vector<78x8xf32>
    %c0_38 = arith.constant 0 : index
    %c21 = arith.constant 21 : index
    %c0_39 = arith.constant 0 : index
    %43 = vector.load %arg1[%c0_38, %c21, %c0_39] : memref<1x100x8xf32, #tpu.memory_space<vmem>>, vector<1x78x8xf32>
    %44 = vector.shape_cast %43 : vector<1x78x8xf32> to vector<78x8xf32>
    %c7 = arith.constant 7 : index
    %c0_40 = arith.constant 0 : index
    %c0_41 = arith.constant 0 : index
    %45 = vector.load %arg2[%c7, %c0_40, %c0_41] : memref<9x8x8xf32, #tpu.memory_space<vmem>>, vector<1x8x8xf32>
    %46 = vector.shape_cast %45 : vector<1x8x8xf32> to vector<8x8xf32>
    %cst_42 = arith.constant dense<0.000000e+00> : vector<78x8xf32>
    %47 = tpu.matmul %44, %46, %cst_42 {dimension_numbers = #tpu.dot_dimension_numbers<[1], [0], [0], [1], [0, 0, 1, 1], [], []>} : vector<78x8xf32>, vector<8x8xf32>, vector<78x8xf32> -> vector<78x8xf32>
    %48 = arith.addf %42, %47 : vector<78x8xf32>
    %c0_43 = arith.constant 0 : index
    %c22 = arith.constant 22 : index
    %c0_44 = arith.constant 0 : index
    %49 = vector.load %arg1[%c0_43, %c22, %c0_44] : memref<1x100x8xf32, #tpu.memory_space<vmem>>, vector<1x78x8xf32>
    %50 = vector.shape_cast %49 : vector<1x78x8xf32> to vector<78x8xf32>
    %c8 = arith.constant 8 : index
    %c0_45 = arith.constant 0 : index
    %c0_46 = arith.constant 0 : index
    %51 = vector.load %arg2[%c8, %c0_45, %c0_46] : memref<9x8x8xf32, #tpu.memory_space<vmem>>, vector<1x8x8xf32>
    %52 = vector.shape_cast %51 : vector<1x8x8xf32> to vector<8x8xf32>
    %cst_47 = arith.constant dense<0.000000e+00> : vector<78x8xf32>
    %53 = tpu.matmul %50, %52, %cst_47 {dimension_numbers = #tpu.dot_dimension_numbers<[1], [0], [0], [1], [0, 0, 1, 1], [], []>} : vector<78x8xf32>, vector<8x8xf32>, vector<78x8xf32> -> vector<78x8xf32>
    %54 = arith.addf %48, %53 : vector<78x8xf32>
    %c0_48 = arith.constant 0 : index
    %c0_49 = arith.constant 0 : index
    %55 = vector.load %arg3[%c0_48, %c0_49] : memref<1x8xf32, #tpu.memory_space<vmem>>, vector<1x8xf32>
    %56 = vector.broadcast %55 : vector<1x8xf32> to vector<78x8xf32>
    %57 = arith.addf %54, %56 : vector<78x8xf32>
    %cst_50 = arith.constant 0.000000e+00 : f32
    %58 = vector.broadcast %cst_50 : f32 to vector<78x8xf32>
    %59 = arith.maximumf %57, %58 : vector<78x8xf32>
    %c0_51 = arith.constant 0 : index
    %c0_52 = arith.constant 0 : index
    %60 = vector.load %arg6[%c0_51, %c0_52] : memref<78x1xf32, #tpu.memory_space<vmem>>, vector<78x1xf32>
    %61 = vector.broadcast %60 : vector<78x1xf32> to vector<78x8xf32>
    %62 = arith.mulf %59, %61 : vector<78x8xf32>
    %cst_53 = arith.constant 0.000000e+00 : f32
    %63 = vector.broadcast %cst_53 : f32 to vector<11x8xf32>
    %c0_54 = arith.constant 0 : index
    %c0_55 = arith.constant 0 : index
    %64 = vector.load %arg10[%c0_54, %c0_55] : memref<100x8xf32, #tpu.memory_space<vmem>>, vector<11x8xf32>
    tpu.vector_store %arg10[%c0_54, %c0_55], %63 {strides = array<i32>} : memref<100x8xf32, #tpu.memory_space<vmem>>, vector<11x8xf32>,
    %cst_56 = arith.constant 0.000000e+00 : f32
    %65 = vector.broadcast %cst_56 : f32 to vector<11x8xf32>
    %c89 = arith.constant 89 : index
    %c0_57 = arith.constant 0 : index
    %66 = vector.load %arg10[%c89, %c0_57] : memref<100x8xf32, #tpu.memory_space<vmem>>, vector<11x8xf32>
    tpu.vector_store %arg10[%c89, %c0_57], %65 {strides = array<i32>} : memref<100x8xf32, #tpu.memory_space<vmem>>, vector<11x8xf32>,
    %c11_58 = arith.constant 11 : index
    %c0_59 = arith.constant 0 : index
    %67 = vector.load %arg10[%c11_58, %c0_59] : memref<100x8xf32, #tpu.memory_space<vmem>>, vector<78x8xf32>
    tpu.vector_store %arg10[%c11_58, %c0_59], %62 {strides = array<i32>} : memref<100x8xf32, #tpu.memory_space<vmem>>, vector<78x8xf32>,
    %cst_60 = arith.constant 0.000000e+00 : f32
    %68 = vector.broadcast %cst_60 : f32 to vector<78x8xf32>
    %c0_61 = arith.constant 0 : index
    %c0_62 = arith.constant 0 : index
    %69 = vector.load %arg10[%c0_61, %c0_62] : memref<100x8xf32, #tpu.memory_space<vmem>>, vector<78x8xf32>
    %c0_63 = arith.constant 0 : index
    %c0_64 = arith.constant 0 : index
    %c0_65 = arith.constant 0 : index
    %70 = vector.load %arg4[%c0_63, %c0_64, %c0_65] : memref<9x8x8xf32, #tpu.memory_space<vmem>>, vector<1x8x8xf32>
    %71 = vector.shape_cast %70 : vector<1x8x8xf32> to vector<8x8xf32>
    %cst_66 = arith.constant dense<0.000000e+00> : vector<78x8xf32>
    %72 = tpu.matmul %69, %71, %cst_66 {dimension_numbers = #tpu.dot_dimension_numbers<[1], [0], [0], [1], [0, 0, 1, 1], [], []>} : vector<78x8xf32>, vector<8x8xf32>, vector<78x8xf32> -> vector<78x8xf32>
    %73 = arith.addf %68, %72 : vector<78x8xf32>
    %c1_67 = arith.constant 1 : index
    %c0_68 = arith.constant 0 : index
    %74 = vector.load %arg10[%c1_67, %c0_68] : memref<100x8xf32, #tpu.memory_space<vmem>>, vector<78x8xf32>
    %c1_69 = arith.constant 1 : index
    %c0_70 = arith.constant 0 : index
    %c0_71 = arith.constant 0 : index
    %75 = vector.load %arg4[%c1_69, %c0_70, %c0_71] : memref<9x8x8xf32, #tpu.memory_space<vmem>>, vector<1x8x8xf32>
    %76 = vector.shape_cast %75 : vector<1x8x8xf32> to vector<8x8xf32>
    %cst_72 = arith.constant dense<0.000000e+00> : vector<78x8xf32>
    %77 = tpu.matmul %74, %76, %cst_72 {dimension_numbers = #tpu.dot_dimension_numbers<[1], [0], [0], [1], [0, 0, 1, 1], [], []>} : vector<78x8xf32>, vector<8x8xf32>, vector<78x8xf32> -> vector<78x8xf32>
    %78 = arith.addf %73, %77 : vector<78x8xf32>
    %c2_73 = arith.constant 2 : index
    %c0_74 = arith.constant 0 : index
    %79 = vector.load %arg10[%c2_73, %c0_74] : memref<100x8xf32, #tpu.memory_space<vmem>>, vector<78x8xf32>
    %c2_75 = arith.constant 2 : index
    %c0_76 = arith.constant 0 : index
    %c0_77 = arith.constant 0 : index
    %80 = vector.load %arg4[%c2_75, %c0_76, %c0_77] : memref<9x8x8xf32, #tpu.memory_space<vmem>>, vector<1x8x8xf32>
    %81 = vector.shape_cast %80 : vector<1x8x8xf32> to vector<8x8xf32>
    %cst_78 = arith.constant dense<0.000000e+00> : vector<78x8xf32>
    %82 = tpu.matmul %79, %81, %cst_78 {dimension_numbers = #tpu.dot_dimension_numbers<[1], [0], [0], [1], [0, 0, 1, 1], [], []>} : vector<78x8xf32>, vector<8x8xf32>, vector<78x8xf32> -> vector<78x8xf32>
    %83 = arith.addf %78, %82 : vector<78x8xf32>
    %c10_79 = arith.constant 10 : index
    %c0_80 = arith.constant 0 : index
    %84 = vector.load %arg10[%c10_79, %c0_80] : memref<100x8xf32, #tpu.memory_space<vmem>>, vector<78x8xf32>
    %c3_81 = arith.constant 3 : index
    %c0_82 = arith.constant 0 : index
    %c0_83 = arith.constant 0 : index
    %85 = vector.load %arg4[%c3_81, %c0_82, %c0_83] : memref<9x8x8xf32, #tpu.memory_space<vmem>>, vector<1x8x8xf32>
    %86 = vector.shape_cast %85 : vector<1x8x8xf32> to vector<8x8xf32>
    %cst_84 = arith.constant dense<0.000000e+00> : vector<78x8xf32>
    %87 = tpu.matmul %84, %86, %cst_84 {dimension_numbers = #tpu.dot_dimension_numbers<[1], [0], [0], [1], [0, 0, 1, 1], [], []>} : vector<78x8xf32>, vector<8x8xf32>, vector<78x8xf32> -> vector<78x8xf32>
    %88 = arith.addf %83, %87 : vector<78x8xf32>
    %c11_85 = arith.constant 11 : index
    %c0_86 = arith.constant 0 : index
    %89 = vector.load %arg10[%c11_85, %c0_86] : memref<100x8xf32, #tpu.memory_space<vmem>>, vector<78x8xf32>
    %c4_87 = arith.constant 4 : index
    %c0_88 = arith.constant 0 : index
    %c0_89 = arith.constant 0 : index
    %90 = vector.load %arg4[%c4_87, %c0_88, %c0_89] : memref<9x8x8xf32, #tpu.memory_space<vmem>>, vector<1x8x8xf32>
    %91 = vector.shape_cast %90 : vector<1x8x8xf32> to vector<8x8xf32>
    %cst_90 = arith.constant dense<0.000000e+00> : vector<78x8xf32>
    %92 = tpu.matmul %89, %91, %cst_90 {dimension_numbers = #tpu.dot_dimension_numbers<[1], [0], [0], [1], [0, 0, 1, 1], [], []>} : vector<78x8xf32>, vector<8x8xf32>, vector<78x8xf32> -> vector<78x8xf32>
    %93 = arith.addf %88, %92 : vector<78x8xf32>
    %c12_91 = arith.constant 12 : index
    %c0_92 = arith.constant 0 : index
    %94 = vector.load %arg10[%c12_91, %c0_92] : memref<100x8xf32, #tpu.memory_space<vmem>>, vector<78x8xf32>
    %c5_93 = arith.constant 5 : index
    %c0_94 = arith.constant 0 : index
    %c0_95 = arith.constant 0 : index
    %95 = vector.load %arg4[%c5_93, %c0_94, %c0_95] : memref<9x8x8xf32, #tpu.memory_space<vmem>>, vector<1x8x8xf32>
    %96 = vector.shape_cast %95 : vector<1x8x8xf32> to vector<8x8xf32>
    %cst_96 = arith.constant dense<0.000000e+00> : vector<78x8xf32>
    %97 = tpu.matmul %94, %96, %cst_96 {dimension_numbers = #tpu.dot_dimension_numbers<[1], [0], [0], [1], [0, 0, 1, 1], [], []>} : vector<78x8xf32>, vector<8x8xf32>, vector<78x8xf32> -> vector<78x8xf32>
    %98 = arith.addf %93, %97 : vector<78x8xf32>
    %c20_97 = arith.constant 20 : index
    %c0_98 = arith.constant 0 : index
    %99 = vector.load %arg10[%c20_97, %c0_98] : memref<100x8xf32, #tpu.memory_space<vmem>>, vector<78x8xf32>
    %c6_99 = arith.constant 6 : index
    %c0_100 = arith.constant 0 : index
    %c0_101 = arith.constant 0 : index
    %100 = vector.load %arg4[%c6_99, %c0_100, %c0_101] : memref<9x8x8xf32, #tpu.memory_space<vmem>>, vector<1x8x8xf32>
    %101 = vector.shape_cast %100 : vector<1x8x8xf32> to vector<8x8xf32>
    %cst_102 = arith.constant dense<0.000000e+00> : vector<78x8xf32>
    %102 = tpu.matmul %99, %101, %cst_102 {dimension_numbers = #tpu.dot_dimension_numbers<[1], [0], [0], [1], [0, 0, 1, 1], [], []>} : vector<78x8xf32>, vector<8x8xf32>, vector<78x8xf32> -> vector<78x8xf32>
    %103 = arith.addf %98, %102 : vector<78x8xf32>
    %c21_103 = arith.constant 21 : index
    %c0_104 = arith.constant 0 : index
    %104 = vector.load %arg10[%c21_103, %c0_104] : memref<100x8xf32, #tpu.memory_space<vmem>>, vector<78x8xf32>
    %c7_105 = arith.constant 7 : index
    %c0_106 = arith.constant 0 : index
    %c0_107 = arith.constant 0 : index
    %105 = vector.load %arg4[%c7_105, %c0_106, %c0_107] : memref<9x8x8xf32, #tpu.memory_space<vmem>>, vector<1x8x8xf32>
    %106 = vector.shape_cast %105 : vector<1x8x8xf32> to vector<8x8xf32>
    %cst_108 = arith.constant dense<0.000000e+00> : vector<78x8xf32>
    %107 = tpu.matmul %104, %106, %cst_108 {dimension_numbers = #tpu.dot_dimension_numbers<[1], [0], [0], [1], [0, 0, 1, 1], [], []>} : vector<78x8xf32>, vector<8x8xf32>, vector<78x8xf32> -> vector<78x8xf32>
    %108 = arith.addf %103, %107 : vector<78x8xf32>
    %c22_109 = arith.constant 22 : index
    %c0_110 = arith.constant 0 : index
    %109 = vector.load %arg10[%c22_109, %c0_110] : memref<100x8xf32, #tpu.memory_space<vmem>>, vector<78x8xf32>
    %c8_111 = arith.constant 8 : index
    %c0_112 = arith.constant 0 : index
    %c0_113 = arith.constant 0 : index
    %110 = vector.load %arg4[%c8_111, %c0_112, %c0_113] : memref<9x8x8xf32, #tpu.memory_space<vmem>>, vector<1x8x8xf32>
    %111 = vector.shape_cast %110 : vector<1x8x8xf32> to vector<8x8xf32>
    %cst_114 = arith.constant dense<0.000000e+00> : vector<78x8xf32>
    %112 = tpu.matmul %109, %111, %cst_114 {dimension_numbers = #tpu.dot_dimension_numbers<[1], [0], [0], [1], [0, 0, 1, 1], [], []>} : vector<78x8xf32>, vector<8x8xf32>, vector<78x8xf32> -> vector<78x8xf32>
    %113 = arith.addf %108, %112 : vector<78x8xf32>
    %c0_115 = arith.constant 0 : index
    %c0_116 = arith.constant 0 : index
    %114 = vector.load %arg5[%c0_115, %c0_116] : memref<1x8xf32, #tpu.memory_space<vmem>>, vector<1x8xf32>
    %115 = vector.broadcast %114 : vector<1x8xf32> to vector<78x8xf32>
    %116 = arith.addf %113, %115 : vector<78x8xf32>
    %cst_117 = arith.constant 0.000000e+00 : f32
    %117 = vector.broadcast %cst_117 : f32 to vector<78x8xf32>
    %118 = arith.maximumf %116, %117 : vector<78x8xf32>
    %c0_118 = arith.constant 0 : index
    %c0_119 = arith.constant 0 : index
    %119 = vector.load %arg11[%c0_118, %c0_119] : memref<78x8xf32, #tpu.memory_space<vmem>>, vector<78x8xf32>
    tpu.vector_store %arg11[%c0_118, %c0_119], %118 {strides = array<i32>} : memref<78x8xf32, #tpu.memory_space<vmem>>, vector<78x8xf32>,
    %c0_120 = arith.constant 0 : index
    %c0_121 = arith.constant 0 : index
    %120 = vector.load %arg7[%c0_120, %c0_121] : memref<4x8xf32, #tpu.memory_space<vmem>>, vector<4x8xf32>
    %c0_122 = arith.constant 0 : index
    %c0_123 = arith.constant 0 : index
    %121 = vector.load %arg8[%c0_122, %c0_123] : memref<4x8xf32, #tpu.memory_space<vmem>>, vector<4x8xf32>
    %cst_124 = arith.constant 0.000000e+00 : f32
    %122 = vector.broadcast %cst_124 : f32 to vector<36x8xf32>
    %c0_125 = arith.constant 0 : index
    %c0_126 = arith.constant 0 : index
    %c0_127 = arith.constant 0 : index
    %123 = vector.load %arg9[%c0_125, %c0_126, %c0_127] : memref<1x36x8xf32, #tpu.memory_space<vmem>>, vector<1x36x8xf32>
    %124 = vector.shape_cast %123 : vector<1x36x8xf32> to vector<36x8xf32>
    %125 = vector.shape_cast %122 : vector<36x8xf32> to vector<1x36x8xf32>
    tpu.vector_store %arg9[%c0_125, %c0_126, %c0_127], %125 {strides = array<i32>} : memref<1x36x8xf32, #tpu.memory_space<vmem>>, vector<1x36x8xf32>,
    %c0_128 = arith.constant 0 : index
    %c0_129 = arith.constant 0 : index
    %126 = vector.load %arg11[%c0_128, %c0_129] : memref<78x8xf32, #tpu.memory_space<vmem>>, vector<8x8xf32>
    %c10_130 = arith.constant 10 : index
    %c0_131 = arith.constant 0 : index
    %127 = vector.load %arg11[%c10_130, %c0_131] : memref<78x8xf32, #tpu.memory_space<vmem>>, vector<8x8xf32>
    %128 = arith.maximumf %126, %127 : vector<8x8xf32>
    %cst_132 = arith.constant dense<0.000000e+00> : vector<4x8xf32>
    %129 = tpu.matmul %120, %128, %cst_132 {dimension_numbers = #tpu.dot_dimension_numbers<[1], [0], [0], [1], [0, 0, 1, 1], [], []>} : vector<4x8xf32>, vector<8x8xf32>, vector<4x8xf32> -> vector<4x8xf32>
    %cst_133 = arith.constant dense<0.000000e+00> : vector<4x8xf32>
    %130 = tpu.matmul %121, %128, %cst_133 {dimension_numbers = #tpu.dot_dimension_numbers<[1], [0], [0], [1], [0, 0, 1, 1], [], []>} : vector<4x8xf32>, vector<8x8xf32>, vector<4x8xf32> -> vector<4x8xf32>
    %131 = arith.maximumf %129, %130 : vector<4x8xf32>
    %c0_134 = arith.constant 0 : index
    %c7_135 = arith.constant 7 : index
    %c0_136 = arith.constant 0 : index
    %132 = vector.load %arg9[%c0_134, %c7_135, %c0_136] : memref<1x36x8xf32, #tpu.memory_space<vmem>>, vector<1x4x8xf32>
    %133 = vector.shape_cast %132 : vector<1x4x8xf32> to vector<4x8xf32>
    %134 = vector.shape_cast %131 : vector<4x8xf32> to vector<1x4x8xf32>
    tpu.vector_store %arg9[%c0_134, %c7_135, %c0_136], %134 {strides = array<i32>} : memref<1x36x8xf32, #tpu.memory_space<vmem>>, vector<1x4x8xf32>,
    %c20_137 = arith.constant 20 : index
    %c0_138 = arith.constant 0 : index
    %135 = vector.load %arg11[%c20_137, %c0_138] : memref<78x8xf32, #tpu.memory_space<vmem>>, vector<8x8xf32>
    %c30 = arith.constant 30 : index
    %c0_139 = arith.constant 0 : index
    %136 = vector.load %arg11[%c30, %c0_139] : memref<78x8xf32, #tpu.memory_space<vmem>>, vector<8x8xf32>
    %137 = arith.maximumf %135, %136 : vector<8x8xf32>
    %cst_140 = arith.constant dense<0.000000e+00> : vector<4x8xf32>
    %138 = tpu.matmul %120, %137, %cst_140 {dimension_numbers = #tpu.dot_dimension_numbers<[1], [0], [0], [1], [0, 0, 1, 1], [], []>} : vector<4x8xf32>, vector<8x8xf32>, vector<4x8xf32> -> vector<4x8xf32>
    %cst_141 = arith.constant dense<0.000000e+00> : vector<4x8xf32>
    %139 = tpu.matmul %121, %137, %cst_141 {dimension_numbers = #tpu.dot_dimension_numbers<[1], [0], [0], [1], [0, 0, 1, 1], [], []>} : vector<4x8xf32>, vector<8x8xf32>, vector<4x8xf32> -> vector<4x8xf32>
    %140 = arith.maximumf %138, %139 : vector<4x8xf32>
    %c0_142 = arith.constant 0 : index
    %c13 = arith.constant 13 : index
    %c0_143 = arith.constant 0 : index
    %141 = vector.load %arg9[%c0_142, %c13, %c0_143] : memref<1x36x8xf32, #tpu.memory_space<vmem>>, vector<1x4x8xf32>
    %142 = vector.shape_cast %141 : vector<1x4x8xf32> to vector<4x8xf32>
    %143 = vector.shape_cast %140 : vector<4x8xf32> to vector<1x4x8xf32>
    tpu.vector_store %arg9[%c0_142, %c13, %c0_143], %143 {strides = array<i32>} : memref<1x36x8xf32, #tpu.memory_space<vmem>>, vector<1x4x8xf32>,
    %c40 = arith.constant 40 : index
    %c0_144 = arith.constant 0 : index
    %144 = vector.load %arg11[%c40, %c0_144] : memref<78x8xf32, #tpu.memory_space<vmem>>, vector<8x8xf32>
    %c50 = arith.constant 50 : index
    %c0_145 = arith.constant 0 : index
    %145 = vector.load %arg11[%c50, %c0_145] : memref<78x8xf32, #tpu.memory_space<vmem>>, vector<8x8xf32>
    %146 = arith.maximumf %144, %145 : vector<8x8xf32>
    %cst_146 = arith.constant dense<0.000000e+00> : vector<4x8xf32>
    %147 = tpu.matmul %120, %146, %cst_146 {dimension_numbers = #tpu.dot_dimension_numbers<[1], [0], [0], [1], [0, 0, 1, 1], [], []>} : vector<4x8xf32>, vector<8x8xf32>, vector<4x8xf32> -> vector<4x8xf32>
    %cst_147 = arith.constant dense<0.000000e+00> : vector<4x8xf32>
    %148 = tpu.matmul %121, %146, %cst_147 {dimension_numbers = #tpu.dot_dimension_numbers<[1], [0], [0], [1], [0, 0, 1, 1], [], []>} : vector<4x8xf32>, vector<8x8xf32>, vector<4x8xf32> -> vector<4x8xf32>
    %149 = arith.maximumf %147, %148 : vector<4x8xf32>
    %c0_148 = arith.constant 0 : index
    %c19 = arith.constant 19 : index
    %c0_149 = arith.constant 0 : index
    %150 = vector.load %arg9[%c0_148, %c19, %c0_149] : memref<1x36x8xf32, #tpu.memory_space<vmem>>, vector<1x4x8xf32>
    %151 = vector.shape_cast %150 : vector<1x4x8xf32> to vector<4x8xf32>
    %152 = vector.shape_cast %149 : vector<4x8xf32> to vector<1x4x8xf32>
    tpu.vector_store %arg9[%c0_148, %c19, %c0_149], %152 {strides = array<i32>} : memref<1x36x8xf32, #tpu.memory_space<vmem>>, vector<1x4x8xf32>,
    %c60 = arith.constant 60 : index
    %c0_150 = arith.constant 0 : index
    %153 = vector.load %arg11[%c60, %c0_150] : memref<78x8xf32, #tpu.memory_space<vmem>>, vector<8x8xf32>
    %c70 = arith.constant 70 : index
    %c0_151 = arith.constant 0 : index
    %154 = vector.load %arg11[%c70, %c0_151] : memref<78x8xf32, #tpu.memory_space<vmem>>, vector<8x8xf32>
    %155 = arith.maximumf %153, %154 : vector<8x8xf32>
    %cst_152 = arith.constant dense<0.000000e+00> : vector<4x8xf32>
    %156 = tpu.matmul %120, %155, %cst_152 {dimension_numbers = #tpu.dot_dimension_numbers<[1], [0], [0], [1], [0, 0, 1, 1], [], []>} : vector<4x8xf32>, vector<8x8xf32>, vector<4x8xf32> -> vector<4x8xf32>
    %cst_153 = arith.constant dense<0.000000e+00> : vector<4x8xf32>
    %157 = tpu.matmul %121, %155, %cst_153 {dimension_numbers = #tpu.dot_dimension_numbers<[1], [0], [0], [1], [0, 0, 1, 1], [], []>} : vector<4x8xf32>, vector<8x8xf32>, vector<4x8xf32> -> vector<4x8xf32>
    %158 = arith.maximumf %156, %157 : vector<4x8xf32>
    %c0_154 = arith.constant 0 : index
    %c25 = arith.constant 25 : index
    %c0_155 = arith.constant 0 : index
    %159 = vector.load %arg9[%c0_154, %c25, %c0_155] : memref<1x36x8xf32, #tpu.memory_space<vmem>>, vector<1x4x8xf32>
    %160 = vector.shape_cast %159 : vector<1x4x8xf32> to vector<4x8xf32>
    %161 = vector.shape_cast %158 : vector<4x8xf32> to vector<1x4x8xf32>
    tpu.vector_store %arg9[%c0_154, %c25, %c0_155], %161 {strides = array<i32>} : memref<1x36x8xf32, #tpu.memory_space<vmem>>, vector<1x4x8xf32>,
    return
  }
  func.func @transform_0(%arg0: i32) -> (i32, i32, i32) {
    %c0_i32 = arith.constant 0 : i32
    %c0_i32_0 = arith.constant 0 : i32
    %c0_i32_1 = arith.constant 0 : i32
    return %arg0, %c0_i32, %c0_i32_0 : i32, i32, i32
  }
  func.func @transform_1(%arg0: i32) -> (i32, i32, i32) {
    %c0_i32 = arith.constant 0 : i32
    %c0_i32_0 = arith.constant 0 : i32
    %c0_i32_1 = arith.constant 0 : i32
    %c0_i32_2 = arith.constant 0 : i32
    return %c0_i32, %c0_i32_0, %c0_i32_1 : i32, i32, i32
  }
  func.func @transform_2(%arg0: i32) -> (i32, i32) {
    %c0_i32 = arith.constant 0 : i32
    %c0_i32_0 = arith.constant 0 : i32
    %c0_i32_1 = arith.constant 0 : i32
    return %c0_i32, %c0_i32_0 : i32, i32
  }
  func.func @transform_3(%arg0: i32) -> (i32, i32, i32) {
    %c0_i32 = arith.constant 0 : i32
    %c0_i32_0 = arith.constant 0 : i32
    %c0_i32_1 = arith.constant 0 : i32
    %c0_i32_2 = arith.constant 0 : i32
    return %c0_i32, %c0_i32_0, %c0_i32_1 : i32, i32, i32
  }
  func.func @transform_4(%arg0: i32) -> (i32, i32) {
    %c0_i32 = arith.constant 0 : i32
    %c0_i32_0 = arith.constant 0 : i32
    %c0_i32_1 = arith.constant 0 : i32
    return %c0_i32, %c0_i32_0 : i32, i32
  }
  func.func @transform_5(%arg0: i32) -> (i32, i32) {
    %c0_i32 = arith.constant 0 : i32
    %c0_i32_0 = arith.constant 0 : i32
    %c0_i32_1 = arith.constant 0 : i32
    return %c0_i32, %c0_i32_0 : i32, i32
  }
  func.func @transform_6(%arg0: i32) -> (i32, i32) {
    %c0_i32 = arith.constant 0 : i32
    %c0_i32_0 = arith.constant 0 : i32
    %c0_i32_1 = arith.constant 0 : i32
    return %c0_i32, %c0_i32_0 : i32, i32
  }
  func.func @transform_7(%arg0: i32) -> (i32, i32) {
    %c0_i32 = arith.constant 0 : i32
    %c0_i32_0 = arith.constant 0 : i32
    %c0_i32_1 = arith.constant 0 : i32
    return %c0_i32, %c0_i32_0 : i32, i32
  }
  func.func @transform_8(%arg0: i32) -> (i32, i32, i32) {
    %c0_i32 = arith.constant 0 : i32
    %c0_i32_0 = arith.constant 0 : i32
    %c0_i32_1 = arith.constant 0 : i32
    return %arg0, %c0_i32, %c0_i32_0 : i32, i32, i32
  }
}

module attributes {stable_mosaic.version = 11 : i64} {
  func.func @kernel(%arg0: i32, %arg1: memref<1x36x8xf32, #tpu.memory_space<vmem>>, %arg2: memref<9x8x16xf32, #tpu.memory_space<vmem>>, %arg3: memref<1x16xf32, #tpu.memory_space<vmem>>, %arg4: memref<9x16x16xf32, #tpu.memory_space<vmem>>, %arg5: memref<1x16xf32, #tpu.memory_space<vmem>>, %arg6: memref<22x1xf32, #tpu.memory_space<vmem>>, %arg7: memref<2x4xf32, #tpu.memory_space<vmem>>, %arg8: memref<2x4xf32, #tpu.memory_space<vmem>>, %arg9: memref<1x16x16xf32, #tpu.memory_space<vmem>>, %arg10: memref<36x16xf32, #tpu.memory_space<vmem>>, %arg11: memref<22x16xf32, #tpu.memory_space<vmem>>) attributes {dimension_semantics = [#tpu.dimension_semantics<parallel>], iteration_bounds = array<i64: 2>, scalar_prefetch = 0 : i64, scratch_operands = 2 : i64, tpu.core_type = #tpu.core_type<tc>, window_params = [{transform_indices = @transform_0, window_bounds = array<i64: 1, 36, 8>}, {pipeline_mode = #tpu.pipeline_mode<synchronous>, transform_indices = @transform_1, window_bounds = array<i64: 9, 8, 16>}, {pipeline_mode = #tpu.pipeline_mode<synchronous>, transform_indices = @transform_2, window_bounds = array<i64: 1, 16>}, {pipeline_mode = #tpu.pipeline_mode<synchronous>, transform_indices = @transform_3, window_bounds = array<i64: 9, 16, 16>}, {pipeline_mode = #tpu.pipeline_mode<synchronous>, transform_indices = @transform_4, window_bounds = array<i64: 1, 16>}, {pipeline_mode = #tpu.pipeline_mode<synchronous>, transform_indices = @transform_5, window_bounds = array<i64: 22, 1>}, {pipeline_mode = #tpu.pipeline_mode<synchronous>, transform_indices = @transform_6, window_bounds = array<i64: 2, 4>}, {pipeline_mode = #tpu.pipeline_mode<synchronous>, transform_indices = @transform_7, window_bounds = array<i64: 2, 4>}, {transform_indices = @transform_8, window_bounds = array<i64: 1, 16, 16>}]} {
    %cst = arith.constant 0.000000e+00 : f32
    %0 = vector.broadcast %cst : f32 to vector<22x16xf32>
    %c0 = arith.constant 0 : index
    %c0_0 = arith.constant 0 : index
    %c0_1 = arith.constant 0 : index
    %1 = vector.load %arg1[%c0, %c0_0, %c0_1] : memref<1x36x8xf32, #tpu.memory_space<vmem>>, vector<1x22x8xf32>
    %2 = vector.shape_cast %1 : vector<1x22x8xf32> to vector<22x8xf32>
    %c0_2 = arith.constant 0 : index
    %c0_3 = arith.constant 0 : index
    %c0_4 = arith.constant 0 : index
    %3 = vector.load %arg2[%c0_2, %c0_3, %c0_4] : memref<9x8x16xf32, #tpu.memory_space<vmem>>, vector<1x8x16xf32>
    %4 = vector.shape_cast %3 : vector<1x8x16xf32> to vector<8x16xf32>
    %cst_5 = arith.constant dense<0.000000e+00> : vector<22x16xf32>
    %5 = tpu.matmul %2, %4, %cst_5 {dimension_numbers = #tpu.dot_dimension_numbers<[1], [0], [0], [1], [0, 0, 1, 1], [], []>} : vector<22x8xf32>, vector<8x16xf32>, vector<22x16xf32> -> vector<22x16xf32>
    %6 = arith.addf %0, %5 : vector<22x16xf32>
    %c0_6 = arith.constant 0 : index
    %c1 = arith.constant 1 : index
    %c0_7 = arith.constant 0 : index
    %7 = vector.load %arg1[%c0_6, %c1, %c0_7] : memref<1x36x8xf32, #tpu.memory_space<vmem>>, vector<1x22x8xf32>
    %8 = vector.shape_cast %7 : vector<1x22x8xf32> to vector<22x8xf32>
    %c1_8 = arith.constant 1 : index
    %c0_9 = arith.constant 0 : index
    %c0_10 = arith.constant 0 : index
    %9 = vector.load %arg2[%c1_8, %c0_9, %c0_10] : memref<9x8x16xf32, #tpu.memory_space<vmem>>, vector<1x8x16xf32>
    %10 = vector.shape_cast %9 : vector<1x8x16xf32> to vector<8x16xf32>
    %cst_11 = arith.constant dense<0.000000e+00> : vector<22x16xf32>
    %11 = tpu.matmul %8, %10, %cst_11 {dimension_numbers = #tpu.dot_dimension_numbers<[1], [0], [0], [1], [0, 0, 1, 1], [], []>} : vector<22x8xf32>, vector<8x16xf32>, vector<22x16xf32> -> vector<22x16xf32>
    %12 = arith.addf %6, %11 : vector<22x16xf32>
    %c0_12 = arith.constant 0 : index
    %c2 = arith.constant 2 : index
    %c0_13 = arith.constant 0 : index
    %13 = vector.load %arg1[%c0_12, %c2, %c0_13] : memref<1x36x8xf32, #tpu.memory_space<vmem>>, vector<1x22x8xf32>
    %14 = vector.shape_cast %13 : vector<1x22x8xf32> to vector<22x8xf32>
    %c2_14 = arith.constant 2 : index
    %c0_15 = arith.constant 0 : index
    %c0_16 = arith.constant 0 : index
    %15 = vector.load %arg2[%c2_14, %c0_15, %c0_16] : memref<9x8x16xf32, #tpu.memory_space<vmem>>, vector<1x8x16xf32>
    %16 = vector.shape_cast %15 : vector<1x8x16xf32> to vector<8x16xf32>
    %cst_17 = arith.constant dense<0.000000e+00> : vector<22x16xf32>
    %17 = tpu.matmul %14, %16, %cst_17 {dimension_numbers = #tpu.dot_dimension_numbers<[1], [0], [0], [1], [0, 0, 1, 1], [], []>} : vector<22x8xf32>, vector<8x16xf32>, vector<22x16xf32> -> vector<22x16xf32>
    %18 = arith.addf %12, %17 : vector<22x16xf32>
    %c0_18 = arith.constant 0 : index
    %c6 = arith.constant 6 : index
    %c0_19 = arith.constant 0 : index
    %19 = vector.load %arg1[%c0_18, %c6, %c0_19] : memref<1x36x8xf32, #tpu.memory_space<vmem>>, vector<1x22x8xf32>
    %20 = vector.shape_cast %19 : vector<1x22x8xf32> to vector<22x8xf32>
    %c3 = arith.constant 3 : index
    %c0_20 = arith.constant 0 : index
    %c0_21 = arith.constant 0 : index
    %21 = vector.load %arg2[%c3, %c0_20, %c0_21] : memref<9x8x16xf32, #tpu.memory_space<vmem>>, vector<1x8x16xf32>
    %22 = vector.shape_cast %21 : vector<1x8x16xf32> to vector<8x16xf32>
    %cst_22 = arith.constant dense<0.000000e+00> : vector<22x16xf32>
    %23 = tpu.matmul %20, %22, %cst_22 {dimension_numbers = #tpu.dot_dimension_numbers<[1], [0], [0], [1], [0, 0, 1, 1], [], []>} : vector<22x8xf32>, vector<8x16xf32>, vector<22x16xf32> -> vector<22x16xf32>
    %24 = arith.addf %18, %23 : vector<22x16xf32>
    %c0_23 = arith.constant 0 : index
    %c7 = arith.constant 7 : index
    %c0_24 = arith.constant 0 : index
    %25 = vector.load %arg1[%c0_23, %c7, %c0_24] : memref<1x36x8xf32, #tpu.memory_space<vmem>>, vector<1x22x8xf32>
    %26 = vector.shape_cast %25 : vector<1x22x8xf32> to vector<22x8xf32>
    %c4 = arith.constant 4 : index
    %c0_25 = arith.constant 0 : index
    %c0_26 = arith.constant 0 : index
    %27 = vector.load %arg2[%c4, %c0_25, %c0_26] : memref<9x8x16xf32, #tpu.memory_space<vmem>>, vector<1x8x16xf32>
    %28 = vector.shape_cast %27 : vector<1x8x16xf32> to vector<8x16xf32>
    %cst_27 = arith.constant dense<0.000000e+00> : vector<22x16xf32>
    %29 = tpu.matmul %26, %28, %cst_27 {dimension_numbers = #tpu.dot_dimension_numbers<[1], [0], [0], [1], [0, 0, 1, 1], [], []>} : vector<22x8xf32>, vector<8x16xf32>, vector<22x16xf32> -> vector<22x16xf32>
    %30 = arith.addf %24, %29 : vector<22x16xf32>
    %c0_28 = arith.constant 0 : index
    %c8 = arith.constant 8 : index
    %c0_29 = arith.constant 0 : index
    %31 = vector.load %arg1[%c0_28, %c8, %c0_29] : memref<1x36x8xf32, #tpu.memory_space<vmem>>, vector<1x22x8xf32>
    %32 = vector.shape_cast %31 : vector<1x22x8xf32> to vector<22x8xf32>
    %c5 = arith.constant 5 : index
    %c0_30 = arith.constant 0 : index
    %c0_31 = arith.constant 0 : index
    %33 = vector.load %arg2[%c5, %c0_30, %c0_31] : memref<9x8x16xf32, #tpu.memory_space<vmem>>, vector<1x8x16xf32>
    %34 = vector.shape_cast %33 : vector<1x8x16xf32> to vector<8x16xf32>
    %cst_32 = arith.constant dense<0.000000e+00> : vector<22x16xf32>
    %35 = tpu.matmul %32, %34, %cst_32 {dimension_numbers = #tpu.dot_dimension_numbers<[1], [0], [0], [1], [0, 0, 1, 1], [], []>} : vector<22x8xf32>, vector<8x16xf32>, vector<22x16xf32> -> vector<22x16xf32>
    %36 = arith.addf %30, %35 : vector<22x16xf32>
    %c0_33 = arith.constant 0 : index
    %c12 = arith.constant 12 : index
    %c0_34 = arith.constant 0 : index
    %37 = vector.load %arg1[%c0_33, %c12, %c0_34] : memref<1x36x8xf32, #tpu.memory_space<vmem>>, vector<1x22x8xf32>
    %38 = vector.shape_cast %37 : vector<1x22x8xf32> to vector<22x8xf32>
    %c6_35 = arith.constant 6 : index
    %c0_36 = arith.constant 0 : index
    %c0_37 = arith.constant 0 : index
    %39 = vector.load %arg2[%c6_35, %c0_36, %c0_37] : memref<9x8x16xf32, #tpu.memory_space<vmem>>, vector<1x8x16xf32>
    %40 = vector.shape_cast %39 : vector<1x8x16xf32> to vector<8x16xf32>
    %cst_38 = arith.constant dense<0.000000e+00> : vector<22x16xf32>
    %41 = tpu.matmul %38, %40, %cst_38 {dimension_numbers = #tpu.dot_dimension_numbers<[1], [0], [0], [1], [0, 0, 1, 1], [], []>} : vector<22x8xf32>, vector<8x16xf32>, vector<22x16xf32> -> vector<22x16xf32>
    %42 = arith.addf %36, %41 : vector<22x16xf32>
    %c0_39 = arith.constant 0 : index
    %c13 = arith.constant 13 : index
    %c0_40 = arith.constant 0 : index
    %43 = vector.load %arg1[%c0_39, %c13, %c0_40] : memref<1x36x8xf32, #tpu.memory_space<vmem>>, vector<1x22x8xf32>
    %44 = vector.shape_cast %43 : vector<1x22x8xf32> to vector<22x8xf32>
    %c7_41 = arith.constant 7 : index
    %c0_42 = arith.constant 0 : index
    %c0_43 = arith.constant 0 : index
    %45 = vector.load %arg2[%c7_41, %c0_42, %c0_43] : memref<9x8x16xf32, #tpu.memory_space<vmem>>, vector<1x8x16xf32>
    %46 = vector.shape_cast %45 : vector<1x8x16xf32> to vector<8x16xf32>
    %cst_44 = arith.constant dense<0.000000e+00> : vector<22x16xf32>
    %47 = tpu.matmul %44, %46, %cst_44 {dimension_numbers = #tpu.dot_dimension_numbers<[1], [0], [0], [1], [0, 0, 1, 1], [], []>} : vector<22x8xf32>, vector<8x16xf32>, vector<22x16xf32> -> vector<22x16xf32>
    %48 = arith.addf %42, %47 : vector<22x16xf32>
    %c0_45 = arith.constant 0 : index
    %c14 = arith.constant 14 : index
    %c0_46 = arith.constant 0 : index
    %49 = vector.load %arg1[%c0_45, %c14, %c0_46] : memref<1x36x8xf32, #tpu.memory_space<vmem>>, vector<1x22x8xf32>
    %50 = vector.shape_cast %49 : vector<1x22x8xf32> to vector<22x8xf32>
    %c8_47 = arith.constant 8 : index
    %c0_48 = arith.constant 0 : index
    %c0_49 = arith.constant 0 : index
    %51 = vector.load %arg2[%c8_47, %c0_48, %c0_49] : memref<9x8x16xf32, #tpu.memory_space<vmem>>, vector<1x8x16xf32>
    %52 = vector.shape_cast %51 : vector<1x8x16xf32> to vector<8x16xf32>
    %cst_50 = arith.constant dense<0.000000e+00> : vector<22x16xf32>
    %53 = tpu.matmul %50, %52, %cst_50 {dimension_numbers = #tpu.dot_dimension_numbers<[1], [0], [0], [1], [0, 0, 1, 1], [], []>} : vector<22x8xf32>, vector<8x16xf32>, vector<22x16xf32> -> vector<22x16xf32>
    %54 = arith.addf %48, %53 : vector<22x16xf32>
    %c0_51 = arith.constant 0 : index
    %c0_52 = arith.constant 0 : index
    %55 = vector.load %arg3[%c0_51, %c0_52] : memref<1x16xf32, #tpu.memory_space<vmem>>, vector<1x16xf32>
    %56 = vector.broadcast %55 : vector<1x16xf32> to vector<22x16xf32>
    %57 = arith.addf %54, %56 : vector<22x16xf32>
    %cst_53 = arith.constant 0.000000e+00 : f32
    %58 = vector.broadcast %cst_53 : f32 to vector<22x16xf32>
    %59 = arith.maximumf %57, %58 : vector<22x16xf32>
    %c0_54 = arith.constant 0 : index
    %c0_55 = arith.constant 0 : index
    %60 = vector.load %arg6[%c0_54, %c0_55] : memref<22x1xf32, #tpu.memory_space<vmem>>, vector<22x1xf32>
    %61 = vector.broadcast %60 : vector<22x1xf32> to vector<22x16xf32>
    %62 = arith.mulf %59, %61 : vector<22x16xf32>
    %cst_56 = arith.constant 0.000000e+00 : f32
    %63 = vector.broadcast %cst_56 : f32 to vector<7x16xf32>
    %c0_57 = arith.constant 0 : index
    %c0_58 = arith.constant 0 : index
    %64 = vector.load %arg10[%c0_57, %c0_58] : memref<36x16xf32, #tpu.memory_space<vmem>>, vector<7x16xf32>
    tpu.vector_store %arg10[%c0_57, %c0_58], %63 {strides = array<i32>} : memref<36x16xf32, #tpu.memory_space<vmem>>, vector<7x16xf32>,
    %cst_59 = arith.constant 0.000000e+00 : f32
    %65 = vector.broadcast %cst_59 : f32 to vector<7x16xf32>
    %c29 = arith.constant 29 : index
    %c0_60 = arith.constant 0 : index
    %66 = vector.load %arg10[%c29, %c0_60] : memref<36x16xf32, #tpu.memory_space<vmem>>, vector<7x16xf32>
    tpu.vector_store %arg10[%c29, %c0_60], %65 {strides = array<i32>} : memref<36x16xf32, #tpu.memory_space<vmem>>, vector<7x16xf32>,
    %c7_61 = arith.constant 7 : index
    %c0_62 = arith.constant 0 : index
    %67 = vector.load %arg10[%c7_61, %c0_62] : memref<36x16xf32, #tpu.memory_space<vmem>>, vector<22x16xf32>
    tpu.vector_store %arg10[%c7_61, %c0_62], %62 {strides = array<i32>} : memref<36x16xf32, #tpu.memory_space<vmem>>, vector<22x16xf32>,
    %cst_63 = arith.constant 0.000000e+00 : f32
    %68 = vector.broadcast %cst_63 : f32 to vector<22x16xf32>
    %c0_64 = arith.constant 0 : index
    %c0_65 = arith.constant 0 : index
    %69 = vector.load %arg10[%c0_64, %c0_65] : memref<36x16xf32, #tpu.memory_space<vmem>>, vector<22x16xf32>
    %c0_66 = arith.constant 0 : index
    %c0_67 = arith.constant 0 : index
    %c0_68 = arith.constant 0 : index
    %70 = vector.load %arg4[%c0_66, %c0_67, %c0_68] : memref<9x16x16xf32, #tpu.memory_space<vmem>>, vector<1x16x16xf32>
    %71 = vector.shape_cast %70 : vector<1x16x16xf32> to vector<16x16xf32>
    %cst_69 = arith.constant dense<0.000000e+00> : vector<22x16xf32>
    %72 = tpu.matmul %69, %71, %cst_69 {dimension_numbers = #tpu.dot_dimension_numbers<[1], [0], [0], [1], [0, 0, 1, 1], [], []>} : vector<22x16xf32>, vector<16x16xf32>, vector<22x16xf32> -> vector<22x16xf32>
    %73 = arith.addf %68, %72 : vector<22x16xf32>
    %c1_70 = arith.constant 1 : index
    %c0_71 = arith.constant 0 : index
    %74 = vector.load %arg10[%c1_70, %c0_71] : memref<36x16xf32, #tpu.memory_space<vmem>>, vector<22x16xf32>
    %c1_72 = arith.constant 1 : index
    %c0_73 = arith.constant 0 : index
    %c0_74 = arith.constant 0 : index
    %75 = vector.load %arg4[%c1_72, %c0_73, %c0_74] : memref<9x16x16xf32, #tpu.memory_space<vmem>>, vector<1x16x16xf32>
    %76 = vector.shape_cast %75 : vector<1x16x16xf32> to vector<16x16xf32>
    %cst_75 = arith.constant dense<0.000000e+00> : vector<22x16xf32>
    %77 = tpu.matmul %74, %76, %cst_75 {dimension_numbers = #tpu.dot_dimension_numbers<[1], [0], [0], [1], [0, 0, 1, 1], [], []>} : vector<22x16xf32>, vector<16x16xf32>, vector<22x16xf32> -> vector<22x16xf32>
    %78 = arith.addf %73, %77 : vector<22x16xf32>
    %c2_76 = arith.constant 2 : index
    %c0_77 = arith.constant 0 : index
    %79 = vector.load %arg10[%c2_76, %c0_77] : memref<36x16xf32, #tpu.memory_space<vmem>>, vector<22x16xf32>
    %c2_78 = arith.constant 2 : index
    %c0_79 = arith.constant 0 : index
    %c0_80 = arith.constant 0 : index
    %80 = vector.load %arg4[%c2_78, %c0_79, %c0_80] : memref<9x16x16xf32, #tpu.memory_space<vmem>>, vector<1x16x16xf32>
    %81 = vector.shape_cast %80 : vector<1x16x16xf32> to vector<16x16xf32>
    %cst_81 = arith.constant dense<0.000000e+00> : vector<22x16xf32>
    %82 = tpu.matmul %79, %81, %cst_81 {dimension_numbers = #tpu.dot_dimension_numbers<[1], [0], [0], [1], [0, 0, 1, 1], [], []>} : vector<22x16xf32>, vector<16x16xf32>, vector<22x16xf32> -> vector<22x16xf32>
    %83 = arith.addf %78, %82 : vector<22x16xf32>
    %c6_82 = arith.constant 6 : index
    %c0_83 = arith.constant 0 : index
    %84 = vector.load %arg10[%c6_82, %c0_83] : memref<36x16xf32, #tpu.memory_space<vmem>>, vector<22x16xf32>
    %c3_84 = arith.constant 3 : index
    %c0_85 = arith.constant 0 : index
    %c0_86 = arith.constant 0 : index
    %85 = vector.load %arg4[%c3_84, %c0_85, %c0_86] : memref<9x16x16xf32, #tpu.memory_space<vmem>>, vector<1x16x16xf32>
    %86 = vector.shape_cast %85 : vector<1x16x16xf32> to vector<16x16xf32>
    %cst_87 = arith.constant dense<0.000000e+00> : vector<22x16xf32>
    %87 = tpu.matmul %84, %86, %cst_87 {dimension_numbers = #tpu.dot_dimension_numbers<[1], [0], [0], [1], [0, 0, 1, 1], [], []>} : vector<22x16xf32>, vector<16x16xf32>, vector<22x16xf32> -> vector<22x16xf32>
    %88 = arith.addf %83, %87 : vector<22x16xf32>
    %c7_88 = arith.constant 7 : index
    %c0_89 = arith.constant 0 : index
    %89 = vector.load %arg10[%c7_88, %c0_89] : memref<36x16xf32, #tpu.memory_space<vmem>>, vector<22x16xf32>
    %c4_90 = arith.constant 4 : index
    %c0_91 = arith.constant 0 : index
    %c0_92 = arith.constant 0 : index
    %90 = vector.load %arg4[%c4_90, %c0_91, %c0_92] : memref<9x16x16xf32, #tpu.memory_space<vmem>>, vector<1x16x16xf32>
    %91 = vector.shape_cast %90 : vector<1x16x16xf32> to vector<16x16xf32>
    %cst_93 = arith.constant dense<0.000000e+00> : vector<22x16xf32>
    %92 = tpu.matmul %89, %91, %cst_93 {dimension_numbers = #tpu.dot_dimension_numbers<[1], [0], [0], [1], [0, 0, 1, 1], [], []>} : vector<22x16xf32>, vector<16x16xf32>, vector<22x16xf32> -> vector<22x16xf32>
    %93 = arith.addf %88, %92 : vector<22x16xf32>
    %c8_94 = arith.constant 8 : index
    %c0_95 = arith.constant 0 : index
    %94 = vector.load %arg10[%c8_94, %c0_95] : memref<36x16xf32, #tpu.memory_space<vmem>>, vector<22x16xf32>
    %c5_96 = arith.constant 5 : index
    %c0_97 = arith.constant 0 : index
    %c0_98 = arith.constant 0 : index
    %95 = vector.load %arg4[%c5_96, %c0_97, %c0_98] : memref<9x16x16xf32, #tpu.memory_space<vmem>>, vector<1x16x16xf32>
    %96 = vector.shape_cast %95 : vector<1x16x16xf32> to vector<16x16xf32>
    %cst_99 = arith.constant dense<0.000000e+00> : vector<22x16xf32>
    %97 = tpu.matmul %94, %96, %cst_99 {dimension_numbers = #tpu.dot_dimension_numbers<[1], [0], [0], [1], [0, 0, 1, 1], [], []>} : vector<22x16xf32>, vector<16x16xf32>, vector<22x16xf32> -> vector<22x16xf32>
    %98 = arith.addf %93, %97 : vector<22x16xf32>
    %c12_100 = arith.constant 12 : index
    %c0_101 = arith.constant 0 : index
    %99 = vector.load %arg10[%c12_100, %c0_101] : memref<36x16xf32, #tpu.memory_space<vmem>>, vector<22x16xf32>
    %c6_102 = arith.constant 6 : index
    %c0_103 = arith.constant 0 : index
    %c0_104 = arith.constant 0 : index
    %100 = vector.load %arg4[%c6_102, %c0_103, %c0_104] : memref<9x16x16xf32, #tpu.memory_space<vmem>>, vector<1x16x16xf32>
    %101 = vector.shape_cast %100 : vector<1x16x16xf32> to vector<16x16xf32>
    %cst_105 = arith.constant dense<0.000000e+00> : vector<22x16xf32>
    %102 = tpu.matmul %99, %101, %cst_105 {dimension_numbers = #tpu.dot_dimension_numbers<[1], [0], [0], [1], [0, 0, 1, 1], [], []>} : vector<22x16xf32>, vector<16x16xf32>, vector<22x16xf32> -> vector<22x16xf32>
    %103 = arith.addf %98, %102 : vector<22x16xf32>
    %c13_106 = arith.constant 13 : index
    %c0_107 = arith.constant 0 : index
    %104 = vector.load %arg10[%c13_106, %c0_107] : memref<36x16xf32, #tpu.memory_space<vmem>>, vector<22x16xf32>
    %c7_108 = arith.constant 7 : index
    %c0_109 = arith.constant 0 : index
    %c0_110 = arith.constant 0 : index
    %105 = vector.load %arg4[%c7_108, %c0_109, %c0_110] : memref<9x16x16xf32, #tpu.memory_space<vmem>>, vector<1x16x16xf32>
    %106 = vector.shape_cast %105 : vector<1x16x16xf32> to vector<16x16xf32>
    %cst_111 = arith.constant dense<0.000000e+00> : vector<22x16xf32>
    %107 = tpu.matmul %104, %106, %cst_111 {dimension_numbers = #tpu.dot_dimension_numbers<[1], [0], [0], [1], [0, 0, 1, 1], [], []>} : vector<22x16xf32>, vector<16x16xf32>, vector<22x16xf32> -> vector<22x16xf32>
    %108 = arith.addf %103, %107 : vector<22x16xf32>
    %c14_112 = arith.constant 14 : index
    %c0_113 = arith.constant 0 : index
    %109 = vector.load %arg10[%c14_112, %c0_113] : memref<36x16xf32, #tpu.memory_space<vmem>>, vector<22x16xf32>
    %c8_114 = arith.constant 8 : index
    %c0_115 = arith.constant 0 : index
    %c0_116 = arith.constant 0 : index
    %110 = vector.load %arg4[%c8_114, %c0_115, %c0_116] : memref<9x16x16xf32, #tpu.memory_space<vmem>>, vector<1x16x16xf32>
    %111 = vector.shape_cast %110 : vector<1x16x16xf32> to vector<16x16xf32>
    %cst_117 = arith.constant dense<0.000000e+00> : vector<22x16xf32>
    %112 = tpu.matmul %109, %111, %cst_117 {dimension_numbers = #tpu.dot_dimension_numbers<[1], [0], [0], [1], [0, 0, 1, 1], [], []>} : vector<22x16xf32>, vector<16x16xf32>, vector<22x16xf32> -> vector<22x16xf32>
    %113 = arith.addf %108, %112 : vector<22x16xf32>
    %c0_118 = arith.constant 0 : index
    %c0_119 = arith.constant 0 : index
    %114 = vector.load %arg5[%c0_118, %c0_119] : memref<1x16xf32, #tpu.memory_space<vmem>>, vector<1x16xf32>
    %115 = vector.broadcast %114 : vector<1x16xf32> to vector<22x16xf32>
    %116 = arith.addf %113, %115 : vector<22x16xf32>
    %cst_120 = arith.constant 0.000000e+00 : f32
    %117 = vector.broadcast %cst_120 : f32 to vector<22x16xf32>
    %118 = arith.maximumf %116, %117 : vector<22x16xf32>
    %c0_121 = arith.constant 0 : index
    %c0_122 = arith.constant 0 : index
    %119 = vector.load %arg11[%c0_121, %c0_122] : memref<22x16xf32, #tpu.memory_space<vmem>>, vector<22x16xf32>
    tpu.vector_store %arg11[%c0_121, %c0_122], %118 {strides = array<i32>} : memref<22x16xf32, #tpu.memory_space<vmem>>, vector<22x16xf32>,
    %c0_123 = arith.constant 0 : index
    %c0_124 = arith.constant 0 : index
    %120 = vector.load %arg7[%c0_123, %c0_124] : memref<2x4xf32, #tpu.memory_space<vmem>>, vector<2x4xf32>
    %c0_125 = arith.constant 0 : index
    %c0_126 = arith.constant 0 : index
    %121 = vector.load %arg8[%c0_125, %c0_126] : memref<2x4xf32, #tpu.memory_space<vmem>>, vector<2x4xf32>
    %cst_127 = arith.constant 0.000000e+00 : f32
    %122 = vector.broadcast %cst_127 : f32 to vector<16x16xf32>
    %c0_128 = arith.constant 0 : index
    %c0_129 = arith.constant 0 : index
    %c0_130 = arith.constant 0 : index
    %123 = vector.load %arg9[%c0_128, %c0_129, %c0_130] : memref<1x16x16xf32, #tpu.memory_space<vmem>>, vector<1x16x16xf32>
    %124 = vector.shape_cast %123 : vector<1x16x16xf32> to vector<16x16xf32>
    %125 = vector.shape_cast %122 : vector<16x16xf32> to vector<1x16x16xf32>
    tpu.vector_store %arg9[%c0_128, %c0_129, %c0_130], %125 {strides = array<i32>} : memref<1x16x16xf32, #tpu.memory_space<vmem>>, vector<1x16x16xf32>,
    %c0_131 = arith.constant 0 : index
    %c0_132 = arith.constant 0 : index
    %126 = vector.load %arg11[%c0_131, %c0_132] : memref<22x16xf32, #tpu.memory_space<vmem>>, vector<4x16xf32>
    %c6_133 = arith.constant 6 : index
    %c0_134 = arith.constant 0 : index
    %127 = vector.load %arg11[%c6_133, %c0_134] : memref<22x16xf32, #tpu.memory_space<vmem>>, vector<4x16xf32>
    %128 = arith.maximumf %126, %127 : vector<4x16xf32>
    %cst_135 = arith.constant dense<0.000000e+00> : vector<2x16xf32>
    %129 = tpu.matmul %120, %128, %cst_135 {dimension_numbers = #tpu.dot_dimension_numbers<[1], [0], [0], [1], [0, 0, 1, 1], [], []>} : vector<2x4xf32>, vector<4x16xf32>, vector<2x16xf32> -> vector<2x16xf32>
    %cst_136 = arith.constant dense<0.000000e+00> : vector<2x16xf32>
    %130 = tpu.matmul %121, %128, %cst_136 {dimension_numbers = #tpu.dot_dimension_numbers<[1], [0], [0], [1], [0, 0, 1, 1], [], []>} : vector<2x4xf32>, vector<4x16xf32>, vector<2x16xf32> -> vector<2x16xf32>
    %131 = arith.maximumf %129, %130 : vector<2x16xf32>
    %c0_137 = arith.constant 0 : index
    %c5_138 = arith.constant 5 : index
    %c0_139 = arith.constant 0 : index
    %132 = vector.load %arg9[%c0_137, %c5_138, %c0_139] : memref<1x16x16xf32, #tpu.memory_space<vmem>>, vector<1x2x16xf32>
    %133 = vector.shape_cast %132 : vector<1x2x16xf32> to vector<2x16xf32>
    %134 = vector.shape_cast %131 : vector<2x16xf32> to vector<1x2x16xf32>
    tpu.vector_store %arg9[%c0_137, %c5_138, %c0_139], %134 {strides = array<i32>} : memref<1x16x16xf32, #tpu.memory_space<vmem>>, vector<1x2x16xf32>,
    %c12_140 = arith.constant 12 : index
    %c0_141 = arith.constant 0 : index
    %135 = vector.load %arg11[%c12_140, %c0_141] : memref<22x16xf32, #tpu.memory_space<vmem>>, vector<4x16xf32>
    %c18 = arith.constant 18 : index
    %c0_142 = arith.constant 0 : index
    %136 = vector.load %arg11[%c18, %c0_142] : memref<22x16xf32, #tpu.memory_space<vmem>>, vector<4x16xf32>
    %137 = arith.maximumf %135, %136 : vector<4x16xf32>
    %cst_143 = arith.constant dense<0.000000e+00> : vector<2x16xf32>
    %138 = tpu.matmul %120, %137, %cst_143 {dimension_numbers = #tpu.dot_dimension_numbers<[1], [0], [0], [1], [0, 0, 1, 1], [], []>} : vector<2x4xf32>, vector<4x16xf32>, vector<2x16xf32> -> vector<2x16xf32>
    %cst_144 = arith.constant dense<0.000000e+00> : vector<2x16xf32>
    %139 = tpu.matmul %121, %137, %cst_144 {dimension_numbers = #tpu.dot_dimension_numbers<[1], [0], [0], [1], [0, 0, 1, 1], [], []>} : vector<2x4xf32>, vector<4x16xf32>, vector<2x16xf32> -> vector<2x16xf32>
    %140 = arith.maximumf %138, %139 : vector<2x16xf32>
    %c0_145 = arith.constant 0 : index
    %c9 = arith.constant 9 : index
    %c0_146 = arith.constant 0 : index
    %141 = vector.load %arg9[%c0_145, %c9, %c0_146] : memref<1x16x16xf32, #tpu.memory_space<vmem>>, vector<1x2x16xf32>
    %142 = vector.shape_cast %141 : vector<1x2x16xf32> to vector<2x16xf32>
    %143 = vector.shape_cast %140 : vector<2x16xf32> to vector<1x2x16xf32>
    tpu.vector_store %arg9[%c0_145, %c9, %c0_146], %143 {strides = array<i32>} : memref<1x16x16xf32, #tpu.memory_space<vmem>>, vector<1x2x16xf32>,
    return
  }
  func.func @transform_0(%arg0: i32) -> (i32, i32, i32) {
    %c0_i32 = arith.constant 0 : i32
    %c0_i32_0 = arith.constant 0 : i32
    %c0_i32_1 = arith.constant 0 : i32
    return %arg0, %c0_i32, %c0_i32_0 : i32, i32, i32
  }
  func.func @transform_1(%arg0: i32) -> (i32, i32, i32) {
    %c0_i32 = arith.constant 0 : i32
    %c0_i32_0 = arith.constant 0 : i32
    %c0_i32_1 = arith.constant 0 : i32
    %c0_i32_2 = arith.constant 0 : i32
    return %c0_i32, %c0_i32_0, %c0_i32_1 : i32, i32, i32
  }
  func.func @transform_2(%arg0: i32) -> (i32, i32) {
    %c0_i32 = arith.constant 0 : i32
    %c0_i32_0 = arith.constant 0 : i32
    %c0_i32_1 = arith.constant 0 : i32
    return %c0_i32, %c0_i32_0 : i32, i32
  }
  func.func @transform_3(%arg0: i32) -> (i32, i32, i32) {
    %c0_i32 = arith.constant 0 : i32
    %c0_i32_0 = arith.constant 0 : i32
    %c0_i32_1 = arith.constant 0 : i32
    %c0_i32_2 = arith.constant 0 : i32
    return %c0_i32, %c0_i32_0, %c0_i32_1 : i32, i32, i32
  }
  func.func @transform_4(%arg0: i32) -> (i32, i32) {
    %c0_i32 = arith.constant 0 : i32
    %c0_i32_0 = arith.constant 0 : i32
    %c0_i32_1 = arith.constant 0 : i32
    return %c0_i32, %c0_i32_0 : i32, i32
  }
  func.func @transform_5(%arg0: i32) -> (i32, i32) {
    %c0_i32 = arith.constant 0 : i32
    %c0_i32_0 = arith.constant 0 : i32
    %c0_i32_1 = arith.constant 0 : i32
    return %c0_i32, %c0_i32_0 : i32, i32
  }
  func.func @transform_6(%arg0: i32) -> (i32, i32) {
    %c0_i32 = arith.constant 0 : i32
    %c0_i32_0 = arith.constant 0 : i32
    %c0_i32_1 = arith.constant 0 : i32
    return %c0_i32, %c0_i32_0 : i32, i32
  }
  func.func @transform_7(%arg0: i32) -> (i32, i32) {
    %c0_i32 = arith.constant 0 : i32
    %c0_i32_0 = arith.constant 0 : i32
    %c0_i32_1 = arith.constant 0 : i32
    return %c0_i32, %c0_i32_0 : i32, i32
  }
  func.func @transform_8(%arg0: i32) -> (i32, i32, i32) {
    %c0_i32 = arith.constant 0 : i32
    %c0_i32_0 = arith.constant 0 : i32
    %c0_i32_1 = arith.constant 0 : i32
    return %arg0, %c0_i32, %c0_i32_0 : i32, i32, i32
  }
}

module attributes {stable_mosaic.version = 11 : i64} {
  func.func @kernel(%arg0: i32, %arg1: memref<1x16x16xf32, #tpu.memory_space<vmem>>, %arg2: memref<9x16x16xf32, #tpu.memory_space<vmem>>, %arg3: memref<1x16xf32, #tpu.memory_space<vmem>>, %arg4: memref<9x16x16xf32, #tpu.memory_space<vmem>>, %arg5: memref<1x16xf32, #tpu.memory_space<vmem>>, %arg6: memref<6x1xf32, #tpu.memory_space<vmem>>, %arg7: memref<1x16x16xf32, #tpu.memory_space<vmem>>, %arg8: memref<16x16xf32, #tpu.memory_space<vmem>>) attributes {dimension_semantics = [#tpu.dimension_semantics<parallel>], iteration_bounds = array<i64: 2>, scalar_prefetch = 0 : i64, scratch_operands = 1 : i64, tpu.core_type = #tpu.core_type<tc>, window_params = [{transform_indices = @transform_0, window_bounds = array<i64: 1, 16, 16>}, {pipeline_mode = #tpu.pipeline_mode<synchronous>, transform_indices = @transform_1, window_bounds = array<i64: 9, 16, 16>}, {pipeline_mode = #tpu.pipeline_mode<synchronous>, transform_indices = @transform_2, window_bounds = array<i64: 1, 16>}, {pipeline_mode = #tpu.pipeline_mode<synchronous>, transform_indices = @transform_3, window_bounds = array<i64: 9, 16, 16>}, {pipeline_mode = #tpu.pipeline_mode<synchronous>, transform_indices = @transform_4, window_bounds = array<i64: 1, 16>}, {pipeline_mode = #tpu.pipeline_mode<synchronous>, transform_indices = @transform_5, window_bounds = array<i64: 6, 1>}, {transform_indices = @transform_6, window_bounds = array<i64: 1, 16, 16>}]} {
    %cst = arith.constant 0.000000e+00 : f32
    %0 = vector.broadcast %cst : f32 to vector<6x16xf32>
    %c0 = arith.constant 0 : index
    %c0_0 = arith.constant 0 : index
    %c0_1 = arith.constant 0 : index
    %1 = vector.load %arg1[%c0, %c0_0, %c0_1] : memref<1x16x16xf32, #tpu.memory_space<vmem>>, vector<1x6x16xf32>
    %2 = vector.shape_cast %1 : vector<1x6x16xf32> to vector<6x16xf32>
    %c0_2 = arith.constant 0 : index
    %c0_3 = arith.constant 0 : index
    %c0_4 = arith.constant 0 : index
    %3 = vector.load %arg2[%c0_2, %c0_3, %c0_4] : memref<9x16x16xf32, #tpu.memory_space<vmem>>, vector<1x16x16xf32>
    %4 = vector.shape_cast %3 : vector<1x16x16xf32> to vector<16x16xf32>
    %cst_5 = arith.constant dense<0.000000e+00> : vector<6x16xf32>
    %5 = tpu.matmul %2, %4, %cst_5 {dimension_numbers = #tpu.dot_dimension_numbers<[1], [0], [0], [1], [0, 0, 1, 1], [], []>} : vector<6x16xf32>, vector<16x16xf32>, vector<6x16xf32> -> vector<6x16xf32>
    %6 = arith.addf %0, %5 : vector<6x16xf32>
    %c0_6 = arith.constant 0 : index
    %c1 = arith.constant 1 : index
    %c0_7 = arith.constant 0 : index
    %7 = vector.load %arg1[%c0_6, %c1, %c0_7] : memref<1x16x16xf32, #tpu.memory_space<vmem>>, vector<1x6x16xf32>
    %8 = vector.shape_cast %7 : vector<1x6x16xf32> to vector<6x16xf32>
    %c1_8 = arith.constant 1 : index
    %c0_9 = arith.constant 0 : index
    %c0_10 = arith.constant 0 : index
    %9 = vector.load %arg2[%c1_8, %c0_9, %c0_10] : memref<9x16x16xf32, #tpu.memory_space<vmem>>, vector<1x16x16xf32>
    %10 = vector.shape_cast %9 : vector<1x16x16xf32> to vector<16x16xf32>
    %cst_11 = arith.constant dense<0.000000e+00> : vector<6x16xf32>
    %11 = tpu.matmul %8, %10, %cst_11 {dimension_numbers = #tpu.dot_dimension_numbers<[1], [0], [0], [1], [0, 0, 1, 1], [], []>} : vector<6x16xf32>, vector<16x16xf32>, vector<6x16xf32> -> vector<6x16xf32>
    %12 = arith.addf %6, %11 : vector<6x16xf32>
    %c0_12 = arith.constant 0 : index
    %c2 = arith.constant 2 : index
    %c0_13 = arith.constant 0 : index
    %13 = vector.load %arg1[%c0_12, %c2, %c0_13] : memref<1x16x16xf32, #tpu.memory_space<vmem>>, vector<1x6x16xf32>
    %14 = vector.shape_cast %13 : vector<1x6x16xf32> to vector<6x16xf32>
    %c2_14 = arith.constant 2 : index
    %c0_15 = arith.constant 0 : index
    %c0_16 = arith.constant 0 : index
    %15 = vector.load %arg2[%c2_14, %c0_15, %c0_16] : memref<9x16x16xf32, #tpu.memory_space<vmem>>, vector<1x16x16xf32>
    %16 = vector.shape_cast %15 : vector<1x16x16xf32> to vector<16x16xf32>
    %cst_17 = arith.constant dense<0.000000e+00> : vector<6x16xf32>
    %17 = tpu.matmul %14, %16, %cst_17 {dimension_numbers = #tpu.dot_dimension_numbers<[1], [0], [0], [1], [0, 0, 1, 1], [], []>} : vector<6x16xf32>, vector<16x16xf32>, vector<6x16xf32> -> vector<6x16xf32>
    %18 = arith.addf %12, %17 : vector<6x16xf32>
    %c0_18 = arith.constant 0 : index
    %c4 = arith.constant 4 : index
    %c0_19 = arith.constant 0 : index
    %19 = vector.load %arg1[%c0_18, %c4, %c0_19] : memref<1x16x16xf32, #tpu.memory_space<vmem>>, vector<1x6x16xf32>
    %20 = vector.shape_cast %19 : vector<1x6x16xf32> to vector<6x16xf32>
    %c3 = arith.constant 3 : index
    %c0_20 = arith.constant 0 : index
    %c0_21 = arith.constant 0 : index
    %21 = vector.load %arg2[%c3, %c0_20, %c0_21] : memref<9x16x16xf32, #tpu.memory_space<vmem>>, vector<1x16x16xf32>
    %22 = vector.shape_cast %21 : vector<1x16x16xf32> to vector<16x16xf32>
    %cst_22 = arith.constant dense<0.000000e+00> : vector<6x16xf32>
    %23 = tpu.matmul %20, %22, %cst_22 {dimension_numbers = #tpu.dot_dimension_numbers<[1], [0], [0], [1], [0, 0, 1, 1], [], []>} : vector<6x16xf32>, vector<16x16xf32>, vector<6x16xf32> -> vector<6x16xf32>
    %24 = arith.addf %18, %23 : vector<6x16xf32>
    %c0_23 = arith.constant 0 : index
    %c5 = arith.constant 5 : index
    %c0_24 = arith.constant 0 : index
    %25 = vector.load %arg1[%c0_23, %c5, %c0_24] : memref<1x16x16xf32, #tpu.memory_space<vmem>>, vector<1x6x16xf32>
    %26 = vector.shape_cast %25 : vector<1x6x16xf32> to vector<6x16xf32>
    %c4_25 = arith.constant 4 : index
    %c0_26 = arith.constant 0 : index
    %c0_27 = arith.constant 0 : index
    %27 = vector.load %arg2[%c4_25, %c0_26, %c0_27] : memref<9x16x16xf32, #tpu.memory_space<vmem>>, vector<1x16x16xf32>
    %28 = vector.shape_cast %27 : vector<1x16x16xf32> to vector<16x16xf32>
    %cst_28 = arith.constant dense<0.000000e+00> : vector<6x16xf32>
    %29 = tpu.matmul %26, %28, %cst_28 {dimension_numbers = #tpu.dot_dimension_numbers<[1], [0], [0], [1], [0, 0, 1, 1], [], []>} : vector<6x16xf32>, vector<16x16xf32>, vector<6x16xf32> -> vector<6x16xf32>
    %30 = arith.addf %24, %29 : vector<6x16xf32>
    %c0_29 = arith.constant 0 : index
    %c6 = arith.constant 6 : index
    %c0_30 = arith.constant 0 : index
    %31 = vector.load %arg1[%c0_29, %c6, %c0_30] : memref<1x16x16xf32, #tpu.memory_space<vmem>>, vector<1x6x16xf32>
    %32 = vector.shape_cast %31 : vector<1x6x16xf32> to vector<6x16xf32>
    %c5_31 = arith.constant 5 : index
    %c0_32 = arith.constant 0 : index
    %c0_33 = arith.constant 0 : index
    %33 = vector.load %arg2[%c5_31, %c0_32, %c0_33] : memref<9x16x16xf32, #tpu.memory_space<vmem>>, vector<1x16x16xf32>
    %34 = vector.shape_cast %33 : vector<1x16x16xf32> to vector<16x16xf32>
    %cst_34 = arith.constant dense<0.000000e+00> : vector<6x16xf32>
    %35 = tpu.matmul %32, %34, %cst_34 {dimension_numbers = #tpu.dot_dimension_numbers<[1], [0], [0], [1], [0, 0, 1, 1], [], []>} : vector<6x16xf32>, vector<16x16xf32>, vector<6x16xf32> -> vector<6x16xf32>
    %36 = arith.addf %30, %35 : vector<6x16xf32>
    %c0_35 = arith.constant 0 : index
    %c8 = arith.constant 8 : index
    %c0_36 = arith.constant 0 : index
    %37 = vector.load %arg1[%c0_35, %c8, %c0_36] : memref<1x16x16xf32, #tpu.memory_space<vmem>>, vector<1x6x16xf32>
    %38 = vector.shape_cast %37 : vector<1x6x16xf32> to vector<6x16xf32>
    %c6_37 = arith.constant 6 : index
    %c0_38 = arith.constant 0 : index
    %c0_39 = arith.constant 0 : index
    %39 = vector.load %arg2[%c6_37, %c0_38, %c0_39] : memref<9x16x16xf32, #tpu.memory_space<vmem>>, vector<1x16x16xf32>
    %40 = vector.shape_cast %39 : vector<1x16x16xf32> to vector<16x16xf32>
    %cst_40 = arith.constant dense<0.000000e+00> : vector<6x16xf32>
    %41 = tpu.matmul %38, %40, %cst_40 {dimension_numbers = #tpu.dot_dimension_numbers<[1], [0], [0], [1], [0, 0, 1, 1], [], []>} : vector<6x16xf32>, vector<16x16xf32>, vector<6x16xf32> -> vector<6x16xf32>
    %42 = arith.addf %36, %41 : vector<6x16xf32>
    %c0_41 = arith.constant 0 : index
    %c9 = arith.constant 9 : index
    %c0_42 = arith.constant 0 : index
    %43 = vector.load %arg1[%c0_41, %c9, %c0_42] : memref<1x16x16xf32, #tpu.memory_space<vmem>>, vector<1x6x16xf32>
    %44 = vector.shape_cast %43 : vector<1x6x16xf32> to vector<6x16xf32>
    %c7 = arith.constant 7 : index
    %c0_43 = arith.constant 0 : index
    %c0_44 = arith.constant 0 : index
    %45 = vector.load %arg2[%c7, %c0_43, %c0_44] : memref<9x16x16xf32, #tpu.memory_space<vmem>>, vector<1x16x16xf32>
    %46 = vector.shape_cast %45 : vector<1x16x16xf32> to vector<16x16xf32>
    %cst_45 = arith.constant dense<0.000000e+00> : vector<6x16xf32>
    %47 = tpu.matmul %44, %46, %cst_45 {dimension_numbers = #tpu.dot_dimension_numbers<[1], [0], [0], [1], [0, 0, 1, 1], [], []>} : vector<6x16xf32>, vector<16x16xf32>, vector<6x16xf32> -> vector<6x16xf32>
    %48 = arith.addf %42, %47 : vector<6x16xf32>
    %c0_46 = arith.constant 0 : index
    %c10 = arith.constant 10 : index
    %c0_47 = arith.constant 0 : index
    %49 = vector.load %arg1[%c0_46, %c10, %c0_47] : memref<1x16x16xf32, #tpu.memory_space<vmem>>, vector<1x6x16xf32>
    %50 = vector.shape_cast %49 : vector<1x6x16xf32> to vector<6x16xf32>
    %c8_48 = arith.constant 8 : index
    %c0_49 = arith.constant 0 : index
    %c0_50 = arith.constant 0 : index
    %51 = vector.load %arg2[%c8_48, %c0_49, %c0_50] : memref<9x16x16xf32, #tpu.memory_space<vmem>>, vector<1x16x16xf32>
    %52 = vector.shape_cast %51 : vector<1x16x16xf32> to vector<16x16xf32>
    %cst_51 = arith.constant dense<0.000000e+00> : vector<6x16xf32>
    %53 = tpu.matmul %50, %52, %cst_51 {dimension_numbers = #tpu.dot_dimension_numbers<[1], [0], [0], [1], [0, 0, 1, 1], [], []>} : vector<6x16xf32>, vector<16x16xf32>, vector<6x16xf32> -> vector<6x16xf32>
    %54 = arith.addf %48, %53 : vector<6x16xf32>
    %c0_52 = arith.constant 0 : index
    %c0_53 = arith.constant 0 : index
    %55 = vector.load %arg3[%c0_52, %c0_53] : memref<1x16xf32, #tpu.memory_space<vmem>>, vector<1x16xf32>
    %56 = vector.broadcast %55 : vector<1x16xf32> to vector<6x16xf32>
    %57 = arith.addf %54, %56 : vector<6x16xf32>
    %cst_54 = arith.constant 0.000000e+00 : f32
    %58 = vector.broadcast %cst_54 : f32 to vector<6x16xf32>
    %59 = arith.maximumf %57, %58 : vector<6x16xf32>
    %c0_55 = arith.constant 0 : index
    %c0_56 = arith.constant 0 : index
    %60 = vector.load %arg6[%c0_55, %c0_56] : memref<6x1xf32, #tpu.memory_space<vmem>>, vector<6x1xf32>
    %61 = vector.broadcast %60 : vector<6x1xf32> to vector<6x16xf32>
    %62 = arith.mulf %59, %61 : vector<6x16xf32>
    %cst_57 = arith.constant 0.000000e+00 : f32
    %63 = vector.broadcast %cst_57 : f32 to vector<5x16xf32>
    %c0_58 = arith.constant 0 : index
    %c0_59 = arith.constant 0 : index
    %64 = vector.load %arg8[%c0_58, %c0_59] : memref<16x16xf32, #tpu.memory_space<vmem>>, vector<5x16xf32>
    tpu.vector_store %arg8[%c0_58, %c0_59], %63 {strides = array<i32>} : memref<16x16xf32, #tpu.memory_space<vmem>>, vector<5x16xf32>,
    %cst_60 = arith.constant 0.000000e+00 : f32
    %65 = vector.broadcast %cst_60 : f32 to vector<5x16xf32>
    %c11 = arith.constant 11 : index
    %c0_61 = arith.constant 0 : index
    %66 = vector.load %arg8[%c11, %c0_61] : memref<16x16xf32, #tpu.memory_space<vmem>>, vector<5x16xf32>
    tpu.vector_store %arg8[%c11, %c0_61], %65 {strides = array<i32>} : memref<16x16xf32, #tpu.memory_space<vmem>>, vector<5x16xf32>,
    %c5_62 = arith.constant 5 : index
    %c0_63 = arith.constant 0 : index
    %67 = vector.load %arg8[%c5_62, %c0_63] : memref<16x16xf32, #tpu.memory_space<vmem>>, vector<6x16xf32>
    tpu.vector_store %arg8[%c5_62, %c0_63], %62 {strides = array<i32>} : memref<16x16xf32, #tpu.memory_space<vmem>>, vector<6x16xf32>,
    %cst_64 = arith.constant 0.000000e+00 : f32
    %68 = vector.broadcast %cst_64 : f32 to vector<6x16xf32>
    %c0_65 = arith.constant 0 : index
    %c0_66 = arith.constant 0 : index
    %69 = vector.load %arg8[%c0_65, %c0_66] : memref<16x16xf32, #tpu.memory_space<vmem>>, vector<6x16xf32>
    %c0_67 = arith.constant 0 : index
    %c0_68 = arith.constant 0 : index
    %c0_69 = arith.constant 0 : index
    %70 = vector.load %arg4[%c0_67, %c0_68, %c0_69] : memref<9x16x16xf32, #tpu.memory_space<vmem>>, vector<1x16x16xf32>
    %71 = vector.shape_cast %70 : vector<1x16x16xf32> to vector<16x16xf32>
    %cst_70 = arith.constant dense<0.000000e+00> : vector<6x16xf32>
    %72 = tpu.matmul %69, %71, %cst_70 {dimension_numbers = #tpu.dot_dimension_numbers<[1], [0], [0], [1], [0, 0, 1, 1], [], []>} : vector<6x16xf32>, vector<16x16xf32>, vector<6x16xf32> -> vector<6x16xf32>
    %73 = arith.addf %68, %72 : vector<6x16xf32>
    %c1_71 = arith.constant 1 : index
    %c0_72 = arith.constant 0 : index
    %74 = vector.load %arg8[%c1_71, %c0_72] : memref<16x16xf32, #tpu.memory_space<vmem>>, vector<6x16xf32>
    %c1_73 = arith.constant 1 : index
    %c0_74 = arith.constant 0 : index
    %c0_75 = arith.constant 0 : index
    %75 = vector.load %arg4[%c1_73, %c0_74, %c0_75] : memref<9x16x16xf32, #tpu.memory_space<vmem>>, vector<1x16x16xf32>
    %76 = vector.shape_cast %75 : vector<1x16x16xf32> to vector<16x16xf32>
    %cst_76 = arith.constant dense<0.000000e+00> : vector<6x16xf32>
    %77 = tpu.matmul %74, %76, %cst_76 {dimension_numbers = #tpu.dot_dimension_numbers<[1], [0], [0], [1], [0, 0, 1, 1], [], []>} : vector<6x16xf32>, vector<16x16xf32>, vector<6x16xf32> -> vector<6x16xf32>
    %78 = arith.addf %73, %77 : vector<6x16xf32>
    %c2_77 = arith.constant 2 : index
    %c0_78 = arith.constant 0 : index
    %79 = vector.load %arg8[%c2_77, %c0_78] : memref<16x16xf32, #tpu.memory_space<vmem>>, vector<6x16xf32>
    %c2_79 = arith.constant 2 : index
    %c0_80 = arith.constant 0 : index
    %c0_81 = arith.constant 0 : index
    %80 = vector.load %arg4[%c2_79, %c0_80, %c0_81] : memref<9x16x16xf32, #tpu.memory_space<vmem>>, vector<1x16x16xf32>
    %81 = vector.shape_cast %80 : vector<1x16x16xf32> to vector<16x16xf32>
    %cst_82 = arith.constant dense<0.000000e+00> : vector<6x16xf32>
    %82 = tpu.matmul %79, %81, %cst_82 {dimension_numbers = #tpu.dot_dimension_numbers<[1], [0], [0], [1], [0, 0, 1, 1], [], []>} : vector<6x16xf32>, vector<16x16xf32>, vector<6x16xf32> -> vector<6x16xf32>
    %83 = arith.addf %78, %82 : vector<6x16xf32>
    %c4_83 = arith.constant 4 : index
    %c0_84 = arith.constant 0 : index
    %84 = vector.load %arg8[%c4_83, %c0_84] : memref<16x16xf32, #tpu.memory_space<vmem>>, vector<6x16xf32>
    %c3_85 = arith.constant 3 : index
    %c0_86 = arith.constant 0 : index
    %c0_87 = arith.constant 0 : index
    %85 = vector.load %arg4[%c3_85, %c0_86, %c0_87] : memref<9x16x16xf32, #tpu.memory_space<vmem>>, vector<1x16x16xf32>
    %86 = vector.shape_cast %85 : vector<1x16x16xf32> to vector<16x16xf32>
    %cst_88 = arith.constant dense<0.000000e+00> : vector<6x16xf32>
    %87 = tpu.matmul %84, %86, %cst_88 {dimension_numbers = #tpu.dot_dimension_numbers<[1], [0], [0], [1], [0, 0, 1, 1], [], []>} : vector<6x16xf32>, vector<16x16xf32>, vector<6x16xf32> -> vector<6x16xf32>
    %88 = arith.addf %83, %87 : vector<6x16xf32>
    %c5_89 = arith.constant 5 : index
    %c0_90 = arith.constant 0 : index
    %89 = vector.load %arg8[%c5_89, %c0_90] : memref<16x16xf32, #tpu.memory_space<vmem>>, vector<6x16xf32>
    %c4_91 = arith.constant 4 : index
    %c0_92 = arith.constant 0 : index
    %c0_93 = arith.constant 0 : index
    %90 = vector.load %arg4[%c4_91, %c0_92, %c0_93] : memref<9x16x16xf32, #tpu.memory_space<vmem>>, vector<1x16x16xf32>
    %91 = vector.shape_cast %90 : vector<1x16x16xf32> to vector<16x16xf32>
    %cst_94 = arith.constant dense<0.000000e+00> : vector<6x16xf32>
    %92 = tpu.matmul %89, %91, %cst_94 {dimension_numbers = #tpu.dot_dimension_numbers<[1], [0], [0], [1], [0, 0, 1, 1], [], []>} : vector<6x16xf32>, vector<16x16xf32>, vector<6x16xf32> -> vector<6x16xf32>
    %93 = arith.addf %88, %92 : vector<6x16xf32>
    %c6_95 = arith.constant 6 : index
    %c0_96 = arith.constant 0 : index
    %94 = vector.load %arg8[%c6_95, %c0_96] : memref<16x16xf32, #tpu.memory_space<vmem>>, vector<6x16xf32>
    %c5_97 = arith.constant 5 : index
    %c0_98 = arith.constant 0 : index
    %c0_99 = arith.constant 0 : index
    %95 = vector.load %arg4[%c5_97, %c0_98, %c0_99] : memref<9x16x16xf32, #tpu.memory_space<vmem>>, vector<1x16x16xf32>
    %96 = vector.shape_cast %95 : vector<1x16x16xf32> to vector<16x16xf32>
    %cst_100 = arith.constant dense<0.000000e+00> : vector<6x16xf32>
    %97 = tpu.matmul %94, %96, %cst_100 {dimension_numbers = #tpu.dot_dimension_numbers<[1], [0], [0], [1], [0, 0, 1, 1], [], []>} : vector<6x16xf32>, vector<16x16xf32>, vector<6x16xf32> -> vector<6x16xf32>
    %98 = arith.addf %93, %97 : vector<6x16xf32>
    %c8_101 = arith.constant 8 : index
    %c0_102 = arith.constant 0 : index
    %99 = vector.load %arg8[%c8_101, %c0_102] : memref<16x16xf32, #tpu.memory_space<vmem>>, vector<6x16xf32>
    %c6_103 = arith.constant 6 : index
    %c0_104 = arith.constant 0 : index
    %c0_105 = arith.constant 0 : index
    %100 = vector.load %arg4[%c6_103, %c0_104, %c0_105] : memref<9x16x16xf32, #tpu.memory_space<vmem>>, vector<1x16x16xf32>
    %101 = vector.shape_cast %100 : vector<1x16x16xf32> to vector<16x16xf32>
    %cst_106 = arith.constant dense<0.000000e+00> : vector<6x16xf32>
    %102 = tpu.matmul %99, %101, %cst_106 {dimension_numbers = #tpu.dot_dimension_numbers<[1], [0], [0], [1], [0, 0, 1, 1], [], []>} : vector<6x16xf32>, vector<16x16xf32>, vector<6x16xf32> -> vector<6x16xf32>
    %103 = arith.addf %98, %102 : vector<6x16xf32>
    %c9_107 = arith.constant 9 : index
    %c0_108 = arith.constant 0 : index
    %104 = vector.load %arg8[%c9_107, %c0_108] : memref<16x16xf32, #tpu.memory_space<vmem>>, vector<6x16xf32>
    %c7_109 = arith.constant 7 : index
    %c0_110 = arith.constant 0 : index
    %c0_111 = arith.constant 0 : index
    %105 = vector.load %arg4[%c7_109, %c0_110, %c0_111] : memref<9x16x16xf32, #tpu.memory_space<vmem>>, vector<1x16x16xf32>
    %106 = vector.shape_cast %105 : vector<1x16x16xf32> to vector<16x16xf32>
    %cst_112 = arith.constant dense<0.000000e+00> : vector<6x16xf32>
    %107 = tpu.matmul %104, %106, %cst_112 {dimension_numbers = #tpu.dot_dimension_numbers<[1], [0], [0], [1], [0, 0, 1, 1], [], []>} : vector<6x16xf32>, vector<16x16xf32>, vector<6x16xf32> -> vector<6x16xf32>
    %108 = arith.addf %103, %107 : vector<6x16xf32>
    %c10_113 = arith.constant 10 : index
    %c0_114 = arith.constant 0 : index
    %109 = vector.load %arg8[%c10_113, %c0_114] : memref<16x16xf32, #tpu.memory_space<vmem>>, vector<6x16xf32>
    %c8_115 = arith.constant 8 : index
    %c0_116 = arith.constant 0 : index
    %c0_117 = arith.constant 0 : index
    %110 = vector.load %arg4[%c8_115, %c0_116, %c0_117] : memref<9x16x16xf32, #tpu.memory_space<vmem>>, vector<1x16x16xf32>
    %111 = vector.shape_cast %110 : vector<1x16x16xf32> to vector<16x16xf32>
    %cst_118 = arith.constant dense<0.000000e+00> : vector<6x16xf32>
    %112 = tpu.matmul %109, %111, %cst_118 {dimension_numbers = #tpu.dot_dimension_numbers<[1], [0], [0], [1], [0, 0, 1, 1], [], []>} : vector<6x16xf32>, vector<16x16xf32>, vector<6x16xf32> -> vector<6x16xf32>
    %113 = arith.addf %108, %112 : vector<6x16xf32>
    %c0_119 = arith.constant 0 : index
    %c0_120 = arith.constant 0 : index
    %114 = vector.load %arg5[%c0_119, %c0_120] : memref<1x16xf32, #tpu.memory_space<vmem>>, vector<1x16xf32>
    %115 = vector.broadcast %114 : vector<1x16xf32> to vector<6x16xf32>
    %116 = arith.addf %113, %115 : vector<6x16xf32>
    %cst_121 = arith.constant 0.000000e+00 : f32
    %117 = vector.broadcast %cst_121 : f32 to vector<6x16xf32>
    %118 = arith.maximumf %116, %117 : vector<6x16xf32>
    %cst_122 = arith.constant 0.000000e+00 : f32
    %119 = vector.broadcast %cst_122 : f32 to vector<5x16xf32>
    %c0_123 = arith.constant 0 : index
    %c0_124 = arith.constant 0 : index
    %c0_125 = arith.constant 0 : index
    %120 = vector.load %arg7[%c0_123, %c0_124, %c0_125] : memref<1x16x16xf32, #tpu.memory_space<vmem>>, vector<1x5x16xf32>
    %121 = vector.shape_cast %120 : vector<1x5x16xf32> to vector<5x16xf32>
    %122 = vector.shape_cast %119 : vector<5x16xf32> to vector<1x5x16xf32>
    tpu.vector_store %arg7[%c0_123, %c0_124, %c0_125], %122 {strides = array<i32>} : memref<1x16x16xf32, #tpu.memory_space<vmem>>, vector<1x5x16xf32>,
    %cst_126 = arith.constant 0.000000e+00 : f32
    %123 = vector.broadcast %cst_126 : f32 to vector<5x16xf32>
    %c0_127 = arith.constant 0 : index
    %c11_128 = arith.constant 11 : index
    %c0_129 = arith.constant 0 : index
    %124 = vector.load %arg7[%c0_127, %c11_128, %c0_129] : memref<1x16x16xf32, #tpu.memory_space<vmem>>, vector<1x5x16xf32>
    %125 = vector.shape_cast %124 : vector<1x5x16xf32> to vector<5x16xf32>
    %126 = vector.shape_cast %123 : vector<5x16xf32> to vector<1x5x16xf32>
    tpu.vector_store %arg7[%c0_127, %c11_128, %c0_129], %126 {strides = array<i32>} : memref<1x16x16xf32, #tpu.memory_space<vmem>>, vector<1x5x16xf32>,
    %c0_130 = arith.constant 0 : index
    %c0_131 = arith.constant 0 : index
    %127 = vector.load %arg6[%c0_130, %c0_131] : memref<6x1xf32, #tpu.memory_space<vmem>>, vector<6x1xf32>
    %128 = vector.broadcast %127 : vector<6x1xf32> to vector<6x16xf32>
    %129 = arith.mulf %118, %128 : vector<6x16xf32>
    %c0_132 = arith.constant 0 : index
    %c5_133 = arith.constant 5 : index
    %c0_134 = arith.constant 0 : index
    %130 = vector.load %arg7[%c0_132, %c5_133, %c0_134] : memref<1x16x16xf32, #tpu.memory_space<vmem>>, vector<1x6x16xf32>
    %131 = vector.shape_cast %130 : vector<1x6x16xf32> to vector<6x16xf32>
    %132 = vector.shape_cast %129 : vector<6x16xf32> to vector<1x6x16xf32>
    tpu.vector_store %arg7[%c0_132, %c5_133, %c0_134], %132 {strides = array<i32>} : memref<1x16x16xf32, #tpu.memory_space<vmem>>, vector<1x6x16xf32>,
    return
  }
  func.func @transform_0(%arg0: i32) -> (i32, i32, i32) {
    %c0_i32 = arith.constant 0 : i32
    %c0_i32_0 = arith.constant 0 : i32
    %c0_i32_1 = arith.constant 0 : i32
    return %arg0, %c0_i32, %c0_i32_0 : i32, i32, i32
  }
  func.func @transform_1(%arg0: i32) -> (i32, i32, i32) {
    %c0_i32 = arith.constant 0 : i32
    %c0_i32_0 = arith.constant 0 : i32
    %c0_i32_1 = arith.constant 0 : i32
    %c0_i32_2 = arith.constant 0 : i32
    return %c0_i32, %c0_i32_0, %c0_i32_1 : i32, i32, i32
  }
  func.func @transform_2(%arg0: i32) -> (i32, i32) {
    %c0_i32 = arith.constant 0 : i32
    %c0_i32_0 = arith.constant 0 : i32
    %c0_i32_1 = arith.constant 0 : i32
    return %c0_i32, %c0_i32_0 : i32, i32
  }
  func.func @transform_3(%arg0: i32) -> (i32, i32, i32) {
    %c0_i32 = arith.constant 0 : i32
    %c0_i32_0 = arith.constant 0 : i32
    %c0_i32_1 = arith.constant 0 : i32
    %c0_i32_2 = arith.constant 0 : i32
    return %c0_i32, %c0_i32_0, %c0_i32_1 : i32, i32, i32
  }
  func.func @transform_4(%arg0: i32) -> (i32, i32) {
    %c0_i32 = arith.constant 0 : i32
    %c0_i32_0 = arith.constant 0 : i32
    %c0_i32_1 = arith.constant 0 : i32
    return %c0_i32, %c0_i32_0 : i32, i32
  }
  func.func @transform_5(%arg0: i32) -> (i32, i32) {
    %c0_i32 = arith.constant 0 : i32
    %c0_i32_0 = arith.constant 0 : i32
    %c0_i32_1 = arith.constant 0 : i32
    return %c0_i32, %c0_i32_0 : i32, i32
  }
  func.func @transform_6(%arg0: i32) -> (i32, i32, i32) {
    %c0_i32 = arith.constant 0 : i32
    %c0_i32_0 = arith.constant 0 : i32
    %c0_i32_1 = arith.constant 0 : i32
    return %arg0, %c0_i32, %c0_i32_0 : i32, i32, i32
  }
}

</mosaic_0001>

<bundles_post_ra>
// kernel: parametric_vgg_forward.7
= control target key start
LH: loop header
LB: loop body
LE: loop exit
PB: predicated region body
PF: predicated region fallthrough
CT: control target
= control target key end

     0   :  { %11 = vsyncpa [#allocation4], 0  ;;  %s3011_s0 = inlined_call_operand.hbm [shape: f32[2,16,16], index: 0, kind: input, shape index: {}]   ;;  %s3012_s1 = inlined_call_operand.hbm [shape: f32[9,16,16], index: 1, kind: input, shape index: {}]   ;;  %s3013_s2 = inlined_call_operand.hbm [shape: f32[1,16], index: 2, kind: input, shape index: {}]   ;;  %s3014_s3 = inlined_call_operand.hbm [shape: f32[9,16,16], index: 3, kind: input, shape index: {}]   ;;  %s3015_s4 = inlined_call_operand.hbm [shape: f32[1,16], index: 4, kind: input, shape index: {}]   ;;  %s3016_s5 = inlined_call_operand.hbm [shape: f32[6,1], index: 5, kind: input, shape index: {}]   ;;  %s3017_s6 = inlined_call_operand.hbm [shape: f32[2,16,16], index: 6, kind: output, shape index: {}]  }
   0x1   :  { %13 = vsyncpa [#allocation4 + $0x1], 0 }
   0x2   :  { %14 = vsyncpa [#allocation7], 0 }
   0x3   :  { %15 = vsyncpa [#allocation10], 0 }
   0x4   :  { %16 = vsyncpa [#allocation13], 0 }
   0x5   :  { %17 = vsyncpa [#allocation5], 0 }
   0x6   :  { %19 = vsyncpa [#allocation5 + $0x1], 0  ;;  %s2597_s21 = smov 0   ;;  %s2599_s22 = smov 0  }
   0x7   :  { %s2601_s23 = smov 0   ;;  %s2603_s24 = smov 0  }
   0x8 LB: > { %s2547_s25 = smov [#allocation6]   ;;  %s2618_s27 = sadd.s32 4294967295, %s2545_s24   ;;  %s2545_s24 = sphi %s2603_s24, %s3042_s24   ;;  %s2541_s23 = sphi %s2601_s23, %s3041_s23   ;;  %s2537_s22 = sphi %s2599_s22, %s3040_s22   ;;  %s2533_s21 = sphi %s2597_s21, %s3039_s21  }
   0x9   : > { %s199_s26 = sshll.u32 %s2547_s25, 4  ;;  %p1912_p0 = scmp.ge.s32.totalorder %s2545_s24, 1  ;;  %s2623_s26 = int_to_ptr.vmem [resolvable:$true] %s199_s26 }
   0xa   : > { %p3018_p1 = scmp.eq.s32.totalorder %s2618_s27, 0  ;;  %p187_p2 = scmp.lt.s32.totalorder %s2545_s24, 3 }
   0xb   : > { %s2548_s29 = smov [#allocation9]   ;;  %s2549_s8 = smov [#allocation8]  }
   0xc   : > { %p2625_p3 = pnand %p1912_p0, %p187_p2  ;;  %s223_s30 = sshll.u32 %s2548_s29, 4  ;;  %s2638_s30 = int_to_ptr.vmem [resolvable:$true] %s223_s30 }
   0xd   : > { %s213_s9 = sshll.u32 %s2549_s8, 4  ;;  %s2297_s12 = scalar_lea.hbm %s3012_s1, 2304  ;;  %s2640_s9 = int_to_ptr.vmem [resolvable:$true] %s213_s9 }
   0xe   : > { %s3021_s28 = scalar_select %p2625_p3, 1, 0 }
   0xf   : > { %p2215_p5 = pneg %p2625_p3  ;;  %p2298_p7 = scmp.ne.s32.totalorder %s3012_s1, %s2297_s12 }
  0x10   : > { %p2304_p11 = scmp.lt.u32.totalorder %s2297_s12, %s3012_s1 }
  0x11   : > { %p2634_p6 = pnand %p2215_p5, %p3018_p1 }
  0x13   : > { %p2650_p8 = pneg %p2634_p6 }
  0x15   : > { %p2300_p9 = pnand %p2650_p8, %p2298_p7 }
  0x17   : > { %p2301_p10 = pneg %p2300_p9 }
  0x19   : > { %p2306_p12 = pnand %p2304_p11, %p2301_p10 }
  0x1b   : > { %2309 = shalt.err (!%p2306_p12)
}
  0x1c   : > { %s2310_s18 = scalar_lea.vmem %s2623_s26, 2304  ;;  %p2318_p5 = scmp.lt.s32.totalorder %s2623_s26, %s2623_s26 }
  0x1d   : > { %p2311_p13 = scmp.ne.s32.totalorder %s2623_s26, %s2310_s18  ;;  %p2319_p4 = scmp.lt.s32.totalorder %s2310_s18, %s2310_s18 }
  0x1f   : > { %p2313_p0 = pnand %p2311_p13, %p2650_p8  ;;  %p2320_p7 = por %p2319_p4, %p2318_p5 }
  0x21   : > { %p2314_p2 = pneg %p2313_p0 }
  0x23   : > { %p2321_p9 = pnand %p2320_p7, %p2314_p2 }
  0x25   : > { %2324 = shalt.err (!%p2321_p9)
}
  0x26   : > { %s2550_s19 = smov 128   ;;  %s2551_s20 = smov 8  }
  0x27   : > { %2218 = dma.hbm_to_vmem [thread:$0]  (!%p2634_p6), %s3012_s1, 2304, %s2623_s26, [#allocation7], %s2550_s19, %s2550_s19, %s2551_s20  }
  0x28   : > { %s2325_s11 = scalar_lea.hbm %s3014_s3, 2304 }
  0x29   : > { %p2326_p4 = scmp.ne.s32.totalorder %s3014_s3, %s2325_s11  ;;  %p2332_p12 = scmp.lt.u32.totalorder %s2325_s11, %s3014_s3 }
  0x2b   : > { %p2328_p10 = pnand %p2326_p4, %p2650_p8 }
  0x2d   : > { %p2329_p11 = pneg %p2328_p10 }
  0x2f   : > { %p2334_p13 = pnand %p2332_p12, %p2329_p11 }
  0x31   : > { %2337 = shalt.err (!%p2334_p13)
}
  0x32   : > { %s2338_s26 = scalar_lea.vmem %s2638_s30, 2304  ;;  %p2346_p7 = scmp.lt.s32.totalorder %s2638_s30, %s2638_s30 }
  0x33   : > { %p2339_p0 = scmp.ne.s32.totalorder %s2638_s30, %s2338_s26  ;;  %p2347_p9 = scmp.lt.s32.totalorder %s2338_s26, %s2338_s26 }
  0x35   : > { %p2341_p2 = pnand %p2339_p0, %p2650_p8  ;;  %p2348_p4 = por %p2347_p9, %p2346_p7 }
  0x37   : > { %p2342_p5 = pneg %p2341_p2 }
  0x39   : > { %p2349_p10 = pnand %p2348_p4, %p2342_p5 }
  0x3b   : > { %2352 = shalt.err (!%p2349_p10)
}
  0x3c   : > { %2224 = dma.hbm_to_vmem [thread:$0]  (!%p2634_p6), %s3014_s3, 2304, %s2638_s30, [#allocation10], %s2550_s19, %s2550_s19, %s2551_s20  }
  0x3d   : > { %s2353_s8 = scalar_lea.hbm %s3013_s2, 16 }
  0x3e   : > { %p2354_p11 = scmp.ne.s32.totalorder %s3013_s2, %s2353_s8  ;;  %p2360_p0 = scmp.lt.u32.totalorder %s2353_s8, %s3013_s2 }
  0x40   : > { %p2356_p12 = pnand %p2354_p11, %p2650_p8 }
  0x42   : > { %p2357_p13 = pneg %p2356_p12 }
  0x44   : > { %p2362_p2 = pnand %p2360_p0, %p2357_p13 }
  0x46   : > { %2365 = shalt.err (!%p2362_p2)
}
  0x47   : > { %s2366_s30 = scalar_lea.vmem %s2640_s9, 16  ;;  %s2373_s14 = scalar_lea.vmem %s2640_s9, 32 }
  0x48   : > { %p2367_p5 = scmp.ne.s32.totalorder %s2640_s9, %s2366_s30  ;;  %p2374_p4 = scmp.lt.s32.totalorder %s2640_s9, %s2640_s9 }
  0x49   : > { %p2375_p10 = scmp.lt.s32.totalorder %s2373_s14, %s2366_s30 }
  0x4a   : > { %p2369_p7 = pnand %p2367_p5, %p2650_p8 }
  0x4b   : > { %p2376_p11 = por %p2375_p10, %p2374_p4 }
  0x4c   : > { %p2370_p9 = pneg %p2369_p7 }
  0x4e   : > { %p2377_p12 = pnand %p2376_p11, %p2370_p9 }
  0x50   : > { %2380 = shalt.err (!%p2377_p12)
}
  0x51   : > { %2221 = dma.hbm_to_vmem [thread:$0]  (!%p2634_p6), %s3013_s2, 16, %s2640_s9, [#allocation7]  }
  0x52   : > { %s2552_s17 = smov [#allocation11]   ;;  %s2553_s25 = smov [#allocation12]  }
  0x53   : > { %s237_s18 = sshll.u32 %s2552_s17, 4  ;;  %s248_s29 = sshll.u32 %s2553_s25, 4  ;;  %s238_s18 = int_to_ptr.vmem [resolvable:$true] %s237_s18  ;;  %s249_s29 = int_to_ptr.vmem [resolvable:$true] %s248_s29 }
  0x54   : > { %s2381_s11 = scalar_lea.hbm %s3015_s4, 16 }
  0x55   : > { %p2382_p13 = scmp.ne.s32.totalorder %s3015_s4, %s2381_s11  ;;  %p2388_p5 = scmp.lt.u32.totalorder %s2381_s11, %s3015_s4 }
  0x57   : > { %p2384_p0 = pnand %p2382_p13, %p2650_p8 }
  0x59   : > { %p2385_p2 = pneg %p2384_p0 }
  0x5b   : > { %p2390_p7 = pnand %p2388_p5, %p2385_p2 }
  0x5d   : > { %2393 = shalt.err (!%p2390_p7)
}
  0x5e   : > { %s2394_s9 = scalar_lea.vmem %s238_s18, 16  ;;  %s2401_s16 = scalar_lea.vmem %s238_s18, 32 }
  0x5f   : > { %p2395_p9 = scmp.ne.s32.totalorder %s238_s18, %s2394_s9  ;;  %p2402_p11 = scmp.lt.s32.totalorder %s238_s18, %s238_s18 }
  0x60   : > { %p2403_p12 = scmp.lt.s32.totalorder %s2401_s16, %s2394_s9 }
  0x61   : > { %p2397_p4 = pnand %p2395_p9, %p2650_p8 }
  0x62   : > { %p2404_p1 = por %p2403_p12, %p2402_p11 }
  0x63   : > { %p2398_p10 = pneg %p2397_p4 }
  0x65   : > { %p2405_p3 = pnand %p2404_p1, %p2398_p10 }
  0x67   : > { %2408 = shalt.err (!%p2405_p3)
}
  0x68   : > { %2227 = dma.hbm_to_vmem [thread:$0]  (!%p2634_p6), %s3015_s4, 16, %s238_s18, [#allocation10]  }
  0x69   : > { %s2409_s10 = scalar_lea.hbm %s3016_s5, 128 }
  0x6a   : > { %p2410_p13 = scmp.ne.s32.totalorder %s3016_s5, %s2409_s10  ;;  %p2416_p3 = scmp.lt.u32.totalorder %s2409_s10, %s3016_s5 }
  0x6c   : > { %p2412_p0 = pnand %p2410_p13, %p2650_p8 }
  0x6e   : > { %p2413_p1 = pneg %p2412_p0 }
  0x70   : > { %p2418_p2 = pnand %p2416_p3, %p2413_p1 }
  0x72   : > { %2421 = shalt.err (!%p2418_p2)
}
  0x73   : > { %s2422_s14 = scalar_lea.vmem %s249_s29, 128  ;;  %p2430_p4 = scmp.lt.s32.totalorder %s249_s29, %s249_s29 }
  0x74   : > { %p2423_p5 = scmp.ne.s32.totalorder %s249_s29, %s2422_s14  ;;  %p2431_p10 = scmp.lt.s32.totalorder %s2422_s14, %s2422_s14 }
  0x76   : > { %p2425_p7 = pnand %p2423_p5, %p2650_p8  ;;  %p2432_p11 = por %p2431_p10, %p2430_p4 }
  0x78   : > { %p2426_p9 = pneg %p2425_p7 }
  0x7a   : > { %p2433_p12 = pnand %p2432_p11, %p2426_p9 }
  0x7c   : > { %2436 = shalt.err (!%p2433_p12)
}
  0x7d   : > { %2230 = dma.hbm_to_vmem [thread:$0]  (!%p2634_p6), %s3016_s5, 128, %s249_s29, [#allocation13]  }
  0x7e   : > { %s1911_s15 = sadd.s32 4294967294, %s2545_s24   ;;  %s2762_s7 = sadd.s32 1, %s2545_s24  }
  0x7f   : > { %s32_s16 = sadd.s32 1, %s2541_s23  ;;  %s29_s26 = ssub.s32 %s2545_s24, %s2762_s7 }
  0x80   : > { %p39_p8 = scmp.ne.s32.totalorder %s2541_s23, %s2537_s22  ;;  %p30_p13 = scmp.eq.s32.totalorder %s29_s26, 0 }
  0x81   : > { %p40_p0 = scmp.eq.s32.totalorder %s2545_s24, 0  ;;  %p45_p1 = scmp.ne.s32.totalorder %s2537_s22, %s2533_s21 }
  0x82   : > { %p174_p3 = scmp.eq.s32.totalorder %s2618_s27, 1  ;;  %p3024_p5 = scmp.eq.s32.totalorder %s2618_s27, 0 }
  0x83   : > { %s2774_s17 = scalar_select %p30_p13, %s2541_s23, %s32_s16  }
  0x84   : > { %p41_p2 = por %p40_p0, %p39_p8  ;;  %p2778_p7 = por %p3024_p5, %p45_p1 }
  0x85   : > { %p2782_p6 = por %p174_p3, %p39_p8  ;;  %p180_p9 = scmp.eq.s32.totalorder %s1911_s15, 1 }
  0x86   : > { %p2244_p4 = scmp.lt.s32.totalorder %s2545_s24, 2  ;;  %s259_s8 = sand.u32 1, %s2541_s23  }
  0x87   : > { %s3026_s29 = scalar_select %p2782_p6, 1, 0 }
  0x88   : > { %p2788_p10 = por %p180_p9, %p45_p1  ;;  %s1919_s11 = sshll.u32 %s259_s8, 4 }
  0x89   : > { %s1955_s12 = sshll.u32 %s2545_s24, 8  ;;  %s263_s18 = scalar_lea.vmem [#allocation3], %s1919_s11 }
  0x8a   : > { %s3027_s10 = scalar_select %p2788_p10, 1, 0 }
  0x8b   : > { %s2796_s14 = scalar_lea.hbm %s3011_s0, %s1955_s12  ;;  %s270_s9 = sshll.u32 %s263_s18, 4  ;;  %s2802_s9 = int_to_ptr.vmem [resolvable:$true] %s270_s9 }
  0x8c   : > { %p2798_p11 = pnand %p2244_p4, %p41_p2  ;;  %s2804_s16 = scalar_lea.sflag [#allocation4], %s259_s8 }
  0x8d   : > { %s2437_s26 = scalar_lea.hbm %s2796_s14, 256  ;;  %s2442_s13 = scalar_lea.hbm %s3011_s0, 512 }
  0x8e   : > { %p2438_p12 = scmp.ne.s32.totalorder %s2796_s14, %s2437_s26  ;;  %p2439_p8 = pneg %p2798_p11 }
  0x8f   : > { %p2443_p1 = scmp.lt.u32.totalorder %s2796_s14, %s3011_s0  ;;  %p2444_p3 = scmp.lt.u32.totalorder %s2442_s13, %s2437_s26 }
  0x90   : > { %p2440_p13 = pnand %p2439_p8, %p2438_p12  ;;  %p2446_p5 = scmp.lt.u32.totalorder %s2437_s26, %s2796_s14 }
  0x91   : > { %p2445_p2 = por %p2444_p3, %p2443_p1 }
  0x92   : > { %p2441_p0 = pneg %p2440_p13 }
  0x93   : > { %p2447_p9 = por %p2446_p5, %p2445_p2 }
  0x95   : > { %p2448_p4 = pnand %p2447_p9, %p2441_p0 }
  0x97   : > { %2451 = shalt.err (!%p2448_p4)
}
  0x98   : > { %s2452_s8 = scalar_lea.vmem %s2802_s9, 256  ;;  %s2554_s11 = smov [#allocation3]  }
  0x99   : > { %p2453_p12 = scmp.ne.s32.totalorder %s2802_s9, %s2452_s8  ;;  %s2457_s12 = sshll.u32 %s2554_s11, 4  ;;  %s2458_s12 = int_to_ptr.vmem [resolvable:$false] %s2457_s12 }
  0x9a   : > { %s2459_s30 = scalar_lea.vmem %s2458_s12, 512  ;;  %p2460_p6 = scmp.lt.s32.totalorder %s2802_s9, %s2458_s12 }
  0x9b   : > { %p2455_p13 = pnand %p2453_p12, %p2439_p8  ;;  %p2461_p1 = scmp.lt.s32.totalorder %s2459_s30, %s2452_s8 }
  0x9d   : > { %p2456_p10 = pneg %p2455_p13  ;;  %p2462_p3 = por %p2461_p1, %p2460_p6 }
  0x9f   : > { %p2463_p2 = pnand %p2462_p3, %p2456_p10 }
  0xa1   : > { %2466 = shalt.err (!%p2463_p2)
}
  0xa2   : > { %2234 = dma.hbm_to_vmem [thread:$0]  (!%p2798_p11), %s2796_s14, 256, %s2802_s9, %s2804_s16, %s2550_s19, %s2550_s19, %s2551_s20  }
  0xa3   : > { %p3029_p8 = scmp.ne.s32.totalorder %s3021_s28, 0 }
  0xa4   : > { %s2838_s26 = sand.u32 (!%p3029_p8), 1, %s2537_s22  }
  0xa5   : > { %282 = sbr.rel (%p3029_p8) target bundleno = 685 (0x2ad), region = 44  ;;  %s1923_s13 = sshll.u32 (!%p3029_p8), %s2838_s26, 4 }
  0xa6   : > { %s285_s18 = scalar_lea.sflag (!%p3029_p8), [#allocation4], %s2838_s26  ;;  %s2844_s15 = scalar_lea.vmem (!%p3029_p8), [#allocation3], %s1923_s13 }
  0xac   : > { %2512 = dma.done.wait (%p2778_p7), %s285_s18, 256  }
  0xad   : > { %2514 = vsyncadd (%p2778_p7), %s285_s18, 4294967040  ;;  %p3030_p6 = scmp.eq.s32.totalorder %s2618_s27, 0 }
  0xaf   : > { %2516 = dma.done.wait (%p3030_p6), [#allocation7], 2320   ;;  %p3031_p10 = pmov %p3030_p6 }
  0xb0   : > { %p3032_p11 = pmov %p3030_p6 }
  0xb1   : > { %2518 = vsyncadd (%p3031_p10), [#allocation7], 4294964976 }
  0xb2   : > { %2520 = dma.done.wait (%p3032_p11), [#allocation10], 2320   ;;  %p3033_p0 = pmov %p3030_p6 }
  0xb4   : > { %2522 = vsyncadd (%p3033_p0), [#allocation10], 4294964976  ;;  %p3034_p5 = pmov %p3033_p0 }
  0xb5   : > { %p3035_p9 = pmov %p3033_p0 }
  0xb6   : > { %2524 = dma.done.wait (%p3034_p5), [#allocation13], 128  }
  0xb7   : > { %2526 = vsyncadd (%p3035_p9), [#allocation13], 4294967168  ;;  %v2555_v0 = vmov 0.0|0.0   ;;  %vm2556_vm0 = vmmov 0   ;;  %v2557_v1 = vmov 0.0   ;;  %v2558_v2 = vmov 0  }
  0xb8   : > { %2137 = vmatprep.subr.bf16.mxu0 %v2555_v0  ;;  %2140 = vmatprep.subr.bf16.mxu1 %v2555_v0  ;;  %v342_v3 = vld [vmem:[#allocation6 + $0x10] sm:$0xff]  ;;  %v343_v4 = vld [vmem:[#allocation6 + $0x18] sm:$0xff]  ;;  %v338_v5 = vld [vmem:[#allocation6] sm:$0xff]  ;;  %vm344_vm1 = vcmask 130048   ;;  %vm1053_vm2 = vcmask 126976   ;;  %vm1056_vm3 = vcmask 128000  }
  0xb9   : > { %2015 = vmatprep.mubr.msk.f32.mxu0 %vm2556_vm0, %v2557_v1  ;;  %2022 = vmatprep.mubr.msk.f32.mxu1 %vm2556_vm0, %v2557_v1  ;;  %v2138_v6 = vpack.c.bf16 %v343_v4, %v342_v3  ;;  %v339_v7 = vld [vmem:[#allocation6 + $0x8] sm:$0xff]  ;;  %v493_v9 = vld [vmem:[#allocation6 + $0x20] sm:$0xff]  ;;  %v571_v11 = vld [vmem:[#allocation6 + $0x30] sm:$0xff]  ;;  %1054 = vst.msk [vmem:[#allocation2] sm:$0x1f] %vm1053_vm2, %v2557_v1  ;;  %s2950_s28 = scalar_lea.vmem [#allocation14], %s1923_s13 }
  0xba   : > { %2296 = vset.pattern.permute.xlu0 %v2558_v2  ;;  %v2141_v8 = vpack.c.bf16 %v339_v7, %v338_v5  ;;  %v494_v10 = vld [vmem:[#allocation6 + $0x28] sm:$0xff]  ;;  %v340_v12 = vld [vmem:[%s2844_s15 + $0x1] sm:$0x3f]  ;;  %v572_v14 = vld [vmem:[#allocation6 + $0x38] sm:$0xff]  ;;  %1055 = vst.msk [vmem:[#allocation2 + $0xb] sm:$0x1f] %vm1053_vm2, %v2557_v1 }
  0xbb   : > { %2139 = vmatpush3.bf16.msra.mxu0 %v2138_v6  ;;  %v2144_v13 = vpack.c.bf16 %v494_v10, %v493_v9  ;;  %v337_v15 = vld [vmem:[%s2844_s15] sm:$0x3f]  ;;  %v2147_v16 = vpack.c.bf16 %v572_v14, %v571_v11  ;;  %v650_v18 = vld [vmem:[#allocation6 + $0x48] sm:$0xff]  ;;  %v728_v20 = vld [vmem:[#allocation6 + $0x58] sm:$0xff]  ;;  %1766 = vst.msk [vmem:[%s2950_s28] sm:$0x1f] %vm1053_vm2, %v2557_v1 }
  0xbc   : > { %2142 = vmatpush3.bf16.msra.mxu1 %v2141_v8  ;;  %2143 = vmatprep.subr.bf16.mxu0 %v2555_v0  ;;  %v649_v17 = vld [vmem:[#allocation6 + $0x40] sm:$0xff]  ;;  %v727_v19 = vld [vmem:[#allocation6 + $0x50] sm:$0xff]  ;;  %v806_v26 = vld [vmem:[#allocation6 + $0x68] sm:$0xff]  ;;  %1767 = vst.msk [vmem:[%s2950_s28 + $0xb] sm:$0x1f] %vm1053_vm2, %v2557_v1  ;;  %s1956_s19 = sshll.u32 %s2618_s27, 8 }
  0xbd   : > { %2146 = vmatprep.subr.bf16.mxu1 %v2555_v0  ;;  %v491_v21 = vld [vmem:[%s2844_s15 + $0x2] sm:$0x3f]  ;;  %v2150_v22 = vpack.c.bf16 %v650_v18, %v649_v17  ;;  %v2153_v24 = vpack.c.bf16 %v728_v20, %v727_v19  ;;  %v884_v28 = vld [vmem:[#allocation6 + $0x78] sm:$0xff]  ;;  %v962_v34 = vld [vmem:[#allocation6 + $0x88] sm:$0xff]  ;;  %s1790_s20 = sshll.u32 %s2950_s28, 4  ;;  %s2963_s9 = scalar_lea.hbm %s3017_s6, %s1956_s19  ;;  %s2965_s20 = int_to_ptr.vmem [resolvable:$true] %s1790_s20 }
  0xbe   : > { %2016 = vmatmul.mubr.msk.f32.vlgmr.msra.gmra.mrb[0].mxu0 %vm344_vm1, %v340_v12  ;;  %v569_v23 = vld [vmem:[%s2844_s15 + $0x4] sm:$0x3f]  ;;  %v959_v39 = vld [vmem:[%s2844_s15 + $0xa] sm:$0x3f]  ;;  %v1939_v9 = vld [vmem:[#allocation8] ss:$0 sm:$0xff] }
  0xbf   : > { %2023 = vmatmul.mubr.msk.f32.vlgmr.msra.gmra.mrb[0].mxu1 %vm344_vm1, %v337_v15  ;;  %2145 = vmatpush3.bf16.msra.mxu0 %v2144_v13  ;;  %v805_v25 = vld [vmem:[#allocation6 + $0x60] sm:$0xff]  ;;  %v883_v27 = vld [vmem:[#allocation6 + $0x70] sm:$0xff]  ;;  %v803_v35 = vld [vmem:[%s2844_s15 + $0x8] sm:$0x3f]  ;;  %s1777_s16 = scalar_lea.sflag [#allocation5], %s2838_s26  ;;  %s2467_s8 = scalar_lea.vmem %s2965_s20, 256 }
  0xc0   : > { %2029 = vmatprep.mubr.msk.f32.mxu0 %vm2556_vm0, %v2557_v1  ;;  %2148 = vmatpush3.bf16.msra.mxu1 %v2147_v16  ;;  %v647_v29 = vld [vmem:[%s2844_s15 + $0x5] sm:$0x3f]  ;;  %v2156_v30 = vpack.c.bf16 %v806_v26, %v805_v25  ;;  %v2159_v32 = vpack.c.bf16 %v884_v28, %v883_v27  ;;  %p2468_p7 = scmp.ne.s32.totalorder %s2965_s20, %s2467_s8  ;;  %p3036_p4 = scmp.ne.s32.totalorder %s3026_s29, 0 }
  0xc1   : > { %2149 = vmatprep.subr.bf16.mxu0 %v2555_v0  ;;  %2036 = vmatprep.mubr.msk.f32.mxu1 %vm2556_vm0, %v2557_v1  ;;  %v725_v31 = vld [vmem:[%s2844_s15 + $0x6] sm:$0x3f]  ;;  %s2559_s27 = smov [#allocation14]  }
  0xc2   : > { %2030 = vmatmul.mubr.msk.f32.vlgmr.msra.gmra.mrb[2].mxu0 %vm344_vm1, %v491_v21  ;;  %2152 = vmatprep.subr.bf16.mxu1 %v2555_v0  ;;  %v961_v33 = vld [vmem:[#allocation6 + $0x80] sm:$0xff]  ;;  %v881_v38 = vld [vmem:[%s2844_s15 + $0x9] sm:$0x3f]  ;;  %p2469_p12 = pnand %p2468_p7, %p3036_p4  ;;  %s2471_s11 = sshll.u32 %s2559_s27, 4  ;;  %s2472_s11 = int_to_ptr.vmem [resolvable:$false] %s2471_s11 }
  0xc3   : > { %2151 = vmatpush3.bf16.msra.mxu0 %v2150_v22  ;;  %2037 = vmatmul.mubr.msk.f32.vlgmr.msra.gmra.mrb[2].mxu1 %vm344_vm1, %v569_v23  ;;  %v2162_v36 = vpack.c.bf16 %v962_v34, %v961_v33  ;;  %v1046_v37 = vld [vmem:[#allocation12] sm:$0x3f]  ;;  %v1064_v42 = vld [vmem:[#allocation9 + $0x18] sm:$0xff]  ;;  %v1059_v43 = vld [vmem:[#allocation9] sm:$0xff]  ;;  %s2473_s12 = scalar_lea.vmem %s2472_s11, 512  ;;  %p2474_p1 = scmp.lt.s32.totalorder %s2965_s20, %s2472_s11 }
  0xc4   : > { %2043 = vmatprep.mubr.msk.f32.mxu0 %vm2556_vm0, %v2557_v1  ;;  %2154 = vmatpush3.bf16.msra.mxu1 %v2153_v24  ;;  %v1768_v40 = vld [vmem:[#allocation12] sm:$0x3f]  ;;  %v1060_v45 = vld [vmem:[#allocation9 + $0x8] sm:$0xff]  ;;  %v1213_v16 = vld [vmem:[#allocation9 + $0x20] sm:$0xff]  ;;  %p2470_p13 = pneg %p2469_p12  ;;  %p2475_p3 = scmp.lt.s32.totalorder %s2473_s12, %s2467_s8 }
  0xc5   : > { %2155 = vmatprep.subr.bf16.mxu0 %v2555_v0  ;;  %2050 = vmatprep.mubr.msk.f32.mxu1 %vm2556_vm0, %v2557_v1  ;;  %v1063_v41 = vld [vmem:[#allocation9 + $0x10] sm:$0xff]  ;;  %v2168_v46 = vpack.c.bf16 %v1060_v45, %v1059_v43  ;;  %v1214_v17 = vld [vmem:[#allocation9 + $0x28] sm:$0xff]  ;;  %v1292_v19 = vld [vmem:[#allocation9 + $0x38] sm:$0xff] }
  0xc6   : > { %2044 = vmatmul.mubr.msk.f32.vlgmr.msra.gmra.mrb[4].mxu0 %vm344_vm1, %v647_v29  ;;  %2158 = vmatprep.subr.bf16.mxu1 %v2555_v0  ;;  %v2165_v44 = vpack.c.bf16 %v1064_v42, %v1063_v41  ;;  %v1291_v18 = vld [vmem:[#allocation9 + $0x30] sm:$0xff]  ;;  %v2171_v20 = vpack.c.bf16 %v1214_v17, %v1213_v16  ;;  %v1369_v22 = vld [vmem:[#allocation9 + $0x40] sm:$0xff]  ;;  %v1370_v23 = vld [vmem:[#allocation9 + $0x48] sm:$0xff]  ;;  %p2476_p2 = por %p2475_p3, %p2474_p1 }
  0xc7   : > { %2157 = vmatpush3.bf16.msra.mxu0 %v2156_v30  ;;  %2051 = vmatmul.mubr.msk.f32.vlgmr.msra.gmra.mrb[4].mxu1 %vm344_vm1, %v725_v31  ;;  %v2174_v21 = vpack.c.bf16 %v1292_v19, %v1291_v18  ;;  %v1447_v24 = vld [vmem:[#allocation9 + $0x50] sm:$0xff]  ;;  %v1448_v25 = vld [vmem:[#allocation9 + $0x58] sm:$0xff]  ;;  %v2177_v28 = vpack.c.bf16 %v1370_v23, %v1369_v22  ;;  %v1525_v30 = vld [vmem:[#allocation9 + $0x60] sm:$0xff] }
  0xc8   : > { %2057 = vmatprep.mubr.msk.f32.mxu0 %vm2556_vm0, %v2557_v1  ;;  %2160 = vmatpush3.bf16.msra.mxu1 %v2159_v32  ;;  %v2180_v29 = vpack.c.bf16 %v1448_v25, %v1447_v24  ;;  %v1526_v31 = vld [vmem:[#allocation9 + $0x68] sm:$0xff]  ;;  %v1603_v32 = vld [vmem:[#allocation9 + $0x70] sm:$0xff]  ;;  %v1604_v33 = vld [vmem:[#allocation9 + $0x78] sm:$0xff]  ;;  %p2477_p8 = pnand %p2476_p2, %p2470_p13 }
  0xc9   : > { %2161 = vmatprep.subr.bf16.mxu0 %v2555_v0  ;;  %2064 = vmatprep.mubr.msk.f32.mxu1 %vm2556_vm0, %v2557_v1 }
  0xca   : > { %2058 = vmatmul.mubr.msk.f32.vlgmr.msra.gmra.mrb[6].mxu0 %vm344_vm1, %v803_v35  ;;  %1049 = vperm.xlu0 %2296, %v1046_v37   ;;  %v2186_v37 = vpack.c.bf16 %v1604_v33, %v1603_v32 }
  0xcb   : > { %2163 = vmatpush3.bf16.msra.mxu0 %v2162_v36  ;;  %2065 = vmatmul.mubr.msk.f32.vlgmr.msra.gmra.mrb[6].mxu1 %vm344_vm1, %v881_v38  ;;  %v2183_v36 = vpack.c.bf16 %v1526_v31, %v1525_v30  ;;  %v1681_v38 = vld [vmem:[#allocation9 + $0x80] sm:$0xff] }
  0xcc   : > { %2071 = vmatprep.mubr.msk.f32.mxu0 %vm2556_vm0, %v2557_v1  ;;  %2164 = vmatprep.subr.bf16.mxu1 %v2555_v0 }
  0xcd   : > { %2167 = vmatprep.subr.bf16.mxu0 %v2555_v0  ;;  %2078 = vmatprep.mubr.msk.f32.mxu1 %vm2556_vm0, %v2557_v1 }
  0xce   : > { %2072 = vmatmul.mubr.msk.f32.vlgmr.msra.gmra.mrb[8].mxu0 %vm344_vm1, %v959_v39  ;;  %1771 = vperm.xlu0 %2296, %v1768_v40   ;;  %v1682_v39 = vld [vmem:[#allocation9 + $0x88] sm:$0xff] }
  0xcf   : > { %2085 = vmatprep.mubr.msk.f32.mxu0 %vm2556_vm0, %v2557_v1  ;;  %2166 = vmatpush3.bf16.msra.mxu1 %v2165_v44  ;;  %v2189_v42 = vpack.c.bf16 %v1682_v39, %v1681_v38 }
  0xd0   : > { %2169 = vmatpush3.bf16.msra.mxu0 %v2168_v46  ;;  %2170 = vmatprep.subr.bf16.mxu1 %v2555_v0 }
  0xd1   : > { %2173 = vmatprep.subr.bf16.mxu0 %v2555_v0 }
 0x149   : > { %v1050_v14 = vpop.permute.xlu0 %1049 }
 0x191   : > { %v414_v47 = vpop.f32.mrb[0].mxu0 }
 0x192   : > { %v2017_v48 = vpop.f32.mrb[1].mxu0  ;;  %v487_v49 = vpop.f32.mrb[0].mxu1 }
 0x193   : > { %v488_v50 = vadd.f32 %v487_v49, %v414_v47  ;;  %v2024_v51 = vpop.f32.mrb[1].mxu1 }
 0x195   : > { %v564_v52 = vpop.f32.mrb[2].mxu0 }
 0x196   : > { %v568_v53 = vadd.f32 %v564_v52, %v488_v50  ;;  %v2031_v54 = vpop.f32.mrb[3].mxu0  ;;  %v642_v55 = vpop.f32.mrb[2].mxu1 }
 0x197   : > { %v2038_v56 = vpop.f32.mrb[3].mxu1 }
 0x198   : > { %v646_v57 = vadd.f32 %v642_v55, %v568_v53 }
 0x199   : > { %v720_v58 = vpop.f32.mrb[4].mxu0 }
 0x19a   : > { %v724_v59 = vadd.f32 %v720_v58, %v646_v57  ;;  %v2045_v60 = vpop.f32.mrb[5].mxu0  ;;  %v798_v61 = vpop.f32.mrb[4].mxu1 }
 0x19b   : > { %v2052_v62 = vpop.f32.mrb[5].mxu1 }
 0x19c   : > { %v802_v63 = vadd.f32 %v798_v61, %v724_v59 }
 0x19d   : > { %v876_v2 = vpop.f32.mrb[6].mxu0 }
 0x19e   : > { %v880_v3 = vadd.f32 %v876_v2, %v802_v63  ;;  %v2059_v4 = vpop.f32.mrb[7].mxu0  ;;  %v954_v5 = vpop.f32.mrb[6].mxu1 }
 0x19f   : > { %v2066_v6 = vpop.f32.mrb[7].mxu1 }
 0x1a0   : > { %v958_v7 = vadd.f32 %v954_v5, %v880_v3  ;;  %v1949_v6 = vld [vmem:[#allocation11] ss:$0 sm:$0xff] }
 0x1a1   : > { %v1032_v8 = vpop.f32.mrb[8].mxu0 }
 0x1a2   : > { %v1036_v10 = vadd.f32 %v1032_v8, %v958_v7  ;;  %v2073_v11 = vpop.f32.mrb[9].mxu0 }
 0x1a3   : > { %v1772_v11 = vpop.permute.xlu0 %1771 }
 0x1a4   : > { %v1044_v12 = vadd.f32 %v1939_v9, %v1036_v10 }
 0x1a6   : > { %v1045_v13 = vmax.f32 %v1044_v12, 0.0 }
 0x1a8   : > { %v1052_v15 = vmul.f32 %v1050_v14, %v1045_v13 }
 0x1aa   : > { %1057 = vst.msk [vmem:[#allocation2 + $0x5] sm:$0x3f] %vm1056_vm3, %v1052_v15 }
 0x1b1   : > { %v1061_v26 = vld [vmem:[#allocation2 + $0x1] sm:$0x3f]  ;;  %v1523_v43 = vld [vmem:[#allocation2 + $0x8] sm:$0x3f] }
 0x1b2   : > { %v1058_v27 = vld [vmem:[#allocation2] sm:$0x3f]  ;;  %2079 = vmatmul.mubr.msk.f32.vlgmr.msra.gmra.mrb[8].mxu1 %vm344_vm1, %v1061_v26  ;;  %v1445_v41 = vld [vmem:[#allocation2 + $0x6] sm:$0x3f] }
 0x1b3   : > { %2086 = vmatmul.mubr.msk.f32.vlgmr.msra.gmra.mrb[10].mxu0 %vm344_vm1, %v1058_v27  ;;  %2172 = vmatpush3.bf16.msra.mxu1 %v2171_v20  ;;  %v1211_v34 = vld [vmem:[#allocation2 + $0x2] sm:$0x3f]  ;;  %v1601_v44 = vld [vmem:[#allocation2 + $0x9] sm:$0x3f] }
 0x1b4   : > { %2175 = vmatpush3.bf16.msra.mxu0 %v2174_v21  ;;  %2092 = vmatprep.mubr.msk.f32.mxu1 %vm2556_vm0, %v2557_v1  ;;  %v1289_v35 = vld [vmem:[#allocation2 + $0x4] sm:$0x3f]  ;;  %v1679_v45 = vld [vmem:[#allocation2 + $0xa] sm:$0x3f] }
 0x1b5   : > { %2099 = vmatprep.mubr.msk.f32.mxu0 %vm2556_vm0, %v2557_v1  ;;  %2176 = vmatprep.subr.bf16.mxu1 %v2555_v0  ;;  %v1367_v40 = vld [vmem:[#allocation2 + $0x5] sm:$0x3f] }
 0x1b6   : > { %2179 = vmatprep.subr.bf16.mxu0 %v2555_v0  ;;  %2093 = vmatmul.mubr.msk.f32.vlgmr.msra.gmra.mrb[10].mxu1 %vm344_vm1, %v1211_v34 }
 0x1b7   : > { %2100 = vmatmul.mubr.msk.f32.vlgmr.msra.gmra.mrb[12].mxu0 %vm344_vm1, %v1289_v35  ;;  %2178 = vmatpush3.bf16.msra.mxu1 %v2177_v28 }
 0x1b8   : > { %2181 = vmatpush3.bf16.msra.mxu0 %v2180_v29  ;;  %2106 = vmatprep.mubr.msk.f32.mxu1 %vm2556_vm0, %v2557_v1 }
 0x1b9   : > { %2113 = vmatprep.mubr.msk.f32.mxu0 %vm2556_vm0, %v2557_v1  ;;  %2182 = vmatprep.subr.bf16.mxu1 %v2555_v0 }
 0x1ba   : > { %2185 = vmatprep.subr.bf16.mxu0 %v2555_v0  ;;  %2107 = vmatmul.mubr.msk.f32.vlgmr.msra.gmra.mrb[12].mxu1 %vm344_vm1, %v1367_v40 }
 0x1bb   : > { %2114 = vmatmul.mubr.msk.f32.vlgmr.msra.gmra.mrb[14].mxu0 %vm344_vm1, %v1445_v41  ;;  %2184 = vmatpush3.bf16.msra.mxu1 %v2183_v36 }
 0x1bc   : > { %2187 = vmatpush3.bf16.msra.mxu0 %v2186_v37  ;;  %2120 = vmatprep.mubr.msk.f32.mxu1 %vm2556_vm0, %v2557_v1 }
 0x1bd   : > { %2127 = vmatprep.mubr.msk.f32.mxu0 %vm2556_vm0, %v2557_v1  ;;  %2188 = vmatprep.subr.bf16.mxu1 %v2555_v0 }
 0x1be   : > { %2121 = vmatmul.mubr.msk.f32.vlgmr.msra.gmra.mrb[14].mxu1 %vm344_vm1, %v1523_v43 }
 0x1bf   : > { %2128 = vmatmul.mubr.msk.f32.vlgmr.msra.gmra.mrb[16].mxu0 %vm344_vm1, %v1601_v44  ;;  %2190 = vmatpush3.bf16.msra.mxu1 %v2189_v42 }
 0x1c0   : > { %2134 = vmatprep.mubr.msk.f32.mxu1 %vm2556_vm0, %v2557_v1 }
 0x1c2   : > { %2135 = vmatmul.mubr.msk.f32.vlgmr.msra.gmra.mrb[16].mxu1 %vm344_vm1, %v1679_v45 }
 0x285   : > { %v1134_v0 = vpop.f32.mrb[8].mxu1 }
 0x286   : > { %v1207_v46 = vpop.f32.mrb[10].mxu0  ;;  %v2080_v48 = vpop.f32.mrb[9].mxu1 }
 0x287   : > { %v1208_v47 = vadd.f32 %v1207_v46, %v1134_v0  ;;  %v2087_v49 = vpop.f32.mrb[11].mxu0 }
 0x289   : > { %v1284_v50 = vpop.f32.mrb[10].mxu1 }
 0x28a   : > { %v1362_v51 = vpop.f32.mrb[12].mxu0  ;;  %v1288_v52 = vadd.f32 %v1284_v50, %v1208_v47  ;;  %v2094_v53 = vpop.f32.mrb[11].mxu1 }
 0x28b   : > { %v2101_v54 = vpop.f32.mrb[13].mxu0 }
 0x28c   : > { %v1366_v55 = vadd.f32 %v1362_v51, %v1288_v52 }
 0x28d   : > { %v1440_v56 = vpop.f32.mrb[12].mxu1 }
 0x28e   : > { %v1518_v57 = vpop.f32.mrb[14].mxu0  ;;  %v1444_v58 = vadd.f32 %v1440_v56, %v1366_v55  ;;  %v2108_v59 = vpop.f32.mrb[13].mxu1 }
 0x28f   : > { %v2115_v60 = vpop.f32.mrb[15].mxu0 }
 0x290   : > { %v1522_v61 = vadd.f32 %v1518_v57, %v1444_v58 }
 0x291   : > { %v1596_v1 = vpop.f32.mrb[14].mxu1 }
 0x292   : > { %v1674_v62 = vpop.f32.mrb[16].mxu0  ;;  %v1600_v63 = vadd.f32 %v1596_v1, %v1522_v61  ;;  %v2122_v2 = vpop.f32.mrb[15].mxu1 }
 0x293   : > { %v2129_v3 = vpop.f32.mrb[17].mxu0 }
 0x294   : > { %v1678_v4 = vadd.f32 %v1674_v62, %v1600_v63 }
 0x295   : > { %v1752_v5 = vpop.f32.mrb[16].mxu1 }
 0x296   : > { %v1756_v7 = vadd.f32 %v1752_v5, %v1678_v4  ;;  %v2136_v8 = vpop.f32.mrb[17].mxu1 }
 0x298   : > { %v1764_v9 = vadd.f32 %v1949_v6, %v1756_v7 }
 0x29a   : > { %v1765_v10 = vmax.f32 %v1764_v9, 0.0 }
 0x29c   : > { %v1774_v12 = vmul.f32 %v1772_v11, %v1765_v10 }
 0x29e   : > { %1775 = vst.msk [vmem:[%s2950_s28 + $0x5] sm:$0x3f] %vm1056_vm3, %v1774_v12 }
 0x29f   : > { %2480 = shalt.err (!%p2477_p8)
}
 0x2a0   : > { %s2481_s30 = scalar_lea.hbm %s2963_s9, 256  ;;  %s2485_s15 = scalar_lea.hbm %s3017_s6, 512 }
 0x2a1   : > { %p2482_p6 = scmp.ne.s32.totalorder %s2963_s9, %s2481_s30  ;;  %p2486_p0 = scmp.lt.u32.totalorder %s2963_s9, %s3017_s6 }
 0x2a2   : > { %p2487_p5 = scmp.lt.u32.totalorder %s2485_s15, %s2481_s30  ;;  %p2489_p7 = scmp.lt.u32.totalorder %s2481_s30, %s2963_s9 }
 0x2a3   : > { %p2483_p10 = pnand %p2482_p6, %p3036_p4 }
 0x2a4   : > { %p2488_p9 = por %p2487_p5, %p2486_p0 }
 0x2a5   : > { %p2484_p11 = pneg %p2483_p10 }
 0x2a6   : > { %p2490_p12 = por %p2489_p7, %p2488_p9 }
 0x2a8   : > { %p2491_p13 = pnand %p2490_p12, %p2484_p11 }
 0x2aa   : > { %2494 = shalt.err (!%p2491_p13)
}
 0x2ab   : > { %s2560_s25 = smov 128   ;;  %s2561_s14 = smov 8  }
 0x2ac   : > { %2213 = dma.vmem_to_hbm [thread:$0]  (%p3036_p4), %s2965_s20, 256, %s2963_s9, %s1777_s16, %s2560_s25, %s2560_s25, %s2561_s14  }
 0x2ad PF: > { %s1805_s8 = sand.u32 1, %s2533_s21   ;;  %p3037_p1 = scmp.ne.s32.totalorder %s3027_s10, 0 }
 0x2ae   : > { %p3038_p3 = scmp.ge.s32.totalorder %s2545_s24, 2  ;;  %s1806_s27 = scalar_lea.sflag [#allocation5], %s1805_s8 }
 0x2b0   : > { %p2236_p2 = pnand %p3038_p3, %p3037_p1 }
 0x2b2   : > { %2528 = dma.done.wait (!%p2236_p2), %s1806_s27, 256  }
 0x2b3   : > { %2530 = vsyncadd (!%p2236_p2), %s1806_s27, 4294967040  ;;  %p22_p8 = scmp.ge.s32.totalorder %s2762_s7, 4   ;;  %s3039_s21 = smov %s2537_s22 }
 0x2b4   : > { %s3040_s22 = smov %s2541_s23  ;;  %s3041_s23 = smov %s2774_s17 }
 0x2b5   : > { %s3042_s24 = smov %s2762_s7  ;;  %24 = sbr.rel (!%p22_p8) target bundleno = 8 (0x8), region = 125 }
 0x2bc   :  { %1811 = vsyncpa [#allocation4], 1 }
 0x2bd   :  { %1813 = vsyncpa [#allocation4 + $0x1], 1 }
 0x2be   :  { %1814 = vsyncpa [#allocation7], 1 }
 0x2bf   :  { %1815 = vsyncpa [#allocation10], 1 }
 0x2c0   :  { %1816 = vsyncpa [#allocation13], 1 }
 0x2c1   :  { %1817 = vsyncpa [#allocation5], 1 }
 0x2c2   :  { %1819 = vsyncpa [#allocation5 + $0x1], 1 }

// kernel: parametric_vgg_forward.6
= control target key start
LH: loop header
LB: loop body
LE: loop exit
PB: predicated region body
PF: predicated region fallthrough
CT: control target
= control target key end

     0   :  { %s4222_s0 = inlined_call_operand.hbm [shape: f32[2,36,8], index: 0, kind: input, shape index: {}]   ;;  %s4223_s1 = inlined_call_operand.hbm [shape: f32[9,8,16], index: 1, kind: input, shape index: {}]   ;;  %s4224_s2 = inlined_call_operand.hbm [shape: f32[1,16], index: 2, kind: input, shape index: {}]   ;;  %s4225_s3 = inlined_call_operand.hbm [shape: f32[9,16,16], index: 3, kind: input, shape index: {}]   ;;  %s4226_s4 = inlined_call_operand.hbm [shape: f32[1,16], index: 4, kind: input, shape index: {}]   ;;  %s4227_s5 = inlined_call_operand.hbm [shape: f32[22,1], index: 5, kind: input, shape index: {}]   ;;  %s4228_s6 = inlined_call_operand.hbm [shape: f32[2,4], index: 6, kind: input, shape index: {}]   ;;  %s4229_s7 = inlined_call_operand.hbm [shape: f32[2,4], index: 7, kind: input, shape index: {}]   ;;  %s4230_s8 = inlined_call_operand.hbm [shape: f32[2,16,16], index: 8, kind: output, shape index: {}]  }
   0x1   :  { %4236 = sst [smem:[#allocation25_spill]] %s4223_s1 }
   0x2   :  { %4237 = sst [smem:[#allocation26_spill]] %s4224_s2 }
   0x3   :  { %13 = vsyncpa [#allocation5], 0 }
   0x4   :  { %15 = vsyncpa [#allocation5 + $0x1], 0 }
   0x5   :  { %16 = vsyncpa [#allocation8], 0 }
   0x6   :  { %17 = vsyncpa [#allocation11], 0 }
   0x7   :  { %18 = vsyncpa [#allocation14], 0 }
   0x8   :  { %19 = vsyncpa [#allocation17], 0 }
   0x9   :  { %20 = vsyncpa [#allocation6], 0 }
   0xa   :  { %22 = vsyncpa [#allocation6 + $0x1], 0  ;;  %s3625_s27 = smov 0   ;;  %s3627_s28 = smov 0  }
   0xb   :  { %s3629_s29 = smov 0   ;;  %s3631_s30 = smov 0  }
   0xc LB: > { %s3563_s9 = smov [#allocation7]   ;;  %s3646_s11 = sadd.s32 4294967295, %s3561_s30   ;;  %s3561_s30 = sphi %s3631_s30, %s4265_s30   ;;  %s3557_s29 = sphi %s3629_s29, %s4264_s29   ;;  %s3553_s28 = sphi %s3627_s28, %s4263_s28   ;;  %s3549_s27 = sphi %s3625_s27, %s4262_s27  }
   0xd   : > { %s244_s10 = sshll.u32 %s3563_s9, 4  ;;  %p2682_p0 = scmp.ge.s32.totalorder %s3561_s30, 1  ;;  %s3651_s10 = int_to_ptr.vmem [resolvable:$true] %s244_s10 }
   0xe   : > { %p4231_p1 = scmp.eq.s32.totalorder %s3646_s11, 0  ;;  %p232_p2 = scmp.lt.s32.totalorder %s3561_s30, 3 }
   0xf   : > { %s3564_s13 = smov [#allocation10]   ;;  %s3565_s16 = smov [#allocation13]  }
  0x10   : > { %p3653_p3 = pnand %p2682_p0, %p232_p2  ;;  %s268_s14 = sshll.u32 %s3564_s13, 4  ;;  %s3666_s14 = int_to_ptr.vmem [resolvable:$true] %s268_s14 }
  0x11   : > { %s292_s17 = sshll.u32 %s3565_s16, 4  ;;  %s4240_s1 = sld [smem:[#allocation25_spill]]  ;;  %s3668_s17 = int_to_ptr.vmem [resolvable:$true] %s292_s17 }
  0x12   : > { %s4238_s12 = scalar_select %p3653_p3, 1, 0 }
  0x13   : > { %p3158_p5 = pneg %p3653_p3 }
  0x15   : > { %p3662_p6 = pnand %p3158_p5, %p4231_p1 }
  0x17   : > { %s3253_s20 = scalar_lea.hbm %s4240_s1, 1152  ;;  %p3678_p8 = pneg %p3662_p6 }
  0x18   : > { %p3254_p7 = scmp.ne.s32.totalorder %s4240_s1, %s3253_s20  ;;  %p3260_p11 = scmp.lt.u32.totalorder %s3253_s20, %s4240_s1 }
  0x1a   : > { %p3256_p9 = pnand %p3678_p8, %p3254_p7 }
  0x1c   : > { %p3257_p10 = pneg %p3256_p9 }
  0x1e   : > { %p3262_p12 = pnand %p3260_p11, %p3257_p10 }
  0x20   : > { %3265 = shalt.err (!%p3262_p12)
}
  0x21   : > { %s3266_s26 = scalar_lea.vmem %s3651_s10, 1152  ;;  %p3274_p5 = scmp.lt.s32.totalorder %s3651_s10, %s3651_s10 }
  0x22   : > { %p3267_p13 = scmp.ne.s32.totalorder %s3651_s10, %s3266_s26  ;;  %p3275_p4 = scmp.lt.s32.totalorder %s3266_s26, %s3266_s26 }
  0x24   : > { %p3269_p0 = pnand %p3267_p13, %p3678_p8  ;;  %p3276_p7 = por %p3275_p4, %p3274_p5 }
  0x26   : > { %p3270_p2 = pneg %p3269_p0 }
  0x28   : > { %p3277_p9 = pnand %p3276_p7, %p3270_p2 }
  0x2a   : > { %3280 = shalt.err (!%p3277_p9)
}
  0x2b   : > { %s4233_s9 = smov 128   ;;  %s4234_s13 = smov 8  }
  0x2c   : > { %3161 = dma.hbm_to_vmem [thread:$0]  (!%p3662_p6), %s4240_s1, 1152, %s3651_s10, [#allocation8], %s4233_s9, %s4233_s9, %s4234_s13  }
  0x2d   : > { %s3281_s21 = scalar_lea.hbm %s4225_s3, 2304 }
  0x2e   : > { %p3282_p4 = scmp.ne.s32.totalorder %s4225_s3, %s3281_s21  ;;  %p3288_p12 = scmp.lt.u32.totalorder %s3281_s21, %s4225_s3 }
  0x30   : > { %p3284_p10 = pnand %p3282_p4, %p3678_p8 }
  0x32   : > { %p3285_p11 = pneg %p3284_p10 }
  0x34   : > { %p3290_p13 = pnand %p3288_p12, %p3285_p11 }
  0x36   : > { %3293 = shalt.err (!%p3290_p13)
}
  0x37   : > { %s3294_s10 = scalar_lea.vmem %s3666_s14, 2304  ;;  %p3302_p7 = scmp.lt.s32.totalorder %s3666_s14, %s3666_s14 }
  0x38   : > { %p3295_p0 = scmp.ne.s32.totalorder %s3666_s14, %s3294_s10  ;;  %p3303_p9 = scmp.lt.s32.totalorder %s3294_s10, %s3294_s10 }
  0x3a   : > { %p3297_p2 = pnand %p3295_p0, %p3678_p8  ;;  %p3304_p4 = por %p3303_p9, %p3302_p7 }
  0x3c   : > { %p3298_p5 = pneg %p3297_p2 }
  0x3e   : > { %p3305_p10 = pnand %p3304_p4, %p3298_p5 }
  0x40   : > { %3308 = shalt.err (!%p3305_p10)
}
  0x41   : > { %3167 = dma.hbm_to_vmem [thread:$0]  (!%p3662_p6), %s4225_s3, 2304, %s3666_s14, [#allocation11], %s4233_s9, %s4233_s9, %s4234_s13  }
  0x42   : > { %s3309_s21 = scalar_lea.hbm %s4227_s5, 384 }
  0x43   : > { %p3310_p11 = scmp.ne.s32.totalorder %s4227_s5, %s3309_s21  ;;  %p3316_p0 = scmp.lt.u32.totalorder %s3309_s21, %s4227_s5 }
  0x45   : > { %p3312_p12 = pnand %p3310_p11, %p3678_p8 }
  0x47   : > { %p3313_p13 = pneg %p3312_p12 }
  0x49   : > { %p3318_p2 = pnand %p3316_p0, %p3313_p13 }
  0x4b   : > { %3321 = shalt.err (!%p3318_p2)
}
  0x4c   : > { %s3322_s14 = scalar_lea.vmem %s3668_s17, 384  ;;  %p3330_p4 = scmp.lt.s32.totalorder %s3668_s17, %s3668_s17 }
  0x4d   : > { %p3323_p5 = scmp.ne.s32.totalorder %s3668_s17, %s3322_s14  ;;  %p3331_p10 = scmp.lt.s32.totalorder %s3322_s14, %s3322_s14 }
  0x4f   : > { %p3325_p7 = pnand %p3323_p5, %p3678_p8  ;;  %p3332_p11 = por %p3331_p10, %p3330_p4 }
  0x51   : > { %p3326_p9 = pneg %p3325_p7 }
  0x53   : > { %p3333_p12 = pnand %p3332_p11, %p3326_p9 }
  0x55   : > { %3336 = shalt.err (!%p3333_p12)
}
  0x56   : > { %3173 = dma.hbm_to_vmem [thread:$0]  (!%p3662_p6), %s4227_s5, 384, %s3668_s17, [#allocation14], %s4233_s9, %s4233_s9, %s4234_s13  }
  0x57   : > { %s3568_s18 = smov [#allocation9]   ;;  %s3569_s20 = smov [#allocation12]  }
  0x58   : > { %s258_s19 = sshll.u32 %s3568_s18, 4  ;;  %s282_s21 = sshll.u32 %s3569_s20, 4  ;;  %s259_s19 = int_to_ptr.vmem [resolvable:$true] %s258_s19  ;;  %s283_s21 = int_to_ptr.vmem [resolvable:$true] %s282_s21 }
  0x59   : > { %s4242_s2 = sld [smem:[#allocation26_spill]] }
  0x5f   : > { %s3337_s25 = scalar_lea.hbm %s4242_s2, 16 }
  0x60   : > { %p3338_p13 = scmp.ne.s32.totalorder %s4242_s2, %s3337_s25  ;;  %p3344_p5 = scmp.lt.u32.totalorder %s3337_s25, %s4242_s2 }
  0x62   : > { %p3340_p0 = pnand %p3338_p13, %p3678_p8 }
  0x64   : > { %p3341_p2 = pneg %p3340_p0 }
  0x66   : > { %p3346_p7 = pnand %p3344_p5, %p3341_p2 }
  0x68   : > { %3349 = shalt.err (!%p3346_p7)
}
  0x69   : > { %s3350_s17 = scalar_lea.vmem %s259_s19, 16  ;;  %s3357_s16 = scalar_lea.vmem %s259_s19, 32 }
  0x6a   : > { %p3351_p9 = scmp.ne.s32.totalorder %s259_s19, %s3350_s17  ;;  %p3358_p11 = scmp.lt.s32.totalorder %s259_s19, %s259_s19 }
  0x6b   : > { %p3359_p12 = scmp.lt.s32.totalorder %s3357_s16, %s3350_s17 }
  0x6c   : > { %p3353_p4 = pnand %p3351_p9, %p3678_p8 }
  0x6d   : > { %p3360_p1 = por %p3359_p12, %p3358_p11 }
  0x6e   : > { %p3354_p10 = pneg %p3353_p4 }
  0x70   : > { %p3361_p3 = pnand %p3360_p1, %p3354_p10 }
  0x72   : > { %3364 = shalt.err (!%p3361_p3)
}
  0x73   : > { %3164 = dma.hbm_to_vmem [thread:$0]  (!%p3662_p6), %s4242_s2, 16, %s259_s19, [#allocation8]  }
  0x74   : > { %s3365_s24 = scalar_lea.hbm %s4226_s4, 16 }
  0x75   : > { %p3366_p13 = scmp.ne.s32.totalorder %s4226_s4, %s3365_s24  ;;  %p3372_p3 = scmp.lt.u32.totalorder %s3365_s24, %s4226_s4 }
  0x77   : > { %p3368_p0 = pnand %p3366_p13, %p3678_p8 }
  0x79   : > { %p3369_p1 = pneg %p3368_p0 }
  0x7b   : > { %p3374_p2 = pnand %p3372_p3, %p3369_p1 }
  0x7d   : > { %3377 = shalt.err (!%p3374_p2)
}
  0x7e   : > { %s3378_s17 = scalar_lea.vmem %s283_s21, 16  ;;  %s3385_s19 = scalar_lea.vmem %s283_s21, 32 }
  0x7f   : > { %p3379_p5 = scmp.ne.s32.totalorder %s283_s21, %s3378_s17  ;;  %p3386_p4 = scmp.lt.s32.totalorder %s283_s21, %s283_s21 }
  0x80   : > { %p3387_p10 = scmp.lt.s32.totalorder %s3385_s19, %s3378_s17 }
  0x81   : > { %p3381_p7 = pnand %p3379_p5, %p3678_p8 }
  0x82   : > { %p3388_p11 = por %p3387_p10, %p3386_p4 }
  0x83   : > { %p3382_p9 = pneg %p3381_p7 }
  0x85   : > { %p3389_p12 = pnand %p3388_p11, %p3382_p9 }
  0x87   : > { %3392 = shalt.err (!%p3389_p12)
}
  0x88   : > { %3170 = dma.hbm_to_vmem [thread:$0]  (!%p3662_p6), %s4226_s4, 16, %s283_s21, [#allocation11]  }
  0x89   : > { %s3570_s20 = smov [#allocation15]   ;;  %s3571_s22 = smov [#allocation16]  }
  0x8a   : > { %s306_s1 = sshll.u32 %s3570_s20, 4  ;;  %s317_s24 = sshll.u32 %s3571_s22, 4  ;;  %s307_s1 = int_to_ptr.vmem [resolvable:$true] %s306_s1  ;;  %s318_s24 = int_to_ptr.vmem [resolvable:$true] %s317_s24 }
  0x8b   : > { %s3393_s14 = scalar_lea.hbm %s4228_s6, 32 }
  0x8c   : > { %p3394_p13 = scmp.ne.s32.totalorder %s4228_s6, %s3393_s14  ;;  %p3400_p3 = scmp.lt.u32.totalorder %s3393_s14, %s4228_s6 }
  0x8e   : > { %p3396_p0 = pnand %p3394_p13, %p3678_p8 }
  0x90   : > { %p3397_p1 = pneg %p3396_p0 }
  0x92   : > { %p3402_p2 = pnand %p3400_p3, %p3397_p1 }
  0x94   : > { %3405 = shalt.err (!%p3402_p2)
}
  0x95   : > { %s3406_s21 = scalar_lea.vmem %s307_s1, 32  ;;  %p3414_p4 = scmp.lt.s32.totalorder %s307_s1, %s307_s1 }
  0x96   : > { %p3407_p5 = scmp.ne.s32.totalorder %s307_s1, %s3406_s21  ;;  %p3415_p10 = scmp.lt.s32.totalorder %s3406_s21, %s3406_s21 }
  0x98   : > { %p3409_p7 = pnand %p3407_p5, %p3678_p8  ;;  %p3416_p11 = por %p3415_p10, %p3414_p4 }
  0x9a   : > { %p3410_p9 = pneg %p3409_p7 }
  0x9c   : > { %p3417_p12 = pnand %p3416_p11, %p3410_p9 }
  0x9e   : > { %3420 = shalt.err (!%p3417_p12)
}
  0x9f   : > { %3176 = dma.hbm_to_vmem [thread:$0]  (!%p3662_p6), %s4228_s6, 32, %s307_s1, [#allocation14]  }
  0xa0   : > { %s3421_s26 = scalar_lea.hbm %s4229_s7, 32 }
  0xa1   : > { %p3422_p13 = scmp.ne.s32.totalorder %s4229_s7, %s3421_s26  ;;  %p3428_p3 = scmp.lt.u32.totalorder %s3421_s26, %s4229_s7 }
  0xa3   : > { %p3424_p0 = pnand %p3422_p13, %p3678_p8 }
  0xa5   : > { %p3425_p1 = pneg %p3424_p0 }
  0xa7   : > { %p3430_p2 = pnand %p3428_p3, %p3425_p1 }
  0xa9   : > { %3433 = shalt.err (!%p3430_p2)
}
  0xaa   : > { %s3434_s16 = scalar_lea.vmem %s318_s24, 32  ;;  %p3442_p4 = scmp.lt.s32.totalorder %s318_s24, %s318_s24 }
  0xab   : > { %p3435_p5 = scmp.ne.s32.totalorder %s318_s24, %s3434_s16  ;;  %p3443_p10 = scmp.lt.s32.totalorder %s3434_s16, %s3434_s16 }
  0xad   : > { %p3437_p7 = pnand %p3435_p5, %p3678_p8  ;;  %p3444_p11 = por %p3443_p10, %p3442_p4 }
  0xaf   : > { %p3438_p9 = pneg %p3437_p7 }
  0xb1   : > { %p3445_p12 = pnand %p3444_p11, %p3438_p9 }
  0xb3   : > { %3448 = shalt.err (!%p3445_p12)
}
  0xb4   : > { %3179 = dma.hbm_to_vmem [thread:$0]  (!%p3662_p6), %s4229_s7, 32, %s318_s24, [#allocation17]  }
  0xb5   : > { %s2681_s23 = sadd.s32 4294967294, %s3561_s30   ;;  %s3828_s15 = sadd.s32 1, %s3561_s30  }
  0xb6   : > { %s35_s18 = sadd.s32 1, %s3557_s29  ;;  %s32_s20 = ssub.s32 %s3561_s30, %s3828_s15 }
  0xb7   : > { %p42_p8 = scmp.ne.s32.totalorder %s3557_s29, %s3553_s28  ;;  %p33_p13 = scmp.eq.s32.totalorder %s32_s20, 0 }
  0xb8   : > { %p43_p0 = scmp.eq.s32.totalorder %s3561_s30, 0  ;;  %p48_p1 = scmp.ne.s32.totalorder %s3553_s28, %s3549_s27 }
  0xb9   : > { %p219_p3 = scmp.eq.s32.totalorder %s3646_s11, 1  ;;  %p4243_p5 = scmp.eq.s32.totalorder %s3646_s11, 0 }
  0xba   : > { %s3840_s22 = scalar_select %p33_p13, %s3557_s29, %s35_s18  }
  0xbb   : > { %p44_p2 = por %p43_p0, %p42_p8  ;;  %p3844_p7 = por %p4243_p5, %p48_p1 }
  0xbc   : > { %p3848_p6 = por %p219_p3, %p42_p8  ;;  %p225_p9 = scmp.eq.s32.totalorder %s2681_s23, 1 }
  0xbd   : > { %p3195_p4 = scmp.lt.s32.totalorder %s3561_s30, 2  ;;  %s328_s26 = sand.u32 1, %s3557_s29  }
  0xbe   : > { %s4245_s24 = scalar_select %p3848_p6, 1, 0 }
  0xbf   : > { %p3854_p10 = por %p225_p9, %p48_p1  ;;  %s3123_s10 = smul.u32 40, %s328_s26 }
  0xc0   : > { %p3858_p11 = pnand %p3195_p4, %p44_p2  ;;  %s3124_s19 = smul.u32 640, %s3561_s30 }
  0xc1   : > { %s4246_s14 = scalar_select %p3854_p10, 1, 0 }
  0xc2   : > { %s3866_s21 = scalar_lea.hbm %s4222_s0, %s3124_s19  ;;  %s332_s23 = scalar_lea.vmem [#allocation4], %s3123_s10 }
  0xc3   : > { %s339_s18 = sshll.u32 %s332_s23, 4  ;;  %s3870_s20 = scalar_lea.sflag [#allocation5], %s328_s26  ;;  %s3868_s18 = int_to_ptr.vmem [resolvable:$true] %s339_s18 }
  0xc4   : > { %s3449_s9 = scalar_lea.hbm %s3866_s21, 640  ;;  %p3451_p8 = pneg %p3858_p11 }
  0xc5   : > { %p3450_p12 = scmp.ne.s32.totalorder %s3866_s21, %s3449_s9  ;;  %s3454_s1 = scalar_lea.hbm %s4222_s0, 1280 }
  0xc6   : > { %p3455_p1 = scmp.lt.u32.totalorder %s3866_s21, %s4222_s0  ;;  %p3456_p3 = scmp.lt.u32.totalorder %s3454_s1, %s3449_s9 }
  0xc7   : > { %p3452_p13 = pnand %p3451_p8, %p3450_p12  ;;  %p3458_p5 = scmp.lt.u32.totalorder %s3449_s9, %s3866_s21 }
  0xc8   : > { %p3457_p2 = por %p3456_p3, %p3455_p1 }
  0xc9   : > { %p3453_p0 = pneg %p3452_p13 }
  0xca   : > { %p3459_p9 = por %p3458_p5, %p3457_p2 }
  0xcc   : > { %p3460_p4 = pnand %p3459_p9, %p3453_p0 }
  0xce   : > { %3463 = shalt.err (!%p3460_p4)
}
  0xcf   : > { %s3464_s26 = scalar_lea.vmem %s3868_s18, 640  ;;  %s3572_s10 = smov [#allocation4]  }
  0xd0   : > { %p3465_p12 = scmp.ne.s32.totalorder %s3868_s18, %s3464_s26  ;;  %s3469_s23 = sshll.u32 %s3572_s10, 4  ;;  %s3470_s23 = int_to_ptr.vmem [resolvable:$false] %s3469_s23 }
  0xd1   : > { %s3471_s2 = scalar_lea.vmem %s3470_s23, 1280  ;;  %p3472_p6 = scmp.lt.s32.totalorder %s3868_s18, %s3470_s23 }
  0xd2   : > { %p3467_p13 = pnand %p3465_p12, %p3451_p8  ;;  %p3473_p1 = scmp.lt.s32.totalorder %s3471_s2, %s3464_s26 }
  0xd4   : > { %p3468_p10 = pneg %p3467_p13  ;;  %p3474_p3 = por %p3473_p1, %p3472_p6 }
  0xd6   : > { %p3475_p2 = pnand %p3474_p3, %p3468_p10 }
  0xd8   : > { %3478 = shalt.err (!%p3475_p2)
}
  0xd9   : > { %s4248_s9 = smov 8   ;;  %s4249_s13 = smov 128  }
  0xda   : > { %3183 = dma.hbm_to_vmem [thread:$0]  (!%p3858_p11), %s3866_s21, 640, %s3868_s18, %s3870_s20, %s4249_s13, %s4249_s13, %s4248_s9  }
  0xdb   : > { %p4250_p8 = scmp.ne.s32.totalorder %s4238_s12, 0 }
  0xdc   : > { %s3904_s19 = sand.u32 (!%p4250_p8), 1, %s3553_s28  }
  0xdd   : > { %351 = sbr.rel (%p4250_p8) target bundleno = 1038 (0x40e), region = 52  ;;  %s354_s1 = scalar_lea.sflag (!%p4250_p8), [#allocation5], %s3904_s19 }
  0xde   : > { %s3125_s16 = smul.u32 (!%p4250_p8), 40, %s3904_s19 }
  0xe0   : > { %s3908_s26 = scalar_lea.vmem (!%p4250_p8), [#allocation4], %s3125_s16 }
  0xe4   : > { %3524 = dma.done.wait (%p3844_p7), %s354_s1, 640  }
  0xe5   : > { %3526 = vsyncadd (%p3844_p7), %s354_s1, 4294966656  ;;  %p4251_p6 = scmp.eq.s32.totalorder %s3646_s11, 0 }
  0xe7   : > { %3528 = dma.done.wait (%p4251_p6), [#allocation8], 1168   ;;  %p4252_p10 = pmov %p4251_p6 }
  0xe8   : > { %p4253_p11 = pmov %p4251_p6 }
  0xe9   : > { %3530 = vsyncadd (%p4252_p10), [#allocation8], 4294966128 }
  0xea   : > { %3532 = dma.done.wait (%p4253_p11), [#allocation11], 2320   ;;  %p4254_p0 = pmov %p4251_p6 }
  0xec   : > { %3534 = vsyncadd (%p4254_p0), [#allocation11], 4294964976  ;;  %p4255_p5 = pmov %p4254_p0 }
  0xed   : > { %p4256_p9 = pmov %p4254_p0 }
  0xee   : > { %3536 = dma.done.wait (%p4255_p5), [#allocation14], 416  }
  0xef   : > { %3538 = vsyncadd (%p4256_p9), [#allocation14], 4294966880  ;;  %p4257_p7 = pmov %p4254_p0 }
  0xf0   : > { %p4258_p4 = pmov %p4254_p0 }
  0xf1   : > { %3540 = dma.done.wait (%p4257_p7), [#allocation17], 32  }
  0xf2   : > { %3542 = vsyncadd (%p4258_p4), [#allocation17], 4294967264  ;;  %v3573_v0 = vmov 0.0   ;;  %vm3574_vm0 = vmmov 0   ;;  %v3575_v1 = vmov 0   ;;  %vm427_vm1 = vcmask 64512  }
  0xf3   : > { %2860 = vmatprep.subr.mxu0 %v3573_v0  ;;  %2871 = vmatprep.subr.mxu1 %v3573_v0  ;;  %v426_v2 = vld [vmem:[#allocation7 + $0x8] sm:$0xff]  ;;  %v421_v3 = vld [vmem:[#allocation7] sm:$0xff]  ;;  %v418_v5 = vld [vmem:[%s3908_s26] sm:$0xff]  ;;  %vm1319_vm2 = vcmask 129024   ;;  %v3576_v44 = vmov 0.0|0.0   ;;  %vm1322_vm3 = vcmask 130048  }
  0xf4   : > { %2862 = vmatprep.mubr.msk.f32.mxu0 %vm3574_vm0, %v3573_v0  ;;  %2873 = vmatprep.mubr.msk.f32.mxu1 %vm3574_vm0, %v3573_v0  ;;  %v422_v4 = vld [vmem:[%s3908_s26 + $0x1] sm:$0xff]  ;;  %v423_v7 = vld [vmem:[%s3908_s26 + $0x9] sm:$0xff]  ;;  %v424_v10 = vld [vmem:[%s3908_s26 + $0x11] sm:$0x3f]  ;;  %1320 = vst.msk [vmem:[#allocation2] sm:$0x7f] %vm1319_vm2, %v3573_v0 }
  0xf5   : > { %3251 = vset.pattern.permute.xlu0 %v3575_v1  ;;  %3252 = vset.pattern.permute.xlu1 %v3575_v1  ;;  %v610_v6 = vld [vmem:[#allocation7 + $0x10] sm:$0xff]  ;;  %v419_v8 = vld [vmem:[%s3908_s26 + $0x8] sm:$0xff]  ;;  %v420_v11 = vld [vmem:[%s3908_s26 + $0x10] sm:$0x3f]  ;;  %1321 = vst.msk [vmem:[#allocation2 + $0x1d] sm:$0x7f] %vm1319_vm2, %v3573_v0 }
  0xf6   : > { %2861 = vmatpush3.msra.mxu0 %v426_v2  ;;  %2872 = vmatpush3.msra.mxu1 %v421_v3  ;;  %v707_v9 = vld [vmem:[#allocation7 + $0x18] sm:$0xff]  ;;  %v1300_v15 = vld [vmem:[#allocation13 + $0x10] sm:$0x3f]  ;;  %v804_v16 = vld [vmem:[#allocation7 + $0x20] sm:$0xff]  ;;  %vm1325_vm4 = vcmask 128000   ;;  %vm2229_vm5 = vcmask 1043456  }
  0xf7   : > { %2863 = vmatmul.mubr.msk.f32.vlgmr.msra.gmra.mrb[0].mxu0 %vm427_vm1, %v422_v4  ;;  %2874 = vmatmul.mubr.msk.f32.vlgmr.msra.gmra.mrb[0].mxu1 %vm427_vm1, %v418_v5  ;;  %v606_v12 = vld [vmem:[%s3908_s26 + $0x2] sm:$0xff]  ;;  %v901_v17 = vld [vmem:[#allocation7 + $0x28] sm:$0xff]  ;;  %vm2225_vm6 = vcmask 31744   ;;  %s2700_s12 = sshll.u32 %s3904_s19, 4  ;;  %vm2377_vm7 = vcmask 123904   ;;  %s2770_s17 = sshll.u32 %s3646_s11, 8 }
  0xf8   : > { %2865 = vmatprep.mubr.msk.f32.mxu0 %vm3574_vm0, %v3573_v0  ;;  %2876 = vmatprep.mubr.msk.f32.mxu1 %vm3574_vm0, %v3573_v0  ;;  %v703_v13 = vld [vmem:[%s3908_s26 + $0x6] sm:$0xff]  ;;  %v704_v19 = vld [vmem:[%s3908_s26 + $0xe] sm:$0xff]  ;;  %v705_v22 = vld [vmem:[%s3908_s26 + $0x16] sm:$0x3f]  ;;  %s417_s25 = scalar_lea.vmem [#allocation18], %s2700_s12  ;;  %s4176_s10 = scalar_lea.hbm %s4230_s8, %s2770_s17 }
  0xf9   : > { %2882 = vmatprep.subr.mxu0 %v3573_v0  ;;  %2893 = vmatprep.subr.mxu1 %v3573_v0  ;;  %v1298_v14 = vld [vmem:[#allocation13] sm:$0xff]  ;;  %v1299_v20 = vld [vmem:[#allocation13 + $0x8] sm:$0xff]  ;;  %v998_v24 = vld [vmem:[#allocation7 + $0x30] sm:$0xff]  ;;  %2220 = vst.msk [vmem:[%s417_s25] sm:$0xff] %vm1322_vm3, %v3573_v0  ;;  %s2541_s21 = sshll.u32 %s417_s25, 4  ;;  %s2528_s23 = scalar_lea.sflag [#allocation6], %s3904_s19  ;;  %s4178_s21 = int_to_ptr.vmem [resolvable:$true] %s2541_s21 }
  0xfa   : > { %2883 = vmatpush3.msra.mxu0 %v610_v6  ;;  %2894 = vmatpush3.msra.mxu1 %v707_v9  ;;  %v607_v18 = vld [vmem:[%s3908_s26 + $0xa] sm:$0xff]  ;;  %v608_v21 = vld [vmem:[%s3908_s26 + $0x12] sm:$0x3f]  ;;  %v899_v29 = vld [vmem:[%s3908_s26 + $0x18] sm:$0x3f]  ;;  %2221 = vst.msk [vmem:[%s417_s25 + $0x8] sm:$0xff] %vm1322_vm3, %v3573_v0 }
  0xfb   : > { %2866 = vmatmul.mubr.msk.f32.gmra.mrb[2].mxu0 %vm427_vm1, %v423_v7  ;;  %2877 = vmatmul.mubr.msk.f32.gmra.mrb[2].mxu1 %vm427_vm1, %v419_v8  ;;  %v800_v23 = vld [vmem:[%s3908_s26 + $0x7] sm:$0xff]  ;;  %v801_v26 = vld [vmem:[%s3908_s26 + $0xf] sm:$0xff]  ;;  %v802_v28 = vld [vmem:[%s3908_s26 + $0x17] sm:$0x3f]  ;;  %s3479_s11 = scalar_lea.vmem %s4178_s21, 256  ;;  %p4259_p13 = scmp.ne.s32.totalorder %s4245_s24, 0 }
  0xfc   : > { %2868 = vmatprep.mubr.msk.f32.mxu0 %vm3574_vm0, %v3573_v0  ;;  %2879 = vmatprep.mubr.msk.f32.mxu1 %vm3574_vm0, %v3573_v0  ;;  %v1095_v25 = vld [vmem:[#allocation7 + $0x38] sm:$0xff]  ;;  %v898_v27 = vld [vmem:[%s3908_s26 + $0x10] sm:$0xff]  ;;  %p3480_p12 = scmp.ne.s32.totalorder %s4178_s21, %s3479_s11  ;;  %s3577_s2 = smov [#allocation18]  }
  0xfd   : > { %2904 = vmatprep.subr.mxu0 %v3573_v0  ;;  %2915 = vmatprep.subr.mxu1 %v3573_v0  ;;  %v994_v30 = vld [vmem:[%s3908_s26 + $0xc] sm:$0xff]  ;;  %v995_v33 = vld [vmem:[%s3908_s26 + $0x14] sm:$0xff]  ;;  %v996_v35 = vld [vmem:[%s3908_s26 + $0x1c] sm:$0x3f]  ;;  %s3483_s9 = sshll.u32 %s3577_s2, 4  ;;  %s3484_s9 = int_to_ptr.vmem [resolvable:$false] %s3483_s9 }
  0xfe   : > { %1303 = vperm.xlu0 %3251, %v1298_v14   ;;  %1313 = vperm.xlu1 %3252, %v1300_v15   ;;  %v1091_v31 = vld [vmem:[%s3908_s26 + $0xd] sm:$0xff]  ;;  %v1092_v34 = vld [vmem:[%s3908_s26 + $0x15] sm:$0xff]  ;;  %v1093_v36 = vld [vmem:[%s3908_s26 + $0x1d] sm:$0x3f]  ;;  %p3481_p1 = pnand %p3480_p12, %p4259_p13  ;;  %s3485_s13 = scalar_lea.vmem %s3484_s9, 512 }
  0xff   : > { %2869 = vmatmul.mubr.msk.f32.gmra.mrb[4].mxu0 %vm427_vm1, %v424_v10  ;;  %2880 = vmatmul.mubr.msk.f32.gmra.mrb[4].mxu1 %vm427_vm1, %v420_v11  ;;  %v1192_v32 = vld [vmem:[#allocation7 + $0x40] sm:$0xff]  ;;  %v1190_v38 = vld [vmem:[%s3908_s26 + $0x1e] sm:$0x3f]  ;;  %p3486_p2 = scmp.lt.s32.totalorder %s4178_s21, %s3484_s9  ;;  %p3487_p8 = scmp.lt.s32.totalorder %s3485_s13, %s3479_s11 }
 0x100   : > { %2884 = vmatprep.mubr.msk.f32.mxu0 %vm3574_vm0, %v3573_v0  ;;  %2895 = vmatprep.mubr.msk.f32.mxu1 %vm3574_vm0, %v3573_v0  ;;  %v1189_v37 = vld [vmem:[%s3908_s26 + $0x16] sm:$0xff]  ;;  %v1336_v39 = vld [vmem:[#allocation10 + $0x10] sm:$0xff]  ;;  %p3482_p3 = pneg %p3481_p1 }
 0x101   : > { %v1337_v40 = vld [vmem:[#allocation10 + $0x18] sm:$0xff]  ;;  %v1330_v41 = vld [vmem:[#allocation10] sm:$0xff]  ;;  %v1331_v43 = vld [vmem:[#allocation10 + $0x8] sm:$0xff]  ;;  %p3488_p6 = por %p3487_p8, %p3486_p2 }
 0x102   : > { %1308 = vperm.xlu0 %3251, %v1299_v20   ;;  %v3097_v42 = vpack.c.bf16 %v1337_v40, %v1336_v39  ;;  %v3100_v45 = vpack.c.bf16 %v1331_v43, %v1330_v41 }
 0x103   : > { %2885 = vmatmul.mubr.msk.f32.vlgmr.msra.gmra.mrb[6].mxu0 %vm427_vm1, %v606_v12  ;;  %2896 = vmatmul.mubr.msk.f32.vlgmr.msra.gmra.mrb[6].mxu1 %vm427_vm1, %v703_v13  ;;  %p3489_p10 = pnand %p3488_p6, %p3482_p3 }
 0x104   : > { %2887 = vmatprep.mubr.msk.f32.mxu0 %vm3574_vm0, %v3573_v0  ;;  %2898 = vmatprep.mubr.msk.f32.mxu1 %vm3574_vm0, %v3573_v0 }
 0x105   : > { %2905 = vmatpush3.msra.mxu0 %v804_v16  ;;  %2916 = vmatpush3.msra.mxu1 %v901_v17 }
 0x106   : > { %2926 = vmatprep.subr.mxu0 %v3573_v0  ;;  %2937 = vmatprep.subr.mxu1 %v3573_v0 }
 0x107   : > { %2888 = vmatmul.mubr.msk.f32.gmra.mrb[8].mxu0 %vm427_vm1, %v607_v18  ;;  %2899 = vmatmul.mubr.msk.f32.gmra.mrb[8].mxu1 %vm427_vm1, %v704_v19 }
 0x108   : > { %2890 = vmatprep.mubr.msk.f32.mxu0 %vm3574_vm0, %v3573_v0  ;;  %2901 = vmatprep.mubr.msk.f32.mxu1 %vm3574_vm0, %v3573_v0 }
 0x10b   : > { %2891 = vmatmul.mubr.msk.f32.gmra.mrb[10].mxu0 %vm427_vm1, %v608_v21  ;;  %2902 = vmatmul.mubr.msk.f32.gmra.mrb[10].mxu1 %vm427_vm1, %v705_v22 }
 0x10c   : > { %2906 = vmatprep.mubr.msk.f32.mxu0 %vm3574_vm0, %v3573_v0  ;;  %2917 = vmatprep.mubr.msk.f32.mxu1 %vm3574_vm0, %v3573_v0 }
 0x10f   : > { %2907 = vmatmul.mubr.msk.f32.vlgmr.msra.gmra.mrb[12].mxu0 %vm427_vm1, %v800_v23  ;;  %2918 = vmatmul.mubr.msk.f32.vlgmr.msra.gmra.mrb[12].mxu1 %vm427_vm1, %v419_v8 }
 0x110   : > { %2909 = vmatprep.mubr.msk.f32.mxu0 %vm3574_vm0, %v3573_v0  ;;  %2920 = vmatprep.mubr.msk.f32.mxu1 %vm3574_vm0, %v3573_v0 }
 0x111   : > { %2927 = vmatpush3.msra.mxu0 %v998_v24  ;;  %2938 = vmatpush3.msra.mxu1 %v1095_v25 }
 0x112   : > { %2948 = vmatprep.subr.mxu0 %v3573_v0  ;;  %3096 = vmatprep.subr.bf16.mxu1 %v3576_v44 }
 0x113   : > { %2910 = vmatmul.mubr.msk.f32.gmra.mrb[14].mxu0 %vm427_vm1, %v801_v26  ;;  %2921 = vmatmul.mubr.msk.f32.gmra.mrb[14].mxu1 %vm427_vm1, %v898_v27 }
 0x114   : > { %2912 = vmatprep.mubr.msk.f32.mxu0 %vm3574_vm0, %v3573_v0  ;;  %2923 = vmatprep.mubr.msk.f32.mxu1 %vm3574_vm0, %v3573_v0 }
 0x117   : > { %2913 = vmatmul.mubr.msk.f32.gmra.mrb[16].mxu0 %vm427_vm1, %v802_v28  ;;  %2924 = vmatmul.mubr.msk.f32.gmra.mrb[16].mxu1 %vm427_vm1, %v899_v29 }
 0x118   : > { %2928 = vmatprep.mubr.msk.f32.mxu0 %vm3574_vm0, %v3573_v0  ;;  %2939 = vmatprep.mubr.msk.f32.mxu1 %vm3574_vm0, %v3573_v0 }
 0x11b   : > { %2929 = vmatmul.mubr.msk.f32.vlgmr.msra.gmra.mrb[18].mxu0 %vm427_vm1, %v994_v30  ;;  %2940 = vmatmul.mubr.msk.f32.vlgmr.msra.gmra.mrb[18].mxu1 %vm427_vm1, %v1091_v31 }
 0x11c   : > { %2931 = vmatprep.mubr.msk.f32.mxu0 %vm3574_vm0, %v3573_v0  ;;  %2942 = vmatprep.mubr.msk.f32.mxu1 %vm3574_vm0, %v3573_v0 }
 0x11d   : > { %2949 = vmatpush3.msra.mxu0 %v1192_v32  ;;  %3098 = vmatpush3.bf16.msra.mxu1 %v3097_v42 }
 0x11e   : > { %3099 = vmatprep.subr.bf16.mxu0 %v3576_v44  ;;  %3102 = vmatprep.subr.bf16.mxu1 %v3576_v44 }
 0x11f   : > { %2932 = vmatmul.mubr.msk.f32.gmra.mrb[20].mxu0 %vm427_vm1, %v995_v33  ;;  %2943 = vmatmul.mubr.msk.f32.gmra.mrb[20].mxu1 %vm427_vm1, %v1092_v34 }
 0x120   : > { %2934 = vmatprep.mubr.msk.f32.mxu0 %vm3574_vm0, %v3573_v0  ;;  %2945 = vmatprep.mubr.msk.f32.mxu1 %vm3574_vm0, %v3573_v0 }
 0x123   : > { %2935 = vmatmul.mubr.msk.f32.gmra.mrb[22].mxu0 %vm427_vm1, %v996_v35  ;;  %2946 = vmatmul.mubr.msk.f32.gmra.mrb[22].mxu1 %vm427_vm1, %v1093_v36 }
 0x124   : > { %2950 = vmatprep.mubr.msk.f32.mxu0 %vm3574_vm0, %v3573_v0  ;;  %2963 = vmatprep.mubr.msk.f32.mxu1 %vm3574_vm0, %v3573_v0 }
 0x127   : > { %2951 = vmatmul.mubr.msk.f32.vlgmr.msra.gmra.mrb[24].mxu0 %vm427_vm1, %v704_v19 }
 0x128   : > { %2953 = vmatprep.mubr.msk.f32.mxu0 %vm3574_vm0, %v3573_v0  ;;  %3101 = vmatpush3.bf16.msra.mxu0 %v3100_v45 }
 0x129   : > { %3105 = vmatprep.subr.bf16.mxu0 %v3576_v44 }
 0x12b   : > { %2954 = vmatmul.mubr.msk.f32.gmra.mrb[26].mxu0 %vm427_vm1, %v1189_v37 }
 0x12c   : > { %2956 = vmatprep.mubr.msk.f32.mxu0 %vm3574_vm0, %v3573_v0 }
 0x12f   : > { %2957 = vmatmul.mubr.msk.f32.gmra.mrb[28].mxu0 %vm427_vm1, %v1190_v38 }
 0x130   : > { %2976 = vmatprep.mubr.msk.f32.mxu0 %vm3574_vm0, %v3573_v0 }
 0x1ca   : > { %v503_v46 = vpop.f32.mrb[0].mxu0  ;;  %v592_v47 = vpop.f32.mrb[0].mxu1 }
 0x1cb   : > { %v593_v48 = vadd.f32 %v592_v47, %v503_v46  ;;  %v2864_v49 = vpop.f32.mrb[1].mxu0  ;;  %v2875_v50 = vpop.f32.mrb[1].mxu1 }
 0x1ce   : > { %v508_v51 = vpop.f32.mrb[2].mxu0  ;;  %v597_v52 = vpop.f32.mrb[2].mxu1 }
 0x1cf   : > { %v598_v53 = vadd.f32 %v597_v52, %v508_v51  ;;  %v2867_v54 = vpop.f32.mrb[3].mxu0  ;;  %v2878_v55 = vpop.f32.mrb[3].mxu1 }
 0x1d0   : > { %v2728_v54 = vld [vmem:[#allocation9] ss:$0 sm:$0xff] }
 0x1d2   : > { %v513_v56 = vpop.f32.mrb[4].mxu0  ;;  %v602_v57 = vpop.f32.mrb[4].mxu1 }
 0x1d3   : > { %v603_v58 = vadd.f32 %v602_v57, %v513_v56  ;;  %v2870_v59 = vpop.f32.mrb[5].mxu0  ;;  %v2881_v60 = vpop.f32.mrb[5].mxu1 }
 0x1d6   : > { %v686_v61 = vpop.f32.mrb[6].mxu0  ;;  %v783_v62 = vpop.f32.mrb[6].mxu1 }
 0x1d7   : > { %v700_v63 = vadd.f32 %v686_v61, %v593_v48  ;;  %v2886_v1 = vpop.f32.mrb[7].mxu0  ;;  %v2897_v2 = vpop.f32.mrb[7].mxu1 }
 0x1d9   : > { %v797_v3 = vadd.f32 %v783_v62, %v700_v63 }
 0x1da   : > { %v691_v4 = vpop.f32.mrb[8].mxu0  ;;  %v788_v5 = vpop.f32.mrb[8].mxu1 }
 0x1db   : > { %v701_v6 = vadd.f32 %v691_v4, %v598_v53  ;;  %v2889_v7 = vpop.f32.mrb[9].mxu0  ;;  %v2900_v8 = vpop.f32.mrb[9].mxu1 }
 0x1dd   : > { %v798_v9 = vadd.f32 %v788_v5, %v701_v6 }
 0x1de   : > { %v696_v10 = vpop.f32.mrb[10].mxu0  ;;  %v793_v11 = vpop.f32.mrb[10].mxu1 }
 0x1df   : > { %v702_v12 = vadd.f32 %v696_v10, %v603_v58  ;;  %v2892_v13 = vpop.f32.mrb[11].mxu0  ;;  %v2903_v14 = vpop.f32.mrb[11].mxu1 }
 0x1e0   : > { %v1304_v58 = vpop.permute.xlu0 %1303  ;;  %v1314_v10 = vpop.permute.xlu1 %1313  ;;  %v1619_v13 = vld [vmem:[#allocation10 + $0x38] sm:$0xff] }
 0x1e1   : > { %v799_v15 = vadd.f32 %v793_v11, %v702_v12  ;;  %v1521_v11 = vld [vmem:[#allocation10 + $0x28] sm:$0xff]  ;;  %v1618_v12 = vld [vmem:[#allocation10 + $0x30] sm:$0xff] }
 0x1e2   : > { %v880_v16 = vpop.f32.mrb[12].mxu0  ;;  %v977_v17 = vpop.f32.mrb[12].mxu1 }
 0x1e3   : > { %v894_v18 = vadd.f32 %v880_v16, %v797_v3  ;;  %v2908_v19 = vpop.f32.mrb[13].mxu0  ;;  %v2919_v20 = vpop.f32.mrb[13].mxu1 }
 0x1e4   : > { %v1309_v6 = vpop.permute.xlu0 %1308 }
 0x1e5   : > { %v991_v21 = vadd.f32 %v977_v17, %v894_v18  ;;  %v3106_v17 = vpack.c.bf16 %v1619_v13, %v1618_v12 }
 0x1e6   : > { %v885_v22 = vpop.f32.mrb[14].mxu0  ;;  %v982_v23 = vpop.f32.mrb[14].mxu1 }
 0x1e7   : > { %v895_v24 = vadd.f32 %v885_v22, %v798_v9  ;;  %v2911_v25 = vpop.f32.mrb[15].mxu0  ;;  %v2922_v26 = vpop.f32.mrb[15].mxu1  ;;  %v1520_v9 = vld [vmem:[#allocation10 + $0x20] sm:$0xff] }
 0x1e8   : > { %v3103_v16 = vpack.c.bf16 %v1521_v11, %v1520_v9  ;;  %v1716_v22 = vld [vmem:[#allocation10 + $0x40] sm:$0xff] }
 0x1e9   : > { %v992_v27 = vadd.f32 %v982_v23, %v895_v24  ;;  %v1717_v23 = vld [vmem:[#allocation10 + $0x48] sm:$0xff]  ;;  %v1814_v24 = vld [vmem:[#allocation10 + $0x50] sm:$0xff] }
 0x1ea   : > { %v890_v28 = vpop.f32.mrb[16].mxu0  ;;  %v987_v29 = vpop.f32.mrb[16].mxu1 }
 0x1eb   : > { %v896_v30 = vadd.f32 %v890_v28, %v799_v15  ;;  %v2914_v31 = vpop.f32.mrb[17].mxu0  ;;  %v2925_v32 = vpop.f32.mrb[17].mxu1  ;;  %v3109_v28 = vpack.c.bf16 %v1717_v23, %v1716_v22 }
 0x1ed   : > { %v993_v33 = vadd.f32 %v987_v29, %v896_v30 }
 0x1ee   : > { %v1074_v34 = vpop.f32.mrb[18].mxu0  ;;  %v1171_v35 = vpop.f32.mrb[18].mxu1 }
 0x1ef   : > { %v1088_v36 = vadd.f32 %v1074_v34, %v991_v21  ;;  %v2930_v37 = vpop.f32.mrb[19].mxu0  ;;  %v2941_v38 = vpop.f32.mrb[19].mxu1  ;;  %v1912_v34 = vld [vmem:[#allocation10 + $0x60] sm:$0xff] }
 0x1f1   : > { %v1185_v39 = vadd.f32 %v1171_v35, %v1088_v36  ;;  %v1913_v35 = vld [vmem:[#allocation10 + $0x68] sm:$0xff]  ;;  %v2010_v36 = vld [vmem:[#allocation10 + $0x70] sm:$0xff] }
 0x1f2   : > { %v1079_v40 = vpop.f32.mrb[20].mxu0  ;;  %v1176_v41 = vpop.f32.mrb[20].mxu1 }
 0x1f3   : > { %v1089_v42 = vadd.f32 %v1079_v40, %v992_v27  ;;  %v2933_v43 = vpop.f32.mrb[21].mxu0  ;;  %v2944_v45 = vpop.f32.mrb[21].mxu1  ;;  %v1815_v27 = vld [vmem:[#allocation10 + $0x58] sm:$0xff]  ;;  %v3115_v40 = vpack.c.bf16 %v1913_v35, %v1912_v34 }
 0x1f4   : > { %v3112_v29 = vpack.c.bf16 %v1815_v27, %v1814_v24 }
 0x1f5   : > { %v1186_v46 = vadd.f32 %v1176_v41, %v1089_v42 }
 0x1f6   : > { %v1084_v47 = vpop.f32.mrb[22].mxu0  ;;  %v1181_v48 = vpop.f32.mrb[22].mxu1 }
 0x1f7   : > { %v1090_v49 = vadd.f32 %v1084_v47, %v993_v33  ;;  %v2936_v50 = vpop.f32.mrb[23].mxu0  ;;  %v2947_v51 = vpop.f32.mrb[23].mxu1 }
 0x1f9   : > { %v1187_v52 = vadd.f32 %v1181_v48, %v1090_v49  ;;  %v2109_v49 = vld [vmem:[#allocation10 + $0x88] sm:$0xff] }
 0x1fa   : > { %v1268_v53 = vpop.f32.mrb[24].mxu0 }
 0x1fb   : > { %v1282_v55 = vadd.f32 %v1268_v53, %v1185_v39  ;;  %v2952_v56 = vpop.f32.mrb[25].mxu0  ;;  %v2011_v39 = vld [vmem:[#allocation10 + $0x78] sm:$0xff] }
 0x1fc   : > { %v3118_v41 = vpack.c.bf16 %v2011_v39, %v2010_v36 }
 0x1fd   : > { %v1292_v57 = vadd.f32 %v2728_v54, %v1282_v55 }
 0x1fe   : > { %v1273_v59 = vpop.f32.mrb[26].mxu0 }
 0x1ff   : > { %v1295_v60 = vmax.f32 %v1292_v57, 0.0  ;;  %v1283_v61 = vadd.f32 %v1273_v59, %v1186_v46  ;;  %v2955_v62 = vpop.f32.mrb[27].mxu0  ;;  %v2108_v46 = vld [vmem:[#allocation10 + $0x80] sm:$0xff] }
 0x200   : > { %v2106_v57 = vld [vmem:[#allocation2 + $0x1e] sm:$0x3f] }
 0x201   : > { %v1316_v63 = vmul.f32 %v1304_v58, %v1295_v60  ;;  %v1293_v1 = vadd.f32 %v2728_v54, %v1283_v61 }
 0x202   : > { %v1278_v2 = vpop.f32.mrb[28].mxu0 }
 0x203   : > { %1323 = vst.msk [vmem:[#allocation2 + $0x7] sm:$0xff] %vm1322_vm3, %v1316_v63  ;;  %v1296_v3 = vmax.f32 %v1293_v1, 0.0  ;;  %v1284_v4 = vadd.f32 %v1278_v2, %v1187_v52  ;;  %v2958_v5 = vpop.f32.mrb[29].mxu0 }
 0x205   : > { %v1317_v7 = vmul.f32 %v1309_v6, %v1296_v3  ;;  %v1294_v8 = vadd.f32 %v2728_v54, %v1284_v4  ;;  %v2008_v54 = vld [vmem:[#allocation2 + $0x1d] sm:$0x3f] }
 0x207   : > { %1324 = vst.msk [vmem:[#allocation2 + $0xf] sm:$0xff] %vm1322_vm3, %v1317_v7  ;;  %v1297_v14 = vmax.f32 %v1294_v8, 0.0 }
 0x209   : > { %v1318_v15 = vmul.f32 %v1314_v10, %v1297_v14 }
 0x20a   : > { %v1332_v18 = vld [vmem:[#allocation2 + $0x1] sm:$0xff] }
 0x20b   : > { %v1327_v19 = vld [vmem:[#allocation2] sm:$0xff]  ;;  %1326 = vst.msk [vmem:[#allocation2 + $0x17] sm:$0x3f] %vm1325_vm4, %v1318_v15  ;;  %2964 = vmatmul.mubr.msk.f32.vlgmr.msra.gmra.mrb[24].mxu1 %vm1322_vm3, %v1332_v18 }
 0x20c   : > { %2977 = vmatmul.mubr.msk.f32.vlgmr.msra.gmra.mrb[30].mxu0 %vm1322_vm3, %v1327_v19  ;;  %2966 = vmatprep.mubr.msk.f32.mxu1 %vm3574_vm0, %v3573_v0  ;;  %v1516_v30 = vld [vmem:[#allocation2 + $0x2] sm:$0xff] }
 0x20d   : > { %2979 = vmatprep.mubr.msk.f32.mxu0 %vm3574_vm0, %v3573_v0  ;;  %3104 = vmatpush3.bf16.msra.mxu1 %v3103_v16  ;;  %v1614_v31 = vld [vmem:[#allocation2 + $0x6] sm:$0xff] }
 0x20e   : > { %3107 = vmatpush3.bf16.msra.mxu0 %v3106_v17  ;;  %v1333_v20 = vld [vmem:[#allocation2 + $0x9] sm:$0xff]  ;;  %3108 = vmatprep.subr.bf16.mxu1 %v3576_v44  ;;  %v1334_v25 = vld [vmem:[#allocation2 + $0x11] sm:$0x3f] }
 0x20f   : > { %v1328_v21 = vld [vmem:[#allocation2 + $0x8] sm:$0xff]  ;;  %3111 = vmatprep.subr.bf16.mxu0 %v3576_v44  ;;  %2967 = vmatmul.mubr.msk.f32.gmra.mrb[26].mxu1 %vm1322_vm3, %v1333_v20  ;;  %v1329_v26 = vld [vmem:[#allocation2 + $0x10] sm:$0x3f] }
 0x210   : > { %2980 = vmatmul.mubr.msk.f32.gmra.mrb[32].mxu0 %vm1322_vm3, %v1328_v21  ;;  %2969 = vmatprep.mubr.msk.f32.mxu1 %vm3574_vm0, %v3573_v0  ;;  %v1517_v32 = vld [vmem:[#allocation2 + $0xa] sm:$0xff] }
 0x211   : > { %2982 = vmatprep.mubr.msk.f32.mxu0 %vm3574_vm0, %v3573_v0  ;;  %v4084_v33 = vld [vmem:[#allocation2 + $0xe] sm:$0xff] }
 0x212   : > { %v1518_v37 = vld [vmem:[#allocation2 + $0x12] sm:$0x3f]  ;;  %v1712_v42 = vld [vmem:[#allocation2 + $0x7] sm:$0xff]  ;;  %v1812_v48 = vld [vmem:[#allocation2 + $0x18] sm:$0x3f] }
 0x213   : > { %2970 = vmatmul.mubr.msk.f32.gmra.mrb[28].mxu1 %vm1322_vm3, %v1334_v25  ;;  %v1616_v38 = vld [vmem:[#allocation2 + $0x16] sm:$0x3f]  ;;  %v1908_v50 = vld [vmem:[#allocation2 + $0xc] sm:$0xff]  ;;  %v1910_v55 = vld [vmem:[#allocation2 + $0x1c] sm:$0x3f] }
 0x214   : > { %2983 = vmatmul.mubr.msk.f32.gmra.mrb[34].mxu0 %vm1322_vm3, %v1329_v26  ;;  %2989 = vmatprep.mubr.msk.f32.mxu1 %vm3574_vm0, %v3573_v0  ;;  %v1713_v43 = vld [vmem:[#allocation2 + $0xf] sm:$0xff]  ;;  %v1714_v47 = vld [vmem:[#allocation2 + $0x17] sm:$0x3f] }
 0x215   : > { %3002 = vmatprep.mubr.msk.f32.mxu0 %vm3574_vm0, %v3573_v0  ;;  %v1811_v45 = vld [vmem:[#allocation2 + $0x10] sm:$0xff] }
 0x216   : > { %v2006_v51 = vld [vmem:[#allocation2 + $0xd] sm:$0xff]  ;;  %v2007_v53 = vld [vmem:[#allocation2 + $0x15] sm:$0xff] }
 0x217   : > { %2990 = vmatmul.mubr.msk.f32.vlgmr.msra.gmra.mrb[30].mxu1 %vm1322_vm3, %v1516_v30  ;;  %v1909_v52 = vld [vmem:[#allocation2 + $0x14] sm:$0xff] }
 0x218   : > { %3003 = vmatmul.mubr.msk.f32.vlgmr.msra.gmra.mrb[36].mxu0 %vm1322_vm3, %v1614_v31  ;;  %2992 = vmatprep.mubr.msk.f32.mxu1 %vm3574_vm0, %v3573_v0  ;;  %v2105_v56 = vld [vmem:[#allocation2 + $0x16] sm:$0xff] }
 0x219   : > { %3005 = vmatprep.mubr.msk.f32.mxu0 %vm3574_vm0, %v3573_v0  ;;  %3110 = vmatpush3.bf16.msra.mxu1 %v3109_v28 }
 0x21a   : > { %3113 = vmatpush3.bf16.msra.mxu0 %v3112_v29  ;;  %3114 = vmatprep.subr.bf16.mxu1 %v3576_v44 }
 0x21b   : > { %3117 = vmatprep.subr.bf16.mxu0 %v3576_v44  ;;  %2993 = vmatmul.mubr.msk.f32.gmra.mrb[32].mxu1 %vm1322_vm3, %v1517_v32 }
 0x21c   : > { %3006 = vmatmul.mubr.msk.f32.gmra.mrb[38].mxu0 %vm1322_vm3, %v4084_v33  ;;  %2995 = vmatprep.mubr.msk.f32.mxu1 %vm3574_vm0, %v3573_v0 }
 0x21d   : > { %3008 = vmatprep.mubr.msk.f32.mxu0 %vm3574_vm0, %v3573_v0 }
 0x21f   : > { %2996 = vmatmul.mubr.msk.f32.gmra.mrb[34].mxu1 %vm1322_vm3, %v1518_v37 }
 0x220   : > { %3009 = vmatmul.mubr.msk.f32.gmra.mrb[40].mxu0 %vm1322_vm3, %v1616_v38  ;;  %3015 = vmatprep.mubr.msk.f32.mxu1 %vm3574_vm0, %v3573_v0 }
 0x221   : > { %3028 = vmatprep.mubr.msk.f32.mxu0 %vm3574_vm0, %v3573_v0 }
 0x223   : > { %3016 = vmatmul.mubr.msk.f32.vlgmr.msra.gmra.mrb[36].mxu1 %vm1322_vm3, %v1712_v42 }
 0x224   : > { %3029 = vmatmul.mubr.msk.f32.vlgmr.msra.gmra.mrb[42].mxu0 %vm1322_vm3, %v1328_v21  ;;  %3018 = vmatprep.mubr.msk.f32.mxu1 %vm3574_vm0, %v3573_v0 }
 0x225   : > { %3031 = vmatprep.mubr.msk.f32.mxu0 %vm3574_vm0, %v3573_v0  ;;  %3116 = vmatpush3.bf16.msra.mxu1 %v3115_v40 }
 0x226   : > { %3119 = vmatpush3.bf16.msra.mxu0 %v3118_v41  ;;  %3120 = vmatprep.subr.bf16.mxu1 %v3576_v44  ;;  %v3121_v44 = vpack.c.bf16 %v2109_v49, %v2108_v46 }
 0x227   : > { %3076 = vmatprep.subr.mxu0 %v3573_v0  ;;  %3019 = vmatmul.mubr.msk.f32.gmra.mrb[38].mxu1 %vm1322_vm3, %v1713_v43 }
 0x228   : > { %3032 = vmatmul.mubr.msk.f32.gmra.mrb[44].mxu0 %vm1322_vm3, %v1811_v45  ;;  %3021 = vmatprep.mubr.msk.f32.mxu1 %vm3574_vm0, %v3573_v0 }
 0x229   : > { %3034 = vmatprep.mubr.msk.f32.mxu0 %vm3574_vm0, %v3573_v0 }
 0x22b   : > { %3022 = vmatmul.mubr.msk.f32.gmra.mrb[40].mxu1 %vm1322_vm3, %v1714_v47 }
 0x22c   : > { %3035 = vmatmul.mubr.msk.f32.gmra.mrb[46].mxu0 %vm1322_vm3, %v1812_v48  ;;  %3041 = vmatprep.mubr.msk.f32.mxu1 %vm3574_vm0, %v3573_v0 }
 0x22d   : > { %3054 = vmatprep.mubr.msk.f32.mxu0 %vm3574_vm0, %v3573_v0 }
 0x22f   : > { %3042 = vmatmul.mubr.msk.f32.vlgmr.msra.gmra.mrb[42].mxu1 %vm1322_vm3, %v1908_v50 }
 0x230   : > { %3055 = vmatmul.mubr.msk.f32.vlgmr.msra.gmra.mrb[48].mxu0 %vm1322_vm3, %v2006_v51  ;;  %3044 = vmatprep.mubr.msk.f32.mxu1 %vm3574_vm0, %v3573_v0 }
 0x231   : > { %3057 = vmatprep.mubr.msk.f32.mxu0 %vm3574_vm0, %v3573_v0  ;;  %3122 = vmatpush3.bf16.msra.mxu1 %v3121_v44 }
 0x232   : > { %3081 = vmatprep.subr.mxu1 %v3573_v0 }
 0x233   : > { %3045 = vmatmul.mubr.msk.f32.gmra.mrb[44].mxu1 %vm1322_vm3, %v1909_v52 }
 0x234   : > { %3058 = vmatmul.mubr.msk.f32.gmra.mrb[50].mxu0 %vm1322_vm3, %v2007_v53  ;;  %3047 = vmatprep.mubr.msk.f32.mxu1 %vm3574_vm0, %v3573_v0 }
 0x235   : > { %3060 = vmatprep.mubr.msk.f32.mxu0 %vm3574_vm0, %v3573_v0 }
 0x237   : > { %3048 = vmatmul.mubr.msk.f32.gmra.mrb[46].mxu1 %vm1322_vm3, %v1910_v55 }
 0x238   : > { %3061 = vmatmul.mubr.msk.f32.gmra.mrb[52].mxu0 %vm1322_vm3, %v2008_v54  ;;  %3067 = vmatprep.mubr.msk.f32.mxu1 %vm3574_vm0, %v3573_v0 }
 0x239   : > { %3078 = vmatprep.mubr.msk.f32.mxu0 %vm3574_vm0, %v3573_v0 }
 0x23b   : > { %3068 = vmatmul.mubr.msk.f32.vlgmr.msra.gmra.mrb[48].mxu1 %vm1322_vm3, %v4084_v33 }
 0x23c   : > { %3070 = vmatprep.mubr.msk.f32.mxu1 %vm3574_vm0, %v3573_v0 }
 0x23f   : > { %3071 = vmatmul.mubr.msk.f32.gmra.mrb[50].mxu1 %vm1322_vm3, %v2105_v56 }
 0x240   : > { %3073 = vmatprep.mubr.msk.f32.mxu1 %vm3574_vm0, %v3573_v0 }
 0x243   : > { %3074 = vmatmul.mubr.msk.f32.gmra.mrb[52].mxu1 %vm1322_vm3, %v2106_v57 }
 0x244   : > { %3083 = vmatprep.mubr.msk.f32.mxu1 %vm3574_vm0, %v3573_v0 }
 0x2de   : > { %v1413_v58 = vpop.f32.mrb[24].mxu1 }
 0x2df   : > { %v1502_v59 = vpop.f32.mrb[30].mxu0  ;;  %v2965_v61 = vpop.f32.mrb[25].mxu1 }
 0x2e0   : > { %v1503_v60 = vadd.f32 %v1502_v59, %v1413_v58  ;;  %v2978_v62 = vpop.f32.mrb[31].mxu0 }
 0x2e2   : > { %v1418_v63 = vpop.f32.mrb[26].mxu1 }
 0x2e3   : > { %v1507_v1 = vpop.f32.mrb[32].mxu0  ;;  %v2968_v3 = vpop.f32.mrb[27].mxu1 }
 0x2e4   : > { %v1508_v2 = vadd.f32 %v1507_v1, %v1418_v63  ;;  %v2981_v4 = vpop.f32.mrb[33].mxu0 }
 0x2e6   : > { %v1423_v5 = vpop.f32.mrb[28].mxu1 }
 0x2e7   : > { %v1512_v6 = vpop.f32.mrb[34].mxu0  ;;  %v2971_v8 = vpop.f32.mrb[29].mxu1 }
 0x2e8   : > { %v1513_v7 = vadd.f32 %v1512_v6, %v1423_v5  ;;  %v2984_v9 = vpop.f32.mrb[35].mxu0 }
 0x2ea   : > { %v1597_v10 = vpop.f32.mrb[30].mxu1 }
 0x2eb   : > { %v1695_v11 = vpop.f32.mrb[36].mxu0  ;;  %v1611_v12 = vadd.f32 %v1597_v10, %v1503_v60  ;;  %v2991_v13 = vpop.f32.mrb[31].mxu1 }
 0x2ec   : > { %v3004_v14 = vpop.f32.mrb[37].mxu0 }
 0x2ed   : > { %v1709_v15 = vadd.f32 %v1695_v11, %v1611_v12 }
 0x2ee   : > { %v1602_v16 = vpop.f32.mrb[32].mxu1 }
 0x2ef   : > { %v1700_v17 = vpop.f32.mrb[38].mxu0  ;;  %v1612_v18 = vadd.f32 %v1602_v16, %v1508_v2  ;;  %v2994_v19 = vpop.f32.mrb[33].mxu1  ;;  %v2756_v2 = vld [vmem:[#allocation12] ss:$0 sm:$0xff] }
 0x2f0   : > { %v3007_v20 = vpop.f32.mrb[39].mxu0 }
 0x2f1   : > { %v1710_v21 = vadd.f32 %v1700_v17, %v1612_v18  ;;  %v2218_v20 = vld [vmem:[#allocation15] sm:$0x3] }
 0x2f2   : > { %v1607_v22 = vpop.f32.mrb[34].mxu1 }
 0x2f3   : > { %v1705_v23 = vpop.f32.mrb[40].mxu0  ;;  %v1613_v24 = vadd.f32 %v1607_v22, %v1513_v7  ;;  %v2997_v25 = vpop.f32.mrb[35].mxu1 }
 0x2f4   : > { %v3010_v26 = vpop.f32.mrb[41].mxu0 }
 0x2f5   : > { %v1711_v27 = vadd.f32 %v1705_v23, %v1613_v24 }
 0x2f6   : > { %v1793_v28 = vpop.f32.mrb[36].mxu1 }
 0x2f7   : > { %v1891_v29 = vpop.f32.mrb[42].mxu0  ;;  %v1807_v30 = vadd.f32 %v1793_v28, %v1709_v15  ;;  %v3017_v31 = vpop.f32.mrb[37].mxu1 }
 0x2f8   : > { %v3030_v32 = vpop.f32.mrb[43].mxu0 }
 0x2f9   : > { %v1905_v33 = vadd.f32 %v1891_v29, %v1807_v30 }
 0x2fa   : > { %v1798_v34 = vpop.f32.mrb[38].mxu1 }
 0x2fb   : > { %v1896_v35 = vpop.f32.mrb[44].mxu0  ;;  %v1808_v36 = vadd.f32 %v1798_v34, %v1710_v21  ;;  %v3020_v37 = vpop.f32.mrb[39].mxu1  ;;  %v2219_v21 = vld [vmem:[#allocation16] sm:$0x3] }
 0x2fc   : > { %v3033_v38 = vpop.f32.mrb[45].mxu0 }
 0x2fd   : > { %v1906_v39 = vadd.f32 %v1896_v35, %v1808_v36 }
 0x2fe   : > { %v1803_v40 = vpop.f32.mrb[40].mxu1 }
 0x2ff   : > { %v1901_v41 = vpop.f32.mrb[46].mxu0  ;;  %v1809_v42 = vadd.f32 %v1803_v40, %v1711_v27  ;;  %v3023_v43 = vpop.f32.mrb[41].mxu1 }
 0x300   : > { %v3036_v45 = vpop.f32.mrb[47].mxu0 }
 0x301   : > { %v1907_v46 = vadd.f32 %v1901_v41, %v1809_v42 }
 0x302   : > { %v1989_v47 = vpop.f32.mrb[42].mxu1 }
 0x303   : > { %v2087_v48 = vpop.f32.mrb[48].mxu0  ;;  %v2003_v49 = vadd.f32 %v1989_v47, %v1905_v33  ;;  %v3043_v44 = vpop.f32.mrb[43].mxu1 }
 0x304   : > { %v3056_v50 = vpop.f32.mrb[49].mxu0 }
 0x305   : > { %v2101_v51 = vadd.f32 %v2087_v48, %v2003_v49 }
 0x306   : > { %v1994_v52 = vpop.f32.mrb[44].mxu1 }
 0x307   : > { %v2092_v53 = vpop.f32.mrb[50].mxu0  ;;  %v2004_v54 = vadd.f32 %v1994_v52, %v1906_v39  ;;  %v3046_v55 = vpop.f32.mrb[45].mxu1 }
 0x308   : > { %v3059_v56 = vpop.f32.mrb[51].mxu0 }
 0x309   : > { %v2102_v57 = vadd.f32 %v2092_v53, %v2004_v54 }
 0x30a   : > { %v1999_v58 = vpop.f32.mrb[46].mxu1 }
 0x30b   : > { %v2097_v59 = vpop.f32.mrb[52].mxu0  ;;  %v2005_v60 = vadd.f32 %v1999_v58, %v1907_v46  ;;  %v3049_v61 = vpop.f32.mrb[47].mxu1 }
 0x30c   : > { %v3062_v62 = vpop.f32.mrb[53].mxu0 }
 0x30d   : > { %v2103_v63 = vadd.f32 %v2097_v59, %v2005_v60 }
 0x30e   : > { %v2185_v1 = vpop.f32.mrb[48].mxu1 }
 0x30f   : > { %v2199_v3 = vadd.f32 %v2185_v1, %v2101_v51  ;;  %v3069_v4 = vpop.f32.mrb[49].mxu1 }
 0x311   : > { %v2209_v5 = vadd.f32 %v2756_v2, %v2199_v3 }
 0x312   : > { %v2190_v6 = vpop.f32.mrb[50].mxu1 }
 0x313   : > { %v2212_v7 = vmax.f32 %v2209_v5, 0.0  ;;  %v2200_v8 = vadd.f32 %v2190_v6, %v2102_v57  ;;  %v3072_v9 = vpop.f32.mrb[51].mxu1 }
 0x315   : > { %2215 = vst.msk [vmem:[#allocation3] sm:$0xff] %vm1322_vm3, %v2212_v7  ;;  %v2210_v10 = vadd.f32 %v2756_v2, %v2200_v8 }
 0x316   : > { %v2195_v11 = vpop.f32.mrb[52].mxu1 }
 0x317   : > { %v2213_v12 = vmax.f32 %v2210_v10, 0.0  ;;  %v2201_v13 = vadd.f32 %v2195_v11, %v2103_v63  ;;  %v3075_v14 = vpop.f32.mrb[53].mxu1 }
 0x319   : > { %2216 = vst.msk [vmem:[#allocation3 + $0x8] sm:$0xff] %vm1322_vm3, %v2213_v12  ;;  %v2211_v15 = vadd.f32 %v2756_v2, %v2201_v13 }
 0x31b   : > { %v2214_v16 = vmax.f32 %v2211_v15, 0.0 }
 0x31c   : > { %v2222_v17 = vld [vmem:[#allocation3] sm:$0xf] }
 0x31d   : > { %2217 = vst.msk [vmem:[#allocation3 + $0x10] sm:$0x3f] %vm1325_vm4, %v2214_v16 }
 0x320   : > { %v2223_v18 = vld [vmem:[#allocation3 + $0x6] sm:$0xf]  ;;  %v2379_v22 = vld [vmem:[#allocation3 + $0xc] sm:$0xf] }
 0x321   : > { %v2224_v19 = vmax.f32 %v2222_v17, %v2223_v18 }
 0x323   : > { %3077 = vmatpush3.msk.msra.mxu0 %vm2229_vm5, %v2224_v19  ;;  %3082 = vmatpush3.msk.msra.mxu1 %vm2229_vm5, %v2224_v19 }
 0x324   : > { %3086 = vmatprep.subr.mxu0 %v3573_v0  ;;  %3091 = vmatprep.subr.mxu1 %v3573_v0  ;;  %v2380_v23 = vld [vmem:[#allocation3 + $0x12] sm:$0xf] }
 0x325   : > { %3079 = vmatmul.mubr.msk.f32.vlgmr.msra.gmra.mrb[54].mxu0 %vm2225_vm6, %v2218_v20  ;;  %3084 = vmatmul.mubr.msk.f32.vlgmr.msra.gmra.mrb[54].mxu1 %vm2225_vm6, %v2219_v21  ;;  %v2381_v24 = vmax.f32 %v2379_v22, %v2380_v23 }
 0x326   : > { %3088 = vmatprep.mubr.msk.f32.mxu0 %vm3574_vm0, %v3573_v0  ;;  %3093 = vmatprep.mubr.msk.f32.mxu1 %vm3574_vm0, %v3573_v0 }
 0x327   : > { %3087 = vmatpush3.msk.msra.mxu0 %vm2229_vm5, %v2381_v24  ;;  %3092 = vmatpush3.msk.msra.mxu1 %vm2229_vm5, %v2381_v24 }
 0x329   : > { %3089 = vmatmul.mubr.msk.f32.vlgmr.msra.gmra.mrb[56].mxu0 %vm2225_vm6, %v2218_v20  ;;  %3094 = vmatmul.mubr.msk.f32.vlgmr.msra.gmra.mrb[56].mxu1 %vm2225_vm6, %v2219_v21 }
 0x3f8   : > { %v2299_v25 = vpop.f32.mrb[54].mxu0  ;;  %v2372_v26 = vpop.f32.mrb[54].mxu1 }
 0x3f9   : > { %v2376_v27 = vmax.f32 %v2299_v25, %v2372_v26  ;;  %v3080_v28 = vpop.f32.mrb[55].mxu0  ;;  %v3085_v29 = vpop.f32.mrb[55].mxu1 }
 0x3fb   : > { %2378 = vst.msk [vmem:[%s417_s25 + $0x5] sm:$0x3] %vm2377_vm7, %v2376_v27 }
 0x3fc   : > { %v2451_v30 = vpop.f32.mrb[56].mxu0  ;;  %v2521_v31 = vpop.f32.mrb[56].mxu1 }
 0x3fd   : > { %v2525_v0 = vmax.f32 %v2451_v30, %v2521_v31  ;;  %v3090_v32 = vpop.f32.mrb[57].mxu0  ;;  %v3095_v33 = vpop.f32.mrb[57].mxu1 }
 0x3ff   : > { %2526 = vst.msk [vmem:[%s417_s25 + $0x9] sm:$0x3] %vm2377_vm7, %v2525_v0 }
 0x400   : > { %3492 = shalt.err (!%p3489_p10)
}
 0x401   : > { %s3493_s16 = scalar_lea.hbm %s4176_s10, 256  ;;  %s3497_s12 = scalar_lea.hbm %s4230_s8, 512 }
 0x402   : > { %p3494_p11 = scmp.ne.s32.totalorder %s4176_s10, %s3493_s16  ;;  %p3498_p9 = scmp.lt.u32.totalorder %s4176_s10, %s4230_s8 }
 0x403   : > { %p3499_p7 = scmp.lt.u32.totalorder %s3497_s12, %s3493_s16  ;;  %p3501_p12 = scmp.lt.u32.totalorder %s3493_s16, %s4176_s10 }
 0x404   : > { %p3495_p0 = pnand %p3494_p11, %p4259_p13 }
 0x405   : > { %p3500_p4 = por %p3499_p7, %p3498_p9 }
 0x406   : > { %p3496_p5 = pneg %p3495_p0 }
 0x407   : > { %p3502_p1 = por %p3501_p12, %p3500_p4 }
 0x409   : > { %p3503_p3 = pnand %p3502_p1, %p3496_p5 }
 0x40b   : > { %3506 = shalt.err (!%p3503_p3)
}
 0x40c   : > { %s3578_s18 = smov 128   ;;  %s3579_s20 = smov 8  }
 0x40d   : > { %3156 = dma.vmem_to_hbm [thread:$0]  (%p4259_p13), %s4178_s21, 256, %s4176_s10, %s2528_s23, %s3578_s18, %s3578_s18, %s3579_s20  }
 0x40e PF: > { %s2556_s11 = sand.u32 1, %s3549_s27   ;;  %p4260_p2 = scmp.ne.s32.totalorder %s4246_s14, 0 }
 0x40f   : > { %p4261_p8 = scmp.ge.s32.totalorder %s3561_s30, 2  ;;  %s2557_s2 = scalar_lea.sflag [#allocation6], %s2556_s11 }
 0x411   : > { %p3185_p6 = pnand %p4261_p8, %p4260_p2 }
 0x413   : > { %3544 = dma.done.wait (!%p3185_p6), %s2557_s2, 256  }
 0x414   : > { %3546 = vsyncadd (!%p3185_p6), %s2557_s2, 4294967040  ;;  %p25_p10 = scmp.ge.s32.totalorder %s3828_s15, 4   ;;  %s4262_s27 = smov %s3553_s28 }
 0x415   : > { %s4263_s28 = smov %s3557_s29  ;;  %s4264_s29 = smov %s3840_s22 }
 0x416   : > { %s4265_s30 = smov %s3828_s15  ;;  %27 = sbr.rel (!%p25_p10) target bundleno = 12 (0xc), region = 141 }
 0x41d   :  { %2562 = vsyncpa [#allocation5], 1 }
 0x41e   :  { %2564 = vsyncpa [#allocation5 + $0x1], 1 }
 0x41f   :  { %2565 = vsyncpa [#allocation8], 1 }
 0x420   :  { %2566 = vsyncpa [#allocation11], 1 }
 0x421   :  { %2567 = vsyncpa [#allocation14], 1 }
 0x422   :  { %2568 = vsyncpa [#allocation17], 1 }
 0x423   :  { %2569 = vsyncpa [#allocation6], 1 }
 0x424   :  { %2571 = vsyncpa [#allocation6 + $0x1], 1 }

// kernel: parametric_vgg_forward.5
= control target key start
LH: loop header
LB: loop body
LE: loop exit
PB: predicated region body
PF: predicated region fallthrough
CT: control target
= control target key end

     0   :  { %s6409_s0 = inlined_call_operand.hbm [shape: f32[2,100,8], index: 0, kind: input, shape index: {}]   ;;  %s6410_s1 = inlined_call_operand.hbm [shape: f32[9,8,8], index: 1, kind: input, shape index: {}]   ;;  %s6411_s2 = inlined_call_operand.hbm [shape: f32[1,8], index: 2, kind: input, shape index: {}]   ;;  %s6412_s3 = inlined_call_operand.hbm [shape: f32[9,8,8], index: 3, kind: input, shape index: {}]   ;;  %s6413_s4 = inlined_call_operand.hbm [shape: f32[1,8], index: 4, kind: input, shape index: {}]   ;;  %s6414_s5 = inlined_call_operand.hbm [shape: f32[78,1], index: 5, kind: input, shape index: {}]   ;;  %s6415_s6 = inlined_call_operand.hbm [shape: f32[4,8], index: 6, kind: input, shape index: {}]   ;;  %s6416_s7 = inlined_call_operand.hbm [shape: f32[4,8], index: 7, kind: input, shape index: {}]   ;;  %s6417_s8 = inlined_call_operand.hbm [shape: f32[2,36,8], index: 8, kind: output, shape index: {}]  }
   0x1   :  { %6423 = sst [smem:[#allocation25_spill]] %s6410_s1 }
   0x2   :  { %6424 = sst [smem:[#allocation26_spill]] %s6411_s2 }
   0x3   :  { %13 = vsyncpa [#allocation5], 0 }
   0x4   :  { %15 = vsyncpa [#allocation5 + $0x1], 0 }
   0x5   :  { %16 = vsyncpa [#allocation8], 0 }
   0x6   :  { %17 = vsyncpa [#allocation11], 0 }
   0x7   :  { %18 = vsyncpa [#allocation14], 0 }
   0x8   :  { %19 = vsyncpa [#allocation17], 0 }
   0x9   :  { %20 = vsyncpa [#allocation6], 0 }
   0xa   :  { %22 = vsyncpa [#allocation6 + $0x1], 0  ;;  %s5715_s27 = smov 0   ;;  %s5717_s28 = smov 0  }
   0xb   :  { %s5719_s29 = smov 0   ;;  %s5721_s30 = smov 0  }
   0xc LB: > { %s5654_s9 = smov [#allocation7]   ;;  %s5736_s11 = sadd.s32 4294967295, %s5652_s30   ;;  %s5652_s30 = sphi %s5721_s30, %s6452_s30   ;;  %s5648_s29 = sphi %s5719_s29, %s6451_s29   ;;  %s5644_s28 = sphi %s5717_s28, %s6450_s28   ;;  %s5640_s27 = sphi %s5715_s27, %s6449_s27  }
   0xd   : > { %s244_s10 = sshll.u32 %s5654_s9, 4  ;;  %p4282_p0 = scmp.ge.s32.totalorder %s5652_s30, 1  ;;  %s5741_s10 = int_to_ptr.vmem [resolvable:$true] %s244_s10 }
   0xe   : > { %p6418_p1 = scmp.eq.s32.totalorder %s5736_s11, 0  ;;  %p232_p2 = scmp.lt.s32.totalorder %s5652_s30, 3 }
   0xf   : > { %s5655_s13 = smov [#allocation10]   ;;  %s5656_s16 = smov [#allocation13]  }
  0x10   : > { %p5743_p3 = pnand %p4282_p0, %p232_p2  ;;  %s268_s14 = sshll.u32 %s5655_s13, 4  ;;  %s5756_s14 = int_to_ptr.vmem [resolvable:$true] %s268_s14 }
  0x11   : > { %s292_s17 = sshll.u32 %s5656_s16, 4  ;;  %s6427_s1 = sld [smem:[#allocation25_spill]]  ;;  %s5758_s17 = int_to_ptr.vmem [resolvable:$true] %s292_s17 }
  0x12   : > { %s6425_s12 = scalar_select %p5743_p3, 1, 0 }
  0x13   : > { %p5250_p5 = pneg %p5743_p3 }
  0x15   : > { %p5752_p6 = pnand %p5250_p5, %p6418_p1 }
  0x17   : > { %s5344_s20 = scalar_lea.hbm %s6427_s1, 1152  ;;  %p5768_p8 = pneg %p5752_p6 }
  0x18   : > { %p5345_p7 = scmp.ne.s32.totalorder %s6427_s1, %s5344_s20  ;;  %p5351_p11 = scmp.lt.u32.totalorder %s5344_s20, %s6427_s1 }
  0x1a   : > { %p5347_p9 = pnand %p5768_p8, %p5345_p7 }
  0x1c   : > { %p5348_p10 = pneg %p5347_p9 }
  0x1e   : > { %p5353_p12 = pnand %p5351_p11, %p5348_p10 }
  0x20   : > { %5356 = shalt.err (!%p5353_p12)
}
  0x21   : > { %s5357_s26 = scalar_lea.vmem %s5741_s10, 1152  ;;  %p5365_p5 = scmp.lt.s32.totalorder %s5741_s10, %s5741_s10 }
  0x22   : > { %p5358_p13 = scmp.ne.s32.totalorder %s5741_s10, %s5357_s26  ;;  %p5366_p4 = scmp.lt.s32.totalorder %s5357_s26, %s5357_s26 }
  0x24   : > { %p5360_p0 = pnand %p5358_p13, %p5768_p8  ;;  %p5367_p7 = por %p5366_p4, %p5365_p5 }
  0x26   : > { %p5361_p2 = pneg %p5360_p0 }
  0x28   : > { %p5368_p9 = pnand %p5367_p7, %p5361_p2 }
  0x2a   : > { %5371 = shalt.err (!%p5368_p9)
}
  0x2b   : > { %s6420_s9 = smov 128   ;;  %s6421_s13 = smov 8  }
  0x2c   : > { %5253 = dma.hbm_to_vmem [thread:$0]  (!%p5752_p6), %s6427_s1, 1152, %s5741_s10, [#allocation8], %s6420_s9, %s6420_s9, %s6421_s13  }
  0x2d   : > { %s5372_s21 = scalar_lea.hbm %s6412_s3, 1152 }
  0x2e   : > { %p5373_p4 = scmp.ne.s32.totalorder %s6412_s3, %s5372_s21  ;;  %p5379_p12 = scmp.lt.u32.totalorder %s5372_s21, %s6412_s3 }
  0x30   : > { %p5375_p10 = pnand %p5373_p4, %p5768_p8 }
  0x32   : > { %p5376_p11 = pneg %p5375_p10 }
  0x34   : > { %p5381_p13 = pnand %p5379_p12, %p5376_p11 }
  0x36   : > { %5384 = shalt.err (!%p5381_p13)
}
  0x37   : > { %s5385_s10 = scalar_lea.vmem %s5756_s14, 1152  ;;  %p5393_p7 = scmp.lt.s32.totalorder %s5756_s14, %s5756_s14 }
  0x38   : > { %p5386_p0 = scmp.ne.s32.totalorder %s5756_s14, %s5385_s10  ;;  %p5394_p9 = scmp.lt.s32.totalorder %s5385_s10, %s5385_s10 }
  0x3a   : > { %p5388_p2 = pnand %p5386_p0, %p5768_p8  ;;  %p5395_p4 = por %p5394_p9, %p5393_p7 }
  0x3c   : > { %p5389_p5 = pneg %p5388_p2 }
  0x3e   : > { %p5396_p10 = pnand %p5395_p4, %p5389_p5 }
  0x40   : > { %5399 = shalt.err (!%p5396_p10)
}
  0x41   : > { %5259 = dma.hbm_to_vmem [thread:$0]  (!%p5752_p6), %s6412_s3, 1152, %s5756_s14, [#allocation11], %s6420_s9, %s6420_s9, %s6421_s13  }
  0x42   : > { %s5400_s21 = scalar_lea.hbm %s6414_s5, 1280 }
  0x43   : > { %p5401_p11 = scmp.ne.s32.totalorder %s6414_s5, %s5400_s21  ;;  %p5407_p0 = scmp.lt.u32.totalorder %s5400_s21, %s6414_s5 }
  0x45   : > { %p5403_p12 = pnand %p5401_p11, %p5768_p8 }
  0x47   : > { %p5404_p13 = pneg %p5403_p12 }
  0x49   : > { %p5409_p2 = pnand %p5407_p0, %p5404_p13 }
  0x4b   : > { %5412 = shalt.err (!%p5409_p2)
}
  0x4c   : > { %s5413_s14 = scalar_lea.vmem %s5758_s17, 1280  ;;  %p5421_p4 = scmp.lt.s32.totalorder %s5758_s17, %s5758_s17 }
  0x4d   : > { %p5414_p5 = scmp.ne.s32.totalorder %s5758_s17, %s5413_s14  ;;  %p5422_p10 = scmp.lt.s32.totalorder %s5413_s14, %s5413_s14 }
  0x4f   : > { %p5416_p7 = pnand %p5414_p5, %p5768_p8  ;;  %p5423_p11 = por %p5422_p10, %p5421_p4 }
  0x51   : > { %p5417_p9 = pneg %p5416_p7 }
  0x53   : > { %p5424_p12 = pnand %p5423_p11, %p5417_p9 }
  0x55   : > { %5427 = shalt.err (!%p5424_p12)
}
  0x56   : > { %5265 = dma.hbm_to_vmem [thread:$0]  (!%p5752_p6), %s6414_s5, 1280, %s5758_s17, [#allocation14], %s6420_s9, %s6420_s9, %s6421_s13  }
  0x57   : > { %s5659_s18 = smov [#allocation9]   ;;  %s5660_s20 = smov [#allocation12]  }
  0x58   : > { %s258_s19 = sshll.u32 %s5659_s18, 4  ;;  %s282_s21 = sshll.u32 %s5660_s20, 4  ;;  %s259_s19 = int_to_ptr.vmem [resolvable:$true] %s258_s19  ;;  %s283_s21 = int_to_ptr.vmem [resolvable:$true] %s282_s21 }
  0x59   : > { %s6429_s2 = sld [smem:[#allocation26_spill]] }
  0x5f   : > { %s5428_s25 = scalar_lea.hbm %s6429_s2, 16 }
  0x60   : > { %p5429_p13 = scmp.ne.s32.totalorder %s6429_s2, %s5428_s25  ;;  %p5435_p5 = scmp.lt.u32.totalorder %s5428_s25, %s6429_s2 }
  0x62   : > { %p5431_p0 = pnand %p5429_p13, %p5768_p8 }
  0x64   : > { %p5432_p2 = pneg %p5431_p0 }
  0x66   : > { %p5437_p7 = pnand %p5435_p5, %p5432_p2 }
  0x68   : > { %5440 = shalt.err (!%p5437_p7)
}
  0x69   : > { %s5441_s17 = scalar_lea.vmem %s259_s19, 16  ;;  %s5448_s16 = scalar_lea.vmem %s259_s19, 32 }
  0x6a   : > { %p5442_p9 = scmp.ne.s32.totalorder %s259_s19, %s5441_s17  ;;  %p5449_p11 = scmp.lt.s32.totalorder %s259_s19, %s259_s19 }
  0x6b   : > { %p5450_p12 = scmp.lt.s32.totalorder %s5448_s16, %s5441_s17 }
  0x6c   : > { %p5444_p4 = pnand %p5442_p9, %p5768_p8 }
  0x6d   : > { %p5451_p1 = por %p5450_p12, %p5449_p11 }
  0x6e   : > { %p5445_p10 = pneg %p5444_p4 }
  0x70   : > { %p5452_p3 = pnand %p5451_p1, %p5445_p10 }
  0x72   : > { %5455 = shalt.err (!%p5452_p3)
}
  0x73   : > { %5256 = dma.hbm_to_vmem [thread:$0]  (!%p5752_p6), %s6429_s2, 16, %s259_s19, [#allocation8]  }
  0x74   : > { %s5456_s24 = scalar_lea.hbm %s6413_s4, 16 }
  0x75   : > { %p5457_p13 = scmp.ne.s32.totalorder %s6413_s4, %s5456_s24  ;;  %p5463_p3 = scmp.lt.u32.totalorder %s5456_s24, %s6413_s4 }
  0x77   : > { %p5459_p0 = pnand %p5457_p13, %p5768_p8 }
  0x79   : > { %p5460_p1 = pneg %p5459_p0 }
  0x7b   : > { %p5465_p2 = pnand %p5463_p3, %p5460_p1 }
  0x7d   : > { %5468 = shalt.err (!%p5465_p2)
}
  0x7e   : > { %s5469_s17 = scalar_lea.vmem %s283_s21, 16  ;;  %s5476_s19 = scalar_lea.vmem %s283_s21, 32 }
  0x7f   : > { %p5470_p5 = scmp.ne.s32.totalorder %s283_s21, %s5469_s17  ;;  %p5477_p4 = scmp.lt.s32.totalorder %s283_s21, %s283_s21 }
  0x80   : > { %p5478_p10 = scmp.lt.s32.totalorder %s5476_s19, %s5469_s17 }
  0x81   : > { %p5472_p7 = pnand %p5470_p5, %p5768_p8 }
  0x82   : > { %p5479_p11 = por %p5478_p10, %p5477_p4 }
  0x83   : > { %p5473_p9 = pneg %p5472_p7 }
  0x85   : > { %p5480_p12 = pnand %p5479_p11, %p5473_p9 }
  0x87   : > { %5483 = shalt.err (!%p5480_p12)
}
  0x88   : > { %5262 = dma.hbm_to_vmem [thread:$0]  (!%p5752_p6), %s6413_s4, 16, %s283_s21, [#allocation11]  }
  0x89   : > { %s5661_s20 = smov [#allocation15]   ;;  %s5662_s22 = smov [#allocation16]  }
  0x8a   : > { %s306_s1 = sshll.u32 %s5661_s20, 4  ;;  %s317_s24 = sshll.u32 %s5662_s22, 4  ;;  %s307_s1 = int_to_ptr.vmem [resolvable:$true] %s306_s1  ;;  %s318_s24 = int_to_ptr.vmem [resolvable:$true] %s317_s24 }
  0x8b   : > { %s5484_s14 = scalar_lea.hbm %s6415_s6, 64 }
  0x8c   : > { %p5485_p13 = scmp.ne.s32.totalorder %s6415_s6, %s5484_s14  ;;  %p5491_p3 = scmp.lt.u32.totalorder %s5484_s14, %s6415_s6 }
  0x8e   : > { %p5487_p0 = pnand %p5485_p13, %p5768_p8 }
  0x90   : > { %p5488_p1 = pneg %p5487_p0 }
  0x92   : > { %p5493_p2 = pnand %p5491_p3, %p5488_p1 }
  0x94   : > { %5496 = shalt.err (!%p5493_p2)
}
  0x95   : > { %s5497_s21 = scalar_lea.vmem %s307_s1, 64  ;;  %p5505_p4 = scmp.lt.s32.totalorder %s307_s1, %s307_s1 }
  0x96   : > { %p5498_p5 = scmp.ne.s32.totalorder %s307_s1, %s5497_s21  ;;  %p5506_p10 = scmp.lt.s32.totalorder %s5497_s21, %s5497_s21 }
  0x98   : > { %p5500_p7 = pnand %p5498_p5, %p5768_p8  ;;  %p5507_p11 = por %p5506_p10, %p5505_p4 }
  0x9a   : > { %p5501_p9 = pneg %p5500_p7 }
  0x9c   : > { %p5508_p12 = pnand %p5507_p11, %p5501_p9 }
  0x9e   : > { %5511 = shalt.err (!%p5508_p12)
}
  0x9f   : > { %5268 = dma.hbm_to_vmem [thread:$0]  (!%p5752_p6), %s6415_s6, 64, %s307_s1, [#allocation14]  }
  0xa0   : > { %s5512_s26 = scalar_lea.hbm %s6416_s7, 64 }
  0xa1   : > { %p5513_p13 = scmp.ne.s32.totalorder %s6416_s7, %s5512_s26  ;;  %p5519_p3 = scmp.lt.u32.totalorder %s5512_s26, %s6416_s7 }
  0xa3   : > { %p5515_p0 = pnand %p5513_p13, %p5768_p8 }
  0xa5   : > { %p5516_p1 = pneg %p5515_p0 }
  0xa7   : > { %p5521_p2 = pnand %p5519_p3, %p5516_p1 }
  0xa9   : > { %5524 = shalt.err (!%p5521_p2)
}
  0xaa   : > { %s5525_s16 = scalar_lea.vmem %s318_s24, 64  ;;  %p5533_p4 = scmp.lt.s32.totalorder %s318_s24, %s318_s24 }
  0xab   : > { %p5526_p5 = scmp.ne.s32.totalorder %s318_s24, %s5525_s16  ;;  %p5534_p10 = scmp.lt.s32.totalorder %s5525_s16, %s5525_s16 }
  0xad   : > { %p5528_p7 = pnand %p5526_p5, %p5768_p8  ;;  %p5535_p11 = por %p5534_p10, %p5533_p4 }
  0xaf   : > { %p5529_p9 = pneg %p5528_p7 }
  0xb1   : > { %p5536_p12 = pnand %p5535_p11, %p5529_p9 }
  0xb3   : > { %5539 = shalt.err (!%p5536_p12)
}
  0xb4   : > { %5271 = dma.hbm_to_vmem [thread:$0]  (!%p5752_p6), %s6416_s7, 64, %s318_s24, [#allocation17]  }
  0xb5   : > { %s4281_s23 = sadd.s32 4294967294, %s5652_s30   ;;  %s5918_s15 = sadd.s32 1, %s5652_s30  }
  0xb6   : > { %s35_s18 = sadd.s32 1, %s5648_s29  ;;  %s32_s20 = ssub.s32 %s5652_s30, %s5918_s15 }
  0xb7   : > { %p42_p8 = scmp.ne.s32.totalorder %s5648_s29, %s5644_s28  ;;  %p33_p13 = scmp.eq.s32.totalorder %s32_s20, 0 }
  0xb8   : > { %p43_p0 = scmp.eq.s32.totalorder %s5652_s30, 0  ;;  %p48_p1 = scmp.ne.s32.totalorder %s5644_s28, %s5640_s27 }
  0xb9   : > { %p219_p3 = scmp.eq.s32.totalorder %s5736_s11, 1  ;;  %p6430_p5 = scmp.eq.s32.totalorder %s5736_s11, 0 }
  0xba   : > { %s5930_s22 = scalar_select %p33_p13, %s5648_s29, %s35_s18  }
  0xbb   : > { %p44_p2 = por %p43_p0, %p42_p8  ;;  %p5934_p7 = por %p6430_p5, %p48_p1 }
  0xbc   : > { %p5938_p6 = por %p219_p3, %p42_p8  ;;  %p225_p9 = scmp.eq.s32.totalorder %s4281_s23, 1 }
  0xbd   : > { %p5287_p4 = scmp.lt.s32.totalorder %s5652_s30, 2  ;;  %s328_s26 = sand.u32 1, %s5648_s29  }
  0xbe   : > { %s6432_s24 = scalar_select %p5938_p6, 1, 0 }
  0xbf   : > { %p5944_p10 = por %p225_p9, %p48_p1  ;;  %s5213_s10 = smul.u32 104, %s328_s26 }
  0xc0   : > { %p5948_p11 = pnand %p5287_p4, %p44_p2  ;;  %s5214_s19 = smul.u32 1664, %s5652_s30 }
  0xc1   : > { %s6433_s14 = scalar_select %p5944_p10, 1, 0 }
  0xc2   : > { %s5956_s21 = scalar_lea.hbm %s6409_s0, %s5214_s19  ;;  %s332_s23 = scalar_lea.vmem [#allocation4], %s5213_s10 }
  0xc3   : > { %s339_s18 = sshll.u32 %s332_s23, 4  ;;  %s5960_s20 = scalar_lea.sflag [#allocation5], %s328_s26  ;;  %s5958_s18 = int_to_ptr.vmem [resolvable:$true] %s339_s18 }
  0xc4   : > { %s5540_s9 = scalar_lea.hbm %s5956_s21, 1664  ;;  %p5542_p8 = pneg %p5948_p11 }
  0xc5   : > { %p5541_p12 = scmp.ne.s32.totalorder %s5956_s21, %s5540_s9  ;;  %s5545_s1 = scalar_lea.hbm %s6409_s0, 3328 }
  0xc6   : > { %p5546_p1 = scmp.lt.u32.totalorder %s5956_s21, %s6409_s0  ;;  %p5547_p3 = scmp.lt.u32.totalorder %s5545_s1, %s5540_s9 }
  0xc7   : > { %p5543_p13 = pnand %p5542_p8, %p5541_p12  ;;  %p5549_p5 = scmp.lt.u32.totalorder %s5540_s9, %s5956_s21 }
  0xc8   : > { %p5548_p2 = por %p5547_p3, %p5546_p1 }
  0xc9   : > { %p5544_p0 = pneg %p5543_p13 }
  0xca   : > { %p5550_p9 = por %p5549_p5, %p5548_p2 }
  0xcc   : > { %p5551_p4 = pnand %p5550_p9, %p5544_p0 }
  0xce   : > { %5554 = shalt.err (!%p5551_p4)
}
  0xcf   : > { %s5555_s26 = scalar_lea.vmem %s5958_s18, 1664  ;;  %s5663_s10 = smov [#allocation4]  }
  0xd0   : > { %p5556_p12 = scmp.ne.s32.totalorder %s5958_s18, %s5555_s26  ;;  %s5560_s23 = sshll.u32 %s5663_s10, 4  ;;  %s5561_s23 = int_to_ptr.vmem [resolvable:$false] %s5560_s23 }
  0xd1   : > { %s5562_s2 = scalar_lea.vmem %s5561_s23, 3328  ;;  %p5563_p6 = scmp.lt.s32.totalorder %s5958_s18, %s5561_s23 }
  0xd2   : > { %p5558_p13 = pnand %p5556_p12, %p5542_p8  ;;  %p5564_p1 = scmp.lt.s32.totalorder %s5562_s2, %s5555_s26 }
  0xd4   : > { %p5559_p10 = pneg %p5558_p13  ;;  %p5565_p3 = por %p5564_p1, %p5563_p6 }
  0xd6   : > { %p5566_p2 = pnand %p5565_p3, %p5559_p10 }
  0xd8   : > { %5569 = shalt.err (!%p5566_p2)
}
  0xd9   : > { %s6435_s9 = smov 8   ;;  %s6436_s13 = smov 128  }
  0xda   : > { %5275 = dma.hbm_to_vmem [thread:$0]  (!%p5948_p11), %s5956_s21, 1664, %s5958_s18, %s5960_s20, %s6436_s13, %s6436_s13, %s6435_s9  }
  0xdb   : > { %p6437_p8 = scmp.ne.s32.totalorder %s6425_s12, 0 }
  0xdc   : > { %s5994_s19 = sand.u32 (!%p6437_p8), 1, %s5644_s28  }
  0xdd   : > { %351 = sbr.rel (%p6437_p8) target bundleno = 1266 (0x4f2), region = 52  ;;  %s354_s1 = scalar_lea.sflag (!%p6437_p8), [#allocation5], %s5994_s19 }
  0xde   : > { %s5215_s16 = smul.u32 (!%p6437_p8), 104, %s5994_s19 }
  0xe0   : > { %s5998_s26 = scalar_lea.vmem (!%p6437_p8), [#allocation4], %s5215_s16 }
  0xe4   : > { %5615 = dma.done.wait (%p5934_p7), %s354_s1, 1664  }
  0xe5   : > { %5617 = vsyncadd (%p5934_p7), %s354_s1, 4294965632  ;;  %p6438_p6 = scmp.eq.s32.totalorder %s5736_s11, 0 }
  0xe7   : > { %5619 = dma.done.wait (%p6438_p6), [#allocation8], 1168   ;;  %p6439_p10 = pmov %p6438_p6 }
  0xe8   : > { %p6440_p11 = pmov %p6438_p6 }
  0xe9   : > { %5621 = vsyncadd (%p6439_p10), [#allocation8], 4294966128 }
  0xea   : > { %5623 = dma.done.wait (%p6440_p11), [#allocation11], 1168   ;;  %p6441_p0 = pmov %p6438_p6 }
  0xec   : > { %5625 = vsyncadd (%p6441_p0), [#allocation11], 4294966128  ;;  %p6442_p5 = pmov %p6441_p0 }
  0xed   : > { %p6443_p9 = pmov %p6441_p0 }
  0xee   : > { %5627 = dma.done.wait (%p6442_p5), [#allocation14], 1344  }
  0xef   : > { %5629 = vsyncadd (%p6443_p9), [#allocation14], 4294965952  ;;  %p6444_p7 = pmov %p6441_p0 }
  0xf0   : > { %p6445_p4 = pmov %p6441_p0 }
  0xf1   : > { %5631 = dma.done.wait (%p6444_p7), [#allocation17], 64  }
  0xf2   : > { %5633 = vsyncadd (%p6445_p4), [#allocation17], 4294967232  ;;  %vm441_vm0 = vcmask 64512   ;;  %v440_v0 = vld [vmem:[#allocation7 + $0x8] sm:$0xff]  ;;  %v429_v1 = vld [vmem:[%s5998_s26 + $0x1] sm:$0xff]  ;;  %v5664_v35 = vmov 0  }
  0xf3   : > { %v430_v2 = vld [vmem:[%s5998_s26 + $0x9] sm:$0xff]  ;;  %4707 = vmatprep.subr.mxu0 %v440_v0  ;;  %4709 = vmatprep.mubr.msk.f32.mxu0 %vm441_vm0, %v429_v1  ;;  %v431_v3 = vld [vmem:[%s5998_s26 + $0x11] sm:$0xff]  ;;  %v432_v5 = vld [vmem:[%s5998_s26 + $0x19] sm:$0xff]  ;;  %vm1999_vm1 = vcmask 59392   ;;  %vm2012_vm2 = vcmask 62464   ;;  %vm5666_vm3 = vmmov 0  }
  0xf4   : > { %4708 = vmatpush3.msra.mxu0 %v440_v0  ;;  %v428_v4 = vld [vmem:[#allocation7] sm:$0xff]  ;;  %v743_v7 = vld [vmem:[#allocation7 + $0x10] sm:$0xff]  ;;  %v910_v16 = vld [vmem:[#allocation7 + $0x18] sm:$0xff]  ;;  %5342 = vset.pattern.permute.xlu0 %v5664_v35  ;;  %s5216_s12 = smul.u32 40, %s5994_s19  ;;  %vm3539_vm4 = vcmask 60416   ;;  %p6446_p13 = scmp.ne.s32.totalorder %s6432_s24, 0 }
  0xf5   : > { %4710 = vmatmul.mubr.msk.f32.vlgmr.msra.gmra.mrb[0].mxu0 %vm441_vm0, %v430_v2  ;;  %4724 = vmatprep.subr.mxu0 %v428_v4  ;;  %v433_v6 = vld [vmem:[%s5998_s26 + $0x21] sm:$0xff]  ;;  %v434_v8 = vld [vmem:[%s5998_s26 + $0x29] sm:$0xff]  ;;  %v435_v9 = vld [vmem:[%s5998_s26 + $0x31] sm:$0xff]  ;;  %s5217_s17 = smul.u32 640, %s5736_s11  ;;  %s4128_s11 = scalar_lea.sflag [#allocation6], %s5994_s19 }
  0xf6   : > { %4712 = vmatprep.mubr.msk.f32.mxu0 %vm441_vm0, %v431_v3  ;;  %4725 = vmatpush3.msra.mxu0 %v428_v4  ;;  %v436_v10 = vld [vmem:[%s5998_s26 + $0x39] sm:$0xff]  ;;  %v437_v11 = vld [vmem:[%s5998_s26 + $0x41] sm:$0xff]  ;;  %v438_v12 = vld [vmem:[%s5998_s26 + $0x49] sm:$0x3f]  ;;  %s6333_s25 = scalar_lea.vmem [#allocation18], %s5216_s12  ;;  %s5667_s2 = smov [#allocation18]  }
  0xf7   : > { %4741 = vmatprep.subr.mxu0 %v743_v7  ;;  %v418_v13 = vld [vmem:[%s5998_s26] sm:$0xff]  ;;  %v419_v14 = vld [vmem:[%s5998_s26 + $0x8] sm:$0xff]  ;;  %v420_v15 = vld [vmem:[%s5998_s26 + $0x10] sm:$0xff]  ;;  %5343 = vset.pattern.permute.xlu1 %v5664_v35  ;;  %s4141_s21 = sshll.u32 %s6333_s25, 4  ;;  %s6361_s10 = scalar_lea.hbm %s6417_s8, %s5217_s17  ;;  %s6363_s21 = int_to_ptr.vmem [resolvable:$true] %s4141_s21 }
  0xf8   : > { %v421_v17 = vld [vmem:[%s5998_s26 + $0x18] sm:$0xff]  ;;  %v422_v18 = vld [vmem:[%s5998_s26 + $0x20] sm:$0xff]  ;;  %v423_v19 = vld [vmem:[%s5998_s26 + $0x28] sm:$0xff]  ;;  %s5570_s23 = scalar_lea.vmem %s6363_s21, 640  ;;  %s5574_s9 = sshll.u32 %s5667_s2, 4  ;;  %s5575_s9 = int_to_ptr.vmem [resolvable:$false] %s5574_s9 }
  0xf9   : > { %4713 = vmatmul.mubr.msk.f32.gmra.mrb[2].mxu0 %vm441_vm0, %v432_v5  ;;  %v424_v20 = vld [vmem:[%s5998_s26 + $0x30] sm:$0xff]  ;;  %v425_v21 = vld [vmem:[%s5998_s26 + $0x38] sm:$0xff]  ;;  %v426_v22 = vld [vmem:[%s5998_s26 + $0x40] sm:$0xff]  ;;  %p5571_p12 = scmp.ne.s32.totalorder %s6363_s21, %s5570_s23  ;;  %s5576_s13 = scalar_lea.vmem %s5575_s9, 1280 }
  0xfa   : > { %4715 = vmatprep.mubr.msk.f32.mxu0 %vm441_vm0, %v433_v6  ;;  %v427_v23 = vld [vmem:[%s5998_s26 + $0x48] sm:$0x3f]  ;;  %v734_v26 = vld [vmem:[%s5998_s26 + $0x12] sm:$0xff]  ;;  %v735_v28 = vld [vmem:[%s5998_s26 + $0x1a] sm:$0xff]  ;;  %p5577_p2 = scmp.lt.s32.totalorder %s6363_s21, %s5575_s9  ;;  %p5578_p8 = scmp.lt.s32.totalorder %s5576_s13, %s5570_s23 }
  0xfb   : > { %v732_v24 = vld [vmem:[%s5998_s26 + $0x2] sm:$0xff]  ;;  %v733_v25 = vld [vmem:[%s5998_s26 + $0xa] sm:$0xff]  ;;  %v738_v31 = vld [vmem:[%s5998_s26 + $0x32] sm:$0xff]  ;;  %p5572_p1 = pnand %p5571_p12, %p6446_p13 }
  0xfc   : > { %v1077_v27 = vld [vmem:[#allocation7 + $0x20] sm:$0xff]  ;;  %v1928_v32 = vld [vmem:[#allocation13] sm:$0xff]  ;;  %v1931_v38 = vld [vmem:[#allocation13 + $0x18] sm:$0xff]  ;;  %p5579_p6 = por %p5578_p8, %p5577_p2 }
  0xfd   : > { %4716 = vmatmul.mubr.msk.f32.gmra.mrb[4].mxu0 %vm441_vm0, %v434_v8  ;;  %v736_v29 = vld [vmem:[%s5998_s26 + $0x22] sm:$0xff]  ;;  %v737_v30 = vld [vmem:[%s5998_s26 + $0x2a] sm:$0xff]  ;;  %v739_v34 = vld [vmem:[%s5998_s26 + $0x3a] sm:$0xff]  ;;  %1940 = vperm.xlu0 %5342, %v1928_v32   ;;  %p5573_p3 = pneg %p5572_p1 }
  0xfe   : > { %4718 = vmatprep.mubr.msk.f32.mxu0 %vm441_vm0, %v435_v9  ;;  %v1930_v33 = vld [vmem:[#allocation13 + $0x10] sm:$0xff]  ;;  %v740_v36 = vld [vmem:[%s5998_s26 + $0x42] sm:$0xff]  ;;  %v1409_v9 = vld [vmem:[%s5998_s26 + $0x5c] sm:$0x3f] }
  0xff   : > { %1950 = vperm.xlu1 %5343, %v1930_v33   ;;  %v1929_v37 = vld [vmem:[#allocation13 + $0x8] sm:$0xff]  ;;  %v1932_v40 = vld [vmem:[#allocation13 + $0x20] sm:$0xff]  ;;  %v1244_v42 = vld [vmem:[#allocation7 + $0x28] sm:$0xff]  ;;  %p5580_p10 = pnand %p5579_p6, %p5573_p3 }
 0x100   : > { %v741_v39 = vld [vmem:[%s5998_s26 + $0x4a] sm:$0x3f]  ;;  %v1935_v44 = vld [vmem:[#allocation13 + $0x38] sm:$0xff] }
 0x101   : > { %4719 = vmatmul.mubr.msk.f32.gmra.mrb[6].mxu0 %vm441_vm0, %v436_v10  ;;  %1945 = vperm.xlu0 %5342, %v1929_v37   ;;  %v1933_v41 = vld [vmem:[#allocation13 + $0x28] sm:$0xff]  ;;  %v1934_v43 = vld [vmem:[#allocation13 + $0x30] sm:$0xff]  ;;  %v1936_v45 = vld [vmem:[#allocation13 + $0x40] sm:$0xff] }
 0x102   : > { %4721 = vmatprep.mubr.msk.f32.mxu0 %vm441_vm0, %v437_v11  ;;  %v1937_v46 = vld [vmem:[#allocation13 + $0x48] sm:$0x3f]  ;;  %v908_v48 = vld [vmem:[%s5998_s26 + $0x52] sm:$0x3f]  ;;  %v1068_v51 = vld [vmem:[%s5998_s26 + $0x1b] sm:$0xff] }
 0x103   : > { %1955 = vperm.xlu1 %5343, %v1931_v38   ;;  %v907_v47 = vld [vmem:[%s5998_s26 + $0x4a] sm:$0xff]  ;;  %v1067_v50 = vld [vmem:[%s5998_s26 + $0x13] sm:$0xff]  ;;  %v1072_v56 = vld [vmem:[%s5998_s26 + $0x3b] sm:$0xff] }
 0x104   : > { %v1066_v49 = vld [vmem:[%s5998_s26 + $0xb] sm:$0xff]  ;;  %v1411_v52 = vld [vmem:[#allocation7 + $0x30] sm:$0xff] }
 0x105   : > { %4722 = vmatmul.mubr.msk.f32.gmra.mrb[8].mxu0 %vm441_vm0, %v438_v12  ;;  %1960 = vperm.xlu0 %5342, %v1932_v40   ;;  %v1069_v53 = vld [vmem:[%s5998_s26 + $0x23] sm:$0xff]  ;;  %v1070_v54 = vld [vmem:[%s5998_s26 + $0x2b] sm:$0xff]  ;;  %v1071_v55 = vld [vmem:[%s5998_s26 + $0x33] sm:$0xff] }
 0x106   : > { %4726 = vmatprep.mubr.msk.f32.mxu0 %vm441_vm0, %v418_v13  ;;  %v1073_v57 = vld [vmem:[%s5998_s26 + $0x43] sm:$0xff]  ;;  %v1074_v58 = vld [vmem:[%s5998_s26 + $0x4b] sm:$0xff]  ;;  %v1075_v59 = vld [vmem:[%s5998_s26 + $0x53] sm:$0x3f] }
 0x107   : > { %1965 = vperm.xlu1 %5343, %v1933_v41   ;;  %v1233_v60 = vld [vmem:[%s5998_s26 + $0xc] sm:$0xff]  ;;  %v1234_v61 = vld [vmem:[%s5998_s26 + $0x14] sm:$0xff]  ;;  %v1235_v62 = vld [vmem:[%s5998_s26 + $0x1c] sm:$0xff] }
 0x108   : > { %v1578_v63 = vld [vmem:[#allocation7 + $0x38] sm:$0xff]  ;;  %v1238_v2 = vld [vmem:[%s5998_s26 + $0x34] sm:$0xff] }
 0x109   : > { %4727 = vmatmul.mubr.msk.f32.vlgmr.msra.gmra.mrb[0].mxu0 %vm441_vm0, %v419_v14  ;;  %1970 = vperm.xlu0 %5342, %v1934_v43   ;;  %v1236_v0 = vld [vmem:[%s5998_s26 + $0x24] sm:$0xff]  ;;  %v1237_v1 = vld [vmem:[%s5998_s26 + $0x2c] sm:$0xff]  ;;  %v1239_v3 = vld [vmem:[%s5998_s26 + $0x3c] sm:$0xff] }
 0x10a   : > { %4729 = vmatprep.mubr.msk.f32.mxu0 %vm441_vm0, %v420_v15  ;;  %4742 = vmatpush3.msra.mxu0 %v743_v7  ;;  %v1240_v4 = vld [vmem:[%s5998_s26 + $0x44] sm:$0xff]  ;;  %v1241_v5 = vld [vmem:[%s5998_s26 + $0x4c] sm:$0xff]  ;;  %v1242_v6 = vld [vmem:[%s5998_s26 + $0x54] sm:$0x3f] }
 0x10b   : > { %4758 = vmatprep.subr.mxu0 %v910_v16  ;;  %1975 = vperm.xlu1 %5343, %v1935_v44   ;;  %v1745_v7 = vld [vmem:[#allocation7 + $0x40] sm:$0xff]  ;;  %v1568_v11 = vld [vmem:[%s5998_s26 + $0x1d] sm:$0xff] }
 0x10c   : > { %v1408_v8 = vld [vmem:[%s5998_s26 + $0x54] sm:$0xff]  ;;  %v1569_v12 = vld [vmem:[%s5998_s26 + $0x25] sm:$0xff]  ;;  %v1572_v15 = vld [vmem:[%s5998_s26 + $0x3d] sm:$0xff] }
 0x10d   : > { %4730 = vmatmul.mubr.msk.f32.gmra.mrb[2].mxu0 %vm441_vm0, %v421_v17  ;;  %1980 = vperm.xlu0 %5342, %v1936_v45   ;;  %v1567_v10 = vld [vmem:[%s5998_s26 + $0x15] sm:$0xff]  ;;  %v1570_v13 = vld [vmem:[%s5998_s26 + $0x2d] sm:$0xff] }
 0x10e   : > { %4732 = vmatprep.mubr.msk.f32.mxu0 %vm441_vm0, %v422_v18  ;;  %v1571_v14 = vld [vmem:[%s5998_s26 + $0x35] sm:$0xff]  ;;  %v1574_v17 = vld [vmem:[%s5998_s26 + $0x4d] sm:$0xff] }
 0x10f   : > { %1985 = vperm.xlu1 %5343, %v1937_v46   ;;  %v1575_v18 = vld [vmem:[%s5998_s26 + $0x55] sm:$0xff] }
 0x110   : > { %v2024_v33 = vld [vmem:[#allocation10] sm:$0xff] }
 0x111   : > { %4733 = vmatmul.mubr.msk.f32.gmra.mrb[4].mxu0 %vm441_vm0, %v423_v19  ;;  %v1576_v19 = vld [vmem:[%s5998_s26 + $0x5d] sm:$0x3f] }
 0x112   : > { %4735 = vmatprep.mubr.msk.f32.mxu0 %vm441_vm0, %v424_v20  ;;  %v1734_v20 = vld [vmem:[%s5998_s26 + $0x16] sm:$0xff] }
 0x115   : > { %4736 = vmatmul.mubr.msk.f32.gmra.mrb[6].mxu0 %vm441_vm0, %v425_v21  ;;  %v1735_v21 = vld [vmem:[%s5998_s26 + $0x1e] sm:$0xff] }
 0x116   : > { %4738 = vmatprep.mubr.msk.f32.mxu0 %vm441_vm0, %v426_v22  ;;  %v1736_v22 = vld [vmem:[%s5998_s26 + $0x26] sm:$0xff] }
 0x119   : > { %4739 = vmatmul.mubr.msk.f32.gmra.mrb[8].mxu0 %vm441_vm0, %v427_v23  ;;  %v1737_v23 = vld [vmem:[%s5998_s26 + $0x2e] sm:$0xff] }
 0x11a   : > { %4743 = vmatprep.mubr.msk.f32.mxu0 %vm441_vm0, %v732_v24  ;;  %v1738_v24 = vld [vmem:[%s5998_s26 + $0x36] sm:$0xff] }
 0x11d   : > { %4744 = vmatmul.mubr.msk.f32.vlgmr.msra.gmra.mrb[0].mxu0 %vm441_vm0, %v733_v25 }
 0x11e   : > { %4746 = vmatprep.mubr.msk.f32.mxu0 %vm441_vm0, %v734_v26  ;;  %4759 = vmatpush3.msra.mxu0 %v910_v16  ;;  %v1573_v16 = vld [vmem:[%s5998_s26 + $0x45] sm:$0xff] }
 0x11f   : > { %4775 = vmatprep.subr.mxu0 %v1077_v27 }
 0x121   : > { %4747 = vmatmul.mubr.msk.f32.gmra.mrb[2].mxu0 %vm441_vm0, %v735_v28 }
 0x122   : > { %4749 = vmatprep.mubr.msk.f32.mxu0 %vm441_vm0, %v736_v29 }
 0x125   : > { %4750 = vmatmul.mubr.msk.f32.gmra.mrb[4].mxu0 %vm441_vm0, %v737_v30 }
 0x126   : > { %4752 = vmatprep.mubr.msk.f32.mxu0 %vm441_vm0, %v738_v31 }
 0x129   : > { %4753 = vmatmul.mubr.msk.f32.gmra.mrb[6].mxu0 %vm441_vm0, %v739_v34 }
 0x12a   : > { %4755 = vmatprep.mubr.msk.f32.mxu0 %vm441_vm0, %v740_v36 }
 0x12d   : > { %4756 = vmatmul.mubr.msk.f32.gmra.mrb[8].mxu0 %vm441_vm0, %v741_v39 }
 0x12e   : > { %4760 = vmatprep.mubr.msk.f32.mxu0 %vm441_vm0, %v733_v25  ;;  %v1739_v25 = vld [vmem:[%s5998_s26 + $0x3e] sm:$0xff] }
 0x131   : > { %4761 = vmatmul.mubr.msk.f32.vlgmr.msra.gmra.mrb[0].mxu0 %vm441_vm0, %v734_v26  ;;  %v1740_v26 = vld [vmem:[%s5998_s26 + $0x46] sm:$0xff] }
 0x132   : > { %4763 = vmatprep.mubr.msk.f32.mxu0 %vm441_vm0, %v735_v28  ;;  %4776 = vmatpush3.msra.mxu0 %v1077_v27  ;;  %v1741_v27 = vld [vmem:[%s5998_s26 + $0x4e] sm:$0xff]  ;;  %v1742_v28 = vld [vmem:[%s5998_s26 + $0x56] sm:$0xff] }
 0x133   : > { %4792 = vmatprep.subr.mxu0 %v1244_v42 }
 0x135   : > { %4764 = vmatmul.mubr.msk.f32.gmra.mrb[2].mxu0 %vm441_vm0, %v736_v29  ;;  %v1743_v29 = vld [vmem:[%s5998_s26 + $0x5e] sm:$0x3f] }
 0x136   : > { %4766 = vmatprep.mubr.msk.f32.mxu0 %vm441_vm0, %v737_v30  ;;  %v5665_v30 = vmov 0.0  }
 0x137   : > { %1998 = vst.msk [vmem:[#allocation2] sm:$0xff] %vm441_vm0, %v5665_v30  ;;  %2001 = vst.msk [vmem:[#allocation2 + $0x59] sm:$0xff] %vm441_vm0, %v5665_v30 }
 0x138   : > { %2000 = vst.msk [vmem:[#allocation2 + $0x8] sm:$0x7] %vm1999_vm1, %v5665_v30  ;;  %2002 = vst.msk [vmem:[#allocation2 + $0x61] sm:$0x7] %vm1999_vm1, %v5665_v30 }
 0x139   : > { %4767 = vmatmul.mubr.msk.f32.gmra.mrb[4].mxu0 %vm441_vm0, %v738_v31  ;;  %v2036_v31 = vld [vmem:[#allocation10 + $0x8] sm:$0xff]  ;;  %3535 = vst.msk [vmem:[%s6333_s25] sm:$0xff] %vm441_vm0, %v5665_v30  ;;  %3536 = vst.msk [vmem:[%s6333_s25 + $0x8] sm:$0xff] %vm441_vm0, %v5665_v30 }
 0x13a   : > { %4769 = vmatprep.mubr.msk.f32.mxu0 %vm441_vm0, %v739_v34  ;;  %4860 = vmatprep.subr.mxu1 %v2036_v31  ;;  %3540 = vst.msk [vmem:[%s6333_s25 + $0x20] sm:$0xf] %vm3539_vm4, %v5665_v30 }
 0x13b   : > { %4861 = vmatpush3.msra.mxu1 %v2036_v31  ;;  %3537 = vst.msk [vmem:[%s6333_s25 + $0x10] sm:$0xff] %vm441_vm0, %v5665_v30  ;;  %3538 = vst.msk [vmem:[%s6333_s25 + $0x18] sm:$0xff] %vm441_vm0, %v5665_v30 }
 0x13c   : > { %4877 = vmatprep.subr.mxu1 %v2024_v33 }
 0x13d   : > { %4770 = vmatmul.mubr.msk.f32.gmra.mrb[6].mxu0 %vm441_vm0, %v740_v36  ;;  %v4390_v36 = vld [vmem:[#allocation9] ss:$0 sm:$0xff] }
 0x13e   : > { %4772 = vmatprep.mubr.msk.f32.mxu0 %vm441_vm0, %v907_v47  ;;  %v2014_v31 = vld [vmem:[#allocation2] sm:$0xff] }
 0x13f   : > { %v2025_v32 = vld [vmem:[#allocation2 + $0x1] sm:$0xff] }
 0x140   : > { %4862 = vmatprep.mubr.msk.f32.mxu1 %vm441_vm0, %v2025_v32 }
 0x141   : > { %4773 = vmatmul.mubr.msk.f32.gmra.mrb[8].mxu0 %vm441_vm0, %v908_v48 }
 0x142   : > { %4777 = vmatprep.mubr.msk.f32.mxu0 %vm441_vm0, %v1066_v49 }
 0x145   : > { %4778 = vmatmul.mubr.msk.f32.vlgmr.msra.gmra.mrb[0].mxu0 %vm441_vm0, %v1067_v50 }
 0x146   : > { %4780 = vmatprep.mubr.msk.f32.mxu0 %vm441_vm0, %v1068_v51  ;;  %4793 = vmatpush3.msra.mxu0 %v1244_v42 }
 0x147   : > { %4809 = vmatprep.subr.mxu0 %v1411_v52 }
 0x149   : > { %4781 = vmatmul.mubr.msk.f32.gmra.mrb[2].mxu0 %vm441_vm0, %v1069_v53 }
 0x14a   : > { %4783 = vmatprep.mubr.msk.f32.mxu0 %vm441_vm0, %v1070_v54 }
 0x14d   : > { %4784 = vmatmul.mubr.msk.f32.gmra.mrb[4].mxu0 %vm441_vm0, %v1071_v55 }
 0x14e   : > { %4786 = vmatprep.mubr.msk.f32.mxu0 %vm441_vm0, %v1072_v56 }
 0x151   : > { %4787 = vmatmul.mubr.msk.f32.gmra.mrb[6].mxu0 %vm441_vm0, %v1073_v57 }
 0x152   : > { %4789 = vmatprep.mubr.msk.f32.mxu0 %vm441_vm0, %v1074_v58 }
 0x155   : > { %4790 = vmatmul.mubr.msk.f32.gmra.mrb[8].mxu0 %vm441_vm0, %v1075_v59 }
 0x156   : > { %4794 = vmatprep.mubr.msk.f32.mxu0 %vm441_vm0, %v1233_v60 }
 0x159   : > { %4795 = vmatmul.mubr.msk.f32.vlgmr.msra.gmra.mrb[0].mxu0 %vm441_vm0, %v1234_v61 }
 0x15a   : > { %4797 = vmatprep.mubr.msk.f32.mxu0 %vm441_vm0, %v1235_v62  ;;  %4810 = vmatpush3.msra.mxu0 %v1411_v52 }
 0x15b   : > { %4826 = vmatprep.subr.mxu0 %v1578_v63 }
 0x15d   : > { %4798 = vmatmul.mubr.msk.f32.gmra.mrb[2].mxu0 %vm441_vm0, %v1236_v0 }
 0x15e   : > { %4800 = vmatprep.mubr.msk.f32.mxu0 %vm441_vm0, %v1237_v1 }
 0x161   : > { %4801 = vmatmul.mubr.msk.f32.gmra.mrb[4].mxu0 %vm441_vm0, %v1238_v2 }
 0x162   : > { %4803 = vmatprep.mubr.msk.f32.mxu0 %vm441_vm0, %v1239_v3 }
 0x165   : > { %4804 = vmatmul.mubr.msk.f32.gmra.mrb[6].mxu0 %vm441_vm0, %v1240_v4 }
 0x166   : > { %4806 = vmatprep.mubr.msk.f32.mxu0 %vm441_vm0, %v1241_v5 }
 0x169   : > { %4807 = vmatmul.mubr.msk.f32.gmra.mrb[8].mxu0 %vm441_vm0, %v1242_v6 }
 0x16a   : > { %4811 = vmatprep.mubr.msk.f32.mxu0 %vm441_vm0, %v1234_v61 }
 0x16d   : > { %4812 = vmatmul.mubr.msk.f32.vlgmr.msra.gmra.mrb[0].mxu0 %vm441_vm0, %v1235_v62 }
 0x16e   : > { %4814 = vmatprep.mubr.msk.f32.mxu0 %vm441_vm0, %v1236_v0  ;;  %4827 = vmatpush3.msra.mxu0 %v1578_v63 }
 0x16f   : > { %4843 = vmatprep.subr.mxu0 %v1745_v7 }
 0x171   : > { %4815 = vmatmul.mubr.msk.f32.gmra.mrb[2].mxu0 %vm441_vm0, %v1237_v1 }
 0x172   : > { %4817 = vmatprep.mubr.msk.f32.mxu0 %vm441_vm0, %v1238_v2 }
 0x175   : > { %4818 = vmatmul.mubr.msk.f32.gmra.mrb[4].mxu0 %vm441_vm0, %v1239_v3 }
 0x176   : > { %4820 = vmatprep.mubr.msk.f32.mxu0 %vm441_vm0, %v1240_v4 }
 0x179   : > { %4821 = vmatmul.mubr.msk.f32.gmra.mrb[6].mxu0 %vm441_vm0, %v1241_v5 }
 0x17a   : > { %4823 = vmatprep.mubr.msk.f32.mxu0 %vm441_vm0, %v1408_v8 }
 0x17c   : > { %v1941_v35 = vpop.permute.xlu0 %1940 }
 0x17d   : > { %4824 = vmatmul.mubr.msk.f32.gmra.mrb[8].mxu0 %vm441_vm0, %v1409_v9 }
 0x17e   : > { %4828 = vmatprep.mubr.msk.f32.mxu0 %vm441_vm0, %v1567_v10  ;;  %v1951_v34 = vpop.permute.xlu1 %1950  ;;  %v2338_v10 = vld [vmem:[#allocation10 + $0x10] sm:$0xff] }
 0x180   : > { %v1946_v42 = vpop.permute.xlu0 %1945 }
 0x181   : > { %4829 = vmatmul.mubr.msk.f32.vlgmr.msra.gmra.mrb[0].mxu0 %vm441_vm0, %v1568_v11 }
 0x182   : > { %4831 = vmatprep.mubr.msk.f32.mxu0 %vm441_vm0, %v1569_v12  ;;  %4844 = vmatpush3.msra.mxu0 %v1745_v7  ;;  %v1956_v40 = vpop.permute.xlu1 %1955 }
 0x183   : > { %5013 = vmatprep.subr.mxu0 %v5665_v30 }
 0x184   : > { %v1961_v55 = vpop.permute.xlu0 %1960 }
 0x185   : > { %4832 = vmatmul.mubr.msk.f32.gmra.mrb[2].mxu0 %vm441_vm0, %v1570_v13 }
 0x186   : > { %4834 = vmatprep.mubr.msk.f32.mxu0 %vm441_vm0, %v1571_v14  ;;  %v1966_v52 = vpop.permute.xlu1 %1965 }
 0x188   : > { %v1971_v6 = vpop.permute.xlu0 %1970 }
 0x189   : > { %4835 = vmatmul.mubr.msk.f32.gmra.mrb[4].mxu0 %vm441_vm0, %v1572_v15 }
 0x18a   : > { %4837 = vmatprep.mubr.msk.f32.mxu0 %vm441_vm0, %v1573_v16  ;;  %v1976_v3 = vpop.permute.xlu1 %1975 }
 0x18d   : > { %4838 = vmatmul.mubr.msk.f32.gmra.mrb[6].mxu0 %vm441_vm0, %v1574_v17 }
 0x18e   : > { %4840 = vmatprep.mubr.msk.f32.mxu0 %vm441_vm0, %v1575_v18 }
 0x191   : > { %4841 = vmatmul.mubr.msk.f32.gmra.mrb[8].mxu0 %vm441_vm0, %v1576_v19 }
 0x192   : > { %4845 = vmatprep.mubr.msk.f32.mxu0 %vm441_vm0, %v1734_v20 }
 0x195   : > { %4846 = vmatmul.mubr.msk.f32.vlgmr.msra.gmra.mrb[0].mxu0 %vm441_vm0, %v1735_v21  ;;  %v1986_v21 = vpop.permute.xlu1 %1985 }
 0x196   : > { %4848 = vmatprep.mubr.msk.f32.mxu0 %vm441_vm0, %v1736_v22 }
 0x199   : > { %4849 = vmatmul.mubr.msk.f32.gmra.mrb[2].mxu0 %vm441_vm0, %v1737_v23  ;;  %v1981_v23 = vpop.permute.xlu0 %1980 }
 0x19a   : > { %4851 = vmatprep.mubr.msk.f32.mxu0 %vm441_vm0, %v1738_v24 }
 0x19d   : > { %4852 = vmatmul.mubr.msk.f32.gmra.mrb[4].mxu0 %vm441_vm0, %v1739_v25 }
 0x19e   : > { %4854 = vmatprep.mubr.msk.f32.mxu0 %vm441_vm0, %v1740_v26 }
 0x1a1   : > { %4855 = vmatmul.mubr.msk.f32.gmra.mrb[6].mxu0 %vm441_vm0, %v1741_v27 }
 0x1a2   : > { %4857 = vmatprep.mubr.msk.f32.mxu0 %vm441_vm0, %v1742_v28 }
 0x1a5   : > { %4858 = vmatmul.mubr.msk.f32.gmra.mrb[8].mxu0 %vm441_vm0, %v1743_v29 }
 0x1a6   : > { %5015 = vmatprep.mubr.msk.f32.mxu0 %vm5666_vm3, %v5665_v30 }
 0x268   : > { %v4847_v37 = vpop.f32.mrb[0].mxu0 }
 0x269   : > { %v1909_v38 = vadd.f32 %v4847_v37, %v4390_v36  ;;  %v1842_v39 = vpop.f32.mrb[1].mxu0 }
 0x26a   : > { %v1908_v41 = vadd.f32 %v4390_v36, %v1842_v39 }
 0x26b   : > { %v1919_v43 = vmax.f32 %v1909_v38, 0.0 }
 0x26c   : > { %v1918_v44 = vmax.f32 %v1908_v41, 0.0  ;;  %v4850_v45 = vpop.f32.mrb[2].mxu0 }
 0x26d   : > { %v1989_v46 = vmul.f32 %v1946_v42, %v1919_v43  ;;  %v1911_v47 = vadd.f32 %v4850_v45, %v4390_v36  ;;  %v1852_v48 = vpop.f32.mrb[3].mxu0  ;;  %v2327_v42 = vld [vmem:[#allocation2 + $0x2] sm:$0xff]  ;;  %v2672_v45 = vld [vmem:[#allocation10 + $0x20] sm:$0xff] }
 0x26e   : > { %v1988_v49 = vmul.f32 %v1941_v35, %v1918_v44  ;;  %v1910_v50 = vadd.f32 %v4390_v36, %v1852_v48 }
 0x26f   : > { %2004 = vst.msk [vmem:[#allocation2 + $0x13] sm:$0xff] %vm441_vm0, %v1989_v46  ;;  %v1921_v51 = vmax.f32 %v1911_v47, 0.0 }
 0x270   : > { %2003 = vst.msk [vmem:[#allocation2 + $0xb] sm:$0xff] %vm441_vm0, %v1988_v49  ;;  %v1920_v53 = vmax.f32 %v1910_v50, 0.0  ;;  %v4853_v54 = vpop.f32.mrb[4].mxu0 }
 0x271   : > { %v1991_v56 = vmul.f32 %v1956_v40, %v1921_v51  ;;  %v1913_v57 = vadd.f32 %v4853_v54, %v4390_v36  ;;  %v1862_v58 = vpop.f32.mrb[5].mxu0  ;;  %v2839_v54 = vld [vmem:[#allocation10 + $0x28] sm:$0xff] }
 0x272   : > { %v1990_v59 = vmul.f32 %v1951_v34, %v1920_v53  ;;  %v1912_v60 = vadd.f32 %v4390_v36, %v1862_v58  ;;  %v2505_v34 = vld [vmem:[#allocation10 + $0x18] sm:$0xff] }
 0x273   : > { %2006 = vst.msk [vmem:[#allocation2 + $0x23] sm:$0xff] %vm441_vm0, %v1991_v56  ;;  %v1923_v61 = vmax.f32 %v1913_v57, 0.0 }
 0x274   : > { %2005 = vst.msk [vmem:[#allocation2 + $0x1b] sm:$0xff] %vm441_vm0, %v1990_v59  ;;  %v1922_v62 = vmax.f32 %v1912_v60, 0.0  ;;  %v4856_v63 = vpop.f32.mrb[6].mxu0  ;;  %v3006_v59 = vld [vmem:[#allocation10 + $0x30] sm:$0xff] }
 0x275   : > { %v1993_v0 = vmul.f32 %v1966_v52, %v1923_v61  ;;  %v1915_v1 = vadd.f32 %v4856_v63, %v4390_v36  ;;  %v1872_v2 = vpop.f32.mrb[7].mxu0 }
 0x276   : > { %v1992_v4 = vmul.f32 %v1961_v55, %v1922_v62  ;;  %v1914_v5 = vadd.f32 %v4390_v36, %v1872_v2  ;;  %v2662_v58 = vld [vmem:[#allocation2 + $0x13] sm:$0xff] }
 0x277   : > { %2008 = vst.msk [vmem:[#allocation2 + $0x33] sm:$0xff] %vm441_vm0, %v1993_v0  ;;  %v1925_v7 = vmax.f32 %v1915_v1, 0.0  ;;  %v2026_v8 = vld [vmem:[#allocation2 + $0x9] sm:$0xff]  ;;  %v2027_v9 = vld [vmem:[#allocation2 + $0x11] sm:$0xff] }
 0x278   : > { %2007 = vst.msk [vmem:[#allocation2 + $0x2b] sm:$0xff] %vm441_vm0, %v1992_v4  ;;  %v1924_v11 = vmax.f32 %v1914_v5, 0.0  ;;  %v4859_v12 = vpop.f32.mrb[8].mxu0  ;;  %4863 = vmatmul.mubr.msk.f32.vlgmr.msra.gmra.mrb[0].mxu1 %vm441_vm0, %v2026_v8  ;;  %v2016_v35 = vld [vmem:[#allocation2 + $0x10] sm:$0xff] }
 0x279   : > { %v1995_v13 = vmul.f32 %v1976_v3, %v1925_v7  ;;  %v1917_v14 = vadd.f32 %v4859_v12, %v4390_v36  ;;  %v1882_v15 = vpop.f32.mrb[9].mxu0  ;;  %4865 = vmatprep.mubr.msk.f32.mxu1 %vm441_vm0, %v2027_v9  ;;  %4878 = vmatpush3.msra.mxu1 %v2024_v33  ;;  %v2015_v33 = vld [vmem:[#allocation2 + $0x8] sm:$0xff]  ;;  %v2329_v46 = vld [vmem:[#allocation2 + $0x12] sm:$0xff] }
 0x27a   : > { %v1994_v16 = vmul.f32 %v1971_v6, %v1924_v11  ;;  %v1916_v17 = vadd.f32 %v4390_v36, %v1882_v15  ;;  %4894 = vmatprep.subr.mxu1 %v2338_v10  ;;  %v2328_v44 = vld [vmem:[#allocation2 + $0xa] sm:$0xff]  ;;  %v3340_v15 = vld [vmem:[#allocation10 + $0x40] sm:$0xff] }
 0x27b   : > { %2010 = vst.msk [vmem:[#allocation2 + $0x43] sm:$0xff] %vm441_vm0, %v1995_v13  ;;  %v1927_v18 = vmax.f32 %v1917_v14, 0.0  ;;  %v2028_v19 = vld [vmem:[#allocation2 + $0x19] sm:$0xff]  ;;  %v2029_v20 = vld [vmem:[#allocation2 + $0x21] sm:$0xff]  ;;  %v2661_v57 = vld [vmem:[#allocation2 + $0xb] sm:$0xff] }
 0x27c   : > { %2009 = vst.msk [vmem:[#allocation2 + $0x3b] sm:$0xff] %vm441_vm0, %v1994_v16  ;;  %v1926_v22 = vmax.f32 %v1916_v17, 0.0  ;;  %4866 = vmatmul.mubr.msk.f32.gmra.mrb[2].mxu1 %vm441_vm0, %v2028_v19  ;;  %v2017_v36 = vld [vmem:[#allocation2 + $0x18] sm:$0xff]  ;;  %v2018_v37 = vld [vmem:[#allocation2 + $0x20] sm:$0xff]  ;;  %v2828_v4 = vld [vmem:[#allocation2 + $0xc] sm:$0xff] }
 0x27d   : > { %v1997_v24 = vmul.f32 %v1986_v21, %v1927_v18  ;;  %4868 = vmatprep.mubr.msk.f32.mxu1 %vm441_vm0, %v2029_v20  ;;  %v2330_v47 = vld [vmem:[#allocation2 + $0x1a] sm:$0xff]  ;;  %v2331_v48 = vld [vmem:[#allocation2 + $0x22] sm:$0xff]  ;;  %v3173_v6 = vld [vmem:[#allocation10 + $0x38] sm:$0xff] }
 0x27e   : > { %v1996_v25 = vmul.f32 %v1981_v23, %v1926_v22  ;;  %v2663_v60 = vld [vmem:[#allocation2 + $0x1b] sm:$0xff]  ;;  %v2664_v61 = vld [vmem:[#allocation2 + $0x23] sm:$0xff]  ;;  %v2666_v63 = vld [vmem:[#allocation2 + $0x33] sm:$0xff] }
 0x27f   : > { %2013 = vst.msk [vmem:[#allocation2 + $0x53] sm:$0x3f] %vm2012_vm2, %v1997_v24  ;;  %v2030_v26 = vld [vmem:[#allocation2 + $0x29] sm:$0xff]  ;;  %v2031_v27 = vld [vmem:[#allocation2 + $0x31] sm:$0xff]  ;;  %v2830_v7 = vld [vmem:[#allocation2 + $0x1c] sm:$0xff] }
 0x280   : > { %2011 = vst.msk [vmem:[#allocation2 + $0x4b] sm:$0xff] %vm441_vm0, %v1996_v25  ;;  %4869 = vmatmul.mubr.msk.f32.gmra.mrb[4].mxu1 %vm441_vm0, %v2030_v26  ;;  %v2019_v38 = vld [vmem:[#allocation2 + $0x28] sm:$0xff]  ;;  %v2020_v39 = vld [vmem:[#allocation2 + $0x30] sm:$0xff]  ;;  %v3004_v17 = vld [vmem:[#allocation2 + $0x5c] sm:$0x3f] }
 0x281   : > { %4871 = vmatprep.mubr.msk.f32.mxu1 %vm441_vm0, %v2031_v27  ;;  %v2332_v49 = vld [vmem:[#allocation2 + $0x2a] sm:$0xff]  ;;  %v2333_v50 = vld [vmem:[#allocation2 + $0x32] sm:$0xff]  ;;  %v3163_v19 = vld [vmem:[#allocation2 + $0x1d] sm:$0xff] }
 0x282   : > { %v2665_v62 = vld [vmem:[#allocation2 + $0x2b] sm:$0xff]  ;;  %v2668_v1 = vld [vmem:[#allocation2 + $0x43] sm:$0xff]  ;;  %v2829_v5 = vld [vmem:[#allocation2 + $0x14] sm:$0xff] }
 0x283   : > { %v2032_v28 = vld [vmem:[#allocation2 + $0x39] sm:$0xff]  ;;  %v2033_v29 = vld [vmem:[#allocation2 + $0x41] sm:$0xff]  ;;  %v2832_v9 = vld [vmem:[#allocation2 + $0x2c] sm:$0xff] }
 0x284   : > { %4872 = vmatmul.mubr.msk.f32.gmra.mrb[6].mxu1 %vm441_vm0, %v2032_v28  ;;  %v2021_v40 = vld [vmem:[#allocation2 + $0x38] sm:$0xff]  ;;  %v2022_v41 = vld [vmem:[#allocation2 + $0x40] sm:$0xff]  ;;  %v3165_v21 = vld [vmem:[#allocation2 + $0x2d] sm:$0xff] }
 0x285   : > { %4874 = vmatprep.mubr.msk.f32.mxu1 %vm441_vm0, %v2033_v29  ;;  %v2334_v51 = vld [vmem:[#allocation2 + $0x3a] sm:$0xff]  ;;  %v2335_v52 = vld [vmem:[#allocation2 + $0x42] sm:$0xff] }
 0x286   : > { %v2667_v0 = vld [vmem:[#allocation2 + $0x3b] sm:$0xff]  ;;  %v2670_v3 = vld [vmem:[#allocation2 + $0x53] sm:$0x3f]  ;;  %v2831_v8 = vld [vmem:[#allocation2 + $0x24] sm:$0xff] }
 0x287   : > { %v2034_v32 = vld [vmem:[#allocation2 + $0x49] sm:$0x3f]  ;;  %v2503_v56 = vld [vmem:[#allocation2 + $0x52] sm:$0x3f]  ;;  %v2834_v11 = vld [vmem:[#allocation2 + $0x3c] sm:$0xff] }
 0x288   : > { %4875 = vmatmul.mubr.msk.f32.gmra.mrb[8].mxu1 %vm441_vm0, %v2034_v32  ;;  %v2023_v43 = vld [vmem:[#allocation2 + $0x48] sm:$0x3f]  ;;  %v2837_v14 = vld [vmem:[#allocation2 + $0x54] sm:$0x3f]  ;;  %v3167_v23 = vld [vmem:[#allocation2 + $0x3d] sm:$0xff] }
 0x289   : > { %4879 = vmatprep.mubr.msk.f32.mxu1 %vm441_vm0, %v2014_v31  ;;  %v2336_v53 = vld [vmem:[#allocation2 + $0x4a] sm:$0x3f]  ;;  %v3003_v16 = vld [vmem:[#allocation2 + $0x54] sm:$0xff]  ;;  %v3171_v27 = vld [vmem:[#allocation2 + $0x5d] sm:$0x3f] }
 0x28a   : > { %v2502_v55 = vld [vmem:[#allocation2 + $0x4a] sm:$0xff]  ;;  %v3162_v18 = vld [vmem:[#allocation2 + $0x15] sm:$0xff]  ;;  %v3330_v29 = vld [vmem:[#allocation2 + $0x1e] sm:$0xff] }
 0x28b   : > { %v2669_v2 = vld [vmem:[#allocation2 + $0x4b] sm:$0xff]  ;;  %v3166_v22 = vld [vmem:[#allocation2 + $0x35] sm:$0xff] }
 0x28c   : > { %4880 = vmatmul.mubr.msk.f32.vlgmr.msra.gmra.mrb[0].mxu1 %vm441_vm0, %v2015_v33  ;;  %v2835_v12 = vld [vmem:[#allocation2 + $0x44] sm:$0xff]  ;;  %v2836_v13 = vld [vmem:[#allocation2 + $0x4c] sm:$0xff]  ;;  %v3170_v26 = vld [vmem:[#allocation2 + $0x55] sm:$0xff] }
 0x28d   : > { %4882 = vmatprep.mubr.msk.f32.mxu1 %vm441_vm0, %v2016_v35  ;;  %4895 = vmatpush3.msra.mxu1 %v2338_v10  ;;  %v2833_v10 = vld [vmem:[#allocation2 + $0x34] sm:$0xff]  ;;  %v3164_v20 = vld [vmem:[#allocation2 + $0x25] sm:$0xff] }
 0x28e   : > { %4911 = vmatprep.subr.mxu1 %v2505_v34  ;;  %v3168_v24 = vld [vmem:[#allocation2 + $0x45] sm:$0xff]  ;;  %v3169_v25 = vld [vmem:[#allocation2 + $0x4d] sm:$0xff]  ;;  %v3329_v28 = vld [vmem:[#allocation2 + $0x16] sm:$0xff] }
 0x28f   : > { %v3331_v31 = vld [vmem:[#allocation2 + $0x26] sm:$0xff]  ;;  %v3332_v32 = vld [vmem:[#allocation2 + $0x2e] sm:$0xff]  ;;  %v3333_v33 = vld [vmem:[#allocation2 + $0x36] sm:$0xff] }
 0x290   : > { %4883 = vmatmul.mubr.msk.f32.gmra.mrb[2].mxu1 %vm441_vm0, %v2017_v36  ;;  %v3335_v35 = vld [vmem:[#allocation2 + $0x46] sm:$0xff]  ;;  %v3336_v36 = vld [vmem:[#allocation2 + $0x4e] sm:$0xff] }
 0x291   : > { %4885 = vmatprep.mubr.msk.f32.mxu1 %vm441_vm0, %v2018_v37  ;;  %v3337_v37 = vld [vmem:[#allocation2 + $0x56] sm:$0xff] }
 0x294   : > { %4886 = vmatmul.mubr.msk.f32.gmra.mrb[4].mxu1 %vm441_vm0, %v2019_v38  ;;  %v3338_v38 = vld [vmem:[#allocation2 + $0x5e] sm:$0x3f] }
 0x295   : > { %4888 = vmatprep.mubr.msk.f32.mxu1 %vm441_vm0, %v2020_v39  ;;  %v4481_v39 = vld [vmem:[#allocation12] ss:$0 sm:$0xff] }
 0x298   : > { %4889 = vmatmul.mubr.msk.f32.gmra.mrb[6].mxu1 %vm441_vm0, %v2021_v40 }
 0x299   : > { %4891 = vmatprep.mubr.msk.f32.mxu1 %vm441_vm0, %v2022_v41 }
 0x29c   : > { %4892 = vmatmul.mubr.msk.f32.gmra.mrb[8].mxu1 %vm441_vm0, %v2023_v43 }
 0x29d   : > { %4896 = vmatprep.mubr.msk.f32.mxu1 %vm441_vm0, %v2327_v42 }
 0x2a0   : > { %4897 = vmatmul.mubr.msk.f32.vlgmr.msra.gmra.mrb[0].mxu1 %vm441_vm0, %v2328_v44 }
 0x2a1   : > { %4899 = vmatprep.mubr.msk.f32.mxu1 %vm441_vm0, %v2329_v46  ;;  %4912 = vmatpush3.msra.mxu1 %v2505_v34  ;;  %v3334_v34 = vld [vmem:[#allocation2 + $0x3e] sm:$0xff] }
 0x2a2   : > { %4928 = vmatprep.subr.mxu1 %v2672_v45 }
 0x2a4   : > { %4900 = vmatmul.mubr.msk.f32.gmra.mrb[2].mxu1 %vm441_vm0, %v2330_v47 }
 0x2a5   : > { %4902 = vmatprep.mubr.msk.f32.mxu1 %vm441_vm0, %v2331_v48 }
 0x2a8   : > { %4903 = vmatmul.mubr.msk.f32.gmra.mrb[4].mxu1 %vm441_vm0, %v2332_v49 }
 0x2a9   : > { %4905 = vmatprep.mubr.msk.f32.mxu1 %vm441_vm0, %v2333_v50 }
 0x2ac   : > { %4906 = vmatmul.mubr.msk.f32.gmra.mrb[6].mxu1 %vm441_vm0, %v2334_v51 }
 0x2ad   : > { %4908 = vmatprep.mubr.msk.f32.mxu1 %vm441_vm0, %v2335_v52 }
 0x2b0   : > { %4909 = vmatmul.mubr.msk.f32.gmra.mrb[8].mxu1 %vm441_vm0, %v2336_v53 }
 0x2b1   : > { %4913 = vmatprep.mubr.msk.f32.mxu1 %vm441_vm0, %v2328_v44 }
 0x2b4   : > { %4914 = vmatmul.mubr.msk.f32.vlgmr.msra.gmra.mrb[0].mxu1 %vm441_vm0, %v2329_v46 }
 0x2b5   : > { %4916 = vmatprep.mubr.msk.f32.mxu1 %vm441_vm0, %v2330_v47  ;;  %4929 = vmatpush3.msra.mxu1 %v2672_v45 }
 0x2b6   : > { %4945 = vmatprep.subr.mxu1 %v2839_v54 }
 0x2b8   : > { %4917 = vmatmul.mubr.msk.f32.gmra.mrb[2].mxu1 %vm441_vm0, %v2331_v48 }
 0x2b9   : > { %4919 = vmatprep.mubr.msk.f32.mxu1 %vm441_vm0, %v2332_v49 }
 0x2bc   : > { %4920 = vmatmul.mubr.msk.f32.gmra.mrb[4].mxu1 %vm441_vm0, %v2333_v50 }
 0x2bd   : > { %4922 = vmatprep.mubr.msk.f32.mxu1 %vm441_vm0, %v2334_v51 }
 0x2c0   : > { %4923 = vmatmul.mubr.msk.f32.gmra.mrb[6].mxu1 %vm441_vm0, %v2335_v52 }
 0x2c1   : > { %4925 = vmatprep.mubr.msk.f32.mxu1 %vm441_vm0, %v2502_v55 }
 0x2c4   : > { %4926 = vmatmul.mubr.msk.f32.gmra.mrb[8].mxu1 %vm441_vm0, %v2503_v56 }
 0x2c5   : > { %4930 = vmatprep.mubr.msk.f32.mxu1 %vm441_vm0, %v2661_v57 }
 0x2c8   : > { %4931 = vmatmul.mubr.msk.f32.vlgmr.msra.gmra.mrb[0].mxu1 %vm441_vm0, %v2662_v58 }
 0x2c9   : > { %4933 = vmatprep.mubr.msk.f32.mxu1 %vm441_vm0, %v2663_v60  ;;  %4946 = vmatpush3.msra.mxu1 %v2839_v54 }
 0x2ca   : > { %4962 = vmatprep.subr.mxu1 %v3006_v59 }
 0x2cc   : > { %4934 = vmatmul.mubr.msk.f32.gmra.mrb[2].mxu1 %vm441_vm0, %v2664_v61 }
 0x2cd   : > { %4936 = vmatprep.mubr.msk.f32.mxu1 %vm441_vm0, %v2665_v62 }
 0x2d0   : > { %4937 = vmatmul.mubr.msk.f32.gmra.mrb[4].mxu1 %vm441_vm0, %v2666_v63 }
 0x2d1   : > { %4939 = vmatprep.mubr.msk.f32.mxu1 %vm441_vm0, %v2667_v0 }
 0x2d4   : > { %4940 = vmatmul.mubr.msk.f32.gmra.mrb[6].mxu1 %vm441_vm0, %v2668_v1 }
 0x2d5   : > { %4942 = vmatprep.mubr.msk.f32.mxu1 %vm441_vm0, %v2669_v2 }
 0x2d8   : > { %4943 = vmatmul.mubr.msk.f32.gmra.mrb[8].mxu1 %vm441_vm0, %v2670_v3 }
 0x2d9   : > { %4947 = vmatprep.mubr.msk.f32.mxu1 %vm441_vm0, %v2828_v4 }
 0x2dc   : > { %4948 = vmatmul.mubr.msk.f32.vlgmr.msra.gmra.mrb[0].mxu1 %vm441_vm0, %v2829_v5 }
 0x2dd   : > { %4950 = vmatprep.mubr.msk.f32.mxu1 %vm441_vm0, %v2830_v7  ;;  %4963 = vmatpush3.msra.mxu1 %v3006_v59 }
 0x2de   : > { %4979 = vmatprep.subr.mxu1 %v3173_v6 }
 0x2e0   : > { %4951 = vmatmul.mubr.msk.f32.gmra.mrb[2].mxu1 %vm441_vm0, %v2831_v8 }
 0x2e1   : > { %4953 = vmatprep.mubr.msk.f32.mxu1 %vm441_vm0, %v2832_v9 }
 0x2e4   : > { %4954 = vmatmul.mubr.msk.f32.gmra.mrb[4].mxu1 %vm441_vm0, %v2833_v10 }
 0x2e5   : > { %4956 = vmatprep.mubr.msk.f32.mxu1 %vm441_vm0, %v2834_v11 }
 0x2e8   : > { %4957 = vmatmul.mubr.msk.f32.gmra.mrb[6].mxu1 %vm441_vm0, %v2835_v12 }
 0x2e9   : > { %4959 = vmatprep.mubr.msk.f32.mxu1 %vm441_vm0, %v2836_v13 }
 0x2ec   : > { %4960 = vmatmul.mubr.msk.f32.gmra.mrb[8].mxu1 %vm441_vm0, %v2837_v14 }
 0x2ed   : > { %4964 = vmatprep.mubr.msk.f32.mxu1 %vm441_vm0, %v2829_v5 }
 0x2f0   : > { %4965 = vmatmul.mubr.msk.f32.vlgmr.msra.gmra.mrb[0].mxu1 %vm441_vm0, %v2830_v7 }
 0x2f1   : > { %4967 = vmatprep.mubr.msk.f32.mxu1 %vm441_vm0, %v2831_v8  ;;  %4980 = vmatpush3.msra.mxu1 %v3173_v6  ;;  %v3533_v8 = vld [vmem:[#allocation15] sm:$0xf] }
 0x2f2   : > { %4996 = vmatprep.subr.mxu1 %v3340_v15 }
 0x2f4   : > { %4968 = vmatmul.mubr.msk.f32.gmra.mrb[2].mxu1 %vm441_vm0, %v2832_v9  ;;  %v3534_v9 = vld [vmem:[#allocation16] sm:$0xf] }
 0x2f5   : > { %4970 = vmatprep.mubr.msk.f32.mxu1 %vm441_vm0, %v2833_v10 }
 0x2f8   : > { %4971 = vmatmul.mubr.msk.f32.gmra.mrb[4].mxu1 %vm441_vm0, %v2834_v11 }
 0x2f9   : > { %4973 = vmatprep.mubr.msk.f32.mxu1 %vm441_vm0, %v2835_v12 }
 0x2fc   : > { %4974 = vmatmul.mubr.msk.f32.gmra.mrb[6].mxu1 %vm441_vm0, %v2836_v13 }
 0x2fd   : > { %4976 = vmatprep.mubr.msk.f32.mxu1 %vm441_vm0, %v3003_v16 }
 0x300   : > { %4977 = vmatmul.mubr.msk.f32.gmra.mrb[8].mxu1 %vm441_vm0, %v3004_v17 }
 0x301   : > { %4981 = vmatprep.mubr.msk.f32.mxu1 %vm441_vm0, %v3162_v18 }
 0x304   : > { %4982 = vmatmul.mubr.msk.f32.vlgmr.msra.gmra.mrb[0].mxu1 %vm441_vm0, %v3163_v19 }
 0x305   : > { %4984 = vmatprep.mubr.msk.f32.mxu1 %vm441_vm0, %v3164_v20  ;;  %4997 = vmatpush3.msra.mxu1 %v3340_v15 }
 0x306   : > { %5018 = vmatprep.subr.mxu1 %v5665_v30 }
 0x308   : > { %4985 = vmatmul.mubr.msk.f32.gmra.mrb[2].mxu1 %vm441_vm0, %v3165_v21 }
 0x309   : > { %4987 = vmatprep.mubr.msk.f32.mxu1 %vm441_vm0, %v3166_v22 }
 0x30c   : > { %4988 = vmatmul.mubr.msk.f32.gmra.mrb[4].mxu1 %vm441_vm0, %v3167_v23 }
 0x30d   : > { %4990 = vmatprep.mubr.msk.f32.mxu1 %vm441_vm0, %v3168_v24 }
 0x310   : > { %4991 = vmatmul.mubr.msk.f32.gmra.mrb[6].mxu1 %vm441_vm0, %v3169_v25 }
 0x311   : > { %4993 = vmatprep.mubr.msk.f32.mxu1 %vm441_vm0, %v3170_v26 }
 0x314   : > { %4994 = vmatmul.mubr.msk.f32.gmra.mrb[8].mxu1 %vm441_vm0, %v3171_v27 }
 0x315   : > { %4998 = vmatprep.mubr.msk.f32.mxu1 %vm441_vm0, %v3329_v28 }
 0x318   : > { %4999 = vmatmul.mubr.msk.f32.vlgmr.msra.gmra.mrb[0].mxu1 %vm441_vm0, %v3330_v29 }
 0x319   : > { %5001 = vmatprep.mubr.msk.f32.mxu1 %vm441_vm0, %v3331_v31 }
 0x31c   : > { %5002 = vmatmul.mubr.msk.f32.gmra.mrb[2].mxu1 %vm441_vm0, %v3332_v32 }
 0x31d   : > { %5004 = vmatprep.mubr.msk.f32.mxu1 %vm441_vm0, %v3333_v33 }
 0x320   : > { %5005 = vmatmul.mubr.msk.f32.gmra.mrb[4].mxu1 %vm441_vm0, %v3334_v34 }
 0x321   : > { %5007 = vmatprep.mubr.msk.f32.mxu1 %vm441_vm0, %v3335_v35 }
 0x324   : > { %5008 = vmatmul.mubr.msk.f32.gmra.mrb[6].mxu1 %vm441_vm0, %v3336_v36 }
 0x325   : > { %5010 = vmatprep.mubr.msk.f32.mxu1 %vm441_vm0, %v3337_v37 }
 0x328   : > { %5011 = vmatmul.mubr.msk.f32.gmra.mrb[8].mxu1 %vm441_vm0, %v3338_v38 }
 0x329   : > { %5020 = vmatprep.mubr.msk.f32.mxu1 %vm5666_vm3, %v5665_v30 }
 0x3eb   : > { %v5000_v40 = vpop.f32.mrb[0].mxu1 }
 0x3ec   : > { %v3504_v41 = vadd.f32 %v5000_v40, %v4481_v39  ;;  %v3437_v42 = vpop.f32.mrb[1].mxu1 }
 0x3ed   : > { %v3503_v43 = vadd.f32 %v4481_v39, %v3437_v42 }
 0x3ee   : > { %v3514_v44 = vmax.f32 %v3504_v41, 0.0 }
 0x3ef   : > { %v3513_v45 = vmax.f32 %v3503_v43, 0.0  ;;  %v5003_v46 = vpop.f32.mrb[2].mxu1 }
 0x3f0   : > { %3524 = vst.msk [vmem:[#allocation3 + $0x8] sm:$0xff] %vm441_vm0, %v3514_v44  ;;  %v3506_v47 = vadd.f32 %v5003_v46, %v4481_v39  ;;  %v3447_v48 = vpop.f32.mrb[3].mxu1 }
 0x3f1   : > { %3523 = vst.msk [vmem:[#allocation3] sm:$0xff] %vm441_vm0, %v3513_v45  ;;  %v3505_v49 = vadd.f32 %v4481_v39, %v3447_v48 }
 0x3f2   : > { %v3516_v50 = vmax.f32 %v3506_v47, 0.0 }
 0x3f3   : > { %v3515_v51 = vmax.f32 %v3505_v49, 0.0  ;;  %v5006_v52 = vpop.f32.mrb[4].mxu1 }
 0x3f4   : > { %3526 = vst.msk [vmem:[#allocation3 + $0x18] sm:$0xff] %vm441_vm0, %v3516_v50  ;;  %v3508_v53 = vadd.f32 %v5006_v52, %v4481_v39  ;;  %v3457_v54 = vpop.f32.mrb[5].mxu1 }
 0x3f5   : > { %3525 = vst.msk [vmem:[#allocation3 + $0x10] sm:$0xff] %vm441_vm0, %v3515_v51  ;;  %v3507_v55 = vadd.f32 %v4481_v39, %v3457_v54 }
 0x3f6   : > { %v3518_v56 = vmax.f32 %v3508_v53, 0.0 }
 0x3f7   : > { %v3517_v57 = vmax.f32 %v3507_v55, 0.0  ;;  %v5009_v58 = vpop.f32.mrb[6].mxu1 }
 0x3f8   : > { %3528 = vst.msk [vmem:[#allocation3 + $0x28] sm:$0xff] %vm441_vm0, %v3518_v56  ;;  %v3510_v59 = vadd.f32 %v5009_v58, %v4481_v39  ;;  %v3467_v60 = vpop.f32.mrb[7].mxu1  ;;  %v3541_v3 = vld [vmem:[#allocation3] sm:$0xff] }
 0x3f9   : > { %3527 = vst.msk [vmem:[#allocation3 + $0x20] sm:$0xff] %vm441_vm0, %v3517_v57  ;;  %v3509_v61 = vadd.f32 %v4481_v39, %v3467_v60 }
 0x3fa   : > { %v3520_v62 = vmax.f32 %v3510_v59, 0.0 }
 0x3fb   : > { %v3519_v63 = vmax.f32 %v3509_v61, 0.0  ;;  %v5012_v0 = vpop.f32.mrb[8].mxu1 }
 0x3fc   : > { %3530 = vst.msk [vmem:[#allocation3 + $0x38] sm:$0xff] %vm441_vm0, %v3520_v62  ;;  %v3512_v1 = vadd.f32 %v5012_v0, %v4481_v39  ;;  %v3477_v2 = vpop.f32.mrb[9].mxu1  ;;  %v3542_v4 = vld [vmem:[#allocation3 + $0xa] sm:$0xff]  ;;  %v3692_v11 = vld [vmem:[#allocation3 + $0x14] sm:$0xff] }
 0x3fd   : > { %3529 = vst.msk [vmem:[#allocation3 + $0x30] sm:$0xff] %vm441_vm0, %v3519_v63  ;;  %v3511_v5 = vadd.f32 %v4481_v39, %v3477_v2  ;;  %v3543_v6 = vmax.f32 %v3541_v3, %v3542_v4 }
 0x3fe   : > { %v3522_v7 = vmax.f32 %v3512_v1, 0.0 }
 0x3ff   : > { %v3521_v10 = vmax.f32 %v3511_v5, 0.0  ;;  %5014 = vmatpush3.msra.mxu0 %v3543_v6  ;;  %5019 = vmatpush3.msra.mxu1 %v3543_v6  ;;  %v3837_v14 = vld [vmem:[#allocation3 + $0x28] sm:$0xff] }
 0x400   : > { %3532 = vst.msk [vmem:[#allocation3 + $0x48] sm:$0x3f] %vm2012_vm2, %v3522_v7  ;;  %5023 = vmatprep.subr.mxu0 %v5665_v30  ;;  %5028 = vmatprep.subr.mxu1 %v5665_v30  ;;  %v3693_v12 = vld [vmem:[#allocation3 + $0x1e] sm:$0xff] }
 0x401   : > { %3531 = vst.msk [vmem:[#allocation3 + $0x40] sm:$0xff] %vm441_vm0, %v3521_v10  ;;  %5016 = vmatmul.mubr.msk.f32.vlgmr.msra.gmra.mrb[10].mxu0 %vm441_vm0, %v3533_v8  ;;  %5021 = vmatmul.mubr.msk.f32.vlgmr.msra.gmra.mrb[10].mxu1 %vm441_vm0, %v3534_v9  ;;  %v3694_v13 = vmax.f32 %v3692_v11, %v3693_v12 }
 0x402   : > { %5025 = vmatprep.mubr.msk.f32.mxu0 %vm5666_vm3, %v5665_v30  ;;  %5030 = vmatprep.mubr.msk.f32.mxu1 %vm5666_vm3, %v5665_v30 }
 0x403   : > { %5024 = vmatpush3.msra.mxu0 %v3694_v13  ;;  %5029 = vmatpush3.msra.mxu1 %v3694_v13 }
 0x404   : > { %5033 = vmatprep.subr.mxu0 %v5665_v30  ;;  %5038 = vmatprep.subr.mxu1 %v5665_v30  ;;  %v3838_v15 = vld [vmem:[#allocation3 + $0x32] sm:$0xff] }
 0x405   : > { %5026 = vmatmul.mubr.msk.f32.vlgmr.msra.gmra.mrb[12].mxu0 %vm441_vm0, %v3533_v8  ;;  %5031 = vmatmul.mubr.msk.f32.vlgmr.msra.gmra.mrb[12].mxu1 %vm441_vm0, %v3534_v9  ;;  %v3839_v16 = vmax.f32 %v3837_v14, %v3838_v15 }
 0x406   : > { %5035 = vmatprep.mubr.msk.f32.mxu0 %vm5666_vm3, %v5665_v30  ;;  %5040 = vmatprep.mubr.msk.f32.mxu1 %vm5666_vm3, %v5665_v30 }
 0x407   : > { %5034 = vmatpush3.msra.mxu0 %v3839_v16  ;;  %5039 = vmatpush3.msra.mxu1 %v3839_v16 }
 0x408   : > { %5043 = vmatprep.subr.mxu0 %v5665_v30  ;;  %5048 = vmatprep.subr.mxu1 %v5665_v30  ;;  %v3982_v17 = vld [vmem:[#allocation3 + $0x3c] sm:$0xff]  ;;  %v3983_v18 = vld [vmem:[#allocation3 + $0x46] sm:$0xff] }
 0x409   : > { %5036 = vmatmul.mubr.msk.f32.vlgmr.msra.gmra.mrb[14].mxu0 %vm441_vm0, %v3533_v8  ;;  %5041 = vmatmul.mubr.msk.f32.vlgmr.msra.gmra.mrb[14].mxu1 %vm441_vm0, %v3534_v9  ;;  %v3984_v19 = vmax.f32 %v3982_v17, %v3983_v18 }
 0x40a   : > { %5045 = vmatprep.mubr.msk.f32.mxu0 %vm5666_vm3, %v5665_v30  ;;  %5050 = vmatprep.mubr.msk.f32.mxu1 %vm5666_vm3, %v5665_v30 }
 0x40b   : > { %5044 = vmatpush3.msra.mxu0 %v3984_v19  ;;  %5049 = vmatpush3.msra.mxu1 %v3984_v19 }
 0x40d   : > { %5046 = vmatmul.mubr.msk.f32.vlgmr.msra.gmra.mrb[16].mxu0 %vm441_vm0, %v3533_v8  ;;  %5051 = vmatmul.mubr.msk.f32.vlgmr.msra.gmra.mrb[16].mxu1 %vm441_vm0, %v3534_v9 }
 0x4d4   : > { %v3613_v20 = vpop.f32.mrb[10].mxu0  ;;  %v3686_v21 = vpop.f32.mrb[10].mxu1 }
 0x4d5   : > { %v3690_v22 = vmax.f32 %v3613_v20, %v3686_v21  ;;  %v5017_v23 = vpop.f32.mrb[11].mxu0  ;;  %v5022_v24 = vpop.f32.mrb[11].mxu1 }
 0x4d7   : > { %3691 = vst.msk [vmem:[%s6333_s25 + $0x7] sm:$0xf] %vm3539_vm4, %v3690_v22 }
 0x4d8   : > { %v3761_v25 = vpop.f32.mrb[12].mxu0  ;;  %v3831_v26 = vpop.f32.mrb[12].mxu1 }
 0x4d9   : > { %v3835_v27 = vmax.f32 %v3761_v25, %v3831_v26  ;;  %v5027_v28 = vpop.f32.mrb[13].mxu0  ;;  %v5032_v29 = vpop.f32.mrb[13].mxu1 }
 0x4db   : > { %3836 = vst.msk [vmem:[%s6333_s25 + $0xd] sm:$0xf] %vm3539_vm4, %v3835_v27 }
 0x4dc   : > { %v3906_v31 = vpop.f32.mrb[14].mxu0  ;;  %v3976_v30 = vpop.f32.mrb[14].mxu1 }
 0x4dd   : > { %v3980_v32 = vmax.f32 %v3906_v31, %v3976_v30  ;;  %v5037_v33 = vpop.f32.mrb[15].mxu0  ;;  %v5042_v34 = vpop.f32.mrb[15].mxu1 }
 0x4df   : > { %3981 = vst.msk [vmem:[%s6333_s25 + $0x13] sm:$0xf] %vm3539_vm4, %v3980_v32 }
 0x4e0   : > { %v4051_v35 = vpop.f32.mrb[16].mxu0  ;;  %v4121_v36 = vpop.f32.mrb[16].mxu1 }
 0x4e1   : > { %v4125_v37 = vmax.f32 %v4051_v35, %v4121_v36  ;;  %v5047_v38 = vpop.f32.mrb[17].mxu0  ;;  %v5052_v39 = vpop.f32.mrb[17].mxu1 }
 0x4e3   : > { %4126 = vst.msk [vmem:[%s6333_s25 + $0x19] sm:$0xf] %vm3539_vm4, %v4125_v37 }
 0x4e4   : > { %5583 = shalt.err (!%p5580_p10)
}
 0x4e5   : > { %s5584_s16 = scalar_lea.hbm %s6361_s10, 640  ;;  %s5588_s12 = scalar_lea.hbm %s6417_s8, 1280 }
 0x4e6   : > { %p5585_p11 = scmp.ne.s32.totalorder %s6361_s10, %s5584_s16  ;;  %p5589_p9 = scmp.lt.u32.totalorder %s6361_s10, %s6417_s8 }
 0x4e7   : > { %p5590_p7 = scmp.lt.u32.totalorder %s5588_s12, %s5584_s16  ;;  %p5592_p12 = scmp.lt.u32.totalorder %s5584_s16, %s6361_s10 }
 0x4e8   : > { %p5586_p0 = pnand %p5585_p11, %p6446_p13 }
 0x4e9   : > { %p5591_p4 = por %p5590_p7, %p5589_p9 }
 0x4ea   : > { %p5587_p5 = pneg %p5586_p0 }
 0x4eb   : > { %p5593_p1 = por %p5592_p12, %p5591_p4 }
 0x4ed   : > { %p5594_p3 = pnand %p5593_p1, %p5587_p5 }
 0x4ef   : > { %5597 = shalt.err (!%p5594_p3)
}
 0x4f0   : > { %s5668_s18 = smov 128   ;;  %s5669_s20 = smov 8  }
 0x4f1   : > { %5248 = dma.vmem_to_hbm [thread:$0]  (%p6446_p13), %s6363_s21, 640, %s6361_s10, %s4128_s11, %s5668_s18, %s5668_s18, %s5669_s20  }
 0x4f2 PF: > { %s4156_s23 = sand.u32 1, %s5640_s27   ;;  %p6447_p2 = scmp.ne.s32.totalorder %s6433_s14, 0 }
 0x4f3   : > { %p6448_p8 = scmp.ge.s32.totalorder %s5652_s30, 2  ;;  %s4157_s2 = scalar_lea.sflag [#allocation6], %s4156_s23 }
 0x4f5   : > { %p5277_p6 = pnand %p6448_p8, %p6447_p2 }
 0x4f7   : > { %5635 = dma.done.wait (!%p5277_p6), %s4157_s2, 640  }
 0x4f8   : > { %5637 = vsyncadd (!%p5277_p6), %s4157_s2, 4294966656  ;;  %p25_p10 = scmp.ge.s32.totalorder %s5918_s15, 4   ;;  %s6449_s27 = smov %s5644_s28 }
 0x4f9   : > { %s6450_s28 = smov %s5648_s29  ;;  %s6451_s29 = smov %s5930_s22 }
 0x4fa   : > { %s6452_s30 = smov %s5918_s15  ;;  %27 = sbr.rel (!%p25_p10) target bundleno = 12 (0xc), region = 141 }
 0x501   :  { %4162 = vsyncpa [#allocation5], 1 }
 0x502   :  { %4164 = vsyncpa [#allocation5 + $0x1], 1 }
 0x503   :  { %4165 = vsyncpa [#allocation8], 1 }
 0x504   :  { %4166 = vsyncpa [#allocation11], 1 }
 0x505   :  { %4167 = vsyncpa [#allocation14], 1 }
 0x506   :  { %4168 = vsyncpa [#allocation17], 1 }
 0x507   :  { %4169 = vsyncpa [#allocation6], 1 }
 0x508   :  { %4171 = vsyncpa [#allocation6 + $0x1], 1 }

// kernel: parametric_vgg_forward.4
= control target key start
LH: loop header
LB: loop body
LE: loop exit
PB: predicated region body
PF: predicated region fallthrough
CT: control target
= control target key end

     0   :  { %s15330_s0 = inlined_call_operand.hbm [shape: f32[2,324,4], index: 0, kind: input, shape index: {}]   ;;  %s15331_s1 = inlined_call_operand.hbm [shape: f32[9,4,8], index: 1, kind: input, shape index: {}]   ;;  %s15332_s2 = inlined_call_operand.hbm [shape: f32[1,8], index: 2, kind: input, shape index: {}]   ;;  %s15333_s3 = inlined_call_operand.hbm [shape: f32[9,8,8], index: 3, kind: input, shape index: {}]   ;;  %s15334_s4 = inlined_call_operand.hbm [shape: f32[1,8], index: 4, kind: input, shape index: {}]   ;;  %s15335_s5 = inlined_call_operand.hbm [shape: f32[286,1], index: 5, kind: input, shape index: {}]   ;;  %s15336_s6 = inlined_call_operand.hbm [shape: f32[8,16], index: 6, kind: input, shape index: {}]   ;;  %s15337_s7 = inlined_call_operand.hbm [shape: f32[8,16], index: 7, kind: input, shape index: {}]   ;;  %s15338_s8 = inlined_call_operand.hbm [shape: f32[2,100,8], index: 8, kind: output, shape index: {}]  }
   0x1   :  { %15344 = sst [smem:[#allocation25_spill]] %s15331_s1 }
   0x2   :  { %15345 = sst [smem:[#allocation26_spill]] %s15332_s2 }
   0x3   :  { %13 = vsyncpa [#allocation5], 0 }
   0x4   :  { %15 = vsyncpa [#allocation5 + $0x1], 0 }
   0x5   :  { %16 = vsyncpa [#allocation8], 0 }
   0x6   :  { %17 = vsyncpa [#allocation11], 0 }
   0x7   :  { %18 = vsyncpa [#allocation14], 0 }
   0x8   :  { %19 = vsyncpa [#allocation17], 0 }
   0x9   :  { %20 = vsyncpa [#allocation6], 0 }
   0xa   :  { %22 = vsyncpa [#allocation6 + $0x1], 0  ;;  %s13502_s27 = smov 0   ;;  %s13504_s28 = smov 0  }
   0xb   :  { %s13506_s29 = smov 0   ;;  %s13508_s30 = smov 0  }
   0xc LB: > { %s13438_s9 = smov [#allocation7]   ;;  %s13523_s11 = sadd.s32 4294967295, %s13436_s30   ;;  %s13436_s30 = sphi %s13508_s30, %s15373_s30   ;;  %s13432_s29 = sphi %s13506_s29, %s15372_s29   ;;  %s13428_s28 = sphi %s13504_s28, %s15371_s28   ;;  %s13424_s27 = sphi %s13502_s27, %s15370_s27  }
   0xd   : > { %s244_s10 = sshll.u32 %s13438_s9, 4  ;;  %p9840_p0 = scmp.ge.s32.totalorder %s13436_s30, 1  ;;  %s13528_s10 = int_to_ptr.vmem [resolvable:$true] %s244_s10 }
   0xe   : > { %p15339_p1 = scmp.eq.s32.totalorder %s13523_s11, 0  ;;  %p232_p2 = scmp.lt.s32.totalorder %s13436_s30, 3 }
   0xf   : > { %s13439_s13 = smov [#allocation10]   ;;  %s13440_s16 = smov [#allocation13]  }
  0x10   : > { %p13530_p3 = pnand %p9840_p0, %p232_p2  ;;  %s268_s14 = sshll.u32 %s13439_s13, 4  ;;  %s13543_s14 = int_to_ptr.vmem [resolvable:$true] %s268_s14 }
  0x11   : > { %s13545_s17 = sshll.u32 %s13440_s16, 4  ;;  %s15348_s1 = sld [smem:[#allocation25_spill]]  ;;  %s293_s17 = int_to_ptr.vmem [resolvable:$true] %s13545_s17 }
  0x12   : > { %s15346_s12 = scalar_select %p13530_p3, 1, 0 }
  0x13   : > { %p13031_p5 = pneg %p13530_p3 }
  0x15   : > { %p13539_p6 = pnand %p13031_p5, %p15339_p1 }
  0x17   : > { %s13128_s20 = scalar_lea.hbm %s15348_s1, 576  ;;  %p13555_p8 = pneg %p13539_p6 }
  0x18   : > { %p13129_p7 = scmp.ne.s32.totalorder %s15348_s1, %s13128_s20  ;;  %p13135_p11 = scmp.lt.u32.totalorder %s13128_s20, %s15348_s1 }
  0x1a   : > { %p13131_p9 = pnand %p13555_p8, %p13129_p7 }
  0x1c   : > { %p13132_p10 = pneg %p13131_p9 }
  0x1e   : > { %p13137_p12 = pnand %p13135_p11, %p13132_p10 }
  0x20   : > { %13140 = shalt.err (!%p13137_p12)
}
  0x21   : > { %s13141_s26 = scalar_lea.vmem %s13528_s10, 576  ;;  %p13149_p5 = scmp.lt.s32.totalorder %s13528_s10, %s13528_s10 }
  0x22   : > { %p13142_p13 = scmp.ne.s32.totalorder %s13528_s10, %s13141_s26  ;;  %p13150_p4 = scmp.lt.s32.totalorder %s13141_s26, %s13141_s26 }
  0x24   : > { %p13144_p0 = pnand %p13142_p13, %p13555_p8  ;;  %p13151_p7 = por %p13150_p4, %p13149_p5 }
  0x26   : > { %p13145_p2 = pneg %p13144_p0 }
  0x28   : > { %p13152_p9 = pnand %p13151_p7, %p13145_p2 }
  0x2a   : > { %13155 = shalt.err (!%p13152_p9)
}
  0x2b   : > { %s13441_s9 = smov 64   ;;  %s13442_s13 = smov 4  }
  0x2c   : > { %13034 = dma.hbm_to_vmem [thread:$0]  (!%p13539_p6), %s15348_s1, 576, %s13528_s10, [#allocation8], %s13441_s9, %s13441_s9, %s13442_s13  }
  0x2d   : > { %s13156_s21 = scalar_lea.hbm %s15333_s3, 1152 }
  0x2e   : > { %p13157_p4 = scmp.ne.s32.totalorder %s15333_s3, %s13156_s21  ;;  %p13163_p12 = scmp.lt.u32.totalorder %s13156_s21, %s15333_s3 }
  0x30   : > { %p13159_p10 = pnand %p13157_p4, %p13555_p8 }
  0x32   : > { %p13160_p11 = pneg %p13159_p10 }
  0x34   : > { %p13165_p13 = pnand %p13163_p12, %p13160_p11 }
  0x36   : > { %13168 = shalt.err (!%p13165_p13)
}
  0x37   : > { %s13169_s10 = scalar_lea.vmem %s13543_s14, 1152  ;;  %p13177_p7 = scmp.lt.s32.totalorder %s13543_s14, %s13543_s14 }
  0x38   : > { %p13170_p0 = scmp.ne.s32.totalorder %s13543_s14, %s13169_s10  ;;  %p13178_p9 = scmp.lt.s32.totalorder %s13169_s10, %s13169_s10 }
  0x3a   : > { %p13172_p2 = pnand %p13170_p0, %p13555_p8  ;;  %p13179_p4 = por %p13178_p9, %p13177_p7 }
  0x3c   : > { %p13173_p5 = pneg %p13172_p2 }
  0x3e   : > { %p13180_p10 = pnand %p13179_p4, %p13173_p5 }
  0x40   : > { %13183 = shalt.err (!%p13180_p10)
}
  0x41   : > { %s15341_s9 = smov 128   ;;  %s15342_s13 = smov 8  }
  0x42   : > { %13040 = dma.hbm_to_vmem [thread:$0]  (!%p13539_p6), %s15333_s3, 1152, %s13543_s14, [#allocation11], %s15341_s9, %s15341_s9, %s15342_s13  }
  0x43   : > { %s13184_s21 = scalar_lea.hbm %s15335_s5, 4608 }
  0x44   : > { %p13185_p11 = scmp.ne.s32.totalorder %s15335_s5, %s13184_s21  ;;  %p13191_p0 = scmp.lt.u32.totalorder %s13184_s21, %s15335_s5 }
  0x46   : > { %p13187_p12 = pnand %p13185_p11, %p13555_p8 }
  0x48   : > { %p13188_p13 = pneg %p13187_p12 }
  0x4a   : > { %p13193_p2 = pnand %p13191_p0, %p13188_p13 }
  0x4c   : > { %13196 = shalt.err (!%p13193_p2)
}
  0x4d   : > { %s13197_s10 = scalar_lea.vmem %s293_s17, 4608  ;;  %p13205_p4 = scmp.lt.s32.totalorder %s293_s17, %s293_s17 }
  0x4e   : > { %p13198_p5 = scmp.ne.s32.totalorder %s293_s17, %s13197_s10  ;;  %p13206_p10 = scmp.lt.s32.totalorder %s13197_s10, %s13197_s10 }
  0x50   : > { %p13200_p7 = pnand %p13198_p5, %p13555_p8  ;;  %p13207_p1 = por %p13206_p10, %p13205_p4 }
  0x52   : > { %p13201_p9 = pneg %p13200_p7 }
  0x54   : > { %p13208_p3 = pnand %p13207_p1, %p13201_p9 }
  0x56   : > { %13211 = shalt.err (!%p13208_p3)
}
  0x57   : > { %13046 = dma.hbm_to_vmem [thread:$0]  (!%p13539_p6), %s15335_s5, 4608, %s293_s17, [#allocation14], %s15341_s9, %s15341_s9, %s15342_s13  }
  0x58   : > { %s13445_s18 = smov [#allocation9]   ;;  %s13446_s20 = smov [#allocation12]  }
  0x59   : > { %s258_s19 = sshll.u32 %s13445_s18, 4  ;;  %s282_s21 = sshll.u32 %s13446_s20, 4  ;;  %s259_s19 = int_to_ptr.vmem [resolvable:$true] %s258_s19  ;;  %s283_s21 = int_to_ptr.vmem [resolvable:$true] %s282_s21 }
  0x5a   : > { %s15350_s2 = sld [smem:[#allocation26_spill]] }
  0x60   : > { %s13212_s25 = scalar_lea.hbm %s15350_s2, 16 }
  0x61   : > { %p13213_p1 = scmp.ne.s32.totalorder %s15350_s2, %s13212_s25  ;;  %p13219_p12 = scmp.lt.u32.totalorder %s13212_s25, %s15350_s2 }
  0x63   : > { %p13215_p3 = pnand %p13213_p1, %p13555_p8 }
  0x65   : > { %p13216_p11 = pneg %p13215_p3 }
  0x67   : > { %p13221_p13 = pnand %p13219_p12, %p13216_p11 }
  0x69   : > { %13224 = shalt.err (!%p13221_p13)
}
  0x6a   : > { %s13225_s17 = scalar_lea.vmem %s259_s19, 16  ;;  %s13232_s16 = scalar_lea.vmem %s259_s19, 32 }
  0x6b   : > { %p13226_p0 = scmp.ne.s32.totalorder %s259_s19, %s13225_s17  ;;  %p13233_p7 = scmp.lt.s32.totalorder %s259_s19, %s259_s19 }
  0x6c   : > { %p13234_p9 = scmp.lt.s32.totalorder %s13232_s16, %s13225_s17 }
  0x6d   : > { %p13228_p2 = pnand %p13226_p0, %p13555_p8 }
  0x6e   : > { %p13235_p4 = por %p13234_p9, %p13233_p7 }
  0x6f   : > { %p13229_p5 = pneg %p13228_p2 }
  0x71   : > { %p13236_p10 = pnand %p13235_p4, %p13229_p5 }
  0x73   : > { %13239 = shalt.err (!%p13236_p10)
}
  0x74   : > { %13037 = dma.hbm_to_vmem [thread:$0]  (!%p13539_p6), %s15350_s2, 16, %s259_s19, [#allocation8]  }
  0x75   : > { %s13240_s24 = scalar_lea.hbm %s15334_s4, 16 }
  0x76   : > { %p13241_p1 = scmp.ne.s32.totalorder %s15334_s4, %s13240_s24  ;;  %p13247_p12 = scmp.lt.u32.totalorder %s13240_s24, %s15334_s4 }
  0x78   : > { %p13243_p3 = pnand %p13241_p1, %p13555_p8 }
  0x7a   : > { %p13244_p11 = pneg %p13243_p3 }
  0x7c   : > { %p13249_p13 = pnand %p13247_p12, %p13244_p11 }
  0x7e   : > { %13252 = shalt.err (!%p13249_p13)
}
  0x7f   : > { %s13253_s17 = scalar_lea.vmem %s283_s21, 16  ;;  %s13260_s19 = scalar_lea.vmem %s283_s21, 32 }
  0x80   : > { %p13254_p0 = scmp.ne.s32.totalorder %s283_s21, %s13253_s17  ;;  %p13261_p7 = scmp.lt.s32.totalorder %s283_s21, %s283_s21 }
  0x81   : > { %p13262_p9 = scmp.lt.s32.totalorder %s13260_s19, %s13253_s17 }
  0x82   : > { %p13256_p2 = pnand %p13254_p0, %p13555_p8 }
  0x83   : > { %p13263_p4 = por %p13262_p9, %p13261_p7 }
  0x84   : > { %p13257_p5 = pneg %p13256_p2 }
  0x86   : > { %p13264_p10 = pnand %p13263_p4, %p13257_p5 }
  0x88   : > { %13267 = shalt.err (!%p13264_p10)
}
  0x89   : > { %13043 = dma.hbm_to_vmem [thread:$0]  (!%p13539_p6), %s15334_s4, 16, %s283_s21, [#allocation11]  }
  0x8a   : > { %s13447_s20 = smov [#allocation15]   ;;  %s13448_s22 = smov [#allocation16]  }
  0x8b   : > { %s306_s1 = sshll.u32 %s13447_s20, 4  ;;  %s317_s24 = sshll.u32 %s13448_s22, 4  ;;  %s307_s1 = int_to_ptr.vmem [resolvable:$true] %s306_s1  ;;  %s318_s24 = int_to_ptr.vmem [resolvable:$true] %s317_s24 }
  0x8c   : > { %s13268_s10 = scalar_lea.hbm %s15336_s6, 128 }
  0x8d   : > { %p13269_p1 = scmp.ne.s32.totalorder %s15336_s6, %s13268_s10  ;;  %p13275_p12 = scmp.lt.u32.totalorder %s13268_s10, %s15336_s6 }
  0x8f   : > { %p13271_p3 = pnand %p13269_p1, %p13555_p8 }
  0x91   : > { %p13272_p11 = pneg %p13271_p3 }
  0x93   : > { %p13277_p13 = pnand %p13275_p12, %p13272_p11 }
  0x95   : > { %13280 = shalt.err (!%p13277_p13)
}
  0x96   : > { %s13281_s21 = scalar_lea.vmem %s307_s1, 128  ;;  %p13289_p7 = scmp.lt.s32.totalorder %s307_s1, %s307_s1 }
  0x97   : > { %p13282_p0 = scmp.ne.s32.totalorder %s307_s1, %s13281_s21  ;;  %p13290_p9 = scmp.lt.s32.totalorder %s13281_s21, %s13281_s21 }
  0x99   : > { %p13284_p2 = pnand %p13282_p0, %p13555_p8  ;;  %p13291_p4 = por %p13290_p9, %p13289_p7 }
  0x9b   : > { %p13285_p5 = pneg %p13284_p2 }
  0x9d   : > { %p13292_p10 = pnand %p13291_p4, %p13285_p5 }
  0x9f   : > { %13295 = shalt.err (!%p13292_p10)
}
  0xa0   : > { %13049 = dma.hbm_to_vmem [thread:$0]  (!%p13539_p6), %s15336_s6, 128, %s307_s1, [#allocation14]  }
  0xa1   : > { %s13296_s26 = scalar_lea.hbm %s15337_s7, 128 }
  0xa2   : > { %p13297_p1 = scmp.ne.s32.totalorder %s15337_s7, %s13296_s26  ;;  %p13303_p12 = scmp.lt.u32.totalorder %s13296_s26, %s15337_s7 }
  0xa4   : > { %p13299_p3 = pnand %p13297_p1, %p13555_p8 }
  0xa6   : > { %p13300_p11 = pneg %p13299_p3 }
  0xa8   : > { %p13305_p13 = pnand %p13303_p12, %p13300_p11 }
  0xaa   : > { %13308 = shalt.err (!%p13305_p13)
}
  0xab   : > { %s13309_s16 = scalar_lea.vmem %s318_s24, 128  ;;  %p13317_p7 = scmp.lt.s32.totalorder %s318_s24, %s318_s24 }
  0xac   : > { %p13310_p0 = scmp.ne.s32.totalorder %s318_s24, %s13309_s16  ;;  %p13318_p9 = scmp.lt.s32.totalorder %s13309_s16, %s13309_s16 }
  0xae   : > { %p13312_p2 = pnand %p13310_p0, %p13555_p8  ;;  %p13319_p4 = por %p13318_p9, %p13317_p7 }
  0xb0   : > { %p13313_p5 = pneg %p13312_p2 }
  0xb2   : > { %p13320_p10 = pnand %p13319_p4, %p13313_p5 }
  0xb4   : > { %13323 = shalt.err (!%p13320_p10)
}
  0xb5   : > { %13052 = dma.hbm_to_vmem [thread:$0]  (!%p13539_p6), %s15337_s7, 128, %s318_s24, [#allocation17]  }
  0xb6   : > { %s9839_s23 = sadd.s32 4294967294, %s13436_s30   ;;  %s13698_s15 = sadd.s32 1, %s13436_s30  }
  0xb7   : > { %s35_s18 = sadd.s32 1, %s13432_s29  ;;  %s32_s20 = ssub.s32 %s13436_s30, %s13698_s15 }
  0xb8   : > { %p42_p8 = scmp.ne.s32.totalorder %s13432_s29, %s13428_s28  ;;  %p33_p1 = scmp.eq.s32.totalorder %s32_s20, 0 }
  0xb9   : > { %p43_p3 = scmp.eq.s32.totalorder %s13436_s30, 0  ;;  %p48_p11 = scmp.ne.s32.totalorder %s13428_s28, %s13424_s27 }
  0xba   : > { %p219_p12 = scmp.eq.s32.totalorder %s13523_s11, 1  ;;  %p15351_p0 = scmp.eq.s32.totalorder %s13523_s11, 0 }
  0xbb   : > { %s13710_s22 = scalar_select %p33_p1, %s13432_s29, %s35_s18  }
  0xbc   : > { %p44_p13 = por %p43_p3, %p42_p8  ;;  %p13714_p2 = por %p15351_p0, %p48_p11 }
  0xbd   : > { %p13718_p6 = por %p219_p12, %p42_p8  ;;  %p225_p5 = scmp.eq.s32.totalorder %s9839_s23, 1 }
  0xbe   : > { %p13068_p7 = scmp.lt.s32.totalorder %s13436_s30, 2  ;;  %s328_s26 = sand.u32 1, %s13432_s29  }
  0xbf   : > { %s15353_s24 = scalar_select %p13718_p6, 1, 0 }
  0xc0   : > { %p13724_p9 = por %p225_p5, %p48_p11  ;;  %s12994_s14 = smul.u32 328, %s328_s26 }
  0xc1   : > { %p13728_p4 = pnand %p13068_p7, %p44_p13  ;;  %s12995_s19 = smul.u32 5248, %s13436_s30 }
  0xc2   : > { %s15354_s10 = scalar_select %p13724_p9, 1, 0 }
  0xc3   : > { %s13736_s21 = scalar_lea.hbm %s15330_s0, %s12995_s19  ;;  %s332_s23 = scalar_lea.vmem [#allocation4], %s12994_s14 }
  0xc4   : > { %s339_s18 = sshll.u32 %s332_s23, 4  ;;  %s13740_s20 = scalar_lea.sflag [#allocation5], %s328_s26  ;;  %s13738_s18 = int_to_ptr.vmem [resolvable:$true] %s339_s18 }
  0xc5   : > { %s13324_s9 = scalar_lea.hbm %s13736_s21, 5248  ;;  %p13326_p8 = pneg %p13728_p4 }
  0xc6   : > { %p13325_p10 = scmp.ne.s32.totalorder %s13736_s21, %s13324_s9  ;;  %s13329_s1 = scalar_lea.hbm %s15330_s0, 10496 }
  0xc7   : > { %p13330_p11 = scmp.lt.u32.totalorder %s13736_s21, %s15330_s0  ;;  %p13331_p12 = scmp.lt.u32.totalorder %s13329_s1, %s13324_s9 }
  0xc8   : > { %p13327_p1 = pnand %p13326_p8, %p13325_p10  ;;  %p13333_p0 = scmp.lt.u32.totalorder %s13324_s9, %s13736_s21 }
  0xc9   : > { %p13332_p13 = por %p13331_p12, %p13330_p11 }
  0xca   : > { %p13328_p3 = pneg %p13327_p1 }
  0xcb   : > { %p13334_p5 = por %p13333_p0, %p13332_p13 }
  0xcd   : > { %p13335_p7 = pnand %p13334_p5, %p13328_p3 }
  0xcf   : > { %13338 = shalt.err (!%p13335_p7)
}
  0xd0   : > { %s13339_s26 = scalar_lea.vmem %s13738_s18, 5248  ;;  %s13449_s14 = smov [#allocation4]  }
  0xd1   : > { %p13340_p10 = scmp.ne.s32.totalorder %s13738_s18, %s13339_s26  ;;  %s13344_s23 = sshll.u32 %s13449_s14, 4  ;;  %s13345_s23 = int_to_ptr.vmem [resolvable:$false] %s13344_s23 }
  0xd2   : > { %s13346_s2 = scalar_lea.vmem %s13345_s23, 10496  ;;  %p13347_p6 = scmp.lt.s32.totalorder %s13738_s18, %s13345_s23 }
  0xd3   : > { %p13342_p1 = pnand %p13340_p10, %p13326_p8  ;;  %p13348_p11 = scmp.lt.s32.totalorder %s13346_s2, %s13339_s26 }
  0xd5   : > { %p13343_p9 = pneg %p13342_p1  ;;  %p13349_p12 = por %p13348_p11, %p13347_p6 }
  0xd7   : > { %p13350_p13 = pnand %p13349_p12, %p13343_p9 }
  0xd9   : > { %13353 = shalt.err (!%p13350_p13)
}
  0xda   : > { %s15356_s9 = smov 8   ;;  %s15357_s13 = smov 128  }
  0xdb   : > { %13056 = dma.hbm_to_vmem [thread:$0]  (!%p13728_p4), %s13736_s21, 5248, %s13738_s18, %s13740_s20, %s15357_s13, %s15357_s13, %s15356_s9  }
  0xdc   : > { %p15358_p8 = scmp.ne.s32.totalorder %s15346_s12, 0 }
  0xdd   : > { %s13774_s19 = sand.u32 (!%p15358_p8), 1, %s13428_s28  }
  0xde   : > { %351 = sbr.rel (%p15358_p8) target bundleno = 2151 (0x867), region = 52  ;;  %s354_s1 = scalar_lea.sflag (!%p15358_p8), [#allocation5], %s13774_s19 }
  0xdf   : > { %s12996_s16 = smul.u32 (!%p15358_p8), 328, %s13774_s19 }
  0xe1   : > { %s13778_s26 = scalar_lea.vmem (!%p15358_p8), [#allocation4], %s12996_s16 }
  0xe5   : > { %13399 = dma.done.wait (%p13714_p2), %s354_s1, 5248  }
  0xe6   : > { %13401 = vsyncadd (%p13714_p2), %s354_s1, 4294962048  ;;  %p15359_p6 = scmp.eq.s32.totalorder %s13523_s11, 0 }
  0xe8   : > { %13403 = dma.done.wait (%p15359_p6), [#allocation8], 592   ;;  %p15360_p9 = pmov %p15359_p6 }
  0xe9   : > { %p15361_p4 = pmov %p15359_p6 }
  0xea   : > { %13405 = vsyncadd (%p15360_p9), [#allocation8], 4294966704 }
  0xeb   : > { %13407 = dma.done.wait (%p15361_p4), [#allocation11], 1168   ;;  %p15362_p3 = pmov %p15361_p4 }
  0xed   : > { %13409 = vsyncadd (%p15362_p3), [#allocation11], 4294966128  ;;  %p15363_p0 = pmov %p15362_p3 }
  0xef   : > { %13411 = dma.done.wait (%p15363_p0), [#allocation14], 4736   ;;  %p15364_p5 = pmov %p15363_p0 }
  0xf0   : > { %p15365_p2 = pmov %p15363_p0 }
  0xf1   : > { %13413 = vsyncadd (%p15364_p5), [#allocation14], 4294962560 }
  0xf2   : > { %13415 = dma.done.wait (%p15365_p2), [#allocation17], 128   ;;  %p15366_p7 = pmov %p15363_p0 }
  0xf3   : > { %vm602_vm0 = vcmask 1043456   ;;  %vm493_vm1 = vcmask 31744   ;;  %v492_v0 = vld [vmem:[#allocation7 + $0x4] sm:$0xf]  ;;  %v455_v1 = vld [vmem:[%s13778_s26 + $0x1] sm:$0xff]  ;;  %v458_v4 = vld [vmem:[%s13778_s26 + $0x19] sm:$0xff] }
  0xf4   : > { %13417 = vsyncadd (%p15366_p7), [#allocation17], 4294967168  ;;  %v456_v2 = vld [vmem:[%s13778_s26 + $0x9] sm:$0xff]  ;;  %11250 = vmatprep.subr.msk.mxu0 %vm602_vm0, %v492_v0  ;;  %11252 = vmatprep.mubr.msk.f32.mxu0 %vm493_vm1, %v455_v1  ;;  %v457_v3 = vld [vmem:[%s13778_s26 + $0x11] sm:$0xff]  ;;  %vm4548_vm2 = vcmask 64512   ;;  %vm4551_vm3 = vcmask 59392  }
  0xf5   : > { %11251 = vmatpush3.msk.msra.mxu0 %vm602_vm0, %v492_v0  ;;  %v459_v5 = vld [vmem:[%s13778_s26 + $0x21] sm:$0xff]  ;;  %v460_v7 = vld [vmem:[%s13778_s26 + $0x29] sm:$0xff]  ;;  %v461_v8 = vld [vmem:[%s13778_s26 + $0x31] sm:$0xff]  ;;  %vm4591_vm4 = vcmask 62464   ;;  %vm13453_vm5 = vmmov 0   ;;  %vm8500_vm6 = vcmask 130048  }
  0xf6   : > { %11253 = vmatmul.mubr.msk.f32.vlgmr.msra.gmra.mrb[0].mxu0 %vm493_vm1, %v456_v2  ;;  %v454_v6 = vld [vmem:[#allocation7] sm:$0xf]  ;;  %v462_v9 = vld [vmem:[%s13778_s26 + $0x39] sm:$0xff]  ;;  %s12997_s12 = smul.u32 104, %s13774_s19  ;;  %vm8492_vm7 = vcmask 60416   ;;  %s9686_s23 = scalar_lea.sflag [#allocation6], %s13774_s19 }
  0xf7   : > { %11255 = vmatprep.mubr.msk.f32.mxu0 %vm493_vm1, %v457_v3  ;;  %11306 = vmatprep.subr.msk.mxu0 %vm602_vm0, %v454_v6  ;;  %v463_v10 = vld [vmem:[%s13778_s26 + $0x41] sm:$0xff]  ;;  %v464_v11 = vld [vmem:[%s13778_s26 + $0x49] sm:$0xff]  ;;  %v465_v12 = vld [vmem:[%s13778_s26 + $0x51] sm:$0xff]  ;;  %s12998_s17 = smul.u32 1664, %s13523_s11  ;;  %p15367_p1 = scmp.ne.s32.totalorder %s15353_s24, 0 }
  0xf8   : > { %11307 = vmatpush3.msk.msra.mxu0 %vm602_vm0, %v454_v6  ;;  %v1244_v13 = vld [vmem:[#allocation7 + $0x8] sm:$0xf]  ;;  %v467_v15 = vld [vmem:[%s13778_s26 + $0x61] sm:$0xff]  ;;  %v13881_v42 = vld [vmem:[#allocation7 + $0xc] sm:$0xf]  ;;  %s15223_s25 = scalar_lea.vmem [#allocation18], %s12997_s12 }
  0xf9   : > { %v466_v14 = vld [vmem:[%s13778_s26 + $0x59] sm:$0xff]  ;;  %11362 = vmatprep.subr.msk.mxu0 %vm602_vm0, %v1244_v13  ;;  %v468_v16 = vld [vmem:[%s13778_s26 + $0x69] sm:$0xff]  ;;  %v469_v17 = vld [vmem:[%s13778_s26 + $0x71] sm:$0xff]  ;;  %s9699_s21 = sshll.u32 %s15223_s25, 4  ;;  %s15282_s14 = scalar_lea.hbm %s15338_s8, %s12998_s17  ;;  %s15284_s21 = int_to_ptr.vmem [resolvable:$true] %s9699_s21 }
  0xfa   : > { %11256 = vmatmul.mubr.msk.f32.gmra.mrb[2].mxu0 %vm493_vm1, %v458_v4  ;;  %v470_v18 = vld [vmem:[%s13778_s26 + $0x79] sm:$0xff]  ;;  %v471_v19 = vld [vmem:[%s13778_s26 + $0x81] sm:$0xff]  ;;  %v472_v20 = vld [vmem:[%s13778_s26 + $0x89] sm:$0xff]  ;;  %s13354_s11 = scalar_lea.vmem %s15284_s21, 1664  ;;  %s13454_s2 = smov [#allocation18]  }
  0xfb   : > { %11258 = vmatprep.mubr.msk.f32.mxu0 %vm493_vm1, %v459_v5  ;;  %v473_v21 = vld [vmem:[%s13778_s26 + $0x91] sm:$0xff]  ;;  %v474_v22 = vld [vmem:[%s13778_s26 + $0x99] sm:$0xff]  ;;  %v475_v23 = vld [vmem:[%s13778_s26 + $0xa1] sm:$0xff]  ;;  %p13355_p10 = scmp.ne.s32.totalorder %s15284_s21, %s13354_s11  ;;  %s13358_s9 = sshll.u32 %s13454_s2, 4  ;;  %s13359_s9 = int_to_ptr.vmem [resolvable:$false] %s13358_s9 }
  0xfc   : > { %v476_v24 = vld [vmem:[%s13778_s26 + $0xa9] sm:$0xff]  ;;  %v477_v25 = vld [vmem:[%s13778_s26 + $0xb1] sm:$0xff]  ;;  %v478_v26 = vld [vmem:[%s13778_s26 + $0xb9] sm:$0xff]  ;;  %s13360_s13 = scalar_lea.vmem %s13359_s9, 3328  ;;  %p13361_p13 = scmp.lt.s32.totalorder %s15284_s21, %s13359_s9 }
  0xfd   : > { %v479_v27 = vld [vmem:[%s13778_s26 + $0xc1] sm:$0xff]  ;;  %v480_v28 = vld [vmem:[%s13778_s26 + $0xc9] sm:$0xff]  ;;  %v481_v29 = vld [vmem:[%s13778_s26 + $0xd1] sm:$0xff]  ;;  %p13356_p11 = pnand %p13355_p10, %p15367_p1  ;;  %p13362_p8 = scmp.lt.s32.totalorder %s13360_s13, %s13354_s11 }
  0xfe   : > { %11259 = vmatmul.mubr.msk.f32.gmra.mrb[4].mxu0 %vm493_vm1, %v460_v7  ;;  %v482_v30 = vld [vmem:[%s13778_s26 + $0xd9] sm:$0xff]  ;;  %v483_v31 = vld [vmem:[%s13778_s26 + $0xe1] sm:$0xff]  ;;  %v484_v32 = vld [vmem:[%s13778_s26 + $0xe9] sm:$0xff] }
  0xff   : > { %11261 = vmatprep.mubr.msk.f32.mxu0 %vm493_vm1, %v461_v8  ;;  %v485_v33 = vld [vmem:[%s13778_s26 + $0xf1] sm:$0xff]  ;;  %v486_v34 = vld [vmem:[%s13778_s26 + $0xf9] sm:$0xff]  ;;  %v487_v35 = vld [vmem:[%s13778_s26 + $0x101] sm:$0xff]  ;;  %p13357_p12 = pneg %p13356_p11  ;;  %p13363_p6 = por %p13362_p8, %p13361_p13 }
 0x100   : > { %v488_v36 = vld [vmem:[%s13778_s26 + $0x109] sm:$0xff]  ;;  %v489_v37 = vld [vmem:[%s13778_s26 + $0x111] sm:$0xff]  ;;  %v490_v38 = vld [vmem:[%s13778_s26 + $0x119] sm:$0x3f] }
 0x101   : > { %v418_v39 = vld [vmem:[%s13778_s26] sm:$0xff]  ;;  %v419_v40 = vld [vmem:[%s13778_s26 + $0x8] sm:$0xff]  ;;  %v420_v41 = vld [vmem:[%s13778_s26 + $0x10] sm:$0xff]  ;;  %p13364_p9 = pnand %p13363_p6, %p13357_p12 }
 0x102   : > { %11262 = vmatmul.mubr.msk.f32.gmra.mrb[6].mxu0 %vm493_vm1, %v462_v9  ;;  %v421_v43 = vld [vmem:[%s13778_s26 + $0x18] sm:$0xff]  ;;  %v422_v44 = vld [vmem:[%s13778_s26 + $0x20] sm:$0xff]  ;;  %v423_v45 = vld [vmem:[%s13778_s26 + $0x28] sm:$0xff] }
 0x103   : > { %11264 = vmatprep.mubr.msk.f32.mxu0 %vm493_vm1, %v463_v10  ;;  %v424_v46 = vld [vmem:[%s13778_s26 + $0x30] sm:$0xff]  ;;  %v425_v47 = vld [vmem:[%s13778_s26 + $0x38] sm:$0xff]  ;;  %v426_v48 = vld [vmem:[%s13778_s26 + $0x40] sm:$0xff] }
 0x104   : > { %v427_v49 = vld [vmem:[%s13778_s26 + $0x48] sm:$0xff]  ;;  %v428_v50 = vld [vmem:[%s13778_s26 + $0x50] sm:$0xff]  ;;  %v429_v51 = vld [vmem:[%s13778_s26 + $0x58] sm:$0xff] }
 0x105   : > { %v430_v52 = vld [vmem:[%s13778_s26 + $0x60] sm:$0xff]  ;;  %v431_v53 = vld [vmem:[%s13778_s26 + $0x68] sm:$0xff]  ;;  %v432_v54 = vld [vmem:[%s13778_s26 + $0x70] sm:$0xff] }
 0x106   : > { %11265 = vmatmul.mubr.msk.f32.gmra.mrb[8].mxu0 %vm493_vm1, %v464_v11  ;;  %v433_v55 = vld [vmem:[%s13778_s26 + $0x78] sm:$0xff]  ;;  %v434_v56 = vld [vmem:[%s13778_s26 + $0x80] sm:$0xff]  ;;  %v435_v57 = vld [vmem:[%s13778_s26 + $0x88] sm:$0xff] }
 0x107   : > { %11267 = vmatprep.mubr.msk.f32.mxu0 %vm493_vm1, %v465_v12  ;;  %v436_v58 = vld [vmem:[%s13778_s26 + $0x90] sm:$0xff]  ;;  %v437_v59 = vld [vmem:[%s13778_s26 + $0x98] sm:$0xff]  ;;  %v438_v60 = vld [vmem:[%s13778_s26 + $0xa0] sm:$0xff] }
 0x108   : > { %v439_v61 = vld [vmem:[%s13778_s26 + $0xa8] sm:$0xff]  ;;  %v440_v62 = vld [vmem:[%s13778_s26 + $0xb0] sm:$0xff]  ;;  %v441_v63 = vld [vmem:[%s13778_s26 + $0xb8] sm:$0xff] }
 0x109   : > { %v442_v0 = vld [vmem:[%s13778_s26 + $0xc0] sm:$0xff]  ;;  %v443_v1 = vld [vmem:[%s13778_s26 + $0xc8] sm:$0xff]  ;;  %v444_v2 = vld [vmem:[%s13778_s26 + $0xd0] sm:$0xff] }
 0x10a   : > { %11268 = vmatmul.mubr.msk.f32.gmra.mrb[10].mxu0 %vm493_vm1, %v466_v14  ;;  %v445_v3 = vld [vmem:[%s13778_s26 + $0xd8] sm:$0xff]  ;;  %v446_v4 = vld [vmem:[%s13778_s26 + $0xe0] sm:$0xff]  ;;  %v447_v5 = vld [vmem:[%s13778_s26 + $0xe8] sm:$0xff] }
 0x10b   : > { %11270 = vmatprep.mubr.msk.f32.mxu0 %vm493_vm1, %v467_v15  ;;  %v448_v6 = vld [vmem:[%s13778_s26 + $0xf0] sm:$0xff]  ;;  %v449_v7 = vld [vmem:[%s13778_s26 + $0xf8] sm:$0xff]  ;;  %v450_v8 = vld [vmem:[%s13778_s26 + $0x100] sm:$0xff] }
 0x10c   : > { %v451_v9 = vld [vmem:[%s13778_s26 + $0x108] sm:$0xff]  ;;  %v452_v10 = vld [vmem:[%s13778_s26 + $0x110] sm:$0xff]  ;;  %v453_v11 = vld [vmem:[%s13778_s26 + $0x118] sm:$0x3f] }
 0x10d   : > { %v1207_v12 = vld [vmem:[%s13778_s26 + $0x2] sm:$0xff]  ;;  %v13958_v14 = vld [vmem:[%s13778_s26 + $0x12] sm:$0xff] }
 0x10e   : > { %11271 = vmatmul.mubr.msk.f32.gmra.mrb[12].mxu0 %vm493_vm1, %v468_v16  ;;  %v13960_v15 = vld [vmem:[#allocation7 + $0x10] sm:$0xf] }
 0x10f   : > { %11273 = vmatprep.mubr.msk.f32.mxu0 %vm493_vm1, %v469_v17  ;;  %v13966_v16 = vld [vmem:[%s13778_s26 + $0x1a] sm:$0xff]  ;;  %v13971_v17 = vld [vmem:[%s13778_s26 + $0x22] sm:$0xff] }
 0x112   : > { %11274 = vmatmul.mubr.msk.f32.gmra.mrb[14].mxu0 %vm493_vm1, %v470_v18  ;;  %v13980_v18 = vld [vmem:[%s13778_s26 + $0x2a] sm:$0xff] }
 0x113   : > { %11276 = vmatprep.mubr.msk.f32.mxu0 %vm493_vm1, %v471_v19  ;;  %v13983_v19 = vld [vmem:[%s13778_s26 + $0x32] sm:$0xff] }
 0x116   : > { %11277 = vmatmul.mubr.msk.f32.gmra.mrb[16].mxu0 %vm493_vm1, %v472_v20  ;;  %v13990_v20 = vld [vmem:[%s13778_s26 + $0x3a] sm:$0xff] }
 0x117   : > { %11279 = vmatprep.mubr.msk.f32.mxu0 %vm493_vm1, %v473_v21  ;;  %v13993_v21 = vld [vmem:[%s13778_s26 + $0x42] sm:$0xff] }
 0x11a   : > { %11280 = vmatmul.mubr.msk.f32.gmra.mrb[18].mxu0 %vm493_vm1, %v474_v22  ;;  %v14000_v22 = vld [vmem:[%s13778_s26 + $0x4a] sm:$0xff] }
 0x11b   : > { %11282 = vmatprep.mubr.msk.f32.mxu0 %vm493_vm1, %v475_v23  ;;  %v14003_v23 = vld [vmem:[%s13778_s26 + $0x52] sm:$0xff] }
 0x11e   : > { %11283 = vmatmul.mubr.msk.f32.gmra.mrb[20].mxu0 %vm493_vm1, %v476_v24  ;;  %v1218_v24 = vld [vmem:[%s13778_s26 + $0x5a] sm:$0xff] }
 0x11f   : > { %11285 = vmatprep.mubr.msk.f32.mxu0 %vm493_vm1, %v477_v25  ;;  %v1219_v25 = vld [vmem:[%s13778_s26 + $0x62] sm:$0xff] }
 0x122   : > { %11286 = vmatmul.mubr.msk.f32.gmra.mrb[22].mxu0 %vm493_vm1, %v478_v26  ;;  %v1220_v26 = vld [vmem:[%s13778_s26 + $0x6a] sm:$0xff] }
 0x123   : > { %11288 = vmatprep.mubr.msk.f32.mxu0 %vm493_vm1, %v479_v27  ;;  %v1221_v27 = vld [vmem:[%s13778_s26 + $0x72] sm:$0xff] }
 0x126   : > { %11289 = vmatmul.mubr.msk.f32.gmra.mrb[24].mxu0 %vm493_vm1, %v480_v28  ;;  %v1222_v28 = vld [vmem:[%s13778_s26 + $0x7a] sm:$0xff] }
 0x127   : > { %11291 = vmatprep.mubr.msk.f32.mxu0 %vm493_vm1, %v481_v29  ;;  %v1223_v29 = vld [vmem:[%s13778_s26 + $0x82] sm:$0xff] }
 0x12a   : > { %11292 = vmatmul.mubr.msk.f32.gmra.mrb[26].mxu0 %vm493_vm1, %v482_v30  ;;  %v1224_v30 = vld [vmem:[%s13778_s26 + $0x8a] sm:$0xff] }
 0x12b   : > { %11294 = vmatprep.mubr.msk.f32.mxu0 %vm493_vm1, %v483_v31  ;;  %v1225_v31 = vld [vmem:[%s13778_s26 + $0x92] sm:$0xff] }
 0x12e   : > { %11295 = vmatmul.mubr.msk.f32.gmra.mrb[28].mxu0 %vm493_vm1, %v484_v32  ;;  %v1226_v32 = vld [vmem:[%s13778_s26 + $0x9a] sm:$0xff] }
 0x12f   : > { %11297 = vmatprep.mubr.msk.f32.mxu0 %vm493_vm1, %v485_v33  ;;  %v1227_v33 = vld [vmem:[%s13778_s26 + $0xa2] sm:$0xff] }
 0x132   : > { %11298 = vmatmul.mubr.msk.f32.gmra.mrb[30].mxu0 %vm493_vm1, %v486_v34  ;;  %v1228_v34 = vld [vmem:[%s13778_s26 + $0xaa] sm:$0xff] }
 0x133   : > { %11300 = vmatprep.mubr.msk.f32.mxu0 %vm493_vm1, %v487_v35  ;;  %v1229_v35 = vld [vmem:[%s13778_s26 + $0xb2] sm:$0xff] }
 0x136   : > { %11301 = vmatmul.mubr.msk.f32.gmra.mrb[32].mxu0 %vm493_vm1, %v488_v36  ;;  %v1230_v36 = vld [vmem:[%s13778_s26 + $0xba] sm:$0xff] }
 0x137   : > { %11303 = vmatprep.mubr.msk.f32.mxu0 %vm493_vm1, %v489_v37  ;;  %v1231_v37 = vld [vmem:[%s13778_s26 + $0xc2] sm:$0xff] }
 0x13a   : > { %11304 = vmatmul.mubr.msk.f32.gmra.mrb[34].mxu0 %vm493_vm1, %v490_v38  ;;  %v1232_v38 = vld [vmem:[%s13778_s26 + $0xca] sm:$0xff] }
 0x13b   : > { %11308 = vmatprep.mubr.msk.f32.mxu0 %vm493_vm1, %v418_v39  ;;  %v1233_v39 = vld [vmem:[%s13778_s26 + $0xd2] sm:$0xff] }
 0x13e   : > { %11309 = vmatmul.mubr.msk.f32.vlgmr.msra.gmra.mrb[0].mxu0 %vm493_vm1, %v419_v40  ;;  %v1234_v40 = vld [vmem:[%s13778_s26 + $0xda] sm:$0xff] }
 0x13f   : > { %11311 = vmatprep.mubr.msk.f32.mxu0 %vm493_vm1, %v420_v41  ;;  %11363 = vmatpush3.msk.msra.mxu0 %vm602_vm0, %v1244_v13  ;;  %v1208_v13 = vld [vmem:[%s13778_s26 + $0xa] sm:$0xff]  ;;  %v1235_v41 = vld [vmem:[%s13778_s26 + $0xe2] sm:$0xff] }
 0x140   : > { %11418 = vmatprep.subr.msk.mxu0 %vm602_vm0, %v13881_v42 }
 0x142   : > { %11312 = vmatmul.mubr.msk.f32.gmra.mrb[2].mxu0 %vm493_vm1, %v421_v43  ;;  %v1237_v43 = vld [vmem:[%s13778_s26 + $0xf2] sm:$0xff] }
 0x143   : > { %11314 = vmatprep.mubr.msk.f32.mxu0 %vm493_vm1, %v422_v44  ;;  %v1238_v44 = vld [vmem:[%s13778_s26 + $0xfa] sm:$0xff] }
 0x146   : > { %11315 = vmatmul.mubr.msk.f32.gmra.mrb[4].mxu0 %vm493_vm1, %v423_v45  ;;  %v1239_v45 = vld [vmem:[%s13778_s26 + $0x102] sm:$0xff] }
 0x147   : > { %11317 = vmatprep.mubr.msk.f32.mxu0 %vm493_vm1, %v424_v46  ;;  %v1240_v46 = vld [vmem:[%s13778_s26 + $0x10a] sm:$0xff] }
 0x14a   : > { %11318 = vmatmul.mubr.msk.f32.gmra.mrb[6].mxu0 %vm493_vm1, %v425_v47  ;;  %v1241_v47 = vld [vmem:[%s13778_s26 + $0x112] sm:$0xff] }
 0x14b   : > { %11320 = vmatprep.mubr.msk.f32.mxu0 %vm493_vm1, %v426_v48  ;;  %v1242_v48 = vld [vmem:[%s13778_s26 + $0x11a] sm:$0x3f] }
 0x14e   : > { %11321 = vmatmul.mubr.msk.f32.gmra.mrb[8].mxu0 %vm493_vm1, %v427_v49  ;;  %v2534_v49 = vld [vmem:[#allocation7 + $0x14] sm:$0xf] }
 0x14f   : > { %11323 = vmatprep.mubr.msk.f32.mxu0 %vm493_vm1, %v428_v50  ;;  %v1670_v50 = vld [vmem:[%s13778_s26 + $0x11a] sm:$0xff] }
 0x152   : > { %11324 = vmatmul.mubr.msk.f32.gmra.mrb[10].mxu0 %vm493_vm1, %v429_v51  ;;  %v1671_v51 = vld [vmem:[%s13778_s26 + $0x122] sm:$0xff] }
 0x153   : > { %11326 = vmatprep.mubr.msk.f32.mxu0 %vm493_vm1, %v430_v52  ;;  %v1672_v52 = vld [vmem:[%s13778_s26 + $0x12a] sm:$0x3f] }
 0x156   : > { %11327 = vmatmul.mubr.msk.f32.gmra.mrb[12].mxu0 %vm493_vm1, %v431_v53  ;;  %v2067_v53 = vld [vmem:[%s13778_s26 + $0x13] sm:$0xff] }
 0x157   : > { %11329 = vmatprep.mubr.msk.f32.mxu0 %vm493_vm1, %v432_v54  ;;  %v2068_v54 = vld [vmem:[%s13778_s26 + $0x1b] sm:$0xff] }
 0x15a   : > { %11330 = vmatmul.mubr.msk.f32.gmra.mrb[14].mxu0 %vm493_vm1, %v433_v55  ;;  %v2069_v55 = vld [vmem:[%s13778_s26 + $0x23] sm:$0xff] }
 0x15b   : > { %11332 = vmatprep.mubr.msk.f32.mxu0 %vm493_vm1, %v434_v56  ;;  %v14114_v56 = vld [vmem:[#allocation7 + $0x18] sm:$0xf] }
 0x15e   : > { %11333 = vmatmul.mubr.msk.f32.gmra.mrb[16].mxu0 %vm493_vm1, %v435_v57  ;;  %v2070_v57 = vld [vmem:[%s13778_s26 + $0x2b] sm:$0xff] }
 0x15f   : > { %11335 = vmatprep.mubr.msk.f32.mxu0 %vm493_vm1, %v436_v58  ;;  %v2071_v58 = vld [vmem:[%s13778_s26 + $0x33] sm:$0xff] }
 0x162   : > { %11336 = vmatmul.mubr.msk.f32.gmra.mrb[18].mxu0 %vm493_vm1, %v437_v59  ;;  %v2072_v59 = vld [vmem:[%s13778_s26 + $0x3b] sm:$0xff] }
 0x163   : > { %11338 = vmatprep.mubr.msk.f32.mxu0 %vm493_vm1, %v438_v60  ;;  %v2073_v60 = vld [vmem:[%s13778_s26 + $0x43] sm:$0xff] }
 0x166   : > { %11339 = vmatmul.mubr.msk.f32.gmra.mrb[20].mxu0 %vm493_vm1, %v439_v61  ;;  %v2074_v61 = vld [vmem:[%s13778_s26 + $0x4b] sm:$0xff] }
 0x167   : > { %11341 = vmatprep.mubr.msk.f32.mxu0 %vm493_vm1, %v440_v62  ;;  %v2075_v62 = vld [vmem:[%s13778_s26 + $0x53] sm:$0xff] }
 0x16a   : > { %11342 = vmatmul.mubr.msk.f32.gmra.mrb[22].mxu0 %vm493_vm1, %v441_v63  ;;  %v2076_v63 = vld [vmem:[%s13778_s26 + $0x5b] sm:$0xff] }
 0x16b   : > { %11344 = vmatprep.mubr.msk.f32.mxu0 %vm493_vm1, %v442_v0  ;;  %v2077_v0 = vld [vmem:[%s13778_s26 + $0x63] sm:$0xff] }
 0x16e   : > { %11345 = vmatmul.mubr.msk.f32.gmra.mrb[24].mxu0 %vm493_vm1, %v443_v1  ;;  %v2078_v1 = vld [vmem:[%s13778_s26 + $0x6b] sm:$0xff] }
 0x16f   : > { %11347 = vmatprep.mubr.msk.f32.mxu0 %vm493_vm1, %v444_v2  ;;  %v2079_v2 = vld [vmem:[%s13778_s26 + $0x73] sm:$0xff] }
 0x172   : > { %11348 = vmatmul.mubr.msk.f32.gmra.mrb[26].mxu0 %vm493_vm1, %v445_v3  ;;  %v2080_v3 = vld [vmem:[%s13778_s26 + $0x7b] sm:$0xff] }
 0x173   : > { %11350 = vmatprep.mubr.msk.f32.mxu0 %vm493_vm1, %v446_v4  ;;  %v2081_v4 = vld [vmem:[%s13778_s26 + $0x83] sm:$0xff] }
 0x176   : > { %11351 = vmatmul.mubr.msk.f32.gmra.mrb[28].mxu0 %vm493_vm1, %v447_v5  ;;  %v2082_v5 = vld [vmem:[%s13778_s26 + $0x8b] sm:$0xff] }
 0x177   : > { %11353 = vmatprep.mubr.msk.f32.mxu0 %vm493_vm1, %v448_v6  ;;  %v2083_v6 = vld [vmem:[%s13778_s26 + $0x93] sm:$0xff] }
 0x17a   : > { %11354 = vmatmul.mubr.msk.f32.gmra.mrb[30].mxu0 %vm493_vm1, %v449_v7  ;;  %v2084_v7 = vld [vmem:[%s13778_s26 + $0x9b] sm:$0xff] }
 0x17b   : > { %11356 = vmatprep.mubr.msk.f32.mxu0 %vm493_vm1, %v450_v8  ;;  %v2085_v8 = vld [vmem:[%s13778_s26 + $0xa3] sm:$0xff] }
 0x17e   : > { %11357 = vmatmul.mubr.msk.f32.gmra.mrb[32].mxu0 %vm493_vm1, %v451_v9  ;;  %v2086_v9 = vld [vmem:[%s13778_s26 + $0xab] sm:$0xff] }
 0x17f   : > { %11359 = vmatprep.mubr.msk.f32.mxu0 %vm493_vm1, %v452_v10  ;;  %v2087_v10 = vld [vmem:[%s13778_s26 + $0xb3] sm:$0xff] }
 0x182   : > { %11360 = vmatmul.mubr.msk.f32.gmra.mrb[34].mxu0 %vm493_vm1, %v453_v11  ;;  %v2088_v11 = vld [vmem:[%s13778_s26 + $0xbb] sm:$0xff] }
 0x183   : > { %11364 = vmatprep.mubr.msk.f32.mxu0 %vm493_vm1, %v1207_v12  ;;  %v2089_v12 = vld [vmem:[%s13778_s26 + $0xc3] sm:$0xff] }
 0x186   : > { %11365 = vmatmul.mubr.msk.f32.vlgmr.msra.gmra.mrb[0].mxu0 %vm493_vm1, %v1208_v13  ;;  %v2090_v13 = vld [vmem:[%s13778_s26 + $0xcb] sm:$0xff] }
 0x187   : > { %11367 = vmatprep.mubr.msk.f32.mxu0 %vm493_vm1, %v13958_v14  ;;  %11419 = vmatpush3.msk.msra.mxu0 %vm602_vm0, %v13881_v42  ;;  %v1236_v42 = vld [vmem:[%s13778_s26 + $0xea] sm:$0xff] }
 0x188   : > { %11474 = vmatprep.subr.msk.mxu0 %vm602_vm0, %v13960_v15 }
 0x18a   : > { %11368 = vmatmul.mubr.msk.f32.gmra.mrb[2].mxu0 %vm493_vm1, %v13966_v16 }
 0x18b   : > { %11370 = vmatprep.mubr.msk.f32.mxu0 %vm493_vm1, %v13971_v17 }
 0x18e   : > { %11371 = vmatmul.mubr.msk.f32.gmra.mrb[4].mxu0 %vm493_vm1, %v13980_v18 }
 0x18f   : > { %11373 = vmatprep.mubr.msk.f32.mxu0 %vm493_vm1, %v13983_v19 }
 0x192   : > { %11374 = vmatmul.mubr.msk.f32.gmra.mrb[6].mxu0 %vm493_vm1, %v13990_v20 }
 0x193   : > { %11376 = vmatprep.mubr.msk.f32.mxu0 %vm493_vm1, %v13993_v21 }
 0x196   : > { %11377 = vmatmul.mubr.msk.f32.gmra.mrb[8].mxu0 %vm493_vm1, %v14000_v22 }
 0x197   : > { %11379 = vmatprep.mubr.msk.f32.mxu0 %vm493_vm1, %v14003_v23 }
 0x19a   : > { %11380 = vmatmul.mubr.msk.f32.gmra.mrb[10].mxu0 %vm493_vm1, %v1218_v24 }
 0x19b   : > { %11382 = vmatprep.mubr.msk.f32.mxu0 %vm493_vm1, %v1219_v25 }
 0x19e   : > { %11383 = vmatmul.mubr.msk.f32.gmra.mrb[12].mxu0 %vm493_vm1, %v1220_v26 }
 0x19f   : > { %11385 = vmatprep.mubr.msk.f32.mxu0 %vm493_vm1, %v1221_v27 }
 0x1a2   : > { %11386 = vmatmul.mubr.msk.f32.gmra.mrb[14].mxu0 %vm493_vm1, %v1222_v28 }
 0x1a3   : > { %11388 = vmatprep.mubr.msk.f32.mxu0 %vm493_vm1, %v1223_v29 }
 0x1a6   : > { %11389 = vmatmul.mubr.msk.f32.gmra.mrb[16].mxu0 %vm493_vm1, %v1224_v30 }
 0x1a7   : > { %11391 = vmatprep.mubr.msk.f32.mxu0 %vm493_vm1, %v1225_v31 }
 0x1aa   : > { %11392 = vmatmul.mubr.msk.f32.gmra.mrb[18].mxu0 %vm493_vm1, %v1226_v32 }
 0x1ab   : > { %11394 = vmatprep.mubr.msk.f32.mxu0 %vm493_vm1, %v1227_v33 }
 0x1ae   : > { %11395 = vmatmul.mubr.msk.f32.gmra.mrb[20].mxu0 %vm493_vm1, %v1228_v34 }
 0x1af   : > { %11397 = vmatprep.mubr.msk.f32.mxu0 %vm493_vm1, %v1229_v35 }
 0x1b2   : > { %11398 = vmatmul.mubr.msk.f32.gmra.mrb[22].mxu0 %vm493_vm1, %v1230_v36 }
 0x1b3   : > { %11400 = vmatprep.mubr.msk.f32.mxu0 %vm493_vm1, %v1231_v37 }
 0x1b6   : > { %11401 = vmatmul.mubr.msk.f32.gmra.mrb[24].mxu0 %vm493_vm1, %v1232_v38 }
 0x1b7   : > { %11403 = vmatprep.mubr.msk.f32.mxu0 %vm493_vm1, %v1233_v39 }
 0x1ba   : > { %11404 = vmatmul.mubr.msk.f32.gmra.mrb[26].mxu0 %vm493_vm1, %v1234_v40 }
 0x1bb   : > { %11406 = vmatprep.mubr.msk.f32.mxu0 %vm493_vm1, %v1235_v41 }
 0x1be   : > { %11407 = vmatmul.mubr.msk.f32.gmra.mrb[28].mxu0 %vm493_vm1, %v1236_v42 }
 0x1bf   : > { %11409 = vmatprep.mubr.msk.f32.mxu0 %vm493_vm1, %v1237_v43 }
 0x1c2   : > { %11410 = vmatmul.mubr.msk.f32.gmra.mrb[30].mxu0 %vm493_vm1, %v1238_v44 }
 0x1c3   : > { %11412 = vmatprep.mubr.msk.f32.mxu0 %vm493_vm1, %v1239_v45 }
 0x1c6   : > { %11413 = vmatmul.mubr.msk.f32.gmra.mrb[32].mxu0 %vm493_vm1, %v1240_v46 }
 0x1c7   : > { %11415 = vmatprep.mubr.msk.f32.mxu0 %vm493_vm1, %v1241_v47 }
 0x1ca   : > { %11416 = vmatmul.mubr.msk.f32.gmra.mrb[34].mxu0 %vm493_vm1, %v1242_v48  ;;  %v2518_v48 = vld [vmem:[%s13778_s26 + $0xbc] sm:$0xff] }
 0x1cb   : > { %11420 = vmatprep.mubr.msk.f32.mxu0 %vm493_vm1, %v13958_v14  ;;  %v2091_v14 = vld [vmem:[%s13778_s26 + $0xd3] sm:$0xff] }
 0x1ce   : > { %11421 = vmatmul.mubr.msk.f32.vlgmr.msra.gmra.mrb[0].mxu0 %vm493_vm1, %v13966_v16  ;;  %v2093_v16 = vld [vmem:[%s13778_s26 + $0xe3] sm:$0xff] }
 0x1cf   : > { %11423 = vmatprep.mubr.msk.f32.mxu0 %vm493_vm1, %v13971_v17  ;;  %11475 = vmatpush3.msk.msra.mxu0 %vm602_vm0, %v13960_v15  ;;  %v2092_v15 = vld [vmem:[%s13778_s26 + $0xdb] sm:$0xff]  ;;  %v2094_v17 = vld [vmem:[%s13778_s26 + $0xeb] sm:$0xff] }
 0x1d0   : > { %11530 = vmatprep.subr.msk.mxu0 %vm602_vm0, %v2534_v49 }
 0x1d2   : > { %11424 = vmatmul.mubr.msk.f32.gmra.mrb[2].mxu0 %vm493_vm1, %v13980_v18  ;;  %v2095_v18 = vld [vmem:[%s13778_s26 + $0xf3] sm:$0xff] }
 0x1d3   : > { %11426 = vmatprep.mubr.msk.f32.mxu0 %vm493_vm1, %v13983_v19  ;;  %v2096_v19 = vld [vmem:[%s13778_s26 + $0xfb] sm:$0xff] }
 0x1d6   : > { %11427 = vmatmul.mubr.msk.f32.gmra.mrb[4].mxu0 %vm493_vm1, %v13990_v20  ;;  %v2097_v20 = vld [vmem:[%s13778_s26 + $0x103] sm:$0xff] }
 0x1d7   : > { %11429 = vmatprep.mubr.msk.f32.mxu0 %vm493_vm1, %v13993_v21  ;;  %v2098_v21 = vld [vmem:[%s13778_s26 + $0x10b] sm:$0xff] }
 0x1da   : > { %11430 = vmatmul.mubr.msk.f32.gmra.mrb[6].mxu0 %vm493_vm1, %v14000_v22  ;;  %v2099_v22 = vld [vmem:[%s13778_s26 + $0x113] sm:$0xff] }
 0x1db   : > { %11432 = vmatprep.mubr.msk.f32.mxu0 %vm493_vm1, %v14003_v23  ;;  %v2100_v23 = vld [vmem:[%s13778_s26 + $0x11b] sm:$0xff] }
 0x1de   : > { %11433 = vmatmul.mubr.msk.f32.gmra.mrb[8].mxu0 %vm493_vm1, %v1218_v24  ;;  %v2101_v24 = vld [vmem:[%s13778_s26 + $0x123] sm:$0xff] }
 0x1df   : > { %11435 = vmatprep.mubr.msk.f32.mxu0 %vm493_vm1, %v1219_v25  ;;  %v2102_v25 = vld [vmem:[%s13778_s26 + $0x12b] sm:$0x3f] }
 0x1e2   : > { %11436 = vmatmul.mubr.msk.f32.gmra.mrb[10].mxu0 %vm493_vm1, %v1220_v26  ;;  %v2497_v26 = vld [vmem:[%s13778_s26 + $0x14] sm:$0xff] }
 0x1e3   : > { %11438 = vmatprep.mubr.msk.f32.mxu0 %vm493_vm1, %v1221_v27  ;;  %v2498_v27 = vld [vmem:[%s13778_s26 + $0x1c] sm:$0xff] }
 0x1e6   : > { %11439 = vmatmul.mubr.msk.f32.gmra.mrb[12].mxu0 %vm493_vm1, %v1222_v28  ;;  %v14191_v28 = vld [vmem:[%s13778_s26 + $0x24] sm:$0xff] }
 0x1e7   : > { %11441 = vmatprep.mubr.msk.f32.mxu0 %vm493_vm1, %v1223_v29  ;;  %v14193_v29 = vld [vmem:[#allocation7 + $0x1c] sm:$0xf] }
 0x1ea   : > { %11442 = vmatmul.mubr.msk.f32.gmra.mrb[14].mxu0 %vm493_vm1, %v1224_v30  ;;  %v14199_v30 = vld [vmem:[%s13778_s26 + $0x2c] sm:$0xff] }
 0x1eb   : > { %11444 = vmatprep.mubr.msk.f32.mxu0 %vm493_vm1, %v1225_v31  ;;  %v14204_v31 = vld [vmem:[%s13778_s26 + $0x34] sm:$0xff] }
 0x1ee   : > { %11445 = vmatmul.mubr.msk.f32.gmra.mrb[16].mxu0 %vm493_vm1, %v1226_v32  ;;  %v14213_v32 = vld [vmem:[%s13778_s26 + $0x3c] sm:$0xff] }
 0x1ef   : > { %11447 = vmatprep.mubr.msk.f32.mxu0 %vm493_vm1, %v1227_v33  ;;  %v14216_v33 = vld [vmem:[%s13778_s26 + $0x44] sm:$0xff] }
 0x1f2   : > { %11448 = vmatmul.mubr.msk.f32.gmra.mrb[18].mxu0 %vm493_vm1, %v1228_v34  ;;  %v14223_v34 = vld [vmem:[%s13778_s26 + $0x4c] sm:$0xff] }
 0x1f3   : > { %11450 = vmatprep.mubr.msk.f32.mxu0 %vm493_vm1, %v1229_v35  ;;  %v14226_v35 = vld [vmem:[%s13778_s26 + $0x54] sm:$0xff] }
 0x1f6   : > { %11451 = vmatmul.mubr.msk.f32.gmra.mrb[20].mxu0 %vm493_vm1, %v1230_v36  ;;  %v14233_v36 = vld [vmem:[%s13778_s26 + $0x5c] sm:$0xff] }
 0x1f7   : > { %11453 = vmatprep.mubr.msk.f32.mxu0 %vm493_vm1, %v1231_v37  ;;  %v14236_v37 = vld [vmem:[%s13778_s26 + $0x64] sm:$0xff] }
 0x1fa   : > { %11454 = vmatmul.mubr.msk.f32.gmra.mrb[22].mxu0 %vm493_vm1, %v1232_v38  ;;  %v2508_v38 = vld [vmem:[%s13778_s26 + $0x6c] sm:$0xff] }
 0x1fb   : > { %11456 = vmatprep.mubr.msk.f32.mxu0 %vm493_vm1, %v1233_v39  ;;  %v2509_v39 = vld [vmem:[%s13778_s26 + $0x74] sm:$0xff] }
 0x1fe   : > { %11457 = vmatmul.mubr.msk.f32.gmra.mrb[24].mxu0 %vm493_vm1, %v1234_v40  ;;  %v2510_v40 = vld [vmem:[%s13778_s26 + $0x7c] sm:$0xff] }
 0x1ff   : > { %11459 = vmatprep.mubr.msk.f32.mxu0 %vm493_vm1, %v1235_v41  ;;  %v2511_v41 = vld [vmem:[%s13778_s26 + $0x84] sm:$0xff] }
 0x202   : > { %11460 = vmatmul.mubr.msk.f32.gmra.mrb[26].mxu0 %vm493_vm1, %v1236_v42  ;;  %v2512_v42 = vld [vmem:[%s13778_s26 + $0x8c] sm:$0xff] }
 0x203   : > { %11462 = vmatprep.mubr.msk.f32.mxu0 %vm493_vm1, %v1237_v43  ;;  %v2513_v43 = vld [vmem:[%s13778_s26 + $0x94] sm:$0xff] }
 0x206   : > { %11463 = vmatmul.mubr.msk.f32.gmra.mrb[28].mxu0 %vm493_vm1, %v1238_v44  ;;  %v2514_v44 = vld [vmem:[%s13778_s26 + $0x9c] sm:$0xff] }
 0x207   : > { %11465 = vmatprep.mubr.msk.f32.mxu0 %vm493_vm1, %v1239_v45  ;;  %v2515_v45 = vld [vmem:[%s13778_s26 + $0xa4] sm:$0xff] }
 0x20a   : > { %11466 = vmatmul.mubr.msk.f32.gmra.mrb[30].mxu0 %vm493_vm1, %v1240_v46  ;;  %v2516_v46 = vld [vmem:[%s13778_s26 + $0xac] sm:$0xff] }
 0x20b   : > { %11468 = vmatprep.mubr.msk.f32.mxu0 %vm493_vm1, %v1241_v47  ;;  %v2517_v47 = vld [vmem:[%s13778_s26 + $0xb4] sm:$0xff] }
 0x20e   : > { %11469 = vmatmul.mubr.msk.f32.gmra.mrb[32].mxu0 %vm493_vm1, %v1670_v50  ;;  %v2520_v50 = vld [vmem:[%s13778_s26 + $0xcc] sm:$0xff] }
 0x20f   : > { %11471 = vmatprep.mubr.msk.f32.mxu0 %vm493_vm1, %v1671_v51  ;;  %v2521_v51 = vld [vmem:[%s13778_s26 + $0xd4] sm:$0xff] }
 0x212   : > { %11472 = vmatmul.mubr.msk.f32.gmra.mrb[34].mxu0 %vm493_vm1, %v1672_v52  ;;  %v2522_v52 = vld [vmem:[%s13778_s26 + $0xdc] sm:$0xff] }
 0x213   : > { %11476 = vmatprep.mubr.msk.f32.mxu0 %vm493_vm1, %v2067_v53  ;;  %v14272_v53 = vld [vmem:[%s13778_s26 + $0xe4] sm:$0xff] }
 0x216   : > { %11477 = vmatmul.mubr.msk.f32.vlgmr.msra.gmra.mrb[0].mxu0 %vm493_vm1, %v2068_v54  ;;  %v14278_v54 = vld [vmem:[%s13778_s26 + $0xec] sm:$0xff] }
 0x217   : > { %11479 = vmatprep.mubr.msk.f32.mxu0 %vm493_vm1, %v2069_v55  ;;  %11531 = vmatpush3.msk.msra.mxu0 %vm602_vm0, %v2534_v49  ;;  %v2519_v49 = vld [vmem:[%s13778_s26 + $0xc4] sm:$0xff]  ;;  %v14281_v55 = vld [vmem:[%s13778_s26 + $0xf4] sm:$0xff] }
 0x218   : > { %11586 = vmatprep.subr.msk.mxu0 %vm602_vm0, %v14114_v56 }
 0x21a   : > { %11480 = vmatmul.mubr.msk.f32.gmra.mrb[2].mxu0 %vm493_vm1, %v2070_v57  ;;  %v14291_v57 = vld [vmem:[%s13778_s26 + $0x104] sm:$0xff] }
 0x21b   : > { %11482 = vmatprep.mubr.msk.f32.mxu0 %vm493_vm1, %v2071_v58  ;;  %v14298_v58 = vld [vmem:[%s13778_s26 + $0x10c] sm:$0xff] }
 0x21e   : > { %11483 = vmatmul.mubr.msk.f32.gmra.mrb[4].mxu0 %vm493_vm1, %v2072_v59  ;;  %v14301_v59 = vld [vmem:[%s13778_s26 + $0x114] sm:$0xff] }
 0x21f   : > { %11485 = vmatprep.mubr.msk.f32.mxu0 %vm493_vm1, %v2073_v60  ;;  %v14308_v60 = vld [vmem:[%s13778_s26 + $0x11c] sm:$0xff] }
 0x222   : > { %11486 = vmatmul.mubr.msk.f32.gmra.mrb[6].mxu0 %vm493_vm1, %v2074_v61  ;;  %v14311_v61 = vld [vmem:[%s13778_s26 + $0x124] sm:$0xff] }
 0x223   : > { %11488 = vmatprep.mubr.msk.f32.mxu0 %vm493_vm1, %v2075_v62  ;;  %v2532_v62 = vld [vmem:[%s13778_s26 + $0x12c] sm:$0x3f] }
 0x226   : > { %11489 = vmatmul.mubr.msk.f32.gmra.mrb[8].mxu0 %vm493_vm1, %v2076_v63  ;;  %v14321_v63 = vld [vmem:[#allocation7 + $0x20] sm:$0xf] }
 0x227   : > { %11491 = vmatprep.mubr.msk.f32.mxu0 %vm493_vm1, %v2077_v0  ;;  %v4296_v0 = vld [vmem:[#allocation13] sm:$0xff] }
 0x22a   : > { %11492 = vmatmul.mubr.msk.f32.gmra.mrb[10].mxu0 %vm493_vm1, %v2078_v1  ;;  %v13450_v1 = vmov 0  }
 0x22b   : > { %11494 = vmatprep.mubr.msk.f32.mxu0 %vm493_vm1, %v2079_v2  ;;  %13126 = vset.pattern.permute.xlu0 %v13450_v1  ;;  %v4298_v2 = vld [vmem:[#allocation13 + $0x10] sm:$0xff] }
 0x22c   : > { %4334 = vperm.xlu0 %13126, %v4296_v0   ;;  %13127 = vset.pattern.permute.xlu1 %v13450_v1  ;;  %v3381_v0 = vld [vmem:[%s13778_s26 + $0xe5] sm:$0xff]  ;;  %v3382_v1 = vld [vmem:[%s13778_s26 + $0xed] sm:$0xff] }
 0x22d   : > { %4344 = vperm.xlu1 %13127, %v4298_v2   ;;  %v3383_v2 = vld [vmem:[%s13778_s26 + $0xf5] sm:$0xff] }
 0x22e   : > { %11495 = vmatmul.mubr.msk.f32.gmra.mrb[12].mxu0 %vm493_vm1, %v2080_v3  ;;  %v4297_v3 = vld [vmem:[#allocation13 + $0x8] sm:$0xff] }
 0x22f   : > { %11497 = vmatprep.mubr.msk.f32.mxu0 %vm493_vm1, %v2081_v4  ;;  %v4299_v4 = vld [vmem:[#allocation13 + $0x18] sm:$0xff] }
 0x230   : > { %4339 = vperm.xlu0 %13126, %v4297_v3   ;;  %v3384_v3 = vld [vmem:[%s13778_s26 + $0xfd] sm:$0xff] }
 0x231   : > { %4349 = vperm.xlu1 %13127, %v4299_v4   ;;  %v3385_v4 = vld [vmem:[%s13778_s26 + $0x105] sm:$0xff] }
 0x232   : > { %11498 = vmatmul.mubr.msk.f32.gmra.mrb[14].mxu0 %vm493_vm1, %v2082_v5  ;;  %v4300_v5 = vld [vmem:[#allocation13 + $0x20] sm:$0xff] }
 0x233   : > { %11500 = vmatprep.mubr.msk.f32.mxu0 %vm493_vm1, %v2083_v6  ;;  %v4301_v6 = vld [vmem:[#allocation13 + $0x28] sm:$0xff] }
 0x234   : > { %4354 = vperm.xlu0 %13126, %v4300_v5   ;;  %v3386_v5 = vld [vmem:[%s13778_s26 + $0x10d] sm:$0xff] }
 0x235   : > { %4359 = vperm.xlu1 %13127, %v4301_v6   ;;  %v3387_v6 = vld [vmem:[%s13778_s26 + $0x115] sm:$0xff] }
 0x236   : > { %11501 = vmatmul.mubr.msk.f32.gmra.mrb[16].mxu0 %vm493_vm1, %v2084_v7  ;;  %v4302_v7 = vld [vmem:[#allocation13 + $0x30] sm:$0xff] }
 0x237   : > { %11503 = vmatprep.mubr.msk.f32.mxu0 %vm493_vm1, %v2085_v8  ;;  %v4303_v8 = vld [vmem:[#allocation13 + $0x38] sm:$0xff] }
 0x238   : > { %4364 = vperm.xlu0 %13126, %v4302_v7   ;;  %v3388_v7 = vld [vmem:[%s13778_s26 + $0x11d] sm:$0xff] }
 0x239   : > { %4369 = vperm.xlu1 %13127, %v4303_v8   ;;  %v3389_v8 = vld [vmem:[%s13778_s26 + $0x125] sm:$0xff] }
 0x23a   : > { %11504 = vmatmul.mubr.msk.f32.gmra.mrb[18].mxu0 %vm493_vm1, %v2086_v9  ;;  %v4304_v9 = vld [vmem:[#allocation13 + $0x40] sm:$0xff] }
 0x23b   : > { %11506 = vmatprep.mubr.msk.f32.mxu0 %vm493_vm1, %v2087_v10  ;;  %v4305_v10 = vld [vmem:[#allocation13 + $0x48] sm:$0xff] }
 0x23c   : > { %4374 = vperm.xlu0 %13126, %v4304_v9   ;;  %v3390_v9 = vld [vmem:[%s13778_s26 + $0x12d] sm:$0xff] }
 0x23d   : > { %4379 = vperm.xlu1 %13127, %v4305_v10   ;;  %v3391_v10 = vld [vmem:[%s13778_s26 + $0x135] sm:$0xff] }
 0x23e   : > { %11507 = vmatmul.mubr.msk.f32.gmra.mrb[20].mxu0 %vm493_vm1, %v2088_v11  ;;  %v4306_v11 = vld [vmem:[#allocation13 + $0x50] sm:$0xff] }
 0x23f   : > { %11509 = vmatprep.mubr.msk.f32.mxu0 %vm493_vm1, %v2089_v12  ;;  %v4307_v12 = vld [vmem:[#allocation13 + $0x58] sm:$0xff] }
 0x240   : > { %4384 = vperm.xlu0 %13126, %v4306_v11   ;;  %v3392_v11 = vld [vmem:[%s13778_s26 + $0x13d] sm:$0x3f] }
 0x241   : > { %4389 = vperm.xlu1 %13127, %v4307_v12   ;;  %v3787_v12 = vld [vmem:[%s13778_s26 + $0x26] sm:$0xff] }
 0x242   : > { %11510 = vmatmul.mubr.msk.f32.gmra.mrb[22].mxu0 %vm493_vm1, %v2090_v13  ;;  %v4308_v13 = vld [vmem:[#allocation13 + $0x60] sm:$0xff] }
 0x243   : > { %11512 = vmatprep.mubr.msk.f32.mxu0 %vm493_vm1, %v2091_v14  ;;  %v4309_v14 = vld [vmem:[#allocation13 + $0x68] sm:$0xff] }
 0x244   : > { %4394 = vperm.xlu0 %13126, %v4308_v13   ;;  %v3788_v13 = vld [vmem:[%s13778_s26 + $0x2e] sm:$0xff] }
 0x245   : > { %4399 = vperm.xlu1 %13127, %v4309_v14   ;;  %v3789_v14 = vld [vmem:[%s13778_s26 + $0x36] sm:$0xff] }
 0x246   : > { %11513 = vmatmul.mubr.msk.f32.gmra.mrb[24].mxu0 %vm493_vm1, %v2092_v15  ;;  %v4310_v15 = vld [vmem:[#allocation13 + $0x70] sm:$0xff] }
 0x247   : > { %11515 = vmatprep.mubr.msk.f32.mxu0 %vm493_vm1, %v2093_v16  ;;  %v2960_v16 = vld [vmem:[%s13778_s26 + $0x12c] sm:$0xff] }
 0x248   : > { %4404 = vperm.xlu0 %13126, %v4310_v15   ;;  %v3790_v15 = vld [vmem:[%s13778_s26 + $0x3e] sm:$0xff] }
 0x24a   : > { %11516 = vmatmul.mubr.msk.f32.gmra.mrb[26].mxu0 %vm493_vm1, %v2094_v17  ;;  %v2961_v17 = vld [vmem:[%s13778_s26 + $0x134] sm:$0xff] }
 0x24b   : > { %11518 = vmatprep.mubr.msk.f32.mxu0 %vm493_vm1, %v2095_v18  ;;  %v4311_v18 = vld [vmem:[#allocation13 + $0x78] sm:$0xff] }
 0x24c   : > { %4409 = vperm.xlu1 %13127, %v4311_v18   ;;  %v3793_v18 = vld [vmem:[%s13778_s26 + $0x56] sm:$0xff] }
 0x24e   : > { %11519 = vmatmul.mubr.msk.f32.gmra.mrb[28].mxu0 %vm493_vm1, %v2096_v19  ;;  %v4312_v19 = vld [vmem:[#allocation13 + $0x80] sm:$0xff] }
 0x24f   : > { %11521 = vmatprep.mubr.msk.f32.mxu0 %vm493_vm1, %v2097_v20  ;;  %v2962_v20 = vld [vmem:[%s13778_s26 + $0x13c] sm:$0x3f]  ;;  %4414 = vperm.xlu0 %13126, %v4312_v19  }
 0x250   : > { %v3794_v19 = vld [vmem:[%s13778_s26 + $0x5e] sm:$0xff] }
 0x252   : > { %11522 = vmatmul.mubr.msk.f32.gmra.mrb[30].mxu0 %vm493_vm1, %v2098_v21  ;;  %v3357_v21 = vld [vmem:[%s13778_s26 + $0x25] sm:$0xff] }
 0x253   : > { %11524 = vmatprep.mubr.msk.f32.mxu0 %vm493_vm1, %v2099_v22  ;;  %v4313_v22 = vld [vmem:[#allocation13 + $0x88] sm:$0xff] }
 0x254   : > { %4419 = vperm.xlu1 %13127, %v4313_v22   ;;  %v3797_v22 = vld [vmem:[%s13778_s26 + $0x76] sm:$0xff] }
 0x256   : > { %11525 = vmatmul.mubr.msk.f32.gmra.mrb[32].mxu0 %vm493_vm1, %v2100_v23  ;;  %v4314_v23 = vld [vmem:[#allocation13 + $0x90] sm:$0xff] }
 0x257   : > { %11527 = vmatprep.mubr.msk.f32.mxu0 %vm493_vm1, %v2101_v24  ;;  %v3358_v24 = vld [vmem:[%s13778_s26 + $0x2d] sm:$0xff]  ;;  %4424 = vperm.xlu0 %13126, %v4314_v23   ;;  %v3798_v23 = vld [vmem:[%s13778_s26 + $0x7e] sm:$0xff] }
 0x25a   : > { %11528 = vmatmul.mubr.msk.f32.gmra.mrb[34].mxu0 %vm493_vm1, %v2102_v25  ;;  %v3359_v25 = vld [vmem:[%s13778_s26 + $0x35] sm:$0xff] }
 0x25b   : > { %11532 = vmatprep.mubr.msk.f32.mxu0 %vm493_vm1, %v2497_v26  ;;  %v4315_v26 = vld [vmem:[#allocation13 + $0x98] sm:$0xff] }
 0x25c   : > { %4429 = vperm.xlu1 %13127, %v4315_v26   ;;  %v3801_v26 = vld [vmem:[%s13778_s26 + $0x96] sm:$0xff] }
 0x25e   : > { %11533 = vmatmul.mubr.msk.f32.vlgmr.msra.gmra.mrb[0].mxu0 %vm493_vm1, %v2498_v27  ;;  %v4316_v27 = vld [vmem:[#allocation13 + $0xa0] sm:$0xff] }
 0x25f   : > { %11535 = vmatprep.mubr.msk.f32.mxu0 %vm493_vm1, %v14191_v28  ;;  %11587 = vmatpush3.msk.msra.mxu0 %vm602_vm0, %v14114_v56  ;;  %v14288_v56 = vld [vmem:[%s13778_s26 + $0xfc] sm:$0xff] }
 0x260   : > { %11642 = vmatprep.subr.msk.mxu0 %vm602_vm0, %v14193_v29  ;;  %4434 = vperm.xlu0 %13126, %v4316_v27   ;;  %v3802_v27 = vld [vmem:[%s13778_s26 + $0x9e] sm:$0xff] }
 0x262   : > { %11536 = vmatmul.mubr.msk.f32.gmra.mrb[2].mxu0 %vm493_vm1, %v14199_v30 }
 0x263   : > { %11538 = vmatprep.mubr.msk.f32.mxu0 %vm493_vm1, %v14204_v31 }
 0x266   : > { %11539 = vmatmul.mubr.msk.f32.gmra.mrb[4].mxu0 %vm493_vm1, %v14213_v32 }
 0x267   : > { %11541 = vmatprep.mubr.msk.f32.mxu0 %vm493_vm1, %v14216_v33 }
 0x26a   : > { %11542 = vmatmul.mubr.msk.f32.gmra.mrb[6].mxu0 %vm493_vm1, %v14223_v34 }
 0x26b   : > { %11544 = vmatprep.mubr.msk.f32.mxu0 %vm493_vm1, %v14226_v35 }
 0x26e   : > { %11545 = vmatmul.mubr.msk.f32.gmra.mrb[8].mxu0 %vm493_vm1, %v14233_v36 }
 0x26f   : > { %11547 = vmatprep.mubr.msk.f32.mxu0 %vm493_vm1, %v14236_v37 }
 0x272   : > { %11548 = vmatmul.mubr.msk.f32.gmra.mrb[10].mxu0 %vm493_vm1, %v2508_v38 }
 0x273   : > { %11550 = vmatprep.mubr.msk.f32.mxu0 %vm493_vm1, %v2509_v39 }
 0x276   : > { %11551 = vmatmul.mubr.msk.f32.gmra.mrb[12].mxu0 %vm493_vm1, %v2510_v40 }
 0x277   : > { %11553 = vmatprep.mubr.msk.f32.mxu0 %vm493_vm1, %v2511_v41 }
 0x27a   : > { %11554 = vmatmul.mubr.msk.f32.gmra.mrb[14].mxu0 %vm493_vm1, %v2512_v42 }
 0x27b   : > { %11556 = vmatprep.mubr.msk.f32.mxu0 %vm493_vm1, %v2513_v43 }
 0x27e   : > { %11557 = vmatmul.mubr.msk.f32.gmra.mrb[16].mxu0 %vm493_vm1, %v2514_v44 }
 0x27f   : > { %11559 = vmatprep.mubr.msk.f32.mxu0 %vm493_vm1, %v2515_v45 }
 0x282   : > { %11560 = vmatmul.mubr.msk.f32.gmra.mrb[18].mxu0 %vm493_vm1, %v2516_v46 }
 0x283   : > { %11562 = vmatprep.mubr.msk.f32.mxu0 %vm493_vm1, %v2517_v47 }
 0x286   : > { %11563 = vmatmul.mubr.msk.f32.gmra.mrb[20].mxu0 %vm493_vm1, %v2518_v48 }
 0x287   : > { %11565 = vmatprep.mubr.msk.f32.mxu0 %vm493_vm1, %v2519_v49 }
 0x28a   : > { %11566 = vmatmul.mubr.msk.f32.gmra.mrb[22].mxu0 %vm493_vm1, %v2520_v50 }
 0x28b   : > { %11568 = vmatprep.mubr.msk.f32.mxu0 %vm493_vm1, %v2521_v51 }
 0x28e   : > { %11569 = vmatmul.mubr.msk.f32.gmra.mrb[24].mxu0 %vm493_vm1, %v2522_v52 }
 0x28f   : > { %11571 = vmatprep.mubr.msk.f32.mxu0 %vm493_vm1, %v14272_v53 }
 0x292   : > { %11572 = vmatmul.mubr.msk.f32.gmra.mrb[26].mxu0 %vm493_vm1, %v14278_v54 }
 0x293   : > { %11574 = vmatprep.mubr.msk.f32.mxu0 %vm493_vm1, %v14281_v55 }
 0x296   : > { %11575 = vmatmul.mubr.msk.f32.gmra.mrb[28].mxu0 %vm493_vm1, %v14288_v56 }
 0x297   : > { %11577 = vmatprep.mubr.msk.f32.mxu0 %vm493_vm1, %v14291_v57 }
 0x29a   : > { %11578 = vmatmul.mubr.msk.f32.gmra.mrb[30].mxu0 %vm493_vm1, %v14298_v58 }
 0x29b   : > { %11580 = vmatprep.mubr.msk.f32.mxu0 %vm493_vm1, %v14301_v59 }
 0x29e   : > { %11581 = vmatmul.mubr.msk.f32.gmra.mrb[32].mxu0 %vm493_vm1, %v14308_v60 }
 0x29f   : > { %11583 = vmatprep.mubr.msk.f32.mxu0 %vm493_vm1, %v14311_v61 }
 0x2a2   : > { %11584 = vmatmul.mubr.msk.f32.gmra.mrb[34].mxu0 %vm493_vm1, %v2532_v62  ;;  %v3379_v62 = vld [vmem:[%s13778_s26 + $0xd5] sm:$0xff] }
 0x2a3   : > { %11588 = vmatprep.mubr.msk.f32.mxu0 %vm493_vm1, %v14191_v28  ;;  %v3360_v28 = vld [vmem:[%s13778_s26 + $0x3d] sm:$0xff] }
 0x2a6   : > { %11589 = vmatmul.mubr.msk.f32.vlgmr.msra.gmra.mrb[0].mxu0 %vm493_vm1, %v14199_v30  ;;  %v4317_v30 = vld [vmem:[#allocation13 + $0xa8] sm:$0xff] }
 0x2a7   : > { %11591 = vmatprep.mubr.msk.f32.mxu0 %vm493_vm1, %v14204_v31  ;;  %11643 = vmatpush3.msk.msra.mxu0 %vm602_vm0, %v14193_v29  ;;  %v3361_v29 = vld [vmem:[%s13778_s26 + $0x45] sm:$0xff] }
 0x2a8   : > { %11698 = vmatprep.subr.msk.mxu0 %vm602_vm0, %v14321_v63  ;;  %v4318_v31 = vld [vmem:[#allocation13 + $0xb0] sm:$0xff]  ;;  %4439 = vperm.xlu1 %13127, %v4317_v30  }
 0x2a9   : > { %4444 = vperm.xlu0 %13126, %v4318_v31   ;;  %v3805_v30 = vld [vmem:[%s13778_s26 + $0xb6] sm:$0xff]  ;;  %v3806_v31 = vld [vmem:[%s13778_s26 + $0xbe] sm:$0xff] }
 0x2aa   : > { %11592 = vmatmul.mubr.msk.f32.gmra.mrb[2].mxu0 %vm493_vm1, %v14213_v32  ;;  %v3362_v32 = vld [vmem:[%s13778_s26 + $0x4d] sm:$0xff] }
 0x2ab   : > { %11594 = vmatprep.mubr.msk.f32.mxu0 %vm493_vm1, %v14216_v33  ;;  %v3363_v33 = vld [vmem:[%s13778_s26 + $0x55] sm:$0xff] }
 0x2ae   : > { %11595 = vmatmul.mubr.msk.f32.gmra.mrb[4].mxu0 %vm493_vm1, %v14223_v34  ;;  %v4319_v34 = vld [vmem:[#allocation13 + $0xb8] sm:$0xff] }
 0x2af   : > { %11597 = vmatprep.mubr.msk.f32.mxu0 %vm493_vm1, %v14226_v35  ;;  %v4320_v35 = vld [vmem:[#allocation13 + $0xc0] sm:$0xff]  ;;  %4449 = vperm.xlu1 %13127, %v4319_v34  }
 0x2b0   : > { %4454 = vperm.xlu0 %13126, %v4320_v35   ;;  %v3809_v34 = vld [vmem:[%s13778_s26 + $0xd6] sm:$0xff]  ;;  %v3810_v35 = vld [vmem:[%s13778_s26 + $0xde] sm:$0xff] }
 0x2b2   : > { %11598 = vmatmul.mubr.msk.f32.gmra.mrb[6].mxu0 %vm493_vm1, %v14233_v36  ;;  %v3364_v36 = vld [vmem:[%s13778_s26 + $0x5d] sm:$0xff] }
 0x2b3   : > { %11600 = vmatprep.mubr.msk.f32.mxu0 %vm493_vm1, %v14236_v37  ;;  %v3365_v37 = vld [vmem:[%s13778_s26 + $0x65] sm:$0xff] }
 0x2b6   : > { %11601 = vmatmul.mubr.msk.f32.gmra.mrb[8].mxu0 %vm493_vm1, %v2508_v38  ;;  %v4321_v38 = vld [vmem:[#allocation13 + $0xc8] sm:$0xff] }
 0x2b7   : > { %11603 = vmatprep.mubr.msk.f32.mxu0 %vm493_vm1, %v2509_v39  ;;  %v4322_v39 = vld [vmem:[#allocation13 + $0xd0] sm:$0xff]  ;;  %4459 = vperm.xlu1 %13127, %v4321_v38  }
 0x2b8   : > { %4464 = vperm.xlu0 %13126, %v4322_v39   ;;  %v3813_v38 = vld [vmem:[%s13778_s26 + $0xf6] sm:$0xff]  ;;  %v3814_v39 = vld [vmem:[%s13778_s26 + $0xfe] sm:$0xff] }
 0x2ba   : > { %11604 = vmatmul.mubr.msk.f32.gmra.mrb[10].mxu0 %vm493_vm1, %v2510_v40  ;;  %v3366_v40 = vld [vmem:[%s13778_s26 + $0x6d] sm:$0xff] }
 0x2bb   : > { %11606 = vmatprep.mubr.msk.f32.mxu0 %vm493_vm1, %v2511_v41  ;;  %v3367_v41 = vld [vmem:[%s13778_s26 + $0x75] sm:$0xff] }
 0x2be   : > { %11607 = vmatmul.mubr.msk.f32.gmra.mrb[12].mxu0 %vm493_vm1, %v2512_v42  ;;  %v4323_v42 = vld [vmem:[#allocation13 + $0xd8] sm:$0xff] }
 0x2bf   : > { %11609 = vmatprep.mubr.msk.f32.mxu0 %vm493_vm1, %v2513_v43  ;;  %v4324_v43 = vld [vmem:[#allocation13 + $0xe0] sm:$0xff]  ;;  %4469 = vperm.xlu1 %13127, %v4323_v42  }
 0x2c0   : > { %4474 = vperm.xlu0 %13126, %v4324_v43   ;;  %v3817_v42 = vld [vmem:[%s13778_s26 + $0x116] sm:$0xff]  ;;  %v3818_v43 = vld [vmem:[%s13778_s26 + $0x11e] sm:$0xff] }
 0x2c2   : > { %11610 = vmatmul.mubr.msk.f32.gmra.mrb[14].mxu0 %vm493_vm1, %v2514_v44  ;;  %v3368_v44 = vld [vmem:[%s13778_s26 + $0x7d] sm:$0xff] }
 0x2c3   : > { %11612 = vmatprep.mubr.msk.f32.mxu0 %vm493_vm1, %v2515_v45  ;;  %v3369_v45 = vld [vmem:[%s13778_s26 + $0x85] sm:$0xff] }
 0x2c6   : > { %11613 = vmatmul.mubr.msk.f32.gmra.mrb[16].mxu0 %vm493_vm1, %v2516_v46  ;;  %v4325_v46 = vld [vmem:[#allocation13 + $0xe8] sm:$0xff] }
 0x2c7   : > { %11615 = vmatprep.mubr.msk.f32.mxu0 %vm493_vm1, %v2517_v47  ;;  %v4326_v47 = vld [vmem:[#allocation13 + $0xf0] sm:$0xff]  ;;  %4479 = vperm.xlu1 %13127, %v4325_v46  }
 0x2c8   : > { %4484 = vperm.xlu0 %13126, %v4326_v47   ;;  %v3821_v46 = vld [vmem:[%s13778_s26 + $0x136] sm:$0xff]  ;;  %v3822_v47 = vld [vmem:[%s13778_s26 + $0x13e] sm:$0x3f] }
 0x2ca   : > { %11616 = vmatmul.mubr.msk.f32.gmra.mrb[18].mxu0 %vm493_vm1, %v2518_v48  ;;  %v3370_v48 = vld [vmem:[%s13778_s26 + $0x8d] sm:$0xff] }
 0x2cb   : > { %11618 = vmatprep.mubr.msk.f32.mxu0 %vm493_vm1, %v2519_v49  ;;  %v3371_v49 = vld [vmem:[%s13778_s26 + $0x95] sm:$0xff] }
 0x2ce   : > { %11619 = vmatmul.mubr.msk.f32.gmra.mrb[20].mxu0 %vm493_vm1, %v2520_v50  ;;  %v4327_v50 = vld [vmem:[#allocation13 + $0xf8] sm:$0xff] }
 0x2cf   : > { %11621 = vmatprep.mubr.msk.f32.mxu0 %vm493_vm1, %v2521_v51  ;;  %v4328_v51 = vld [vmem:[#allocation13 + $0x100] sm:$0xff]  ;;  %4489 = vperm.xlu1 %13127, %v4327_v50  }
 0x2d0   : > { %4494 = vperm.xlu0 %13126, %v4328_v51  }
 0x2d2   : > { %11622 = vmatmul.mubr.msk.f32.gmra.mrb[22].mxu0 %vm493_vm1, %v2522_v52  ;;  %v3372_v52 = vld [vmem:[%s13778_s26 + $0x9d] sm:$0xff] }
 0x2d3   : > { %11624 = vmatprep.mubr.msk.f32.mxu0 %vm493_vm1, %v14272_v53  ;;  %v3373_v53 = vld [vmem:[%s13778_s26 + $0xa5] sm:$0xff] }
 0x2d6   : > { %11625 = vmatmul.mubr.msk.f32.gmra.mrb[24].mxu0 %vm493_vm1, %v14278_v54  ;;  %v4329_v54 = vld [vmem:[#allocation13 + $0x108] sm:$0xff] }
 0x2d7   : > { %11627 = vmatprep.mubr.msk.f32.mxu0 %vm493_vm1, %v14281_v55  ;;  %v4330_v55 = vld [vmem:[#allocation13 + $0x110] sm:$0xff]  ;;  %4499 = vperm.xlu1 %13127, %v4329_v54   ;;  %v4335_v54 = vpop.permute.xlu0 %4334 }
 0x2d8   : > { %4504 = vperm.xlu0 %13126, %v4330_v55  }
 0x2da   : > { %11628 = vmatmul.mubr.msk.f32.gmra.mrb[26].mxu0 %vm493_vm1, %v14288_v56  ;;  %v3374_v56 = vld [vmem:[%s13778_s26 + $0xad] sm:$0xff] }
 0x2db   : > { %11630 = vmatprep.mubr.msk.f32.mxu0 %vm493_vm1, %v14291_v57  ;;  %v3375_v57 = vld [vmem:[%s13778_s26 + $0xb5] sm:$0xff] }
 0x2de   : > { %11631 = vmatmul.mubr.msk.f32.gmra.mrb[28].mxu0 %vm493_vm1, %v14298_v58  ;;  %v4331_v58 = vld [vmem:[#allocation13 + $0x118] sm:$0x3f] }
 0x2df   : > { %11633 = vmatprep.mubr.msk.f32.mxu0 %vm493_vm1, %v14301_v59  ;;  %v3376_v59 = vld [vmem:[%s13778_s26 + $0xbd] sm:$0xff]  ;;  %4509 = vperm.xlu1 %13127, %v4331_v58  }
 0x2e2   : > { %11634 = vmatmul.mubr.msk.f32.gmra.mrb[30].mxu0 %vm493_vm1, %v14308_v60  ;;  %v3377_v60 = vld [vmem:[%s13778_s26 + $0xc5] sm:$0xff] }
 0x2e3   : > { %11636 = vmatprep.mubr.msk.f32.mxu0 %vm493_vm1, %v14311_v61  ;;  %v3378_v61 = vld [vmem:[%s13778_s26 + $0xcd] sm:$0xff] }
 0x2e6   : > { %11637 = vmatmul.mubr.msk.f32.gmra.mrb[32].mxu0 %vm493_vm1, %v2960_v16  ;;  %v3791_v16 = vld [vmem:[%s13778_s26 + $0x46] sm:$0xff] }
 0x2e7   : > { %11639 = vmatprep.mubr.msk.f32.mxu0 %vm493_vm1, %v2961_v17  ;;  %v3792_v17 = vld [vmem:[%s13778_s26 + $0x4e] sm:$0xff] }
 0x2ea   : > { %11640 = vmatmul.mubr.msk.f32.gmra.mrb[34].mxu0 %vm493_vm1, %v2962_v20  ;;  %v3795_v20 = vld [vmem:[%s13778_s26 + $0x66] sm:$0xff] }
 0x2eb   : > { %11644 = vmatprep.mubr.msk.f32.mxu0 %vm493_vm1, %v3357_v21  ;;  %v3796_v21 = vld [vmem:[%s13778_s26 + $0x6e] sm:$0xff] }
 0x2ee   : > { %11645 = vmatmul.mubr.msk.f32.vlgmr.msra.gmra.mrb[0].mxu0 %vm493_vm1, %v3358_v24  ;;  %v3799_v24 = vld [vmem:[%s13778_s26 + $0x86] sm:$0xff] }
 0x2ef   : > { %11647 = vmatprep.mubr.msk.f32.mxu0 %vm493_vm1, %v3359_v25  ;;  %11699 = vmatpush3.msk.msra.mxu0 %vm602_vm0, %v14321_v63  ;;  %v3380_v63 = vld [vmem:[%s13778_s26 + $0xdd] sm:$0xff]  ;;  %v3800_v25 = vld [vmem:[%s13778_s26 + $0x8e] sm:$0xff] }
 0x2f2   : > { %11648 = vmatmul.mubr.msk.f32.gmra.mrb[2].mxu0 %vm493_vm1, %v3360_v28  ;;  %v3803_v28 = vld [vmem:[%s13778_s26 + $0xa6] sm:$0xff] }
 0x2f3   : > { %11650 = vmatprep.mubr.msk.f32.mxu0 %vm493_vm1, %v3361_v29  ;;  %v3804_v29 = vld [vmem:[%s13778_s26 + $0xae] sm:$0xff] }
 0x2f6   : > { %11651 = vmatmul.mubr.msk.f32.gmra.mrb[4].mxu0 %vm493_vm1, %v3362_v32  ;;  %v3807_v32 = vld [vmem:[%s13778_s26 + $0xc6] sm:$0xff] }
 0x2f7   : > { %11653 = vmatprep.mubr.msk.f32.mxu0 %vm493_vm1, %v3363_v33  ;;  %v3808_v33 = vld [vmem:[%s13778_s26 + $0xce] sm:$0xff] }
 0x2fa   : > { %11654 = vmatmul.mubr.msk.f32.gmra.mrb[6].mxu0 %vm493_vm1, %v3364_v36  ;;  %v3811_v36 = vld [vmem:[%s13778_s26 + $0xe6] sm:$0xff] }
 0x2fb   : > { %11656 = vmatprep.mubr.msk.f32.mxu0 %vm493_vm1, %v3365_v37  ;;  %v3812_v37 = vld [vmem:[%s13778_s26 + $0xee] sm:$0xff] }
 0x2fe   : > { %11657 = vmatmul.mubr.msk.f32.gmra.mrb[8].mxu0 %vm493_vm1, %v3366_v40  ;;  %v3815_v40 = vld [vmem:[%s13778_s26 + $0x106] sm:$0xff] }
 0x2ff   : > { %11659 = vmatprep.mubr.msk.f32.mxu0 %vm493_vm1, %v3367_v41  ;;  %v3816_v41 = vld [vmem:[%s13778_s26 + $0x10e] sm:$0xff] }
 0x302   : > { %11660 = vmatmul.mubr.msk.f32.gmra.mrb[10].mxu0 %vm493_vm1, %v3368_v44  ;;  %v3819_v44 = vld [vmem:[%s13778_s26 + $0x126] sm:$0xff] }
 0x303   : > { %11662 = vmatprep.mubr.msk.f32.mxu0 %vm493_vm1, %v3369_v45  ;;  %v3820_v45 = vld [vmem:[%s13778_s26 + $0x12e] sm:$0xff] }
 0x306   : > { %11663 = vmatmul.mubr.msk.f32.gmra.mrb[12].mxu0 %vm493_vm1, %v3370_v48  ;;  %v13451_v48 = vmov 0.0  }
 0x307   : > { %11665 = vmatprep.mubr.msk.f32.mxu0 %vm493_vm1, %v3371_v49  ;;  %4549 = vst.msk [vmem:[#allocation2] sm:$0xff] %vm4548_vm2, %v13451_v48  ;;  %4550 = vst.msk [vmem:[#allocation2 + $0x8] sm:$0xff] %vm4548_vm2, %v13451_v48  ;;  %v4667_v49 = vld [vmem:[#allocation10 + $0x8] sm:$0xff] }
 0x308   : > { %4553 = vst.msk [vmem:[#allocation2 + $0x131] sm:$0xff] %vm4548_vm2, %v13451_v48  ;;  %4554 = vst.msk [vmem:[#allocation2 + $0x139] sm:$0xff] %vm4548_vm2, %v13451_v48  ;;  %11754 = vmatprep.subr.mxu1 %v4667_v49 }
 0x309   : > { %4552 = vst.msk [vmem:[#allocation2 + $0x10] sm:$0x7] %vm4551_vm3, %v13451_v48  ;;  %4555 = vst.msk [vmem:[#allocation2 + $0x141] sm:$0x7] %vm4551_vm3, %v13451_v48  ;;  %11755 = vmatpush3.msra.mxu1 %v4667_v49 }
 0x30a   : > { %11666 = vmatmul.mubr.msk.f32.gmra.mrb[14].mxu0 %vm493_vm1, %v3372_v52  ;;  %v4629_v52 = vld [vmem:[#allocation10] sm:$0xff]  ;;  %8481 = vst.msk [vmem:[%s15223_s25 + $0x8] sm:$0xff] %vm4548_vm2, %v13451_v48  ;;  %8482 = vst.msk [vmem:[%s15223_s25 + $0x10] sm:$0xff] %vm4548_vm2, %v13451_v48 }
 0x30b   : > { %11668 = vmatprep.mubr.msk.f32.mxu0 %vm493_vm1, %v3373_v53  ;;  %11810 = vmatprep.subr.mxu1 %v4629_v52  ;;  %v4345_v53 = vpop.permute.xlu1 %4344  ;;  %8480 = vst.msk [vmem:[%s15223_s25] sm:$0xff] %vm4548_vm2, %v13451_v48  ;;  %8483 = vst.msk [vmem:[%s15223_s25 + $0x18] sm:$0xff] %vm4548_vm2, %v13451_v48 }
 0x30c   : > { %8484 = vst.msk [vmem:[%s15223_s25 + $0x20] sm:$0xff] %vm4548_vm2, %v13451_v48  ;;  %8485 = vst.msk [vmem:[%s15223_s25 + $0x28] sm:$0xff] %vm4548_vm2, %v13451_v48 }
 0x30d   : > { %8486 = vst.msk [vmem:[%s15223_s25 + $0x30] sm:$0xff] %vm4548_vm2, %v13451_v48  ;;  %8487 = vst.msk [vmem:[%s15223_s25 + $0x38] sm:$0xff] %vm4548_vm2, %v13451_v48 }
 0x30e   : > { %11669 = vmatmul.mubr.msk.f32.gmra.mrb[16].mxu0 %vm493_vm1, %v3374_v56  ;;  %v4630_v50 = vld [vmem:[#allocation2 + $0x1] sm:$0xff]  ;;  %v4340_v56 = vpop.permute.xlu0 %4339  ;;  %8488 = vst.msk [vmem:[%s15223_s25 + $0x40] sm:$0xff] %vm4548_vm2, %v13451_v48  ;;  %8489 = vst.msk [vmem:[%s15223_s25 + $0x48] sm:$0xff] %vm4548_vm2, %v13451_v48 }
 0x30f   : > { %11671 = vmatprep.mubr.msk.f32.mxu0 %vm493_vm1, %v3375_v57  ;;  %11756 = vmatprep.mubr.msk.f32.mxu1 %vm4548_vm2, %v4630_v50  ;;  %v4350_v55 = vpop.permute.xlu1 %4349  ;;  %8490 = vst.msk [vmem:[%s15223_s25 + $0x50] sm:$0xff] %vm4548_vm2, %v13451_v48  ;;  %8491 = vst.msk [vmem:[%s15223_s25 + $0x58] sm:$0xff] %vm4548_vm2, %v13451_v48 }
 0x310   : > { %v4631_v51 = vld [vmem:[#allocation2 + $0x9] sm:$0xff]  ;;  %8493 = vst.msk [vmem:[%s15223_s25 + $0x60] sm:$0xf] %vm8492_vm7, %v13451_v48 }
 0x311   : > { %11757 = vmatmul.mubr.msk.f32.vlgmr.msra.gmra.mrb[0].mxu1 %vm4548_vm2, %v4631_v51 }
 0x312   : > { %11672 = vmatmul.mubr.msk.f32.gmra.mrb[18].mxu0 %vm493_vm1, %v3376_v59  ;;  %11811 = vmatpush3.msra.mxu1 %v4629_v52  ;;  %v4355_v58 = vpop.permute.xlu0 %4354 }
 0x313   : > { %11674 = vmatprep.mubr.msk.f32.mxu0 %vm493_vm1, %v3377_v60  ;;  %v4360_v57 = vpop.permute.xlu1 %4359 }
 0x316   : > { %11675 = vmatmul.mubr.msk.f32.gmra.mrb[20].mxu0 %vm493_vm1, %v3378_v61  ;;  %v4365_v60 = vpop.permute.xlu0 %4364  ;;  %v14540_v61 = vld [vmem:[#allocation10 + $0x10] sm:$0xff] }
 0x317   : > { %11677 = vmatprep.mubr.msk.f32.mxu0 %vm493_vm1, %v3379_v62  ;;  %v4370_v59 = vpop.permute.xlu1 %4369  ;;  %11866 = vmatprep.subr.mxu1 %v14540_v61 }
 0x31a   : > { %11678 = vmatmul.mubr.msk.f32.gmra.mrb[22].mxu0 %vm493_vm1, %v3380_v63  ;;  %v14545_v63 = vpop.permute.xlu0 %4374 }
 0x31b   : > { %11680 = vmatprep.mubr.msk.f32.mxu0 %vm493_vm1, %v3381_v0  ;;  %v14542_v62 = vpop.permute.xlu1 %4379  ;;  %v14547_v0 = vld [vmem:[#allocation9] ss:$0 sm:$0xff] }
 0x31e   : > { %11681 = vmatmul.mubr.msk.f32.gmra.mrb[24].mxu0 %vm493_vm1, %v3382_v1 }
 0x31f   : > { %11683 = vmatprep.mubr.msk.f32.mxu0 %vm493_vm1, %v3383_v2  ;;  %v14549_v1 = vpop.permute.xlu1 %4389 }
 0x322   : > { %11684 = vmatmul.mubr.msk.f32.gmra.mrb[26].mxu0 %vm493_vm1, %v3384_v3  ;;  %v14551_v3 = vpop.permute.xlu0 %4384 }
 0x323   : > { %11686 = vmatprep.mubr.msk.f32.mxu0 %vm493_vm1, %v3385_v4 }
 0x326   : > { %11687 = vmatmul.mubr.msk.f32.gmra.mrb[28].mxu0 %vm493_vm1, %v3386_v5 }
 0x327   : > { %11689 = vmatprep.mubr.msk.f32.mxu0 %vm493_vm1, %v3387_v6 }
 0x32a   : > { %11690 = vmatmul.mubr.msk.f32.gmra.mrb[30].mxu0 %vm493_vm1, %v3388_v7 }
 0x32b   : > { %11692 = vmatprep.mubr.msk.f32.mxu0 %vm493_vm1, %v3389_v8 }
 0x32e   : > { %11693 = vmatmul.mubr.msk.f32.gmra.mrb[32].mxu0 %vm493_vm1, %v3390_v9 }
 0x32f   : > { %11695 = vmatprep.mubr.msk.f32.mxu0 %vm493_vm1, %v3391_v10 }
 0x332   : > { %11696 = vmatmul.mubr.msk.f32.gmra.mrb[34].mxu0 %vm493_vm1, %v3392_v11 }
 0x333   : > { %11700 = vmatprep.mubr.msk.f32.mxu0 %vm493_vm1, %v3787_v12 }
 0x336   : > { %11701 = vmatmul.mubr.msk.f32.vlgmr.msra.gmra.mrb[0].mxu0 %vm493_vm1, %v3788_v13  ;;  %v14556_v13 = vpop.permute.xlu1 %4399 }
 0x337   : > { %11703 = vmatprep.mubr.msk.f32.mxu0 %vm493_vm1, %v3789_v14 }
 0x33a   : > { %11704 = vmatmul.mubr.msk.f32.gmra.mrb[2].mxu0 %vm493_vm1, %v3790_v15 }
 0x33b   : > { %11706 = vmatprep.mubr.msk.f32.mxu0 %vm493_vm1, %v3791_v16  ;;  %v14559_v16 = vpop.permute.xlu0 %4394 }
 0x33e   : > { %11707 = vmatmul.mubr.msk.f32.gmra.mrb[4].mxu0 %vm493_vm1, %v3792_v17 }
 0x33f   : > { %11709 = vmatprep.mubr.msk.f32.mxu0 %vm493_vm1, %v3793_v18 }
 0x342   : > { %11710 = vmatmul.mubr.msk.f32.gmra.mrb[6].mxu0 %vm493_vm1, %v3794_v19 }
 0x343   : > { %11712 = vmatprep.mubr.msk.f32.mxu0 %vm493_vm1, %v3795_v20 }
 0x346   : > { %11713 = vmatmul.mubr.msk.f32.gmra.mrb[8].mxu0 %vm493_vm1, %v3796_v21 }
 0x347   : > { %11715 = vmatprep.mubr.msk.f32.mxu0 %vm493_vm1, %v3797_v22 }
 0x34a   : > { %11716 = vmatmul.mubr.msk.f32.gmra.mrb[10].mxu0 %vm493_vm1, %v3798_v23 }
 0x34b   : > { %11718 = vmatprep.mubr.msk.f32.mxu0 %vm493_vm1, %v3799_v24 }
 0x34e   : > { %11719 = vmatmul.mubr.msk.f32.gmra.mrb[12].mxu0 %vm493_vm1, %v3800_v25 }
 0x34f   : > { %11721 = vmatprep.mubr.msk.f32.mxu0 %vm493_vm1, %v3801_v26  ;;  %v14566_v26 = vpop.permute.xlu1 %4409 }
 0x352   : > { %11722 = vmatmul.mubr.msk.f32.gmra.mrb[14].mxu0 %vm493_vm1, %v3802_v27 }
 0x353   : > { %11724 = vmatprep.mubr.msk.f32.mxu0 %vm493_vm1, %v3803_v28 }
 0x356   : > { %11725 = vmatmul.mubr.msk.f32.gmra.mrb[16].mxu0 %vm493_vm1, %v3804_v29  ;;  %v14569_v29 = vpop.permute.xlu0 %4404 }
 0x357   : > { %11727 = vmatprep.mubr.msk.f32.mxu0 %vm493_vm1, %v3805_v30 }
 0x35a   : > { %11728 = vmatmul.mubr.msk.f32.gmra.mrb[18].mxu0 %vm493_vm1, %v3806_v31 }
 0x35b   : > { %11730 = vmatprep.mubr.msk.f32.mxu0 %vm493_vm1, %v3807_v32 }
 0x35e   : > { %11731 = vmatmul.mubr.msk.f32.gmra.mrb[20].mxu0 %vm493_vm1, %v3808_v33 }
 0x35f   : > { %11733 = vmatprep.mubr.msk.f32.mxu0 %vm493_vm1, %v3809_v34 }
 0x362   : > { %11734 = vmatmul.mubr.msk.f32.gmra.mrb[22].mxu0 %vm493_vm1, %v3810_v35 }
 0x363   : > { %11736 = vmatprep.mubr.msk.f32.mxu0 %vm493_vm1, %v3811_v36 }
 0x366   : > { %11737 = vmatmul.mubr.msk.f32.gmra.mrb[24].mxu0 %vm493_vm1, %v3812_v37 }
 0x367   : > { %11739 = vmatprep.mubr.msk.f32.mxu0 %vm493_vm1, %v3813_v38 }
 0x36a   : > { %11740 = vmatmul.mubr.msk.f32.gmra.mrb[26].mxu0 %vm493_vm1, %v3814_v39 }
 0x36b   : > { %11742 = vmatprep.mubr.msk.f32.mxu0 %vm493_vm1, %v3815_v40 }
 0x36e   : > { %11743 = vmatmul.mubr.msk.f32.gmra.mrb[28].mxu0 %vm493_vm1, %v3816_v41 }
 0x36f   : > { %11745 = vmatprep.mubr.msk.f32.mxu0 %vm493_vm1, %v3817_v42 }
 0x372   : > { %11746 = vmatmul.mubr.msk.f32.gmra.mrb[30].mxu0 %vm493_vm1, %v3818_v43  ;;  %v14578_v43 = vpop.permute.xlu1 %4419 }
 0x373   : > { %11748 = vmatprep.mubr.msk.f32.mxu0 %vm493_vm1, %v3819_v44 }
 0x376   : > { %11749 = vmatmul.mubr.msk.f32.gmra.mrb[32].mxu0 %vm493_vm1, %v3820_v45 }
 0x377   : > { %11751 = vmatprep.mubr.msk.f32.mxu0 %vm493_vm1, %v3821_v46  ;;  %v14581_v46 = vpop.permute.xlu0 %4414 }
 0x37a   : > { %11752 = vmatmul.mubr.msk.f32.gmra.mrb[34].mxu0 %vm493_vm1, %v3822_v47 }
 0x37b   : > { %12262 = vmatprep.mubr.msk.f32.mxu0 %vm13453_vm5, %v13451_v48 }
 0x409   : > { %v11702_v2 = vpop.f32.mrb[0].mxu0 }
 0x40a   : > { %v4225_v4 = vadd.f32 %v11702_v2, %v14547_v0  ;;  %v4002_v5 = vpop.f32.mrb[1].mxu0  ;;  %v14592_v2 = vpop.permute.xlu1 %4429 }
 0x40b   : > { %v4224_v6 = vadd.f32 %v14547_v0, %v4002_v5  ;;  %v14596_v5 = vpop.permute.xlu0 %4424 }
 0x40c   : > { %v4261_v7 = vmax.f32 %v4225_v4, 0.0 }
 0x40d   : > { %v4260_v8 = vmax.f32 %v4224_v6, 0.0  ;;  %v11705_v9 = vpop.f32.mrb[2].mxu0 }
 0x40e   : > { %v4513_v10 = vmul.f32 %v4340_v56, %v4261_v7  ;;  %v4227_v11 = vadd.f32 %v11705_v9, %v14547_v0  ;;  %v4012_v12 = vpop.f32.mrb[3].mxu0 }
 0x40f   : > { %v4512_v14 = vmul.f32 %v4335_v54, %v4260_v8  ;;  %v4226_v15 = vadd.f32 %v14547_v0, %v4012_v12 }
 0x410   : > { %4557 = vst.msk [vmem:[#allocation2 + $0x1b] sm:$0xff] %vm4548_vm2, %v4513_v10  ;;  %v4263_v17 = vmax.f32 %v4227_v11, 0.0 }
 0x411   : > { %4556 = vst.msk [vmem:[#allocation2 + $0x13] sm:$0xff] %vm4548_vm2, %v4512_v14  ;;  %v4262_v18 = vmax.f32 %v4226_v15, 0.0  ;;  %v11708_v19 = vpop.f32.mrb[4].mxu0 }
 0x412   : > { %v4515_v20 = vmul.f32 %v4350_v55, %v4263_v17  ;;  %v4229_v21 = vadd.f32 %v11708_v19, %v14547_v0  ;;  %v4022_v22 = vpop.f32.mrb[5].mxu0 }
 0x413   : > { %v4514_v23 = vmul.f32 %v4345_v53, %v4262_v18  ;;  %v4228_v24 = vadd.f32 %v14547_v0, %v4022_v22 }
 0x414   : > { %4559 = vst.msk [vmem:[#allocation2 + $0x2b] sm:$0xff] %vm4548_vm2, %v4515_v20  ;;  %v4265_v25 = vmax.f32 %v4229_v21, 0.0  ;;  %v4435_v21 = vpop.permute.xlu0 %4434 }
 0x415   : > { %4558 = vst.msk [vmem:[#allocation2 + $0x23] sm:$0xff] %vm4548_vm2, %v4514_v23  ;;  %v4264_v27 = vmax.f32 %v4228_v24, 0.0  ;;  %v11711_v28 = vpop.f32.mrb[6].mxu0 }
 0x416   : > { %v4517_v30 = vmul.f32 %v4360_v57, %v4265_v25  ;;  %v4231_v31 = vadd.f32 %v11711_v28, %v14547_v0  ;;  %v4032_v32 = vpop.f32.mrb[7].mxu0 }
 0x417   : > { %v4516_v33 = vmul.f32 %v4355_v58, %v4264_v27  ;;  %v4230_v34 = vadd.f32 %v14547_v0, %v4032_v32 }
 0x418   : > { %4561 = vst.msk [vmem:[#allocation2 + $0x3b] sm:$0xff] %vm4548_vm2, %v4517_v30  ;;  %v4267_v35 = vmax.f32 %v4231_v31, 0.0  ;;  %v4632_v36 = vld [vmem:[#allocation2 + $0x11] sm:$0xff]  ;;  %v4633_v37 = vld [vmem:[#allocation2 + $0x19] sm:$0xff] }
 0x419   : > { %4560 = vst.msk [vmem:[#allocation2 + $0x33] sm:$0xff] %vm4548_vm2, %v4516_v33  ;;  %v4266_v38 = vmax.f32 %v4230_v34, 0.0  ;;  %v11714_v39 = vpop.f32.mrb[8].mxu0  ;;  %11759 = vmatprep.mubr.msk.f32.mxu1 %vm4548_vm2, %v4632_v36 }
 0x41a   : > { %v4519_v40 = vmul.f32 %v4370_v59, %v4267_v35  ;;  %v4233_v41 = vadd.f32 %v11714_v39, %v14547_v0  ;;  %v4042_v42 = vpop.f32.mrb[9].mxu0  ;;  %11760 = vmatmul.mubr.msk.f32.gmra.mrb[2].mxu1 %vm4548_vm2, %v4633_v37 }
 0x41b   : > { %v4518_v44 = vmul.f32 %v4365_v60, %v4266_v38  ;;  %v4232_v45 = vadd.f32 %v14547_v0, %v4042_v42 }
 0x41c   : > { %4563 = vst.msk [vmem:[#allocation2 + $0x4b] sm:$0xff] %vm4548_vm2, %v4519_v40  ;;  %v4269_v47 = vmax.f32 %v4233_v41, 0.0  ;;  %v4634_v49 = vld [vmem:[#allocation2 + $0x21] sm:$0xff]  ;;  %v4635_v50 = vld [vmem:[#allocation2 + $0x29] sm:$0xff] }
 0x41d   : > { %4562 = vst.msk [vmem:[#allocation2 + $0x43] sm:$0xff] %vm4548_vm2, %v4518_v44  ;;  %v4268_v51 = vmax.f32 %v4232_v45, 0.0  ;;  %v11717_v52 = vpop.f32.mrb[10].mxu0  ;;  %11762 = vmatprep.mubr.msk.f32.mxu1 %vm4548_vm2, %v4634_v49 }
 0x41e   : > { %v4521_v53 = vmul.f32 %v14542_v62, %v4269_v47  ;;  %v4235_v54 = vadd.f32 %v11717_v52, %v14547_v0  ;;  %v4052_v55 = vpop.f32.mrb[11].mxu0  ;;  %11763 = vmatmul.mubr.msk.f32.gmra.mrb[4].mxu1 %vm4548_vm2, %v4635_v50 }
 0x41f   : > { %v4520_v56 = vmul.f32 %v14545_v63, %v4268_v51  ;;  %v4234_v57 = vadd.f32 %v14547_v0, %v4052_v55 }
 0x420   : > { %4565 = vst.msk [vmem:[#allocation2 + $0x5b] sm:$0xff] %vm4548_vm2, %v4521_v53  ;;  %v4271_v58 = vmax.f32 %v4235_v54, 0.0  ;;  %v4636_v59 = vld [vmem:[#allocation2 + $0x31] sm:$0xff]  ;;  %v4637_v60 = vld [vmem:[#allocation2 + $0x39] sm:$0xff] }
 0x421   : > { %4564 = vst.msk [vmem:[#allocation2 + $0x53] sm:$0xff] %vm4548_vm2, %v4520_v56  ;;  %v4270_v4 = vmax.f32 %v4234_v57, 0.0  ;;  %v11720_v62 = vpop.f32.mrb[12].mxu0  ;;  %11765 = vmatprep.mubr.msk.f32.mxu1 %vm4548_vm2, %v4636_v59 }
 0x422   : > { %v4523_v6 = vmul.f32 %v14549_v1, %v4271_v58  ;;  %v4237_v63 = vadd.f32 %v11720_v62, %v14547_v0  ;;  %v4062_v7 = vpop.f32.mrb[13].mxu0  ;;  %11766 = vmatmul.mubr.msk.f32.gmra.mrb[6].mxu1 %vm4548_vm2, %v4637_v60 }
 0x423   : > { %v4522_v8 = vmul.f32 %v14551_v3, %v4270_v4  ;;  %v4236_v9 = vadd.f32 %v14547_v0, %v4062_v7  ;;  %v4440_v3 = vpop.permute.xlu1 %4439 }
 0x424   : > { %4567 = vst.msk [vmem:[#allocation2 + $0x6b] sm:$0xff] %vm4548_vm2, %v4523_v6  ;;  %v4273_v10 = vmax.f32 %v4237_v63, 0.0  ;;  %v4638_v11 = vld [vmem:[#allocation2 + $0x41] sm:$0xff]  ;;  %v4639_v12 = vld [vmem:[#allocation2 + $0x49] sm:$0xff] }
 0x425   : > { %4566 = vst.msk [vmem:[#allocation2 + $0x63] sm:$0xff] %vm4548_vm2, %v4522_v8  ;;  %v4272_v14 = vmax.f32 %v4236_v9, 0.0  ;;  %v11723_v15 = vpop.f32.mrb[14].mxu0  ;;  %11768 = vmatprep.mubr.msk.f32.mxu1 %vm4548_vm2, %v4638_v11 }
 0x426   : > { %v4525_v1 = vmul.f32 %v14556_v13, %v4273_v10  ;;  %v4239_v17 = vadd.f32 %v11723_v15, %v14547_v0  ;;  %v4072_v18 = vpop.f32.mrb[15].mxu0  ;;  %11769 = vmatmul.mubr.msk.f32.gmra.mrb[8].mxu1 %vm4548_vm2, %v4639_v12 }
 0x427   : > { %v4524_v19 = vmul.f32 %v14559_v16, %v4272_v14  ;;  %v4238_v20 = vadd.f32 %v14547_v0, %v4072_v18  ;;  %v4450_v35 = vpop.permute.xlu1 %4449 }
 0x428   : > { %4569 = vst.msk [vmem:[#allocation2 + $0x7b] sm:$0xff] %vm4548_vm2, %v4525_v1  ;;  %v4275_v22 = vmax.f32 %v4239_v17, 0.0  ;;  %v4640_v23 = vld [vmem:[#allocation2 + $0x51] sm:$0xff]  ;;  %v4641_v24 = vld [vmem:[#allocation2 + $0x59] sm:$0xff] }
 0x429   : > { %4568 = vst.msk [vmem:[#allocation2 + $0x73] sm:$0xff] %vm4548_vm2, %v4524_v19  ;;  %v4274_v25 = vmax.f32 %v4238_v20, 0.0  ;;  %v11726_v13 = vpop.f32.mrb[16].mxu0  ;;  %11771 = vmatprep.mubr.msk.f32.mxu1 %vm4548_vm2, %v4640_v23 }
 0x42a   : > { %v4527_v27 = vmul.f32 %v14566_v26, %v4275_v22  ;;  %v4241_v28 = vadd.f32 %v11726_v13, %v14547_v0  ;;  %v4082_v30 = vpop.f32.mrb[17].mxu0  ;;  %11772 = vmatmul.mubr.msk.f32.gmra.mrb[10].mxu1 %vm4548_vm2, %v4641_v24  ;;  %v4445_v26 = vpop.permute.xlu0 %4444 }
 0x42b   : > { %v4526_v16 = vmul.f32 %v14569_v29, %v4274_v25  ;;  %v4240_v31 = vadd.f32 %v14547_v0, %v4082_v30 }
 0x42c   : > { %4571 = vst.msk [vmem:[#allocation2 + $0x8b] sm:$0xff] %vm4548_vm2, %v4527_v27  ;;  %v4277_v32 = vmax.f32 %v4241_v28, 0.0  ;;  %v4642_v33 = vld [vmem:[#allocation2 + $0x61] sm:$0xff]  ;;  %v4643_v34 = vld [vmem:[#allocation2 + $0x69] sm:$0xff] }
 0x42d   : > { %4570 = vst.msk [vmem:[#allocation2 + $0x83] sm:$0xff] %vm4548_vm2, %v4526_v16  ;;  %v4276_v36 = vmax.f32 %v4240_v31, 0.0  ;;  %v11729_v37 = vpop.f32.mrb[18].mxu0  ;;  %11774 = vmatprep.mubr.msk.f32.mxu1 %vm4548_vm2, %v4642_v33 }
 0x42e   : > { %v4529_v38 = vmul.f32 %v14578_v43, %v4277_v32  ;;  %v4243_v39 = vadd.f32 %v11729_v37, %v14547_v0  ;;  %v4092_v29 = vpop.f32.mrb[19].mxu0  ;;  %11775 = vmatmul.mubr.msk.f32.gmra.mrb[12].mxu1 %vm4548_vm2, %v4643_v34  ;;  %v4455_v54 = vpop.permute.xlu0 %4454 }
 0x42f   : > { %v4528_v40 = vmul.f32 %v14581_v46, %v4276_v36  ;;  %v4242_v41 = vadd.f32 %v14547_v0, %v4092_v29  ;;  %v4460_v46 = vpop.permute.xlu1 %4459 }
 0x430   : > { %4573 = vst.msk [vmem:[#allocation2 + $0x9b] sm:$0xff] %vm4548_vm2, %v4529_v38  ;;  %v4279_v42 = vmax.f32 %v4243_v39, 0.0  ;;  %v4644_v44 = vld [vmem:[#allocation2 + $0x71] sm:$0xff]  ;;  %v4645_v45 = vld [vmem:[#allocation2 + $0x79] sm:$0xff] }
 0x431   : > { %4572 = vst.msk [vmem:[#allocation2 + $0x93] sm:$0xff] %vm4548_vm2, %v4528_v40  ;;  %v4278_v47 = vmax.f32 %v4242_v41, 0.0  ;;  %v11732_v49 = vpop.f32.mrb[20].mxu0  ;;  %11777 = vmatprep.mubr.msk.f32.mxu1 %vm4548_vm2, %v4644_v44 }
 0x432   : > { %v4531_v43 = vmul.f32 %v14592_v2, %v4279_v42  ;;  %v4245_v50 = vadd.f32 %v11732_v49, %v14547_v0  ;;  %v4102_v51 = vpop.f32.mrb[21].mxu0  ;;  %11778 = vmatmul.mubr.msk.f32.gmra.mrb[14].mxu1 %vm4548_vm2, %v4645_v45  ;;  %v4465_v11 = vpop.permute.xlu0 %4464 }
 0x433   : > { %v4530_v52 = vmul.f32 %v14596_v5, %v4278_v47  ;;  %v4244_v53 = vadd.f32 %v14547_v0, %v4102_v51  ;;  %v4470_v8 = vpop.permute.xlu1 %4469 }
 0x434   : > { %4575 = vst.msk [vmem:[#allocation2 + $0xab] sm:$0xff] %vm4548_vm2, %v4531_v43  ;;  %v4281_v55 = vmax.f32 %v4245_v50, 0.0  ;;  %v4646_v56 = vld [vmem:[#allocation2 + $0x81] sm:$0xff]  ;;  %v4647_v57 = vld [vmem:[#allocation2 + $0x89] sm:$0xff] }
 0x435   : > { %4574 = vst.msk [vmem:[#allocation2 + $0xa3] sm:$0xff] %vm4548_vm2, %v4530_v52  ;;  %v4280_v58 = vmax.f32 %v4244_v53, 0.0  ;;  %v11735_v59 = vpop.f32.mrb[22].mxu0  ;;  %11780 = vmatprep.mubr.msk.f32.mxu1 %vm4548_vm2, %v4646_v56 }
 0x436   : > { %v4533_v60 = vmul.f32 %v4440_v3, %v4281_v55  ;;  %v4247_v2 = vadd.f32 %v11735_v59, %v14547_v0  ;;  %v4112_v4 = vpop.f32.mrb[23].mxu0  ;;  %11781 = vmatmul.mubr.msk.f32.gmra.mrb[16].mxu1 %vm4548_vm2, %v4647_v57  ;;  %v4475_v28 = vpop.permute.xlu0 %4474 }
 0x437   : > { %v4532_v62 = vmul.f32 %v4435_v21, %v4280_v58  ;;  %v4246_v5 = vadd.f32 %v14547_v0, %v4112_v4  ;;  %v4480_v25 = vpop.permute.xlu1 %4479 }
 0x438   : > { %4577 = vst.msk [vmem:[#allocation2 + $0xbb] sm:$0xff] %vm4548_vm2, %v4533_v60  ;;  %v4283_v6 = vmax.f32 %v4247_v2, 0.0  ;;  %v4648_v63 = vld [vmem:[#allocation2 + $0x91] sm:$0xff]  ;;  %v4649_v7 = vld [vmem:[#allocation2 + $0x99] sm:$0xff] }
 0x439   : > { %4576 = vst.msk [vmem:[#allocation2 + $0xb3] sm:$0xff] %vm4548_vm2, %v4532_v62  ;;  %v4282_v9 = vmax.f32 %v4246_v5, 0.0  ;;  %v11738_v10 = vpop.f32.mrb[24].mxu0  ;;  %11783 = vmatprep.mubr.msk.f32.mxu1 %vm4548_vm2, %v4648_v63 }
 0x43a   : > { %v4535_v12 = vmul.f32 %v4450_v35, %v4283_v6  ;;  %v4249_v14 = vadd.f32 %v11738_v10, %v14547_v0  ;;  %v4122_v15 = vpop.f32.mrb[25].mxu0  ;;  %11784 = vmatmul.mubr.msk.f32.gmra.mrb[18].mxu1 %vm4548_vm2, %v4649_v7  ;;  %v4485_v44 = vpop.permute.xlu0 %4484 }
 0x43b   : > { %v4534_v1 = vmul.f32 %v4445_v26, %v4282_v9  ;;  %v4248_v17 = vadd.f32 %v14547_v0, %v4122_v15  ;;  %v4490_v40 = vpop.permute.xlu1 %4489 }
 0x43c   : > { %4579 = vst.msk [vmem:[#allocation2 + $0xcb] sm:$0xff] %vm4548_vm2, %v4535_v12  ;;  %v4285_v18 = vmax.f32 %v4249_v14, 0.0  ;;  %v4650_v3 = vld [vmem:[#allocation2 + $0xa1] sm:$0xff]  ;;  %v4651_v19 = vld [vmem:[#allocation2 + $0xa9] sm:$0xff] }
 0x43d   : > { %4578 = vst.msk [vmem:[#allocation2 + $0xc3] sm:$0xff] %vm4548_vm2, %v4534_v1  ;;  %v4284_v20 = vmax.f32 %v4248_v17, 0.0  ;;  %v11741_v21 = vpop.f32.mrb[26].mxu0  ;;  %11786 = vmatprep.mubr.msk.f32.mxu1 %vm4548_vm2, %v4650_v3 }
 0x43e   : > { %v4537_v22 = vmul.f32 %v4460_v46, %v4285_v18  ;;  %v4251_v23 = vadd.f32 %v11741_v21, %v14547_v0  ;;  %v4132_v24 = vpop.f32.mrb[27].mxu0  ;;  %11787 = vmatmul.mubr.msk.f32.gmra.mrb[20].mxu1 %vm4548_vm2, %v4651_v19  ;;  %v4495_v2 = vpop.permute.xlu0 %4494 }
 0x43f   : > { %v4536_v13 = vmul.f32 %v4455_v54, %v4284_v20  ;;  %v4250_v27 = vadd.f32 %v14547_v0, %v4132_v24  ;;  %v4500_v58 = vpop.permute.xlu1 %4499  ;;  %v4594_v24 = vld [vmem:[#allocation2 + $0x8] sm:$0xff] }
 0x440   : > { %4581 = vst.msk [vmem:[#allocation2 + $0xdb] sm:$0xff] %vm4548_vm2, %v4537_v22  ;;  %v4287_v30 = vmax.f32 %v4251_v23, 0.0  ;;  %v4652_v16 = vld [vmem:[#allocation2 + $0xb1] sm:$0xff]  ;;  %v4653_v31 = vld [vmem:[#allocation2 + $0xb9] sm:$0xff] }
 0x441   : > { %4580 = vst.msk [vmem:[#allocation2 + $0xd3] sm:$0xff] %vm4548_vm2, %v4536_v13  ;;  %v4286_v32 = vmax.f32 %v4250_v27, 0.0  ;;  %v11744_v33 = vpop.f32.mrb[28].mxu0  ;;  %11789 = vmatprep.mubr.msk.f32.mxu1 %vm4548_vm2, %v4652_v16  ;;  %v4593_v23 = vld [vmem:[#allocation2] sm:$0xff]  ;;  %v4595_v13 = vld [vmem:[#allocation2 + $0x10] sm:$0xff]  ;;  %v4596_v27 = vld [vmem:[#allocation2 + $0x18] sm:$0xff] }
 0x442   : > { %v4539_v34 = vmul.f32 %v4470_v8, %v4287_v30  ;;  %v4253_v35 = vadd.f32 %v11744_v33, %v14547_v0  ;;  %v4142_v36 = vpop.f32.mrb[29].mxu0  ;;  %11790 = vmatmul.mubr.msk.f32.gmra.mrb[22].mxu1 %vm4548_vm2, %v4653_v31  ;;  %v4505_v18 = vpop.permute.xlu0 %4504  ;;  %v4598_v30 = vld [vmem:[#allocation2 + $0x28] sm:$0xff]  ;;  %v4599_v16 = vld [vmem:[#allocation2 + $0x30] sm:$0xff]  ;;  %v4600_v31 = vld [vmem:[#allocation2 + $0x38] sm:$0xff] }
 0x443   : > { %v4538_v37 = vmul.f32 %v4465_v11, %v4286_v32  ;;  %v4252_v26 = vadd.f32 %v14547_v0, %v4142_v36  ;;  %v4510_v1 = vpop.permute.xlu1 %4509  ;;  %v4601_v32 = vld [vmem:[#allocation2 + $0x40] sm:$0xff]  ;;  %v4603_v33 = vld [vmem:[#allocation2 + $0x50] sm:$0xff]  ;;  %v4606_v36 = vld [vmem:[#allocation2 + $0x68] sm:$0xff] }
 0x444   : > { %4583 = vst.msk [vmem:[#allocation2 + $0xeb] sm:$0xff] %vm4548_vm2, %v4539_v34  ;;  %v4289_v38 = vmax.f32 %v4253_v35, 0.0  ;;  %v4654_v39 = vld [vmem:[#allocation2 + $0xc1] sm:$0xff]  ;;  %v4655_v29 = vld [vmem:[#allocation2 + $0xc9] sm:$0xff]  ;;  %v4604_v34 = vld [vmem:[#allocation2 + $0x58] sm:$0xff] }
 0x445   : > { %4582 = vst.msk [vmem:[#allocation2 + $0xe3] sm:$0xff] %vm4548_vm2, %v4538_v37  ;;  %v4288_v41 = vmax.f32 %v4252_v26, 0.0  ;;  %v11747_v42 = vpop.f32.mrb[30].mxu0  ;;  %11792 = vmatprep.mubr.msk.f32.mxu1 %vm4548_vm2, %v4654_v39  ;;  %v4605_v35 = vld [vmem:[#allocation2 + $0x60] sm:$0xff]  ;;  %v4607_v37 = vld [vmem:[#allocation2 + $0x70] sm:$0xff]  ;;  %v4608_v26 = vld [vmem:[#allocation2 + $0x78] sm:$0xff] }
 0x446   : > { %v4541_v45 = vmul.f32 %v4480_v25, %v4289_v38  ;;  %v4255_v47 = vadd.f32 %v11747_v42, %v14547_v0  ;;  %v4152_v49 = vpop.f32.mrb[31].mxu0  ;;  %11793 = vmatmul.mubr.msk.f32.gmra.mrb[24].mxu1 %vm4548_vm2, %v4655_v29  ;;  %v14688_v25 = vld [vmem:[#allocation10 + $0x18] sm:$0xff]  ;;  %v4609_v38 = vld [vmem:[#allocation2 + $0x80] sm:$0xff]  ;;  %v4610_v39 = vld [vmem:[#allocation2 + $0x88] sm:$0xff] }
 0x447   : > { %v4540_v43 = vmul.f32 %v4475_v28, %v4288_v41  ;;  %v4254_v50 = vadd.f32 %v14547_v0, %v4152_v49  ;;  %v4597_v28 = vld [vmem:[#allocation2 + $0x20] sm:$0xff]  ;;  %v4611_v29 = vld [vmem:[#allocation2 + $0x90] sm:$0xff]  ;;  %v4614_v42 = vld [vmem:[#allocation2 + $0xa8] sm:$0xff] }
 0x448   : > { %4585 = vst.msk [vmem:[#allocation2 + $0xfb] sm:$0xff] %vm4548_vm2, %v4541_v45  ;;  %v4291_v51 = vmax.f32 %v4255_v47, 0.0  ;;  %v4656_v46 = vld [vmem:[#allocation2 + $0xd1] sm:$0xff]  ;;  %v4657_v52 = vld [vmem:[#allocation2 + $0xd9] sm:$0xff]  ;;  %v4618_v49 = vld [vmem:[#allocation2 + $0xc8] sm:$0xff] }
 0x449   : > { %4584 = vst.msk [vmem:[#allocation2 + $0xf3] sm:$0xff] %vm4548_vm2, %v4540_v43  ;;  %v4290_v53 = vmax.f32 %v4254_v50, 0.0  ;;  %v11750_v54 = vpop.f32.mrb[32].mxu0  ;;  %11795 = vmatprep.mubr.msk.f32.mxu1 %vm4548_vm2, %v4656_v46  ;;  %v4613_v41 = vld [vmem:[#allocation2 + $0xa0] sm:$0xff]  ;;  %v4616_v45 = vld [vmem:[#allocation2 + $0xb8] sm:$0xff]  ;;  %v4619_v43 = vld [vmem:[#allocation2 + $0xd0] sm:$0xff] }
 0x44a   : > { %v4543_v55 = vmul.f32 %v4490_v40, %v4291_v51  ;;  %v4257_v56 = vadd.f32 %v11750_v54, %v14547_v0  ;;  %v4162_v57 = vpop.f32.mrb[33].mxu0  ;;  %11796 = vmatmul.mubr.msk.f32.gmra.mrb[26].mxu1 %vm4548_vm2, %v4657_v52  ;;  %v4612_v40 = vld [vmem:[#allocation2 + $0x98] sm:$0xff]  ;;  %v4617_v47 = vld [vmem:[#allocation2 + $0xc0] sm:$0xff] }
 0x44b   : > { %v4542_v59 = vmul.f32 %v4485_v44, %v4290_v53  ;;  %v4256_v60 = vadd.f32 %v14547_v0, %v4162_v57  ;;  %v4615_v44 = vld [vmem:[#allocation2 + $0xb0] sm:$0xff]  ;;  %v4620_v50 = vld [vmem:[#allocation2 + $0xd8] sm:$0xff]  ;;  %v5374_v57 = vld [vmem:[#allocation2 + $0x2] sm:$0xff] }
 0x44c   : > { %4587 = vst.msk [vmem:[#allocation2 + $0x10b] sm:$0xff] %vm4548_vm2, %v4543_v55  ;;  %v4293_v4 = vmax.f32 %v4257_v56, 0.0  ;;  %v4658_v62 = vld [vmem:[#allocation2 + $0xe1] sm:$0xff]  ;;  %v4659_v5 = vld [vmem:[#allocation2 + $0xe9] sm:$0xff] }
 0x44d   : > { %4586 = vst.msk [vmem:[#allocation2 + $0x103] sm:$0xff] %vm4548_vm2, %v4542_v59  ;;  %v4292_v6 = vmax.f32 %v4256_v60, 0.0  ;;  %v11753_v63 = vpop.f32.mrb[34].mxu0  ;;  %11798 = vmatprep.mubr.msk.f32.mxu1 %vm4548_vm2, %v4658_v62  ;;  %v4621_v51 = vld [vmem:[#allocation2 + $0xe0] sm:$0xff]  ;;  %v4622_v46 = vld [vmem:[#allocation2 + $0xe8] sm:$0xff] }
 0x44e   : > { %v4545_v7 = vmul.f32 %v4500_v58, %v4293_v4  ;;  %v4259_v8 = vadd.f32 %v11753_v63, %v14547_v0  ;;  %v4172_v9 = vpop.f32.mrb[35].mxu0  ;;  %11799 = vmatmul.mubr.msk.f32.gmra.mrb[28].mxu1 %vm4548_vm2, %v4659_v5  ;;  %v5375_v59 = vld [vmem:[#allocation2 + $0xa] sm:$0xff]  ;;  %v14728_v60 = vld [vmem:[#allocation10 + $0x20] sm:$0xff] }
 0x44f   : > { %v4544_v10 = vmul.f32 %v4495_v2, %v4292_v6  ;;  %v4258_v11 = vadd.f32 %v14547_v0, %v4172_v9  ;;  %v14731_v2 = vld [vmem:[#allocation2 + $0x12] sm:$0xff]  ;;  %v14737_v4 = vld [vmem:[#allocation2 + $0x1a] sm:$0xff]  ;;  %v14741_v62 = vld [vmem:[#allocation2 + $0x22] sm:$0xff] }
 0x450   : > { %4589 = vst.msk [vmem:[#allocation2 + $0x11b] sm:$0xff] %vm4548_vm2, %v4545_v7  ;;  %v4295_v12 = vmax.f32 %v4259_v8, 0.0  ;;  %v4660_v14 = vld [vmem:[#allocation2 + $0xf1] sm:$0xff]  ;;  %v4661_v15 = vld [vmem:[#allocation2 + $0xf9] sm:$0xff]  ;;  %v14757_v7 = vld [vmem:[#allocation2 + $0x42] sm:$0xff] }
 0x451   : > { %4588 = vst.msk [vmem:[#allocation2 + $0x113] sm:$0xff] %vm4548_vm2, %v4544_v10  ;;  %v4294_v17 = vmax.f32 %v4258_v11, 0.0  ;;  %11801 = vmatprep.mubr.msk.f32.mxu1 %vm4548_vm2, %v4660_v14  ;;  %v4623_v52 = vld [vmem:[#allocation2 + $0xf0] sm:$0xff]  ;;  %v4624_v53 = vld [vmem:[#allocation2 + $0xf8] sm:$0xff]  ;;  %v5386_v11 = vld [vmem:[#allocation2 + $0x62] sm:$0xff] }
 0x452   : > { %v4547_v3 = vmul.f32 %v4510_v1, %v4295_v12  ;;  %11802 = vmatmul.mubr.msk.f32.gmra.mrb[30].mxu1 %vm4548_vm2, %v4661_v15  ;;  %v14745_v5 = vld [vmem:[#allocation2 + $0x2a] sm:$0xff]  ;;  %v14749_v6 = vld [vmem:[#allocation2 + $0x32] sm:$0xff]  ;;  %v14753_v63 = vld [vmem:[#allocation2 + $0x3a] sm:$0xff] }
 0x453   : > { %v4546_v19 = vmul.f32 %v4505_v18, %v4294_v17  ;;  %v14761_v8 = vld [vmem:[#allocation2 + $0x4a] sm:$0xff]  ;;  %v14765_v9 = vld [vmem:[#allocation2 + $0x52] sm:$0xff]  ;;  %v5385_v10 = vld [vmem:[#allocation2 + $0x5a] sm:$0xff] }
 0x454   : > { %4592 = vst.msk [vmem:[#allocation2 + $0x12b] sm:$0x3f] %vm4591_vm4, %v4547_v3  ;;  %v4662_v0 = vld [vmem:[#allocation2 + $0x101] sm:$0xff]  ;;  %v4663_v20 = vld [vmem:[#allocation2 + $0x109] sm:$0xff]  ;;  %v5388_v14 = vld [vmem:[#allocation2 + $0x72] sm:$0xff] }
 0x455   : > { %4590 = vst.msk [vmem:[#allocation2 + $0x123] sm:$0xff] %vm4548_vm2, %v4546_v19  ;;  %11804 = vmatprep.mubr.msk.f32.mxu1 %vm4548_vm2, %v4662_v0  ;;  %v4625_v54 = vld [vmem:[#allocation2 + $0x100] sm:$0xff]  ;;  %v4626_v55 = vld [vmem:[#allocation2 + $0x108] sm:$0xff]  ;;  %v5392_v18 = vld [vmem:[#allocation2 + $0x92] sm:$0xff] }
 0x456   : > { %11805 = vmatmul.mubr.msk.f32.gmra.mrb[32].mxu1 %vm4548_vm2, %v4663_v20  ;;  %v5387_v12 = vld [vmem:[#allocation2 + $0x6a] sm:$0xff]  ;;  %v5389_v15 = vld [vmem:[#allocation2 + $0x7a] sm:$0xff]  ;;  %v5390_v1 = vld [vmem:[#allocation2 + $0x82] sm:$0xff] }
 0x457   : > { %v5391_v17 = vld [vmem:[#allocation2 + $0x8a] sm:$0xff]  ;;  %v5393_v3 = vld [vmem:[#allocation2 + $0x9a] sm:$0xff]  ;;  %v5394_v19 = vld [vmem:[#allocation2 + $0xa2] sm:$0xff] }
 0x458   : > { %v4664_v21 = vld [vmem:[#allocation2 + $0x111] sm:$0xff]  ;;  %v4665_v22 = vld [vmem:[#allocation2 + $0x119] sm:$0x3f] }
 0x459   : > { %11807 = vmatprep.mubr.msk.f32.mxu1 %vm4548_vm2, %v4664_v21  ;;  %v4627_v56 = vld [vmem:[#allocation2 + $0x110] sm:$0xff]  ;;  %v4628_v58 = vld [vmem:[#allocation2 + $0x118] sm:$0x3f] }
 0x45a   : > { %11808 = vmatmul.mubr.msk.f32.gmra.mrb[34].mxu1 %vm4548_vm2, %v4665_v22  ;;  %v5395_v0 = vld [vmem:[#allocation2 + $0xaa] sm:$0xff]  ;;  %v5396_v20 = vld [vmem:[#allocation2 + $0xb2] sm:$0xff]  ;;  %v5397_v21 = vld [vmem:[#allocation2 + $0xba] sm:$0xff] }
 0x45b   : > { %11812 = vmatprep.mubr.msk.f32.mxu1 %vm4548_vm2, %v4593_v23  ;;  %v5398_v22 = vld [vmem:[#allocation2 + $0xc2] sm:$0xff]  ;;  %v5399_v23 = vld [vmem:[#allocation2 + $0xca] sm:$0xff] }
 0x45e   : > { %11813 = vmatmul.mubr.msk.f32.vlgmr.msra.gmra.mrb[0].mxu1 %vm4548_vm2, %v4594_v24  ;;  %v5400_v24 = vld [vmem:[#allocation2 + $0xd2] sm:$0xff] }
 0x45f   : > { %11815 = vmatprep.mubr.msk.f32.mxu1 %vm4548_vm2, %v4595_v13  ;;  %11867 = vmatpush3.msra.mxu1 %v14540_v61  ;;  %v4602_v61 = vld [vmem:[#allocation2 + $0x48] sm:$0xff] }
 0x460   : > { %11922 = vmatprep.subr.mxu1 %v14688_v25  ;;  %v5402_v13 = vld [vmem:[#allocation2 + $0xe2] sm:$0xff] }
 0x462   : > { %11816 = vmatmul.mubr.msk.f32.gmra.mrb[2].mxu1 %vm4548_vm2, %v4596_v27  ;;  %v5403_v27 = vld [vmem:[#allocation2 + $0xea] sm:$0xff] }
 0x463   : > { %11818 = vmatprep.mubr.msk.f32.mxu1 %vm4548_vm2, %v4597_v28  ;;  %v5404_v28 = vld [vmem:[#allocation2 + $0xf2] sm:$0xff] }
 0x466   : > { %11819 = vmatmul.mubr.msk.f32.gmra.mrb[4].mxu1 %vm4548_vm2, %v4598_v30  ;;  %v5405_v30 = vld [vmem:[#allocation2 + $0xfa] sm:$0xff] }
 0x467   : > { %11821 = vmatprep.mubr.msk.f32.mxu1 %vm4548_vm2, %v4599_v16  ;;  %v5406_v16 = vld [vmem:[#allocation2 + $0x102] sm:$0xff] }
 0x46a   : > { %11822 = vmatmul.mubr.msk.f32.gmra.mrb[6].mxu1 %vm4548_vm2, %v4600_v31  ;;  %v5407_v31 = vld [vmem:[#allocation2 + $0x10a] sm:$0xff] }
 0x46b   : > { %11824 = vmatprep.mubr.msk.f32.mxu1 %vm4548_vm2, %v4601_v32  ;;  %v5408_v32 = vld [vmem:[#allocation2 + $0x112] sm:$0xff] }
 0x46e   : > { %11825 = vmatmul.mubr.msk.f32.gmra.mrb[8].mxu1 %vm4548_vm2, %v4602_v61  ;;  %v5409_v61 = vld [vmem:[#allocation2 + $0x11a] sm:$0x3f] }
 0x46f   : > { %11827 = vmatprep.mubr.msk.f32.mxu1 %vm4548_vm2, %v4603_v33  ;;  %v6692_v33 = vld [vmem:[#allocation10 + $0x28] sm:$0xff] }
 0x472   : > { %11828 = vmatmul.mubr.msk.f32.gmra.mrb[10].mxu1 %vm4548_vm2, %v4604_v34  ;;  %v5834_v34 = vld [vmem:[#allocation2 + $0x11a] sm:$0xff] }
 0x473   : > { %11830 = vmatprep.mubr.msk.f32.mxu1 %vm4548_vm2, %v4605_v35  ;;  %v5835_v35 = vld [vmem:[#allocation2 + $0x122] sm:$0xff] }
 0x476   : > { %11831 = vmatmul.mubr.msk.f32.gmra.mrb[12].mxu1 %vm4548_vm2, %v4606_v36  ;;  %v5836_v36 = vld [vmem:[#allocation2 + $0x12a] sm:$0x3f] }
 0x477   : > { %11833 = vmatprep.mubr.msk.f32.mxu1 %vm4548_vm2, %v4607_v37  ;;  %v6228_v37 = vld [vmem:[#allocation2 + $0x13] sm:$0xff] }
 0x47a   : > { %11834 = vmatmul.mubr.msk.f32.gmra.mrb[14].mxu1 %vm4548_vm2, %v4608_v26  ;;  %v6229_v26 = vld [vmem:[#allocation2 + $0x1b] sm:$0xff] }
 0x47b   : > { %11836 = vmatprep.mubr.msk.f32.mxu1 %vm4548_vm2, %v4609_v38  ;;  %v14841_v38 = vld [vmem:[#allocation10 + $0x30] sm:$0xff] }
 0x47e   : > { %11837 = vmatmul.mubr.msk.f32.gmra.mrb[16].mxu1 %vm4548_vm2, %v4610_v39  ;;  %v6230_v39 = vld [vmem:[#allocation2 + $0x23] sm:$0xff] }
 0x47f   : > { %11839 = vmatprep.mubr.msk.f32.mxu1 %vm4548_vm2, %v4611_v29  ;;  %v6231_v29 = vld [vmem:[#allocation2 + $0x2b] sm:$0xff] }
 0x482   : > { %11840 = vmatmul.mubr.msk.f32.gmra.mrb[18].mxu1 %vm4548_vm2, %v4612_v40  ;;  %v6232_v40 = vld [vmem:[#allocation2 + $0x33] sm:$0xff] }
 0x483   : > { %11842 = vmatprep.mubr.msk.f32.mxu1 %vm4548_vm2, %v4613_v41  ;;  %v6233_v41 = vld [vmem:[#allocation2 + $0x3b] sm:$0xff] }
 0x486   : > { %11843 = vmatmul.mubr.msk.f32.gmra.mrb[20].mxu1 %vm4548_vm2, %v4614_v42  ;;  %v6234_v42 = vld [vmem:[#allocation2 + $0x43] sm:$0xff] }
 0x487   : > { %11845 = vmatprep.mubr.msk.f32.mxu1 %vm4548_vm2, %v4615_v44  ;;  %v6235_v44 = vld [vmem:[#allocation2 + $0x4b] sm:$0xff] }
 0x48a   : > { %11846 = vmatmul.mubr.msk.f32.gmra.mrb[22].mxu1 %vm4548_vm2, %v4616_v45  ;;  %v6236_v45 = vld [vmem:[#allocation2 + $0x53] sm:$0xff] }
 0x48b   : > { %11848 = vmatprep.mubr.msk.f32.mxu1 %vm4548_vm2, %v4617_v47  ;;  %v6237_v47 = vld [vmem:[#allocation2 + $0x5b] sm:$0xff] }
 0x48e   : > { %11849 = vmatmul.mubr.msk.f32.gmra.mrb[24].mxu1 %vm4548_vm2, %v4618_v49  ;;  %v6238_v49 = vld [vmem:[#allocation2 + $0x63] sm:$0xff] }
 0x48f   : > { %11851 = vmatprep.mubr.msk.f32.mxu1 %vm4548_vm2, %v4619_v43  ;;  %v6239_v43 = vld [vmem:[#allocation2 + $0x6b] sm:$0xff] }
 0x492   : > { %11852 = vmatmul.mubr.msk.f32.gmra.mrb[26].mxu1 %vm4548_vm2, %v4620_v50  ;;  %v6240_v50 = vld [vmem:[#allocation2 + $0x73] sm:$0xff] }
 0x493   : > { %11854 = vmatprep.mubr.msk.f32.mxu1 %vm4548_vm2, %v4621_v51  ;;  %v6241_v51 = vld [vmem:[#allocation2 + $0x7b] sm:$0xff] }
 0x496   : > { %11855 = vmatmul.mubr.msk.f32.gmra.mrb[28].mxu1 %vm4548_vm2, %v4622_v46  ;;  %v6242_v46 = vld [vmem:[#allocation2 + $0x83] sm:$0xff] }
 0x497   : > { %11857 = vmatprep.mubr.msk.f32.mxu1 %vm4548_vm2, %v4623_v52  ;;  %v6243_v52 = vld [vmem:[#allocation2 + $0x8b] sm:$0xff] }
 0x49a   : > { %11858 = vmatmul.mubr.msk.f32.gmra.mrb[30].mxu1 %vm4548_vm2, %v4624_v53  ;;  %v6244_v53 = vld [vmem:[#allocation2 + $0x93] sm:$0xff] }
 0x49b   : > { %11860 = vmatprep.mubr.msk.f32.mxu1 %vm4548_vm2, %v4625_v54  ;;  %v6245_v54 = vld [vmem:[#allocation2 + $0x9b] sm:$0xff] }
 0x49e   : > { %11861 = vmatmul.mubr.msk.f32.gmra.mrb[32].mxu1 %vm4548_vm2, %v4626_v55  ;;  %v6246_v55 = vld [vmem:[#allocation2 + $0xa3] sm:$0xff] }
 0x49f   : > { %11863 = vmatprep.mubr.msk.f32.mxu1 %vm4548_vm2, %v4627_v56  ;;  %v6247_v56 = vld [vmem:[#allocation2 + $0xab] sm:$0xff] }
 0x4a2   : > { %11864 = vmatmul.mubr.msk.f32.gmra.mrb[34].mxu1 %vm4548_vm2, %v4628_v58  ;;  %v6249_v58 = vld [vmem:[#allocation2 + $0xbb] sm:$0xff] }
 0x4a3   : > { %11868 = vmatprep.mubr.msk.f32.mxu1 %vm4548_vm2, %v5374_v57  ;;  %v6248_v57 = vld [vmem:[#allocation2 + $0xb3] sm:$0xff] }
 0x4a6   : > { %11869 = vmatmul.mubr.msk.f32.vlgmr.msra.gmra.mrb[0].mxu1 %vm4548_vm2, %v5375_v59  ;;  %v6250_v59 = vld [vmem:[#allocation2 + $0xc3] sm:$0xff] }
 0x4a7   : > { %11871 = vmatprep.mubr.msk.f32.mxu1 %vm4548_vm2, %v14731_v2  ;;  %11923 = vmatpush3.msra.mxu1 %v14688_v25  ;;  %v5401_v25 = vld [vmem:[#allocation2 + $0xda] sm:$0xff] }
 0x4a8   : > { %11978 = vmatprep.subr.mxu1 %v14728_v60 }
 0x4aa   : > { %11872 = vmatmul.mubr.msk.f32.gmra.mrb[2].mxu1 %vm4548_vm2, %v14737_v4 }
 0x4ab   : > { %11874 = vmatprep.mubr.msk.f32.mxu1 %vm4548_vm2, %v14741_v62 }
 0x4ae   : > { %11875 = vmatmul.mubr.msk.f32.gmra.mrb[4].mxu1 %vm4548_vm2, %v14745_v5 }
 0x4af   : > { %11877 = vmatprep.mubr.msk.f32.mxu1 %vm4548_vm2, %v14749_v6 }
 0x4b2   : > { %11878 = vmatmul.mubr.msk.f32.gmra.mrb[6].mxu1 %vm4548_vm2, %v14753_v63 }
 0x4b3   : > { %11880 = vmatprep.mubr.msk.f32.mxu1 %vm4548_vm2, %v14757_v7 }
 0x4b6   : > { %11881 = vmatmul.mubr.msk.f32.gmra.mrb[8].mxu1 %vm4548_vm2, %v14761_v8 }
 0x4b7   : > { %11883 = vmatprep.mubr.msk.f32.mxu1 %vm4548_vm2, %v14765_v9 }
 0x4ba   : > { %11884 = vmatmul.mubr.msk.f32.gmra.mrb[10].mxu1 %vm4548_vm2, %v5385_v10 }
 0x4bb   : > { %11886 = vmatprep.mubr.msk.f32.mxu1 %vm4548_vm2, %v5386_v11 }
 0x4be   : > { %11887 = vmatmul.mubr.msk.f32.gmra.mrb[12].mxu1 %vm4548_vm2, %v5387_v12 }
 0x4bf   : > { %11889 = vmatprep.mubr.msk.f32.mxu1 %vm4548_vm2, %v5388_v14 }
 0x4c2   : > { %11890 = vmatmul.mubr.msk.f32.gmra.mrb[14].mxu1 %vm4548_vm2, %v5389_v15 }
 0x4c3   : > { %11892 = vmatprep.mubr.msk.f32.mxu1 %vm4548_vm2, %v5390_v1 }
 0x4c6   : > { %11893 = vmatmul.mubr.msk.f32.gmra.mrb[16].mxu1 %vm4548_vm2, %v5391_v17 }
 0x4c7   : > { %11895 = vmatprep.mubr.msk.f32.mxu1 %vm4548_vm2, %v5392_v18 }
 0x4ca   : > { %11896 = vmatmul.mubr.msk.f32.gmra.mrb[18].mxu1 %vm4548_vm2, %v5393_v3 }
 0x4cb   : > { %11898 = vmatprep.mubr.msk.f32.mxu1 %vm4548_vm2, %v5394_v19 }
 0x4ce   : > { %11899 = vmatmul.mubr.msk.f32.gmra.mrb[20].mxu1 %vm4548_vm2, %v5395_v0 }
 0x4cf   : > { %11901 = vmatprep.mubr.msk.f32.mxu1 %vm4548_vm2, %v5396_v20 }
 0x4d2   : > { %11902 = vmatmul.mubr.msk.f32.gmra.mrb[22].mxu1 %vm4548_vm2, %v5397_v21 }
 0x4d3   : > { %11904 = vmatprep.mubr.msk.f32.mxu1 %vm4548_vm2, %v5398_v22 }
 0x4d6   : > { %11905 = vmatmul.mubr.msk.f32.gmra.mrb[24].mxu1 %vm4548_vm2, %v5399_v23 }
 0x4d7   : > { %11907 = vmatprep.mubr.msk.f32.mxu1 %vm4548_vm2, %v5400_v24 }
 0x4da   : > { %11908 = vmatmul.mubr.msk.f32.gmra.mrb[26].mxu1 %vm4548_vm2, %v5401_v25 }
 0x4db   : > { %11910 = vmatprep.mubr.msk.f32.mxu1 %vm4548_vm2, %v5402_v13 }
 0x4de   : > { %11911 = vmatmul.mubr.msk.f32.gmra.mrb[28].mxu1 %vm4548_vm2, %v5403_v27 }
 0x4df   : > { %11913 = vmatprep.mubr.msk.f32.mxu1 %vm4548_vm2, %v5404_v28 }
 0x4e2   : > { %11914 = vmatmul.mubr.msk.f32.gmra.mrb[30].mxu1 %vm4548_vm2, %v5405_v30 }
 0x4e3   : > { %11916 = vmatprep.mubr.msk.f32.mxu1 %vm4548_vm2, %v5406_v16 }
 0x4e6   : > { %11917 = vmatmul.mubr.msk.f32.gmra.mrb[32].mxu1 %vm4548_vm2, %v5407_v31 }
 0x4e7   : > { %11919 = vmatprep.mubr.msk.f32.mxu1 %vm4548_vm2, %v5408_v32 }
 0x4ea   : > { %11920 = vmatmul.mubr.msk.f32.gmra.mrb[34].mxu1 %vm4548_vm2, %v5409_v61  ;;  %v6675_v61 = vld [vmem:[#allocation2 + $0xb4] sm:$0xff] }
 0x4eb   : > { %11924 = vmatprep.mubr.msk.f32.mxu1 %vm4548_vm2, %v14731_v2  ;;  %v6252_v2 = vld [vmem:[#allocation2 + $0xd3] sm:$0xff] }
 0x4ee   : > { %11925 = vmatmul.mubr.msk.f32.vlgmr.msra.gmra.mrb[0].mxu1 %vm4548_vm2, %v14737_v4  ;;  %v6253_v4 = vld [vmem:[#allocation2 + $0xdb] sm:$0xff] }
 0x4ef   : > { %11927 = vmatprep.mubr.msk.f32.mxu1 %vm4548_vm2, %v14741_v62  ;;  %11979 = vmatpush3.msra.mxu1 %v14728_v60  ;;  %v6251_v60 = vld [vmem:[#allocation2 + $0xcb] sm:$0xff]  ;;  %v6254_v62 = vld [vmem:[#allocation2 + $0xe3] sm:$0xff] }
 0x4f0   : > { %12034 = vmatprep.subr.mxu1 %v6692_v33 }
 0x4f2   : > { %11928 = vmatmul.mubr.msk.f32.gmra.mrb[2].mxu1 %vm4548_vm2, %v14745_v5  ;;  %v6255_v5 = vld [vmem:[#allocation2 + $0xeb] sm:$0xff] }
 0x4f3   : > { %11930 = vmatprep.mubr.msk.f32.mxu1 %vm4548_vm2, %v14749_v6  ;;  %v6256_v6 = vld [vmem:[#allocation2 + $0xf3] sm:$0xff] }
 0x4f6   : > { %11931 = vmatmul.mubr.msk.f32.gmra.mrb[4].mxu1 %vm4548_vm2, %v14753_v63  ;;  %v6257_v63 = vld [vmem:[#allocation2 + $0xfb] sm:$0xff] }
 0x4f7   : > { %11933 = vmatprep.mubr.msk.f32.mxu1 %vm4548_vm2, %v14757_v7  ;;  %v6258_v7 = vld [vmem:[#allocation2 + $0x103] sm:$0xff] }
 0x4fa   : > { %11934 = vmatmul.mubr.msk.f32.gmra.mrb[6].mxu1 %vm4548_vm2, %v14761_v8  ;;  %v6259_v8 = vld [vmem:[#allocation2 + $0x10b] sm:$0xff] }
 0x4fb   : > { %11936 = vmatprep.mubr.msk.f32.mxu1 %vm4548_vm2, %v14765_v9  ;;  %v6260_v9 = vld [vmem:[#allocation2 + $0x113] sm:$0xff] }
 0x4fe   : > { %11937 = vmatmul.mubr.msk.f32.gmra.mrb[8].mxu1 %vm4548_vm2, %v5385_v10  ;;  %v6261_v10 = vld [vmem:[#allocation2 + $0x11b] sm:$0xff] }
 0x4ff   : > { %11939 = vmatprep.mubr.msk.f32.mxu1 %vm4548_vm2, %v5386_v11  ;;  %v6262_v11 = vld [vmem:[#allocation2 + $0x123] sm:$0xff] }
 0x502   : > { %11940 = vmatmul.mubr.msk.f32.gmra.mrb[10].mxu1 %vm4548_vm2, %v5387_v12  ;;  %v6263_v12 = vld [vmem:[#allocation2 + $0x12b] sm:$0x3f] }
 0x503   : > { %11942 = vmatprep.mubr.msk.f32.mxu1 %vm4548_vm2, %v5388_v14  ;;  %v6655_v14 = vld [vmem:[#allocation2 + $0x14] sm:$0xff] }
 0x506   : > { %11943 = vmatmul.mubr.msk.f32.gmra.mrb[12].mxu1 %vm4548_vm2, %v5389_v15  ;;  %v6656_v15 = vld [vmem:[#allocation2 + $0x1c] sm:$0xff] }
 0x507   : > { %11945 = vmatprep.mubr.msk.f32.mxu1 %vm4548_vm2, %v5390_v1  ;;  %v14880_v1 = vld [vmem:[#allocation10 + $0x38] sm:$0xff] }
 0x50a   : > { %11946 = vmatmul.mubr.msk.f32.gmra.mrb[14].mxu1 %vm4548_vm2, %v5391_v17  ;;  %v14883_v17 = vld [vmem:[#allocation2 + $0x24] sm:$0xff] }
 0x50b   : > { %11948 = vmatprep.mubr.msk.f32.mxu1 %vm4548_vm2, %v5392_v18  ;;  %v14889_v18 = vld [vmem:[#allocation2 + $0x2c] sm:$0xff] }
 0x50e   : > { %11949 = vmatmul.mubr.msk.f32.gmra.mrb[16].mxu1 %vm4548_vm2, %v5393_v3  ;;  %v14893_v3 = vld [vmem:[#allocation2 + $0x34] sm:$0xff] }
 0x50f   : > { %11951 = vmatprep.mubr.msk.f32.mxu1 %vm4548_vm2, %v5394_v19  ;;  %v14897_v19 = vld [vmem:[#allocation2 + $0x3c] sm:$0xff] }
 0x512   : > { %11952 = vmatmul.mubr.msk.f32.gmra.mrb[18].mxu1 %vm4548_vm2, %v5395_v0  ;;  %v14901_v0 = vld [vmem:[#allocation2 + $0x44] sm:$0xff] }
 0x513   : > { %11954 = vmatprep.mubr.msk.f32.mxu1 %vm4548_vm2, %v5396_v20  ;;  %v14905_v20 = vld [vmem:[#allocation2 + $0x4c] sm:$0xff] }
 0x516   : > { %11955 = vmatmul.mubr.msk.f32.gmra.mrb[20].mxu1 %vm4548_vm2, %v5397_v21  ;;  %v14909_v21 = vld [vmem:[#allocation2 + $0x54] sm:$0xff] }
 0x517   : > { %11957 = vmatprep.mubr.msk.f32.mxu1 %vm4548_vm2, %v5398_v22  ;;  %v14913_v22 = vld [vmem:[#allocation2 + $0x5c] sm:$0xff] }
 0x51a   : > { %11958 = vmatmul.mubr.msk.f32.gmra.mrb[22].mxu1 %vm4548_vm2, %v5399_v23  ;;  %v14917_v23 = vld [vmem:[#allocation2 + $0x64] sm:$0xff] }
 0x51b   : > { %11960 = vmatprep.mubr.msk.f32.mxu1 %vm4548_vm2, %v5400_v24  ;;  %v6666_v24 = vld [vmem:[#allocation2 + $0x6c] sm:$0xff] }
 0x51e   : > { %11961 = vmatmul.mubr.msk.f32.gmra.mrb[24].mxu1 %vm4548_vm2, %v5401_v25  ;;  %v6667_v25 = vld [vmem:[#allocation2 + $0x74] sm:$0xff] }
 0x51f   : > { %11963 = vmatprep.mubr.msk.f32.mxu1 %vm4548_vm2, %v5402_v13  ;;  %v6668_v13 = vld [vmem:[#allocation2 + $0x7c] sm:$0xff] }
 0x522   : > { %11964 = vmatmul.mubr.msk.f32.gmra.mrb[26].mxu1 %vm4548_vm2, %v5403_v27  ;;  %v6669_v27 = vld [vmem:[#allocation2 + $0x84] sm:$0xff] }
 0x523   : > { %11966 = vmatprep.mubr.msk.f32.mxu1 %vm4548_vm2, %v5404_v28  ;;  %v6670_v28 = vld [vmem:[#allocation2 + $0x8c] sm:$0xff] }
 0x526   : > { %11967 = vmatmul.mubr.msk.f32.gmra.mrb[28].mxu1 %vm4548_vm2, %v5405_v30  ;;  %v6671_v30 = vld [vmem:[#allocation2 + $0x94] sm:$0xff] }
 0x527   : > { %11969 = vmatprep.mubr.msk.f32.mxu1 %vm4548_vm2, %v5406_v16  ;;  %v6672_v16 = vld [vmem:[#allocation2 + $0x9c] sm:$0xff] }
 0x52a   : > { %11970 = vmatmul.mubr.msk.f32.gmra.mrb[30].mxu1 %vm4548_vm2, %v5407_v31  ;;  %v6673_v31 = vld [vmem:[#allocation2 + $0xa4] sm:$0xff] }
 0x52b   : > { %11972 = vmatprep.mubr.msk.f32.mxu1 %vm4548_vm2, %v5408_v32  ;;  %v6674_v32 = vld [vmem:[#allocation2 + $0xac] sm:$0xff] }
 0x52e   : > { %11973 = vmatmul.mubr.msk.f32.gmra.mrb[32].mxu1 %vm4548_vm2, %v5834_v34  ;;  %v6677_v34 = vld [vmem:[#allocation2 + $0xc4] sm:$0xff] }
 0x52f   : > { %11975 = vmatprep.mubr.msk.f32.mxu1 %vm4548_vm2, %v5835_v35  ;;  %v6678_v35 = vld [vmem:[#allocation2 + $0xcc] sm:$0xff] }
 0x532   : > { %11976 = vmatmul.mubr.msk.f32.gmra.mrb[34].mxu1 %vm4548_vm2, %v5836_v36  ;;  %v6679_v36 = vld [vmem:[#allocation2 + $0xd4] sm:$0xff] }
 0x533   : > { %11980 = vmatprep.mubr.msk.f32.mxu1 %vm4548_vm2, %v6228_v37  ;;  %v6680_v37 = vld [vmem:[#allocation2 + $0xdc] sm:$0xff] }
 0x536   : > { %11981 = vmatmul.mubr.msk.f32.vlgmr.msra.gmra.mrb[0].mxu1 %vm4548_vm2, %v6229_v26  ;;  %v6681_v26 = vld [vmem:[#allocation2 + $0xe4] sm:$0xff] }
 0x537   : > { %11983 = vmatprep.mubr.msk.f32.mxu1 %vm4548_vm2, %v6230_v39  ;;  %12035 = vmatpush3.msra.mxu1 %v6692_v33  ;;  %v6676_v33 = vld [vmem:[#allocation2 + $0xbc] sm:$0xff]  ;;  %v6683_v39 = vld [vmem:[#allocation2 + $0xf4] sm:$0xff] }
 0x538   : > { %12090 = vmatprep.subr.mxu1 %v14841_v38 }
 0x53a   : > { %11984 = vmatmul.mubr.msk.f32.gmra.mrb[2].mxu1 %vm4548_vm2, %v6231_v29  ;;  %v6684_v29 = vld [vmem:[#allocation2 + $0xfc] sm:$0xff] }
 0x53b   : > { %11986 = vmatprep.mubr.msk.f32.mxu1 %vm4548_vm2, %v6232_v40  ;;  %v6685_v40 = vld [vmem:[#allocation2 + $0x104] sm:$0xff] }
 0x53e   : > { %11987 = vmatmul.mubr.msk.f32.gmra.mrb[4].mxu1 %vm4548_vm2, %v6233_v41  ;;  %v6686_v41 = vld [vmem:[#allocation2 + $0x10c] sm:$0xff] }
 0x53f   : > { %11989 = vmatprep.mubr.msk.f32.mxu1 %vm4548_vm2, %v6234_v42  ;;  %v6687_v42 = vld [vmem:[#allocation2 + $0x114] sm:$0xff] }
 0x542   : > { %11990 = vmatmul.mubr.msk.f32.gmra.mrb[6].mxu1 %vm4548_vm2, %v6235_v44  ;;  %v6688_v44 = vld [vmem:[#allocation2 + $0x11c] sm:$0xff] }
 0x543   : > { %11992 = vmatprep.mubr.msk.f32.mxu1 %vm4548_vm2, %v6236_v45  ;;  %v6689_v45 = vld [vmem:[#allocation2 + $0x124] sm:$0xff] }
 0x546   : > { %11993 = vmatmul.mubr.msk.f32.gmra.mrb[8].mxu1 %vm4548_vm2, %v6237_v47  ;;  %v6690_v47 = vld [vmem:[#allocation2 + $0x12c] sm:$0x3f] }
 0x547   : > { %11995 = vmatprep.mubr.msk.f32.mxu1 %vm4548_vm2, %v6238_v49  ;;  %v7973_v49 = vld [vmem:[#allocation10 + $0x40] sm:$0xff] }
 0x54a   : > { %11996 = vmatmul.mubr.msk.f32.gmra.mrb[10].mxu1 %vm4548_vm2, %v6239_v43  ;;  %v7116_v43 = vld [vmem:[#allocation2 + $0x134] sm:$0xff] }
 0x54b   : > { %11998 = vmatprep.mubr.msk.f32.mxu1 %vm4548_vm2, %v6240_v50  ;;  %v7115_v50 = vld [vmem:[#allocation2 + $0x12c] sm:$0xff] }
 0x54e   : > { %11999 = vmatmul.mubr.msk.f32.gmra.mrb[12].mxu1 %vm4548_vm2, %v6241_v51  ;;  %v7117_v51 = vld [vmem:[#allocation2 + $0x13c] sm:$0x3f] }
 0x54f   : > { %12001 = vmatprep.mubr.msk.f32.mxu1 %vm4548_vm2, %v6242_v46  ;;  %v7509_v46 = vld [vmem:[#allocation2 + $0x25] sm:$0xff] }
 0x552   : > { %12002 = vmatmul.mubr.msk.f32.gmra.mrb[14].mxu1 %vm4548_vm2, %v6243_v52  ;;  %v7510_v52 = vld [vmem:[#allocation2 + $0x2d] sm:$0xff] }
 0x553   : > { %12004 = vmatprep.mubr.msk.f32.mxu1 %vm4548_vm2, %v6244_v53  ;;  %v7511_v53 = vld [vmem:[#allocation2 + $0x35] sm:$0xff] }
 0x556   : > { %12005 = vmatmul.mubr.msk.f32.gmra.mrb[16].mxu1 %vm4548_vm2, %v6245_v54  ;;  %v7512_v54 = vld [vmem:[#allocation2 + $0x3d] sm:$0xff] }
 0x557   : > { %12007 = vmatprep.mubr.msk.f32.mxu1 %vm4548_vm2, %v6246_v55  ;;  %v7513_v55 = vld [vmem:[#allocation2 + $0x45] sm:$0xff] }
 0x55a   : > { %12008 = vmatmul.mubr.msk.f32.gmra.mrb[18].mxu1 %vm4548_vm2, %v6247_v56  ;;  %v7514_v56 = vld [vmem:[#allocation2 + $0x4d] sm:$0xff] }
 0x55b   : > { %12010 = vmatprep.mubr.msk.f32.mxu1 %vm4548_vm2, %v6248_v57  ;;  %v7515_v57 = vld [vmem:[#allocation2 + $0x55] sm:$0xff] }
 0x55e   : > { %12011 = vmatmul.mubr.msk.f32.gmra.mrb[20].mxu1 %vm4548_vm2, %v6249_v58  ;;  %v7516_v58 = vld [vmem:[#allocation2 + $0x5d] sm:$0xff] }
 0x55f   : > { %12013 = vmatprep.mubr.msk.f32.mxu1 %vm4548_vm2, %v6250_v59  ;;  %v7517_v59 = vld [vmem:[#allocation2 + $0x65] sm:$0xff] }
 0x562   : > { %12014 = vmatmul.mubr.msk.f32.gmra.mrb[22].mxu1 %vm4548_vm2, %v6251_v60  ;;  %v7518_v60 = vld [vmem:[#allocation2 + $0x6d] sm:$0xff] }
 0x563   : > { %12016 = vmatprep.mubr.msk.f32.mxu1 %vm4548_vm2, %v6252_v2  ;;  %v7519_v2 = vld [vmem:[#allocation2 + $0x75] sm:$0xff] }
 0x566   : > { %12017 = vmatmul.mubr.msk.f32.gmra.mrb[24].mxu1 %vm4548_vm2, %v6253_v4  ;;  %v7520_v4 = vld [vmem:[#allocation2 + $0x7d] sm:$0xff] }
 0x567   : > { %12019 = vmatprep.mubr.msk.f32.mxu1 %vm4548_vm2, %v6254_v62  ;;  %v7521_v62 = vld [vmem:[#allocation2 + $0x85] sm:$0xff] }
 0x56a   : > { %12020 = vmatmul.mubr.msk.f32.gmra.mrb[26].mxu1 %vm4548_vm2, %v6255_v5  ;;  %v7522_v5 = vld [vmem:[#allocation2 + $0x8d] sm:$0xff] }
 0x56b   : > { %12022 = vmatprep.mubr.msk.f32.mxu1 %vm4548_vm2, %v6256_v6  ;;  %v7523_v6 = vld [vmem:[#allocation2 + $0x95] sm:$0xff] }
 0x56e   : > { %12023 = vmatmul.mubr.msk.f32.gmra.mrb[28].mxu1 %vm4548_vm2, %v6257_v63  ;;  %v7524_v63 = vld [vmem:[#allocation2 + $0x9d] sm:$0xff] }
 0x56f   : > { %12025 = vmatprep.mubr.msk.f32.mxu1 %vm4548_vm2, %v6258_v7  ;;  %v7525_v7 = vld [vmem:[#allocation2 + $0xa5] sm:$0xff] }
 0x572   : > { %12026 = vmatmul.mubr.msk.f32.gmra.mrb[30].mxu1 %vm4548_vm2, %v6259_v8  ;;  %v7526_v8 = vld [vmem:[#allocation2 + $0xad] sm:$0xff] }
 0x573   : > { %12028 = vmatprep.mubr.msk.f32.mxu1 %vm4548_vm2, %v6260_v9  ;;  %v7527_v9 = vld [vmem:[#allocation2 + $0xb5] sm:$0xff] }
 0x576   : > { %12029 = vmatmul.mubr.msk.f32.gmra.mrb[32].mxu1 %vm4548_vm2, %v6261_v10  ;;  %v7528_v10 = vld [vmem:[#allocation2 + $0xbd] sm:$0xff] }
 0x577   : > { %12031 = vmatprep.mubr.msk.f32.mxu1 %vm4548_vm2, %v6262_v11  ;;  %v7529_v11 = vld [vmem:[#allocation2 + $0xc5] sm:$0xff] }
 0x57a   : > { %12032 = vmatmul.mubr.msk.f32.gmra.mrb[34].mxu1 %vm4548_vm2, %v6263_v12  ;;  %v7530_v12 = vld [vmem:[#allocation2 + $0xcd] sm:$0xff] }
 0x57b   : > { %12036 = vmatprep.mubr.msk.f32.mxu1 %vm4548_vm2, %v6655_v14  ;;  %v7531_v14 = vld [vmem:[#allocation2 + $0xd5] sm:$0xff] }
 0x57e   : > { %12037 = vmatmul.mubr.msk.f32.vlgmr.msra.gmra.mrb[0].mxu1 %vm4548_vm2, %v6656_v15  ;;  %v7532_v15 = vld [vmem:[#allocation2 + $0xdd] sm:$0xff] }
 0x57f   : > { %12039 = vmatprep.mubr.msk.f32.mxu1 %vm4548_vm2, %v14883_v17  ;;  %12091 = vmatpush3.msra.mxu1 %v14841_v38  ;;  %v6682_v38 = vld [vmem:[#allocation2 + $0xec] sm:$0xff] }
 0x580   : > { %12146 = vmatprep.subr.mxu1 %v14880_v1 }
 0x582   : > { %12040 = vmatmul.mubr.msk.f32.gmra.mrb[2].mxu1 %vm4548_vm2, %v14889_v18 }
 0x583   : > { %12042 = vmatprep.mubr.msk.f32.mxu1 %vm4548_vm2, %v14893_v3 }
 0x586   : > { %12043 = vmatmul.mubr.msk.f32.gmra.mrb[4].mxu1 %vm4548_vm2, %v14897_v19 }
 0x587   : > { %12045 = vmatprep.mubr.msk.f32.mxu1 %vm4548_vm2, %v14901_v0 }
 0x58a   : > { %12046 = vmatmul.mubr.msk.f32.gmra.mrb[6].mxu1 %vm4548_vm2, %v14905_v20 }
 0x58b   : > { %12048 = vmatprep.mubr.msk.f32.mxu1 %vm4548_vm2, %v14909_v21 }
 0x58e   : > { %12049 = vmatmul.mubr.msk.f32.gmra.mrb[8].mxu1 %vm4548_vm2, %v14913_v22 }
 0x58f   : > { %12051 = vmatprep.mubr.msk.f32.mxu1 %vm4548_vm2, %v14917_v23 }
 0x592   : > { %12052 = vmatmul.mubr.msk.f32.gmra.mrb[10].mxu1 %vm4548_vm2, %v6666_v24 }
 0x593   : > { %12054 = vmatprep.mubr.msk.f32.mxu1 %vm4548_vm2, %v6667_v25 }
 0x596   : > { %12055 = vmatmul.mubr.msk.f32.gmra.mrb[12].mxu1 %vm4548_vm2, %v6668_v13 }
 0x597   : > { %12057 = vmatprep.mubr.msk.f32.mxu1 %vm4548_vm2, %v6669_v27 }
 0x59a   : > { %12058 = vmatmul.mubr.msk.f32.gmra.mrb[14].mxu1 %vm4548_vm2, %v6670_v28 }
 0x59b   : > { %12060 = vmatprep.mubr.msk.f32.mxu1 %vm4548_vm2, %v6671_v30 }
 0x59e   : > { %12061 = vmatmul.mubr.msk.f32.gmra.mrb[16].mxu1 %vm4548_vm2, %v6672_v16 }
 0x59f   : > { %12063 = vmatprep.mubr.msk.f32.mxu1 %vm4548_vm2, %v6673_v31 }
 0x5a2   : > { %12064 = vmatmul.mubr.msk.f32.gmra.mrb[18].mxu1 %vm4548_vm2, %v6674_v32 }
 0x5a3   : > { %12066 = vmatprep.mubr.msk.f32.mxu1 %vm4548_vm2, %v6675_v61 }
 0x5a6   : > { %12067 = vmatmul.mubr.msk.f32.gmra.mrb[20].mxu1 %vm4548_vm2, %v6676_v33 }
 0x5a7   : > { %12069 = vmatprep.mubr.msk.f32.mxu1 %vm4548_vm2, %v6677_v34 }
 0x5aa   : > { %12070 = vmatmul.mubr.msk.f32.gmra.mrb[22].mxu1 %vm4548_vm2, %v6678_v35 }
 0x5ab   : > { %12072 = vmatprep.mubr.msk.f32.mxu1 %vm4548_vm2, %v6679_v36 }
 0x5ae   : > { %12073 = vmatmul.mubr.msk.f32.gmra.mrb[24].mxu1 %vm4548_vm2, %v6680_v37 }
 0x5af   : > { %12075 = vmatprep.mubr.msk.f32.mxu1 %vm4548_vm2, %v6681_v26 }
 0x5b2   : > { %12076 = vmatmul.mubr.msk.f32.gmra.mrb[26].mxu1 %vm4548_vm2, %v6682_v38 }
 0x5b3   : > { %12078 = vmatprep.mubr.msk.f32.mxu1 %vm4548_vm2, %v6683_v39 }
 0x5b6   : > { %12079 = vmatmul.mubr.msk.f32.gmra.mrb[28].mxu1 %vm4548_vm2, %v6684_v29 }
 0x5b7   : > { %12081 = vmatprep.mubr.msk.f32.mxu1 %vm4548_vm2, %v6685_v40 }
 0x5ba   : > { %12082 = vmatmul.mubr.msk.f32.gmra.mrb[30].mxu1 %vm4548_vm2, %v6686_v41 }
 0x5bb   : > { %12084 = vmatprep.mubr.msk.f32.mxu1 %vm4548_vm2, %v6687_v42 }
 0x5be   : > { %12085 = vmatmul.mubr.msk.f32.gmra.mrb[32].mxu1 %vm4548_vm2, %v6688_v44 }
 0x5bf   : > { %12087 = vmatprep.mubr.msk.f32.mxu1 %vm4548_vm2, %v6689_v45 }
 0x5c2   : > { %12088 = vmatmul.mubr.msk.f32.gmra.mrb[34].mxu1 %vm4548_vm2, %v6690_v47  ;;  %v7958_v47 = vld [vmem:[#allocation2 + $0xd6] sm:$0xff] }
 0x5c3   : > { %12092 = vmatprep.mubr.msk.f32.mxu1 %vm4548_vm2, %v14883_v17  ;;  %v7534_v17 = vld [vmem:[#allocation2 + $0xed] sm:$0xff] }
 0x5c6   : > { %12093 = vmatmul.mubr.msk.f32.vlgmr.msra.gmra.mrb[0].mxu1 %vm4548_vm2, %v14889_v18  ;;  %v7535_v18 = vld [vmem:[#allocation2 + $0xf5] sm:$0xff] }
 0x5c7   : > { %12095 = vmatprep.mubr.msk.f32.mxu1 %vm4548_vm2, %v14893_v3  ;;  %12147 = vmatpush3.msra.mxu1 %v14880_v1  ;;  %v7533_v1 = vld [vmem:[#allocation2 + $0xe5] sm:$0xff]  ;;  %v7536_v3 = vld [vmem:[#allocation2 + $0xfd] sm:$0xff] }
 0x5c8   : > { %12202 = vmatprep.subr.mxu1 %v7973_v49 }
 0x5ca   : > { %12096 = vmatmul.mubr.msk.f32.gmra.mrb[2].mxu1 %vm4548_vm2, %v14897_v19  ;;  %v7537_v19 = vld [vmem:[#allocation2 + $0x105] sm:$0xff] }
 0x5cb   : > { %12098 = vmatprep.mubr.msk.f32.mxu1 %vm4548_vm2, %v14901_v0  ;;  %v7538_v0 = vld [vmem:[#allocation2 + $0x10d] sm:$0xff] }
 0x5ce   : > { %12099 = vmatmul.mubr.msk.f32.gmra.mrb[4].mxu1 %vm4548_vm2, %v14905_v20  ;;  %v7539_v20 = vld [vmem:[#allocation2 + $0x115] sm:$0xff] }
 0x5cf   : > { %12101 = vmatprep.mubr.msk.f32.mxu1 %vm4548_vm2, %v14909_v21  ;;  %v7540_v21 = vld [vmem:[#allocation2 + $0x11d] sm:$0xff] }
 0x5d2   : > { %12102 = vmatmul.mubr.msk.f32.gmra.mrb[6].mxu1 %vm4548_vm2, %v14913_v22  ;;  %v7541_v22 = vld [vmem:[#allocation2 + $0x125] sm:$0xff] }
 0x5d3   : > { %12104 = vmatprep.mubr.msk.f32.mxu1 %vm4548_vm2, %v14917_v23  ;;  %v7543_v23 = vld [vmem:[#allocation2 + $0x135] sm:$0xff] }
 0x5d6   : > { %12105 = vmatmul.mubr.msk.f32.gmra.mrb[8].mxu1 %vm4548_vm2, %v6666_v24  ;;  %v7542_v24 = vld [vmem:[#allocation2 + $0x12d] sm:$0xff] }
 0x5d7   : > { %12107 = vmatprep.mubr.msk.f32.mxu1 %vm4548_vm2, %v6667_v25  ;;  %v7544_v25 = vld [vmem:[#allocation2 + $0x13d] sm:$0x3f] }
 0x5da   : > { %12108 = vmatmul.mubr.msk.f32.gmra.mrb[10].mxu1 %vm4548_vm2, %v6668_v13  ;;  %v7936_v13 = vld [vmem:[#allocation2 + $0x26] sm:$0xff] }
 0x5db   : > { %12110 = vmatprep.mubr.msk.f32.mxu1 %vm4548_vm2, %v6669_v27  ;;  %v7937_v27 = vld [vmem:[#allocation2 + $0x2e] sm:$0xff] }
 0x5de   : > { %12111 = vmatmul.mubr.msk.f32.gmra.mrb[12].mxu1 %vm4548_vm2, %v6670_v28  ;;  %v7938_v28 = vld [vmem:[#allocation2 + $0x36] sm:$0xff] }
 0x5df   : > { %12113 = vmatprep.mubr.msk.f32.mxu1 %vm4548_vm2, %v6671_v30  ;;  %v7939_v30 = vld [vmem:[#allocation2 + $0x3e] sm:$0xff] }
 0x5e2   : > { %12114 = vmatmul.mubr.msk.f32.gmra.mrb[14].mxu1 %vm4548_vm2, %v6672_v16  ;;  %v7940_v16 = vld [vmem:[#allocation2 + $0x46] sm:$0xff] }
 0x5e3   : > { %12116 = vmatprep.mubr.msk.f32.mxu1 %vm4548_vm2, %v6673_v31  ;;  %v7941_v31 = vld [vmem:[#allocation2 + $0x4e] sm:$0xff] }
 0x5e6   : > { %12117 = vmatmul.mubr.msk.f32.gmra.mrb[16].mxu1 %vm4548_vm2, %v6674_v32  ;;  %v7942_v32 = vld [vmem:[#allocation2 + $0x56] sm:$0xff] }
 0x5e7   : > { %12119 = vmatprep.mubr.msk.f32.mxu1 %vm4548_vm2, %v6675_v61  ;;  %v7943_v61 = vld [vmem:[#allocation2 + $0x5e] sm:$0xff] }
 0x5ea   : > { %12120 = vmatmul.mubr.msk.f32.gmra.mrb[18].mxu1 %vm4548_vm2, %v6676_v33  ;;  %v7944_v33 = vld [vmem:[#allocation2 + $0x66] sm:$0xff] }
 0x5eb   : > { %12122 = vmatprep.mubr.msk.f32.mxu1 %vm4548_vm2, %v6677_v34  ;;  %v7945_v34 = vld [vmem:[#allocation2 + $0x6e] sm:$0xff] }
 0x5ee   : > { %12123 = vmatmul.mubr.msk.f32.gmra.mrb[20].mxu1 %vm4548_vm2, %v6678_v35  ;;  %v7946_v35 = vld [vmem:[#allocation2 + $0x76] sm:$0xff] }
 0x5ef   : > { %12125 = vmatprep.mubr.msk.f32.mxu1 %vm4548_vm2, %v6679_v36  ;;  %v7947_v36 = vld [vmem:[#allocation2 + $0x7e] sm:$0xff] }
 0x5f2   : > { %12126 = vmatmul.mubr.msk.f32.gmra.mrb[22].mxu1 %vm4548_vm2, %v6680_v37  ;;  %v7948_v37 = vld [vmem:[#allocation2 + $0x86] sm:$0xff] }
 0x5f3   : > { %12128 = vmatprep.mubr.msk.f32.mxu1 %vm4548_vm2, %v6681_v26  ;;  %v7949_v26 = vld [vmem:[#allocation2 + $0x8e] sm:$0xff] }
 0x5f6   : > { %12129 = vmatmul.mubr.msk.f32.gmra.mrb[24].mxu1 %vm4548_vm2, %v6682_v38  ;;  %v7950_v38 = vld [vmem:[#allocation2 + $0x96] sm:$0xff] }
 0x5f7   : > { %12131 = vmatprep.mubr.msk.f32.mxu1 %vm4548_vm2, %v6683_v39  ;;  %v7951_v39 = vld [vmem:[#allocation2 + $0x9e] sm:$0xff] }
 0x5fa   : > { %12132 = vmatmul.mubr.msk.f32.gmra.mrb[26].mxu1 %vm4548_vm2, %v6684_v29  ;;  %v7952_v29 = vld [vmem:[#allocation2 + $0xa6] sm:$0xff] }
 0x5fb   : > { %12134 = vmatprep.mubr.msk.f32.mxu1 %vm4548_vm2, %v6685_v40  ;;  %v7953_v40 = vld [vmem:[#allocation2 + $0xae] sm:$0xff] }
 0x5fe   : > { %12135 = vmatmul.mubr.msk.f32.gmra.mrb[28].mxu1 %vm4548_vm2, %v6686_v41  ;;  %v7954_v41 = vld [vmem:[#allocation2 + $0xb6] sm:$0xff] }
 0x5ff   : > { %12137 = vmatprep.mubr.msk.f32.mxu1 %vm4548_vm2, %v6687_v42  ;;  %v7955_v42 = vld [vmem:[#allocation2 + $0xbe] sm:$0xff] }
 0x602   : > { %12138 = vmatmul.mubr.msk.f32.gmra.mrb[30].mxu1 %vm4548_vm2, %v6688_v44  ;;  %v7956_v44 = vld [vmem:[#allocation2 + $0xc6] sm:$0xff] }
 0x603   : > { %12140 = vmatprep.mubr.msk.f32.mxu1 %vm4548_vm2, %v6689_v45  ;;  %v7957_v45 = vld [vmem:[#allocation2 + $0xce] sm:$0xff] }
 0x606   : > { %12141 = vmatmul.mubr.msk.f32.gmra.mrb[32].mxu1 %vm4548_vm2, %v7115_v50  ;;  %v7961_v50 = vld [vmem:[#allocation2 + $0xee] sm:$0xff] }
 0x607   : > { %12143 = vmatprep.mubr.msk.f32.mxu1 %vm4548_vm2, %v7116_v43  ;;  %v7960_v43 = vld [vmem:[#allocation2 + $0xe6] sm:$0xff] }
 0x60a   : > { %12144 = vmatmul.mubr.msk.f32.gmra.mrb[34].mxu1 %vm4548_vm2, %v7117_v51  ;;  %v7962_v51 = vld [vmem:[#allocation2 + $0xf6] sm:$0xff] }
 0x60b   : > { %12148 = vmatprep.mubr.msk.f32.mxu1 %vm4548_vm2, %v7509_v46  ;;  %v7963_v46 = vld [vmem:[#allocation2 + $0xfe] sm:$0xff] }
 0x60e   : > { %12149 = vmatmul.mubr.msk.f32.vlgmr.msra.gmra.mrb[0].mxu1 %vm4548_vm2, %v7510_v52  ;;  %v7964_v52 = vld [vmem:[#allocation2 + $0x106] sm:$0xff] }
 0x60f   : > { %12151 = vmatprep.mubr.msk.f32.mxu1 %vm4548_vm2, %v7511_v53  ;;  %12203 = vmatpush3.msra.mxu1 %v7973_v49  ;;  %v7959_v49 = vld [vmem:[#allocation2 + $0xde] sm:$0xff]  ;;  %v7965_v53 = vld [vmem:[#allocation2 + $0x10e] sm:$0xff] }
 0x612   : > { %12152 = vmatmul.mubr.msk.f32.gmra.mrb[2].mxu1 %vm4548_vm2, %v7512_v54  ;;  %v7966_v54 = vld [vmem:[#allocation2 + $0x116] sm:$0xff] }
 0x613   : > { %12154 = vmatprep.mubr.msk.f32.mxu1 %vm4548_vm2, %v7513_v55  ;;  %v7967_v55 = vld [vmem:[#allocation2 + $0x11e] sm:$0xff] }
 0x616   : > { %12155 = vmatmul.mubr.msk.f32.gmra.mrb[4].mxu1 %vm4548_vm2, %v7514_v56  ;;  %v7968_v56 = vld [vmem:[#allocation2 + $0x126] sm:$0xff] }
 0x617   : > { %12157 = vmatprep.mubr.msk.f32.mxu1 %vm4548_vm2, %v7515_v57  ;;  %v7970_v57 = vld [vmem:[#allocation2 + $0x136] sm:$0xff] }
 0x61a   : > { %12158 = vmatmul.mubr.msk.f32.gmra.mrb[6].mxu1 %vm4548_vm2, %v7516_v58  ;;  %v7969_v58 = vld [vmem:[#allocation2 + $0x12e] sm:$0xff] }
 0x61b   : > { %12160 = vmatprep.mubr.msk.f32.mxu1 %vm4548_vm2, %v7517_v59  ;;  %v7971_v59 = vld [vmem:[#allocation2 + $0x13e] sm:$0x3f] }
 0x61e   : > { %12161 = vmatmul.mubr.msk.f32.gmra.mrb[8].mxu1 %vm4548_vm2, %v7518_v60  ;;  %v13452_v60 = vmov 0.0|0.0  }
 0x61f   : > { %12163 = vmatprep.mubr.msk.f32.mxu1 %vm4548_vm2, %v7519_v2  ;;  %12370 = vmatprep.subr.bf16.mxu0 %v13452_v60  ;;  %v15070_v2 = vld [vmem:[#allocation12] ss:$0 sm:$0xff] }
 0x620   : > { %12373 = vmatprep.subr.bf16.mxu1 %v13452_v60 }
 0x622   : > { %12164 = vmatmul.mubr.msk.f32.gmra.mrb[10].mxu1 %vm4548_vm2, %v7520_v4 }
 0x623   : > { %12166 = vmatprep.mubr.msk.f32.mxu1 %vm4548_vm2, %v7521_v62 }
 0x626   : > { %12167 = vmatmul.mubr.msk.f32.gmra.mrb[12].mxu1 %vm4548_vm2, %v7522_v5 }
 0x627   : > { %12169 = vmatprep.mubr.msk.f32.mxu1 %vm4548_vm2, %v7523_v6 }
 0x62a   : > { %12170 = vmatmul.mubr.msk.f32.gmra.mrb[14].mxu1 %vm4548_vm2, %v7524_v63 }
 0x62b   : > { %12172 = vmatprep.mubr.msk.f32.mxu1 %vm4548_vm2, %v7525_v7 }
 0x62e   : > { %12173 = vmatmul.mubr.msk.f32.gmra.mrb[16].mxu1 %vm4548_vm2, %v7526_v8 }
 0x62f   : > { %12175 = vmatprep.mubr.msk.f32.mxu1 %vm4548_vm2, %v7527_v9 }
 0x632   : > { %12176 = vmatmul.mubr.msk.f32.gmra.mrb[18].mxu1 %vm4548_vm2, %v7528_v10 }
 0x633   : > { %12178 = vmatprep.mubr.msk.f32.mxu1 %vm4548_vm2, %v7529_v11 }
 0x636   : > { %12179 = vmatmul.mubr.msk.f32.gmra.mrb[20].mxu1 %vm4548_vm2, %v7530_v12 }
 0x637   : > { %12181 = vmatprep.mubr.msk.f32.mxu1 %vm4548_vm2, %v7531_v14 }
 0x63a   : > { %12182 = vmatmul.mubr.msk.f32.gmra.mrb[22].mxu1 %vm4548_vm2, %v7532_v15 }
 0x63b   : > { %12184 = vmatprep.mubr.msk.f32.mxu1 %vm4548_vm2, %v7533_v1 }
 0x63e   : > { %12185 = vmatmul.mubr.msk.f32.gmra.mrb[24].mxu1 %vm4548_vm2, %v7534_v17 }
 0x63f   : > { %12187 = vmatprep.mubr.msk.f32.mxu1 %vm4548_vm2, %v7535_v18 }
 0x642   : > { %12188 = vmatmul.mubr.msk.f32.gmra.mrb[26].mxu1 %vm4548_vm2, %v7536_v3 }
 0x643   : > { %12190 = vmatprep.mubr.msk.f32.mxu1 %vm4548_vm2, %v7537_v19 }
 0x646   : > { %12191 = vmatmul.mubr.msk.f32.gmra.mrb[28].mxu1 %vm4548_vm2, %v7538_v0 }
 0x647   : > { %12193 = vmatprep.mubr.msk.f32.mxu1 %vm4548_vm2, %v7539_v20 }
 0x64a   : > { %12194 = vmatmul.mubr.msk.f32.gmra.mrb[30].mxu1 %vm4548_vm2, %v7540_v21 }
 0x64b   : > { %12196 = vmatprep.mubr.msk.f32.mxu1 %vm4548_vm2, %v7541_v22 }
 0x64e   : > { %12197 = vmatmul.mubr.msk.f32.gmra.mrb[32].mxu1 %vm4548_vm2, %v7542_v24 }
 0x64f   : > { %12199 = vmatprep.mubr.msk.f32.mxu1 %vm4548_vm2, %v7543_v23 }
 0x652   : > { %12200 = vmatmul.mubr.msk.f32.gmra.mrb[34].mxu1 %vm4548_vm2, %v7544_v25 }
 0x653   : > { %12204 = vmatprep.mubr.msk.f32.mxu1 %vm4548_vm2, %v7936_v13 }
 0x656   : > { %12205 = vmatmul.mubr.msk.f32.vlgmr.msra.gmra.mrb[0].mxu1 %vm4548_vm2, %v7937_v27 }
 0x657   : > { %12207 = vmatprep.mubr.msk.f32.mxu1 %vm4548_vm2, %v7938_v28 }
 0x65a   : > { %12208 = vmatmul.mubr.msk.f32.gmra.mrb[2].mxu1 %vm4548_vm2, %v7939_v30 }
 0x65b   : > { %12210 = vmatprep.mubr.msk.f32.mxu1 %vm4548_vm2, %v7940_v16 }
 0x65e   : > { %12211 = vmatmul.mubr.msk.f32.gmra.mrb[4].mxu1 %vm4548_vm2, %v7941_v31 }
 0x65f   : > { %12213 = vmatprep.mubr.msk.f32.mxu1 %vm4548_vm2, %v7942_v32 }
 0x662   : > { %12214 = vmatmul.mubr.msk.f32.gmra.mrb[6].mxu1 %vm4548_vm2, %v7943_v61 }
 0x663   : > { %12216 = vmatprep.mubr.msk.f32.mxu1 %vm4548_vm2, %v7944_v33 }
 0x666   : > { %12217 = vmatmul.mubr.msk.f32.gmra.mrb[8].mxu1 %vm4548_vm2, %v7945_v34 }
 0x667   : > { %12219 = vmatprep.mubr.msk.f32.mxu1 %vm4548_vm2, %v7946_v35 }
 0x66a   : > { %12220 = vmatmul.mubr.msk.f32.gmra.mrb[10].mxu1 %vm4548_vm2, %v7947_v36 }
 0x66b   : > { %12222 = vmatprep.mubr.msk.f32.mxu1 %vm4548_vm2, %v7948_v37 }
 0x66e   : > { %12223 = vmatmul.mubr.msk.f32.gmra.mrb[12].mxu1 %vm4548_vm2, %v7949_v26 }
 0x66f   : > { %12225 = vmatprep.mubr.msk.f32.mxu1 %vm4548_vm2, %v7950_v38 }
 0x672   : > { %12226 = vmatmul.mubr.msk.f32.gmra.mrb[14].mxu1 %vm4548_vm2, %v7951_v39 }
 0x673   : > { %12228 = vmatprep.mubr.msk.f32.mxu1 %vm4548_vm2, %v7952_v29 }
 0x676   : > { %12229 = vmatmul.mubr.msk.f32.gmra.mrb[16].mxu1 %vm4548_vm2, %v7953_v40 }
 0x677   : > { %12231 = vmatprep.mubr.msk.f32.mxu1 %vm4548_vm2, %v7954_v41 }
 0x67a   : > { %12232 = vmatmul.mubr.msk.f32.gmra.mrb[18].mxu1 %vm4548_vm2, %v7955_v42 }
 0x67b   : > { %12234 = vmatprep.mubr.msk.f32.mxu1 %vm4548_vm2, %v7956_v44 }
 0x67e   : > { %12235 = vmatmul.mubr.msk.f32.gmra.mrb[20].mxu1 %vm4548_vm2, %v7957_v45 }
 0x67f   : > { %12237 = vmatprep.mubr.msk.f32.mxu1 %vm4548_vm2, %v7958_v47  ;;  %v15098_v47 = vld [vmem:[#allocation15] sm:$0xff] }
 0x682   : > { %12238 = vmatmul.mubr.msk.f32.gmra.mrb[22].mxu1 %vm4548_vm2, %v7959_v49  ;;  %v15100_v49 = vld [vmem:[#allocation16] sm:$0xff] }
 0x683   : > { %12240 = vmatprep.mubr.msk.f32.mxu1 %vm4548_vm2, %v7960_v43 }
 0x686   : > { %12241 = vmatmul.mubr.msk.f32.gmra.mrb[24].mxu1 %vm4548_vm2, %v7961_v50 }
 0x687   : > { %12243 = vmatprep.mubr.msk.f32.mxu1 %vm4548_vm2, %v7962_v51 }
 0x68a   : > { %12244 = vmatmul.mubr.msk.f32.gmra.mrb[26].mxu1 %vm4548_vm2, %v7963_v46 }
 0x68b   : > { %12246 = vmatprep.mubr.msk.f32.mxu1 %vm4548_vm2, %v7964_v52 }
 0x68e   : > { %12247 = vmatmul.mubr.msk.f32.gmra.mrb[28].mxu1 %vm4548_vm2, %v7965_v53 }
 0x68f   : > { %12249 = vmatprep.mubr.msk.f32.mxu1 %vm4548_vm2, %v7966_v54 }
 0x692   : > { %12250 = vmatmul.mubr.msk.f32.gmra.mrb[30].mxu1 %vm4548_vm2, %v7967_v55 }
 0x693   : > { %12252 = vmatprep.mubr.msk.f32.mxu1 %vm4548_vm2, %v7968_v56 }
 0x696   : > { %12253 = vmatmul.mubr.msk.f32.gmra.mrb[32].mxu1 %vm4548_vm2, %v7969_v58 }
 0x697   : > { %12255 = vmatprep.mubr.msk.f32.mxu1 %vm4548_vm2, %v7970_v57 }
 0x69a   : > { %12256 = vmatmul.mubr.msk.f32.gmra.mrb[34].mxu1 %vm4548_vm2, %v7971_v59 }
 0x69b   : > { %12269 = vmatprep.mubr.msk.f32.mxu1 %vm13453_vm5, %v13451_v48 }
 0x729   : > { %v12206_v4 = vpop.f32.mrb[0].mxu1 }
 0x72a   : > { %v8371_v62 = vadd.f32 %v12206_v4, %v15070_v2  ;;  %v8148_v5 = vpop.f32.mrb[1].mxu1 }
 0x72b   : > { %v8370_v6 = vadd.f32 %v15070_v2, %v8148_v5 }
 0x72c   : > { %v8407_v63 = vmax.f32 %v8371_v62, 0.0 }
 0x72d   : > { %v8406_v7 = vmax.f32 %v8370_v6, 0.0  ;;  %v12209_v8 = vpop.f32.mrb[2].mxu1 }
 0x72e   : > { %8443 = vst.msk [vmem:[#allocation3 + $0x8] sm:$0xff] %vm4548_vm2, %v8407_v63  ;;  %v8373_v9 = vadd.f32 %v12209_v8, %v15070_v2  ;;  %v8158_v10 = vpop.f32.mrb[3].mxu1 }
 0x72f   : > { %8442 = vst.msk [vmem:[#allocation3] sm:$0xff] %vm4548_vm2, %v8406_v7  ;;  %v8372_v11 = vadd.f32 %v15070_v2, %v8158_v10 }
 0x730   : > { %v8409_v12 = vmax.f32 %v8373_v9, 0.0 }
 0x731   : > { %v8408_v14 = vmax.f32 %v8372_v11, 0.0  ;;  %v12212_v15 = vpop.f32.mrb[4].mxu1 }
 0x732   : > { %8445 = vst.msk [vmem:[#allocation3 + $0x18] sm:$0xff] %vm4548_vm2, %v8409_v12  ;;  %v8375_v1 = vadd.f32 %v12212_v15, %v15070_v2  ;;  %v8168_v17 = vpop.f32.mrb[5].mxu1 }
 0x733   : > { %8444 = vst.msk [vmem:[#allocation3 + $0x10] sm:$0xff] %vm4548_vm2, %v8408_v14  ;;  %v8374_v18 = vadd.f32 %v15070_v2, %v8168_v17 }
 0x734   : > { %v8411_v3 = vmax.f32 %v8375_v1, 0.0 }
 0x735   : > { %v8410_v19 = vmax.f32 %v8374_v18, 0.0  ;;  %v12215_v0 = vpop.f32.mrb[6].mxu1  ;;  %v8495_v35 = vld [vmem:[#allocation3 + $0x8] sm:$0xff] }
 0x736   : > { %8447 = vst.msk [vmem:[#allocation3 + $0x28] sm:$0xff] %vm4548_vm2, %v8411_v3  ;;  %v8377_v20 = vadd.f32 %v12215_v0, %v15070_v2  ;;  %v8178_v21 = vpop.f32.mrb[7].mxu1  ;;  %v8494_v34 = vld [vmem:[#allocation3] sm:$0xff] }
 0x737   : > { %8446 = vst.msk [vmem:[#allocation3 + $0x20] sm:$0xff] %vm4548_vm2, %v8410_v19  ;;  %v8376_v22 = vadd.f32 %v15070_v2, %v8178_v21 }
 0x738   : > { %v8413_v23 = vmax.f32 %v8377_v20, 0.0 }
 0x739   : > { %v8412_v24 = vmax.f32 %v8376_v22, 0.0  ;;  %v12218_v25 = vpop.f32.mrb[8].mxu1 }
 0x73a   : > { %8449 = vst.msk [vmem:[#allocation3 + $0x38] sm:$0xff] %vm4548_vm2, %v8413_v23  ;;  %v8379_v13 = vadd.f32 %v12218_v25, %v15070_v2  ;;  %v8188_v27 = vpop.f32.mrb[9].mxu1  ;;  %v8496_v16 = vld [vmem:[#allocation3 + $0x12] sm:$0xff] }
 0x73b   : > { %8448 = vst.msk [vmem:[#allocation3 + $0x30] sm:$0xff] %vm4548_vm2, %v8412_v24  ;;  %v8378_v28 = vadd.f32 %v15070_v2, %v8188_v27  ;;  %v8498_v26 = vmax.f32 %v8494_v34, %v8496_v16 }
 0x73c   : > { %v8415_v30 = vmax.f32 %v8379_v13, 0.0 }
 0x73d   : > { %v8414_v31 = vmax.f32 %v8378_v28, 0.0  ;;  %v12221_v32 = vpop.f32.mrb[10].mxu1 }
 0x73e   : > { %8451 = vst.msk [vmem:[#allocation3 + $0x48] sm:$0xff] %vm4548_vm2, %v8415_v30  ;;  %v8381_v61 = vadd.f32 %v12221_v32, %v15070_v2  ;;  %v8198_v33 = vpop.f32.mrb[11].mxu1  ;;  %v8497_v36 = vld [vmem:[#allocation3 + $0x1a] sm:$0xff]  ;;  %v8649_v54 = vld [vmem:[#allocation3 + $0x24] sm:$0xff] }
 0x73f   : > { %8450 = vst.msk [vmem:[#allocation3 + $0x40] sm:$0xff] %vm4548_vm2, %v8414_v31  ;;  %v8380_v37 = vadd.f32 %v15070_v2, %v8198_v33  ;;  %v8499_v38 = vmax.f32 %v8495_v35, %v8497_v36 }
 0x740   : > { %v8417_v39 = vmax.f32 %v8381_v61, 0.0 }
 0x741   : > { %v8416_v29 = vmax.f32 %v8380_v37, 0.0  ;;  %v12224_v40 = vpop.f32.mrb[12].mxu1  ;;  %v12371_v41 = vpack.c.bf16 %v8499_v38, %v8498_v26 }
 0x742   : > { %8453 = vst.msk [vmem:[#allocation3 + $0x58] sm:$0xff] %vm4548_vm2, %v8417_v39  ;;  %v8383_v42 = vadd.f32 %v12224_v40, %v15070_v2  ;;  %v8208_v44 = vpop.f32.mrb[13].mxu1  ;;  %v8651_v50 = vld [vmem:[#allocation3 + $0x36] sm:$0xff]  ;;  %v8650_v55 = vld [vmem:[#allocation3 + $0x2c] sm:$0xff] }
 0x743   : > { %8452 = vst.msk [vmem:[#allocation3 + $0x50] sm:$0xff] %vm4548_vm2, %v8416_v29  ;;  %v8382_v45 = vadd.f32 %v15070_v2, %v8208_v44  ;;  %12372 = vmatpush3.bf16.msra.mxu0 %v12371_v41  ;;  %12375 = vmatpush3.bf16.msra.mxu1 %v12371_v41  ;;  %v8653_v58 = vmax.f32 %v8649_v54, %v8651_v50 }
 0x744   : > { %v8419_v43 = vmax.f32 %v8383_v42, 0.0  ;;  %12376 = vmatprep.subr.bf16.mxu0 %v13452_v60  ;;  %12379 = vmatprep.subr.bf16.mxu1 %v13452_v60 }
 0x745   : > { %v8418_v51 = vmax.f32 %v8382_v45, 0.0  ;;  %v12227_v46 = vpop.f32.mrb[14].mxu1  ;;  %v8797_v12 = vld [vmem:[#allocation3 + $0x48] sm:$0xff] }
 0x746   : > { %8455 = vst.msk [vmem:[#allocation3 + $0x68] sm:$0xff] %vm4548_vm2, %v8419_v43  ;;  %v8385_v52 = vadd.f32 %v12227_v46, %v15070_v2  ;;  %v8218_v53 = vpop.f32.mrb[15].mxu1  ;;  %12263 = vmatmul.mubr.msk.f32.vlgmr.msra.gmra.mrb[36].mxu0 %vm8500_vm6, %v15098_v47  ;;  %12270 = vmatmul.mubr.msk.f32.vlgmr.msra.gmra.mrb[36].mxu1 %vm8500_vm6, %v15100_v49  ;;  %v8652_v56 = vld [vmem:[#allocation3 + $0x3e] sm:$0xff] }
 0x747   : > { %8454 = vst.msk [vmem:[#allocation3 + $0x60] sm:$0xff] %vm4548_vm2, %v8418_v51  ;;  %v8384_v57 = vadd.f32 %v15070_v2, %v8218_v53  ;;  %v8654_v59 = vmax.f32 %v8650_v55, %v8652_v56  ;;  %12276 = vmatprep.mubr.msk.f32.mxu0 %vm13453_vm5, %v13451_v48  ;;  %12283 = vmatprep.mubr.msk.f32.mxu1 %vm13453_vm5, %v13451_v48 }
 0x748   : > { %v8421_v4 = vmax.f32 %v8385_v52, 0.0 }
 0x749   : > { %v8420_v62 = vmax.f32 %v8384_v57, 0.0  ;;  %v12230_v5 = vpop.f32.mrb[16].mxu1  ;;  %v12377_v6 = vpack.c.bf16 %v8654_v59, %v8653_v58 }
 0x74a   : > { %8457 = vst.msk [vmem:[#allocation3 + $0x78] sm:$0xff] %vm4548_vm2, %v8421_v4  ;;  %v8387_v63 = vadd.f32 %v12230_v5, %v15070_v2  ;;  %v8228_v7 = vpop.f32.mrb[17].mxu1  ;;  %v8798_v1 = vld [vmem:[#allocation3 + $0x50] sm:$0xff] }
 0x74b   : > { %8456 = vst.msk [vmem:[#allocation3 + $0x70] sm:$0xff] %vm4548_vm2, %v8420_v62  ;;  %v8386_v8 = vadd.f32 %v15070_v2, %v8228_v7  ;;  %12378 = vmatpush3.bf16.msra.mxu0 %v12377_v6  ;;  %12381 = vmatpush3.bf16.msra.mxu1 %v12377_v6 }
 0x74c   : > { %v8423_v9 = vmax.f32 %v8387_v63, 0.0  ;;  %12382 = vmatprep.subr.bf16.mxu0 %v13452_v60  ;;  %12385 = vmatprep.subr.bf16.mxu1 %v13452_v60 }
 0x74d   : > { %v8422_v10 = vmax.f32 %v8386_v8, 0.0  ;;  %v12233_v11 = vpop.f32.mrb[18].mxu1 }
 0x74e   : > { %8459 = vst.msk [vmem:[#allocation3 + $0x88] sm:$0xff] %vm4548_vm2, %v8423_v9  ;;  %v8389_v14 = vadd.f32 %v12233_v11, %v15070_v2  ;;  %v8238_v15 = vpop.f32.mrb[19].mxu1  ;;  %12277 = vmatmul.mubr.msk.f32.vlgmr.msra.gmra.mrb[38].mxu0 %vm8500_vm6, %v15098_v47  ;;  %12284 = vmatmul.mubr.msk.f32.vlgmr.msra.gmra.mrb[38].mxu1 %vm8500_vm6, %v15100_v49  ;;  %v8799_v17 = vld [vmem:[#allocation3 + $0x5a] sm:$0xff]  ;;  %v8800_v18 = vld [vmem:[#allocation3 + $0x62] sm:$0xff] }
 0x74f   : > { %8458 = vst.msk [vmem:[#allocation3 + $0x80] sm:$0xff] %vm4548_vm2, %v8422_v10  ;;  %v8388_v3 = vadd.f32 %v15070_v2, %v8238_v15  ;;  %v8801_v19 = vmax.f32 %v8797_v12, %v8799_v17  ;;  %v8802_v0 = vmax.f32 %v8798_v1, %v8800_v18  ;;  %12290 = vmatprep.mubr.msk.f32.mxu0 %vm13453_vm5, %v13451_v48 }
 0x750   : > { %12297 = vmatprep.mubr.msk.f32.mxu1 %vm13453_vm5, %v13451_v48  ;;  %v8425_v20 = vmax.f32 %v8389_v14, 0.0 }
 0x751   : > { %v8424_v21 = vmax.f32 %v8388_v3, 0.0  ;;  %v12236_v22 = vpop.f32.mrb[20].mxu1  ;;  %v12383_v23 = vpack.c.bf16 %v8802_v0, %v8801_v19 }
 0x752   : > { %8461 = vst.msk [vmem:[#allocation3 + $0x98] sm:$0xff] %vm4548_vm2, %v8425_v20  ;;  %v8391_v24 = vadd.f32 %v12236_v22, %v15070_v2  ;;  %v8248_v25 = vpop.f32.mrb[21].mxu1  ;;  %v8945_v16 = vld [vmem:[#allocation3 + $0x6c] sm:$0xff]  ;;  %v8946_v61 = vld [vmem:[#allocation3 + $0x74] sm:$0xff] }
 0x753   : > { %8460 = vst.msk [vmem:[#allocation3 + $0x90] sm:$0xff] %vm4548_vm2, %v8424_v21  ;;  %v8390_v13 = vadd.f32 %v15070_v2, %v8248_v25  ;;  %12384 = vmatpush3.bf16.msra.mxu0 %v12383_v23  ;;  %12387 = vmatpush3.bf16.msra.mxu1 %v12383_v23 }
 0x754   : > { %v8427_v27 = vmax.f32 %v8391_v24, 0.0  ;;  %12388 = vmatprep.subr.bf16.mxu0 %v13452_v60  ;;  %12391 = vmatprep.subr.bf16.mxu1 %v13452_v60 }
 0x755   : > { %v8426_v28 = vmax.f32 %v8390_v13, 0.0  ;;  %v12239_v30 = vpop.f32.mrb[22].mxu1 }
 0x756   : > { %8463 = vst.msk [vmem:[#allocation3 + $0xa8] sm:$0xff] %vm4548_vm2, %v8427_v27  ;;  %v8393_v31 = vadd.f32 %v12239_v30, %v15070_v2  ;;  %v8258_v32 = vpop.f32.mrb[23].mxu1  ;;  %12291 = vmatmul.mubr.msk.f32.vlgmr.msra.gmra.mrb[40].mxu0 %vm8500_vm6, %v15098_v47  ;;  %12298 = vmatmul.mubr.msk.f32.vlgmr.msra.gmra.mrb[40].mxu1 %vm8500_vm6, %v15100_v49  ;;  %v8947_v33 = vld [vmem:[#allocation3 + $0x7e] sm:$0xff]  ;;  %v8948_v34 = vld [vmem:[#allocation3 + $0x86] sm:$0xff] }
 0x757   : > { %8462 = vst.msk [vmem:[#allocation3 + $0xa0] sm:$0xff] %vm4548_vm2, %v8426_v28  ;;  %v8392_v35 = vadd.f32 %v15070_v2, %v8258_v32  ;;  %v8949_v36 = vmax.f32 %v8945_v16, %v8947_v33  ;;  %v8950_v37 = vmax.f32 %v8946_v61, %v8948_v34  ;;  %12304 = vmatprep.mubr.msk.f32.mxu0 %vm13453_vm5, %v13451_v48 }
 0x758   : > { %12311 = vmatprep.mubr.msk.f32.mxu1 %vm13453_vm5, %v13451_v48  ;;  %v8429_v26 = vmax.f32 %v8393_v31, 0.0 }
 0x759   : > { %v8428_v38 = vmax.f32 %v8392_v35, 0.0  ;;  %v12242_v39 = vpop.f32.mrb[24].mxu1  ;;  %v12389_v29 = vpack.c.bf16 %v8950_v37, %v8949_v36  ;;  %v9094_v59 = vld [vmem:[#allocation3 + $0x98] sm:$0xff] }
 0x75a   : > { %8465 = vst.msk [vmem:[#allocation3 + $0xb8] sm:$0xff] %vm4548_vm2, %v8429_v26  ;;  %v8395_v40 = vadd.f32 %v12242_v39, %v15070_v2  ;;  %v8268_v41 = vpop.f32.mrb[25].mxu1  ;;  %v9093_v58 = vld [vmem:[#allocation3 + $0x90] sm:$0xff] }
 0x75b   : > { %8464 = vst.msk [vmem:[#allocation3 + $0xb0] sm:$0xff] %vm4548_vm2, %v8428_v38  ;;  %v8394_v42 = vadd.f32 %v15070_v2, %v8268_v41  ;;  %12390 = vmatpush3.bf16.msra.mxu0 %v12389_v29  ;;  %12393 = vmatpush3.bf16.msra.mxu1 %v12389_v29 }
 0x75c   : > { %v8431_v44 = vmax.f32 %v8395_v40, 0.0  ;;  %12394 = vmatprep.subr.bf16.mxu0 %v13452_v60  ;;  %12397 = vmatprep.subr.bf16.mxu1 %v13452_v60 }
 0x75d   : > { %v8430_v45 = vmax.f32 %v8394_v42, 0.0  ;;  %v12245_v43 = vpop.f32.mrb[26].mxu1 }
 0x75e   : > { %8467 = vst.msk [vmem:[#allocation3 + $0xc8] sm:$0xff] %vm4548_vm2, %v8431_v44  ;;  %v8397_v50 = vadd.f32 %v12245_v43, %v15070_v2  ;;  %v8278_v51 = vpop.f32.mrb[27].mxu1  ;;  %12305 = vmatmul.mubr.msk.f32.vlgmr.msra.gmra.mrb[42].mxu0 %vm8500_vm6, %v15098_v47  ;;  %12312 = vmatmul.mubr.msk.f32.vlgmr.msra.gmra.mrb[42].mxu1 %vm8500_vm6, %v15100_v49  ;;  %v9095_v53 = vld [vmem:[#allocation3 + $0xa2] sm:$0xff] }
 0x75f   : > { %8466 = vst.msk [vmem:[#allocation3 + $0xc0] sm:$0xff] %vm4548_vm2, %v8430_v45  ;;  %v8396_v46 = vadd.f32 %v15070_v2, %v8278_v51  ;;  %12318 = vmatprep.mubr.msk.f32.mxu0 %vm13453_vm5, %v13451_v48  ;;  %12325 = vmatprep.mubr.msk.f32.mxu1 %vm13453_vm5, %v13451_v48  ;;  %v9097_v5 = vmax.f32 %v9093_v58, %v9095_v53 }
 0x760   : > { %v8433_v52 = vmax.f32 %v8397_v50, 0.0 }
 0x761   : > { %v8432_v54 = vmax.f32 %v8396_v46, 0.0  ;;  %v12248_v55 = vpop.f32.mrb[28].mxu1 }
 0x762   : > { %8469 = vst.msk [vmem:[#allocation3 + $0xd8] sm:$0xff] %vm4548_vm2, %v8433_v52  ;;  %v8399_v56 = vadd.f32 %v12248_v55, %v15070_v2  ;;  %v8288_v57 = vpop.f32.mrb[29].mxu1  ;;  %v9096_v4 = vld [vmem:[#allocation3 + $0xaa] sm:$0xff]  ;;  %v9241_v19 = vld [vmem:[#allocation3 + $0xb4] sm:$0xff] }
 0x763   : > { %8468 = vst.msk [vmem:[#allocation3 + $0xd0] sm:$0xff] %vm4548_vm2, %v8432_v54  ;;  %v8398_v62 = vadd.f32 %v15070_v2, %v8288_v57  ;;  %v9098_v6 = vmax.f32 %v9094_v59, %v9096_v4 }
 0x764   : > { %v8435_v63 = vmax.f32 %v8399_v56, 0.0 }
 0x765   : > { %v8434_v7 = vmax.f32 %v8398_v62, 0.0  ;;  %v12251_v8 = vpop.f32.mrb[30].mxu1  ;;  %v12395_v9 = vpack.c.bf16 %v9098_v6, %v9097_v5 }
 0x766   : > { %8471 = vst.msk [vmem:[#allocation3 + $0xe8] sm:$0xff] %vm4548_vm2, %v8435_v63  ;;  %v8401_v10 = vadd.f32 %v12251_v8, %v15070_v2  ;;  %v8298_v11 = vpop.f32.mrb[31].mxu1  ;;  %v9243_v15 = vld [vmem:[#allocation3 + $0xc6] sm:$0xff]  ;;  %v9242_v0 = vld [vmem:[#allocation3 + $0xbc] sm:$0xff] }
 0x767   : > { %8470 = vst.msk [vmem:[#allocation3 + $0xe0] sm:$0xff] %vm4548_vm2, %v8434_v7  ;;  %v8400_v12 = vadd.f32 %v15070_v2, %v8298_v11  ;;  %12396 = vmatpush3.bf16.msra.mxu0 %v12395_v9  ;;  %12399 = vmatpush3.bf16.msra.mxu1 %v12395_v9  ;;  %v9245_v22 = vmax.f32 %v9241_v19, %v9243_v15 }
 0x768   : > { %v8437_v14 = vmax.f32 %v8401_v10, 0.0  ;;  %12400 = vmatprep.subr.bf16.mxu0 %v13452_v60  ;;  %12403 = vmatprep.subr.bf16.mxu1 %v13452_v60 }
 0x769   : > { %v8436_v1 = vmax.f32 %v8400_v12, 0.0  ;;  %v12254_v17 = vpop.f32.mrb[32].mxu1  ;;  %v9389_v61 = vld [vmem:[#allocation3 + $0xd8] sm:$0xff] }
 0x76a   : > { %8473 = vst.msk [vmem:[#allocation3 + $0xf8] sm:$0xff] %vm4548_vm2, %v8437_v14  ;;  %v8403_v18 = vadd.f32 %v12254_v17, %v15070_v2  ;;  %v8308_v3 = vpop.f32.mrb[33].mxu1  ;;  %12319 = vmatmul.mubr.msk.f32.vlgmr.msra.gmra.mrb[44].mxu0 %vm8500_vm6, %v15098_v47  ;;  %12326 = vmatmul.mubr.msk.f32.vlgmr.msra.gmra.mrb[44].mxu1 %vm8500_vm6, %v15100_v49  ;;  %v9244_v20 = vld [vmem:[#allocation3 + $0xce] sm:$0xff] }
 0x76b   : > { %8472 = vst.msk [vmem:[#allocation3 + $0xf0] sm:$0xff] %vm4548_vm2, %v8436_v1  ;;  %v8402_v21 = vadd.f32 %v15070_v2, %v8308_v3  ;;  %v9246_v23 = vmax.f32 %v9242_v0, %v9244_v20  ;;  %12332 = vmatprep.mubr.msk.f32.mxu0 %vm13453_vm5, %v13451_v48  ;;  %12339 = vmatprep.mubr.msk.f32.mxu1 %vm13453_vm5, %v13451_v48 }
 0x76c   : > { %v8439_v24 = vmax.f32 %v8403_v18, 0.0 }
 0x76d   : > { %v8438_v25 = vmax.f32 %v8402_v21, 0.0  ;;  %v12257_v13 = vpop.f32.mrb[34].mxu1  ;;  %v12401_v27 = vpack.c.bf16 %v9246_v23, %v9245_v22 }
 0x76e   : > { %8475 = vst.msk [vmem:[#allocation3 + $0x108] sm:$0xff] %vm4548_vm2, %v8439_v24  ;;  %v8405_v28 = vadd.f32 %v12257_v13, %v15070_v2  ;;  %v8318_v30 = vpop.f32.mrb[35].mxu1  ;;  %v9390_v33 = vld [vmem:[#allocation3 + $0xe0] sm:$0xff] }
 0x76f   : > { %8474 = vst.msk [vmem:[#allocation3 + $0x100] sm:$0xff] %vm4548_vm2, %v8438_v25  ;;  %v8404_v16 = vadd.f32 %v15070_v2, %v8318_v30  ;;  %12402 = vmatpush3.bf16.msra.mxu0 %v12401_v27  ;;  %12405 = vmatpush3.bf16.msra.mxu1 %v12401_v27 }
 0x770   : > { %v8441_v31 = vmax.f32 %v8405_v28, 0.0  ;;  %12406 = vmatprep.subr.bf16.mxu0 %v13452_v60  ;;  %12409 = vmatprep.subr.bf16.mxu1 %v13452_v60 }
 0x771   : > { %v8440_v32 = vmax.f32 %v8404_v16, 0.0 }
 0x772   : > { %8477 = vst.msk [vmem:[#allocation3 + $0x118] sm:$0x3f] %vm4591_vm4, %v8441_v31  ;;  %12333 = vmatmul.mubr.msk.f32.vlgmr.msra.gmra.mrb[46].mxu0 %vm8500_vm6, %v15098_v47  ;;  %12340 = vmatmul.mubr.msk.f32.vlgmr.msra.gmra.mrb[46].mxu1 %vm8500_vm6, %v15100_v49  ;;  %v9391_v34 = vld [vmem:[#allocation3 + $0xea] sm:$0xff]  ;;  %v9392_v2 = vld [vmem:[#allocation3 + $0xf2] sm:$0xff] }
 0x773   : > { %8476 = vst.msk [vmem:[#allocation3 + $0x110] sm:$0xff] %vm4548_vm2, %v8440_v32  ;;  %v9393_v35 = vmax.f32 %v9389_v61, %v9391_v34  ;;  %v9394_v36 = vmax.f32 %v9390_v33, %v9392_v2  ;;  %12346 = vmatprep.mubr.msk.f32.mxu0 %vm13453_vm5, %v13451_v48  ;;  %12353 = vmatprep.mubr.msk.f32.mxu1 %vm13453_vm5, %v13451_v48 }
 0x775   : > { %v12407_v37 = vpack.c.bf16 %v9394_v36, %v9393_v35 }
 0x776   : > { %v9537_v26 = vld [vmem:[#allocation3 + $0xfc] sm:$0xff]  ;;  %v9538_v38 = vld [vmem:[#allocation3 + $0x104] sm:$0xff] }
 0x777   : > { %12408 = vmatpush3.bf16.msra.mxu0 %v12407_v37  ;;  %12411 = vmatpush3.bf16.msra.mxu1 %v12407_v37 }
 0x778   : > { %12412 = vmatprep.subr.bf16.mxu0 %v13452_v60  ;;  %12415 = vmatprep.subr.bf16.mxu1 %v13452_v60 }
 0x77a   : > { %12347 = vmatmul.mubr.msk.f32.vlgmr.msra.gmra.mrb[48].mxu0 %vm8500_vm6, %v15098_v47  ;;  %12354 = vmatmul.mubr.msk.f32.vlgmr.msra.gmra.mrb[48].mxu1 %vm8500_vm6, %v15100_v49  ;;  %v9539_v39 = vld [vmem:[#allocation3 + $0x10e] sm:$0xff]  ;;  %v9540_v29 = vld [vmem:[#allocation3 + $0x116] sm:$0xff] }
 0x77b   : > { %v9541_v40 = vmax.f32 %v9537_v26, %v9539_v39  ;;  %v9542_v41 = vmax.f32 %v9538_v38, %v9540_v29  ;;  %12360 = vmatprep.mubr.msk.f32.mxu0 %vm13453_vm5, %v13451_v48  ;;  %12367 = vmatprep.mubr.msk.f32.mxu1 %vm13453_vm5, %v13451_v48 }
 0x77d   : > { %v12413_v60 = vpack.c.bf16 %v9542_v41, %v9541_v40 }
 0x77f   : > { %12414 = vmatpush3.bf16.msra.mxu0 %v12413_v60  ;;  %12417 = vmatpush3.bf16.msra.mxu1 %v12413_v60 }
 0x782   : > { %12361 = vmatmul.mubr.msk.f32.vlgmr.msra.gmra.mrb[50].mxu0 %vm8500_vm6, %v15098_v47  ;;  %12368 = vmatmul.mubr.msk.f32.vlgmr.msra.gmra.mrb[50].mxu1 %vm8500_vm6, %v15100_v49 }
 0x819   : > { %v8570_v47 = vpop.f32.mrb[36].mxu0  ;;  %v8643_v49 = vpop.f32.mrb[36].mxu1 }
 0x81a   : > { %v8647_v42 = vmax.f32 %v8570_v47, %v8643_v49  ;;  %v12264_v44 = vpop.f32.mrb[37].mxu0  ;;  %v12271_v45 = vpop.f32.mrb[37].mxu1 }
 0x81c   : > { %8648 = vst.msk [vmem:[%s15223_s25 + $0xb] sm:$0xff] %vm4548_vm2, %v8647_v42 }
 0x821   : > { %v8721_v43 = vpop.f32.mrb[38].mxu0  ;;  %v8791_v50 = vpop.f32.mrb[38].mxu1 }
 0x822   : > { %v8795_v51 = vmax.f32 %v8721_v43, %v8791_v50  ;;  %v12278_v46 = vpop.f32.mrb[39].mxu0  ;;  %v12285_v52 = vpop.f32.mrb[39].mxu1 }
 0x824   : > { %8796 = vst.msk [vmem:[%s15223_s25 + $0x15] sm:$0xff] %vm4548_vm2, %v8795_v51 }
 0x829   : > { %v8869_v53 = vpop.f32.mrb[40].mxu0  ;;  %v8939_v54 = vpop.f32.mrb[40].mxu1 }
 0x82a   : > { %v8943_v48 = vmax.f32 %v8869_v53, %v8939_v54  ;;  %v12292_v55 = vpop.f32.mrb[41].mxu0  ;;  %v12299_v56 = vpop.f32.mrb[41].mxu1 }
 0x82c   : > { %8944 = vst.msk [vmem:[%s15223_s25 + $0x1f] sm:$0xff] %vm4548_vm2, %v8943_v48 }
 0x831   : > { %v9017_v57 = vpop.f32.mrb[42].mxu0  ;;  %v9087_v58 = vpop.f32.mrb[42].mxu1 }
 0x832   : > { %v9091_v59 = vmax.f32 %v9017_v57, %v9087_v58  ;;  %v12306_v4 = vpop.f32.mrb[43].mxu0  ;;  %v12313_v62 = vpop.f32.mrb[43].mxu1 }
 0x834   : > { %9092 = vst.msk [vmem:[%s15223_s25 + $0x29] sm:$0xff] %vm4548_vm2, %v9091_v59 }
 0x83d   : > { %v9165_v5 = vpop.f32.mrb[44].mxu0  ;;  %v9235_v6 = vpop.f32.mrb[44].mxu1 }
 0x83e   : > { %v9239_v63 = vmax.f32 %v9165_v5, %v9235_v6  ;;  %v12320_v7 = vpop.f32.mrb[45].mxu0  ;;  %v12327_v8 = vpop.f32.mrb[45].mxu1 }
 0x840   : > { %9240 = vst.msk [vmem:[%s15223_s25 + $0x33] sm:$0xff] %vm4548_vm2, %v9239_v63 }
 0x845   : > { %v9313_v9 = vpop.f32.mrb[46].mxu0  ;;  %v9383_v10 = vpop.f32.mrb[46].mxu1 }
 0x846   : > { %v9387_v11 = vmax.f32 %v9313_v9, %v9383_v10  ;;  %v12334_v12 = vpop.f32.mrb[47].mxu0  ;;  %v12341_v14 = vpop.f32.mrb[47].mxu1 }
 0x848   : > { %9388 = vst.msk [vmem:[%s15223_s25 + $0x3d] sm:$0xff] %vm4548_vm2, %v9387_v11 }
 0x84d   : > { %v9461_v15 = vpop.f32.mrb[48].mxu0  ;;  %v9531_v1 = vpop.f32.mrb[48].mxu1 }
 0x84e   : > { %v9535_v17 = vmax.f32 %v9461_v15, %v9531_v1  ;;  %v12348_v18 = vpop.f32.mrb[49].mxu0  ;;  %v12355_v3 = vpop.f32.mrb[49].mxu1 }
 0x850   : > { %9536 = vst.msk [vmem:[%s15223_s25 + $0x47] sm:$0xff] %vm4548_vm2, %v9535_v17 }
 0x855   : > { %v9609_v19 = vpop.f32.mrb[50].mxu0  ;;  %v9679_v0 = vpop.f32.mrb[50].mxu1 }
 0x856   : > { %v9683_v20 = vmax.f32 %v9609_v19, %v9679_v0  ;;  %v12362_v21 = vpop.f32.mrb[51].mxu0  ;;  %v12369_v22 = vpop.f32.mrb[51].mxu1 }
 0x858   : > { %9684 = vst.msk [vmem:[%s15223_s25 + $0x51] sm:$0xff] %vm4548_vm2, %v9683_v20 }
 0x859   : > { %13367 = shalt.err (!%p13364_p9)
}
 0x85a   : > { %s13368_s16 = scalar_lea.hbm %s15282_s14, 1664  ;;  %s13372_s12 = scalar_lea.hbm %s15338_s8, 3328 }
 0x85b   : > { %p13369_p4 = scmp.ne.s32.totalorder %s15282_s14, %s13368_s16  ;;  %p13373_p5 = scmp.lt.u32.totalorder %s15282_s14, %s15338_s8 }
 0x85c   : > { %p13374_p2 = scmp.lt.u32.totalorder %s13372_s12, %s13368_s16  ;;  %p13376_p10 = scmp.lt.u32.totalorder %s13368_s16, %s15282_s14 }
 0x85d   : > { %p13370_p3 = pnand %p13369_p4, %p15367_p1 }
 0x85e   : > { %p13375_p7 = por %p13374_p2, %p13373_p5 }
 0x85f   : > { %p13371_p0 = pneg %p13370_p3 }
 0x860   : > { %p13377_p11 = por %p13376_p10, %p13375_p7 }
 0x862   : > { %p13378_p12 = pnand %p13377_p11, %p13371_p0 }
 0x864   : > { %13381 = shalt.err (!%p13378_p12)
}
 0x865   : > { %s13455_s18 = smov 128   ;;  %s13456_s20 = smov 8  }
 0x866   : > { %13029 = dma.vmem_to_hbm [thread:$0]  (%p15367_p1), %s15284_s21, 1664, %s15282_s14, %s9686_s23, %s13455_s18, %s13455_s18, %s13456_s20  }
 0x867 PF: > { %s9714_s11 = sand.u32 1, %s13424_s27   ;;  %p15368_p13 = scmp.ne.s32.totalorder %s15354_s10, 0 }
 0x868   : > { %p15369_p8 = scmp.ge.s32.totalorder %s13436_s30, 2  ;;  %s9715_s2 = scalar_lea.sflag [#allocation6], %s9714_s11 }
 0x86a   : > { %p13058_p6 = pnand %p15369_p8, %p15368_p13 }
 0x86c   : > { %13419 = dma.done.wait (!%p13058_p6), %s9715_s2, 1664  }
 0x86d   : > { %13421 = vsyncadd (!%p13058_p6), %s9715_s2, 4294965632  ;;  %p25_p9 = scmp.ge.s32.totalorder %s13698_s15, 4   ;;  %s15370_s27 = smov %s13428_s28 }
 0x86e   : > { %s15371_s28 = smov %s13432_s29  ;;  %s15372_s29 = smov %s13710_s22 }
 0x86f   : > { %s15373_s30 = smov %s13698_s15  ;;  %27 = sbr.rel (!%p25_p9) target bundleno = 12 (0xc), region = 141 }
 0x876   :  { %9720 = vsyncpa [#allocation5], 1 }
 0x877   :  { %9722 = vsyncpa [#allocation5 + $0x1], 1 }
 0x878   :  { %9723 = vsyncpa [#allocation8], 1 }
 0x879   :  { %9724 = vsyncpa [#allocation11], 1 }
 0x87a   :  { %9725 = vsyncpa [#allocation14], 1 }
 0x87b   :  { %9726 = vsyncpa [#allocation17], 1 }
 0x87c   :  { %9727 = vsyncpa [#allocation6], 1 }
 0x87d   :  { %9729 = vsyncpa [#allocation6 + $0x1], 1 }

</bundles_post_ra>
